<compile_context>
chip_gen: v6e
topology: v6e:2x2x1
jax: 0.10.0
libtpu: 0.0.40
codegen_flags: <defaults>
</compile_context>

<pallas_src>
import jax
import jax.numpy as jnp
from jax.experimental import pallas as pl
from jax.experimental.pallas import tpu as pltpu

# --- configuration (cfg.Z_HIDDEN stand-in) -----------------------------------
Z_HIDDEN = 32
FEATURE_DIM = 32                  # input_size - Z_HIDDEN
INPUT_SIZE = FEATURE_DIM + Z_HIDDEN
OUTPUT_SIZE = 8
OUT_PAD = 128                     # lane-dense padded output width
BN_EPS = 1e-5

GROUP_SIZE = 8                    # module forward batch (BN statistics batch)
GROUPS_PER_TILE = 16              # groups stacked per grid step
M_TILE = GROUP_SIZE * GROUPS_PER_TILE   # 128 rows per grid step (full MXU M)


def _bn_relu_grouped(h, gamma, beta):
    """Training-mode BatchNorm1d + ReLU applied independently to each
    GROUP_SIZE-row group of h ([M,N] f32).  Two-pass (stable) biased variance;
    scale/shift folded to per-row s/t so the full-tile work is 3 VPU ops after
    the (h - mean) already needed for the variance."""
    m, n = h.shape
    g = m // GROUP_SIZE
    hg = h.reshape(g, GROUP_SIZE, n)
    mean = jnp.mean(hg, axis=1, keepdims=True)          # [g,1,n]
    d = hg - mean
    var = jnp.mean(d * d, axis=1, keepdims=True)        # biased, two-pass
    s = gamma * jax.lax.rsqrt(var + BN_EPS)             # [g,1,n] (small row)
    # (h-mean)*s + beta == h*s + (beta - mean*s); reuse d -> relu(d*s + beta)
    return jnp.maximum(d * s + beta, 0.0).reshape(m, n)


def dqn_z_kernel(
    x_ref,
    w_in_ref, g_in_ref, be_in_ref,       # fused input_layer1/2 (block-diag W)
    wh1_ref, gh1_ref, beh1_ref,          # hidden1
    wh2_ref, gh2_ref, beh2_ref,          # hidden2
    wo1_ref, go1_ref, beo1_ref,          # output_layer[0] Linear+BN+ReLU
    wo2_ref, bo2_ref,                    # final Linear (lane-padded to 128)
    out_ref,
):
    # Fused input layers: [M,64] x [64,512] block-diagonal matmul, then
    # per-group BN+ReLU over all 512 columns (BN is per-feature, so exact).
    x = x_ref[...].astype(jnp.bfloat16)
    h = jnp.dot(x, w_in_ref[...], preferred_element_type=jnp.float32)
    h = _bn_relu_grouped(h, g_in_ref[...], be_in_ref[...])

    # hidden1
    h = jnp.dot(h.astype(jnp.bfloat16), wh1_ref[...],
                preferred_element_type=jnp.float32)
    h = _bn_relu_grouped(h, gh1_ref[...], beh1_ref[...])

    # hidden2
    h = jnp.dot(h.astype(jnp.bfloat16), wh2_ref[...],
                preferred_element_type=jnp.float32)
    h = _bn_relu_grouped(h, gh2_ref[...], beh2_ref[...])

    # output_layer[0:3]: Linear(512,256) + BN + ReLU
    h = jnp.dot(h.astype(jnp.bfloat16), wo1_ref[...],
                preferred_element_type=jnp.float32)
    h = _bn_relu_grouped(h, go1_ref[...], beo1_ref[...])

    # output_layer[3]: Linear(256, out) padded to 128 lanes (unmasked store)
    out = jnp.dot(h.astype(jnp.bfloat16), wo2_ref[...],
                  preferred_element_type=jnp.float32) + bo2_ref[...]
    out_ref[...] = out.astype(out_ref.dtype)


def dqn_z_forward(x, kparams):
    """x: [num_groups*GROUP_SIZE, INPUT_SIZE]; every consecutive GROUP_SIZE
    rows form one independent module forward (one BN batch).  Returns
    [rows, OUTPUT_SIZE]."""
    total_rows = x.shape[0]
    assert x.shape[1] == INPUT_SIZE
    assert total_rows % M_TILE == 0, "rows must be a multiple of M_TILE"
    num_tiles = total_rows // M_TILE

    def const_spec(arr):
        # Full-array block, constant index: fetched once per core, never
        # re-DMA'd across grid steps (weight-stream amortization).
        return pl.BlockSpec(arr.shape, lambda t: (0, 0))

    in_specs = [pl.BlockSpec((M_TILE, INPUT_SIZE), lambda t: (t, 0))]
    in_specs += [const_spec(p) for p in kparams]

    out = pl.pallas_call(
        dqn_z_kernel,
        out_shape=jax.ShapeDtypeStruct((total_rows, OUT_PAD), jnp.float32),
        grid_spec=pltpu.PrefetchScalarGridSpec(
            num_scalar_prefetch=0,
            grid=(num_tiles,),
            in_specs=in_specs,
            out_specs=pl.BlockSpec((M_TILE, OUT_PAD), lambda t: (t, 0)),
        ),
        compiler_params=pltpu.CompilerParams(
            dimension_semantics=("parallel",)),   # v7x: shard tiles over 2 TCs
    )(x, *kparams)
    return out[:, :OUTPUT_SIZE]


def init_params(key):
    """Original-module-shaped f32 parameters ([in,out] weights, with biases)."""
    def linear(key, fan_in, fan_out):
        kw, kb = jax.random.split(key)
        bound = 1.0 / jnp.sqrt(fan_in)
        w = jax.random.uniform(kw, (fan_in, fan_out), jnp.float32, -bound, bound)
        b = jax.random.uniform(kb, (1, fan_out), jnp.float32, -bound, bound)
        return w, b

    def bn(key, n):
        kg, kb = jax.random.split(key)
        gamma = 1.0 + 0.1 * jax.random.normal(kg, (1, n), jnp.float32)
        beta = 0.1 * jax.random.normal(kb, (1, n), jnp.float32)
        return gamma, beta

    keys = jax.random.split(key, 12)
    w1a, b1a = linear(keys[0], FEATURE_DIM, 256); g1a, be1a = bn(keys[1], 256)
    w1b, b1b = linear(keys[2], Z_HIDDEN, 256);    g1b, be1b = bn(keys[3], 256)
    wh1, bh1 = linear(keys[4], 512, 512);         gh1, beh1 = bn(keys[5], 512)
    wh2, bh2 = linear(keys[6], 512, 512);         gh2, beh2 = bn(keys[7], 512)
    wo1, bo1 = linear(keys[8], 512, 256);         go1, beo1 = bn(keys[9], 256)
    wo2, bo2 = linear(keys[10], 256, OUTPUT_SIZE)
    return (
        w1a, b1a, g1a, be1a,
        w1b, b1b, g1b, be1b,
        wh1, bh1, gh1, beh1,
        wh2, bh2, gh2, beh2,
        wo1, bo1, go1, beo1,
        wo2, bo2,
    )


def prepare_kernel_params(params):
    """Wrapper-side transform: block-diag input fusion, BN-cancelled-bias drop,
    bf16 matmul weights, lane padding of the final head.  All exact w.r.t. the
    training-mode-BN forward (up to bf16 rounding of matmul operands)."""
    (w1a, b1a, g1a, be1a,
     w1b, b1b, g1b, be1b,
     wh1, bh1, gh1, beh1,
     wh2, bh2, gh2, beh2,
     wo1, bo1, go1, beo1,
     wo2, bo2) = params

    # Fuse the two input branches into one block-diagonal [64, 512] weight.
    w_in = jnp.zeros((INPUT_SIZE, 512), jnp.float32)
    w_in = w_in.at[:FEATURE_DIM, :256].set(w1a)
    w_in = w_in.at[FEATURE_DIM:, 256:].set(w1b)
    g_in = jnp.concatenate([g1a, g1b], axis=1)
    be_in = jnp.concatenate([be1a, be1b], axis=1)

    # Biases feeding a training-mode BatchNorm cancel exactly -> dropped.
    # Pad the final head to 128 output lanes for an unmasked store.
    wo2p = jnp.zeros((256, OUT_PAD), jnp.float32).at[:, :OUTPUT_SIZE].set(wo2)
    bo2p = jnp.zeros((1, OUT_PAD), jnp.float32).at[:, :OUTPUT_SIZE].set(bo2)

    bf16 = jnp.bfloat16
    return (
        w_in.astype(bf16), g_in, be_in,
        wh1.astype(bf16), gh1, beh1,
        wh2.astype(bf16), gh2, beh2,
        wo1.astype(bf16), go1, beo1,
        wo2p.astype(bf16), bo2p,
    )


def dqn_z_reference(x, params):
    """Pure-JAX reference with the ORIGINAL module structure (separate input
    branches, biases, standard two-pass variance) on ONE mini-batch, matmul
    operands in bf16 to match the kernel's streamed-weight precision."""
    (w1a, b1a, g1a, be1a,
     w1b, b1b, g1b, be1b,
     wh1, bh1, gh1, beh1,
     wh2, bh2, gh2, beh2,
     wo1, bo1, go1, beo1,
     wo2, bo2) = params

    def mm(a, w):
        return jnp.dot(a.astype(jnp.bfloat16), w.astype(jnp.bfloat16),
                       preferred_element_type=jnp.float32)

    def bn_relu(h, g, b):
        m = jnp.mean(h, axis=0, keepdims=True)
        v = jnp.mean((h - m) ** 2, axis=0, keepdims=True)
        return jnp.maximum((h - m) * jax.lax.rsqrt(v + BN_EPS) * g + b, 0.0)

    in1 = x[:, :FEATURE_DIM]
    in2 = x[:, FEATURE_DIM:]
    h1 = bn_relu(mm(in1, w1a) + b1a, g1a, be1a)
    h2 = bn_relu(mm(in2, w1b) + b1b, g1b, be1b)
    h = jnp.concatenate([h1, h2], axis=1)
    h = bn_relu(mm(h, wh1) + bh1, gh1, beh1)
    h = bn_relu(mm(h, wh2) + bh2, gh2, beh2)
    h = bn_relu(mm(h, wo1) + bo1, go1, beo1)
    return mm(h, wo2) + bo2


if __name__ == "__main__":
    key = jax.random.PRNGKey(0)
    kx, kp = jax.random.split(key)

    NUM_TILES = 2                                    # exercises the grid path
    total_rows = NUM_TILES * M_TILE                  # 256 rows = 32 groups of 8
    x = jax.random.normal(kx, (total_rows, INPUT_SIZE), jnp.float32)

    params = init_params(kp)
    kparams = prepare_kernel_params(params)

    out = jax.block_until_ready(dqn_z_forward(x, kparams))

    # Reference: the original module forward applied independently per group.
    x_groups = x.reshape(-1, GROUP_SIZE, INPUT_SIZE)
    ref = jax.vmap(lambda xg: dqn_z_reference(xg, params))(x_groups)
    ref = ref.reshape(total_rows, OUTPUT_SIZE)

    assert out.shape == (total_rows, OUTPUT_SIZE)
    assert jnp.allclose(out, ref, atol=1e-2, rtol=1e-2), (
        f"max abs err = {jnp.max(jnp.abs(out - ref))}"
    )
    print("KERNEL_OK")
</pallas_src>

<mosaic_0001>
module attributes {stable_mosaic.version = 11 : i64} {
  func.func @dqn_z_kernel(%arg0: i32, %arg1: memref<128x64xf32, #tpu.memory_space<vmem>>, %arg2: memref<64x512xbf16, #tpu.memory_space<vmem>>, %arg3: memref<1x512xf32, #tpu.memory_space<vmem>>, %arg4: memref<1x512xf32, #tpu.memory_space<vmem>>, %arg5: memref<512x512xbf16, #tpu.memory_space<vmem>>, %arg6: memref<1x512xf32, #tpu.memory_space<vmem>>, %arg7: memref<1x512xf32, #tpu.memory_space<vmem>>, %arg8: memref<512x512xbf16, #tpu.memory_space<vmem>>, %arg9: memref<1x512xf32, #tpu.memory_space<vmem>>, %arg10: memref<1x512xf32, #tpu.memory_space<vmem>>, %arg11: memref<512x256xbf16, #tpu.memory_space<vmem>>, %arg12: memref<1x256xf32, #tpu.memory_space<vmem>>, %arg13: memref<1x256xf32, #tpu.memory_space<vmem>>, %arg14: memref<256x128xbf16, #tpu.memory_space<vmem>>, %arg15: memref<1x128xf32, #tpu.memory_space<vmem>>, %arg16: memref<128x128xf32, #tpu.memory_space<vmem>>) attributes {dimension_semantics = [#tpu.dimension_semantics<parallel>], iteration_bounds = array<i64: 2>, scalar_prefetch = 0 : i64, scratch_operands = 0 : i64, tpu.core_type = #tpu.core_type<tc>, window_params = [{transform_indices = @transform_0, window_bounds = array<i64: 128, 64>}, {pipeline_mode = #tpu.pipeline_mode<synchronous>, transform_indices = @transform_1, window_bounds = array<i64: 64, 512>}, {pipeline_mode = #tpu.pipeline_mode<synchronous>, transform_indices = @transform_2, window_bounds = array<i64: 1, 512>}, {pipeline_mode = #tpu.pipeline_mode<synchronous>, transform_indices = @transform_3, window_bounds = array<i64: 1, 512>}, {pipeline_mode = #tpu.pipeline_mode<synchronous>, transform_indices = @transform_4, window_bounds = array<i64: 512, 512>}, {pipeline_mode = #tpu.pipeline_mode<synchronous>, transform_indices = @transform_5, window_bounds = array<i64: 1, 512>}, {pipeline_mode = #tpu.pipeline_mode<synchronous>, transform_indices = @transform_6, window_bounds = array<i64: 1, 512>}, {pipeline_mode = #tpu.pipeline_mode<synchronous>, transform_indices = @transform_7, window_bounds = array<i64: 512, 512>}, {pipeline_mode = #tpu.pipeline_mode<synchronous>, transform_indices = @transform_8, window_bounds = array<i64: 1, 512>}, {pipeline_mode = #tpu.pipeline_mode<synchronous>, transform_indices = @transform_9, window_bounds = array<i64: 1, 512>}, {pipeline_mode = #tpu.pipeline_mode<synchronous>, transform_indices = @transform_10, window_bounds = array<i64: 512, 256>}, {pipeline_mode = #tpu.pipeline_mode<synchronous>, transform_indices = @transform_11, window_bounds = array<i64: 1, 256>}, {pipeline_mode = #tpu.pipeline_mode<synchronous>, transform_indices = @transform_12, window_bounds = array<i64: 1, 256>}, {pipeline_mode = #tpu.pipeline_mode<synchronous>, transform_indices = @transform_13, window_bounds = array<i64: 256, 128>}, {pipeline_mode = #tpu.pipeline_mode<synchronous>, transform_indices = @transform_14, window_bounds = array<i64: 1, 128>}, {transform_indices = @transform_15, window_bounds = array<i64: 128, 128>}]} {
    %c0 = arith.constant 0 : index
    %c0_0 = arith.constant 0 : index
    %0 = vector.load %arg1[%c0, %c0_0] : memref<128x64xf32, #tpu.memory_space<vmem>>, vector<128x64xf32>
    %1 = arith.truncf %0 : vector<128x64xf32> to vector<128x64xbf16>
    %c0_1 = arith.constant 0 : index
    %c0_2 = arith.constant 0 : index
    %2 = vector.load %arg2[%c0_1, %c0_2] : memref<64x512xbf16, #tpu.memory_space<vmem>>, vector<64x512xbf16>
    %cst = arith.constant dense<0.000000e+00> : vector<128x512xf32>
    %3 = tpu.matmul %1, %2, %cst {dimension_numbers = #tpu.dot_dimension_numbers<[1], [0], [0], [1], [0, 0, 1, 1], [], []>} : vector<128x64xbf16>, vector<64x512xbf16>, vector<128x512xf32> -> vector<128x512xf32>
    %c0_3 = arith.constant 0 : index
    %c0_4 = arith.constant 0 : index
    %4 = vector.load %arg3[%c0_3, %c0_4] : memref<1x512xf32, #tpu.memory_space<vmem>>, vector<1x512xf32>
    %c0_5 = arith.constant 0 : index
    %c0_6 = arith.constant 0 : index
    %5 = vector.load %arg4[%c0_5, %c0_6] : memref<1x512xf32, #tpu.memory_space<vmem>>, vector<1x512xf32>
    %6 = vector.shape_cast %3 : vector<128x512xf32> to vector<16x8x512xf32>
    %cst_7 = arith.constant dense<0.000000e+00> : vector<16x512xf32>
    %7 = vector.multi_reduction <add>, %6, %cst_7 [1] : vector<16x8x512xf32> to vector<16x512xf32>
    %8 = vector.shape_cast %7 : vector<16x512xf32> to vector<16x1x512xf32>
    %cst_8 = arith.constant 8.000000e+00 : f32
    %9 = vector.broadcast %cst_8 : f32 to vector<16x1x512xf32>
    %10 = arith.divf %8, %9 : vector<16x1x512xf32>
    %11 = vector.broadcast %10 : vector<16x1x512xf32> to vector<16x8x512xf32>
    %12 = arith.subf %6, %11 : vector<16x8x512xf32>
    %13 = arith.mulf %12, %12 : vector<16x8x512xf32>
    %cst_9 = arith.constant dense<0.000000e+00> : vector<16x512xf32>
    %14 = vector.multi_reduction <add>, %13, %cst_9 [1] : vector<16x8x512xf32> to vector<16x512xf32>
    %15 = vector.shape_cast %14 : vector<16x512xf32> to vector<16x1x512xf32>
    %cst_10 = arith.constant 8.000000e+00 : f32
    %16 = vector.broadcast %cst_10 : f32 to vector<16x1x512xf32>
    %17 = arith.divf %15, %16 : vector<16x1x512xf32>
    %cst_11 = arith.constant 9.99999974E-6 : f32
    %18 = vector.broadcast %cst_11 : f32 to vector<16x1x512xf32>
    %19 = arith.addf %17, %18 : vector<16x1x512xf32>
    %20 = math.rsqrt %19 : vector<16x1x512xf32>
    %21 = vector.shape_cast %4 : vector<1x512xf32> to vector<1x1x512xf32>
    %22 = vector.broadcast %21 : vector<1x1x512xf32> to vector<16x1x512xf32>
    %23 = arith.mulf %22, %20 : vector<16x1x512xf32>
    %24 = vector.broadcast %23 : vector<16x1x512xf32> to vector<16x8x512xf32>
    %25 = arith.mulf %12, %24 : vector<16x8x512xf32>
    %26 = vector.shape_cast %5 : vector<1x512xf32> to vector<1x1x512xf32>
    %27 = vector.broadcast %26 : vector<1x1x512xf32> to vector<16x8x512xf32>
    %28 = arith.addf %25, %27 : vector<16x8x512xf32>
    %cst_12 = arith.constant 0.000000e+00 : f32
    %29 = vector.broadcast %cst_12 : f32 to vector<16x8x512xf32>
    %30 = arith.maximumf %28, %29 : vector<16x8x512xf32>
    %31 = vector.shape_cast %30 : vector<16x8x512xf32> to vector<128x512xf32>
    %32 = arith.truncf %31 : vector<128x512xf32> to vector<128x512xbf16>
    %c0_13 = arith.constant 0 : index
    %c0_14 = arith.constant 0 : index
    %33 = vector.load %arg5[%c0_13, %c0_14] : memref<512x512xbf16, #tpu.memory_space<vmem>>, vector<512x512xbf16>
    %cst_15 = arith.constant dense<0.000000e+00> : vector<128x512xf32>
    %34 = tpu.matmul %32, %33, %cst_15 {dimension_numbers = #tpu.dot_dimension_numbers<[1], [0], [0], [1], [0, 0, 1, 1], [], []>} : vector<128x512xbf16>, vector<512x512xbf16>, vector<128x512xf32> -> vector<128x512xf32>
    %c0_16 = arith.constant 0 : index
    %c0_17 = arith.constant 0 : index
    %35 = vector.load %arg6[%c0_16, %c0_17] : memref<1x512xf32, #tpu.memory_space<vmem>>, vector<1x512xf32>
    %c0_18 = arith.constant 0 : index
    %c0_19 = arith.constant 0 : index
    %36 = vector.load %arg7[%c0_18, %c0_19] : memref<1x512xf32, #tpu.memory_space<vmem>>, vector<1x512xf32>
    %37 = vector.shape_cast %34 : vector<128x512xf32> to vector<16x8x512xf32>
    %cst_20 = arith.constant dense<0.000000e+00> : vector<16x512xf32>
    %38 = vector.multi_reduction <add>, %37, %cst_20 [1] : vector<16x8x512xf32> to vector<16x512xf32>
    %39 = vector.shape_cast %38 : vector<16x512xf32> to vector<16x1x512xf32>
    %cst_21 = arith.constant 8.000000e+00 : f32
    %40 = vector.broadcast %cst_21 : f32 to vector<16x1x512xf32>
    %41 = arith.divf %39, %40 : vector<16x1x512xf32>
    %42 = vector.broadcast %41 : vector<16x1x512xf32> to vector<16x8x512xf32>
    %43 = arith.subf %37, %42 : vector<16x8x512xf32>
    %44 = arith.mulf %43, %43 : vector<16x8x512xf32>
    %cst_22 = arith.constant dense<0.000000e+00> : vector<16x512xf32>
    %45 = vector.multi_reduction <add>, %44, %cst_22 [1] : vector<16x8x512xf32> to vector<16x512xf32>
    %46 = vector.shape_cast %45 : vector<16x512xf32> to vector<16x1x512xf32>
    %cst_23 = arith.constant 8.000000e+00 : f32
    %47 = vector.broadcast %cst_23 : f32 to vector<16x1x512xf32>
    %48 = arith.divf %46, %47 : vector<16x1x512xf32>
    %cst_24 = arith.constant 9.99999974E-6 : f32
    %49 = vector.broadcast %cst_24 : f32 to vector<16x1x512xf32>
    %50 = arith.addf %48, %49 : vector<16x1x512xf32>
    %51 = math.rsqrt %50 : vector<16x1x512xf32>
    %52 = vector.shape_cast %35 : vector<1x512xf32> to vector<1x1x512xf32>
    %53 = vector.broadcast %52 : vector<1x1x512xf32> to vector<16x1x512xf32>
    %54 = arith.mulf %53, %51 : vector<16x1x512xf32>
    %55 = vector.broadcast %54 : vector<16x1x512xf32> to vector<16x8x512xf32>
    %56 = arith.mulf %43, %55 : vector<16x8x512xf32>
    %57 = vector.shape_cast %36 : vector<1x512xf32> to vector<1x1x512xf32>
    %58 = vector.broadcast %57 : vector<1x1x512xf32> to vector<16x8x512xf32>
    %59 = arith.addf %56, %58 : vector<16x8x512xf32>
    %cst_25 = arith.constant 0.000000e+00 : f32
    %60 = vector.broadcast %cst_25 : f32 to vector<16x8x512xf32>
    %61 = arith.maximumf %59, %60 : vector<16x8x512xf32>
    %62 = vector.shape_cast %61 : vector<16x8x512xf32> to vector<128x512xf32>
    %63 = arith.truncf %62 : vector<128x512xf32> to vector<128x512xbf16>
    %c0_26 = arith.constant 0 : index
    %c0_27 = arith.constant 0 : index
    %64 = vector.load %arg8[%c0_26, %c0_27] : memref<512x512xbf16, #tpu.memory_space<vmem>>, vector<512x512xbf16>
    %cst_28 = arith.constant dense<0.000000e+00> : vector<128x512xf32>
    %65 = tpu.matmul %63, %64, %cst_28 {dimension_numbers = #tpu.dot_dimension_numbers<[1], [0], [0], [1], [0, 0, 1, 1], [], []>} : vector<128x512xbf16>, vector<512x512xbf16>, vector<128x512xf32> -> vector<128x512xf32>
    %c0_29 = arith.constant 0 : index
    %c0_30 = arith.constant 0 : index
    %66 = vector.load %arg9[%c0_29, %c0_30] : memref<1x512xf32, #tpu.memory_space<vmem>>, vector<1x512xf32>
    %c0_31 = arith.constant 0 : index
    %c0_32 = arith.constant 0 : index
    %67 = vector.load %arg10[%c0_31, %c0_32] : memref<1x512xf32, #tpu.memory_space<vmem>>, vector<1x512xf32>
    %68 = vector.shape_cast %65 : vector<128x512xf32> to vector<16x8x512xf32>
    %cst_33 = arith.constant dense<0.000000e+00> : vector<16x512xf32>
    %69 = vector.multi_reduction <add>, %68, %cst_33 [1] : vector<16x8x512xf32> to vector<16x512xf32>
    %70 = vector.shape_cast %69 : vector<16x512xf32> to vector<16x1x512xf32>
    %cst_34 = arith.constant 8.000000e+00 : f32
    %71 = vector.broadcast %cst_34 : f32 to vector<16x1x512xf32>
    %72 = arith.divf %70, %71 : vector<16x1x512xf32>
    %73 = vector.broadcast %72 : vector<16x1x512xf32> to vector<16x8x512xf32>
    %74 = arith.subf %68, %73 : vector<16x8x512xf32>
    %75 = arith.mulf %74, %74 : vector<16x8x512xf32>
    %cst_35 = arith.constant dense<0.000000e+00> : vector<16x512xf32>
    %76 = vector.multi_reduction <add>, %75, %cst_35 [1] : vector<16x8x512xf32> to vector<16x512xf32>
    %77 = vector.shape_cast %76 : vector<16x512xf32> to vector<16x1x512xf32>
    %cst_36 = arith.constant 8.000000e+00 : f32
    %78 = vector.broadcast %cst_36 : f32 to vector<16x1x512xf32>
    %79 = arith.divf %77, %78 : vector<16x1x512xf32>
    %cst_37 = arith.constant 9.99999974E-6 : f32
    %80 = vector.broadcast %cst_37 : f32 to vector<16x1x512xf32>
    %81 = arith.addf %79, %80 : vector<16x1x512xf32>
    %82 = math.rsqrt %81 : vector<16x1x512xf32>
    %83 = vector.shape_cast %66 : vector<1x512xf32> to vector<1x1x512xf32>
    %84 = vector.broadcast %83 : vector<1x1x512xf32> to vector<16x1x512xf32>
    %85 = arith.mulf %84, %82 : vector<16x1x512xf32>
    %86 = vector.broadcast %85 : vector<16x1x512xf32> to vector<16x8x512xf32>
    %87 = arith.mulf %74, %86 : vector<16x8x512xf32>
    %88 = vector.shape_cast %67 : vector<1x512xf32> to vector<1x1x512xf32>
    %89 = vector.broadcast %88 : vector<1x1x512xf32> to vector<16x8x512xf32>
    %90 = arith.addf %87, %89 : vector<16x8x512xf32>
    %cst_38 = arith.constant 0.000000e+00 : f32
    %91 = vector.broadcast %cst_38 : f32 to vector<16x8x512xf32>
    %92 = arith.maximumf %90, %91 : vector<16x8x512xf32>
    %93 = vector.shape_cast %92 : vector<16x8x512xf32> to vector<128x512xf32>
    %94 = arith.truncf %93 : vector<128x512xf32> to vector<128x512xbf16>
    %c0_39 = arith.constant 0 : index
    %c0_40 = arith.constant 0 : index
    %95 = vector.load %arg11[%c0_39, %c0_40] : memref<512x256xbf16, #tpu.memory_space<vmem>>, vector<512x256xbf16>
    %cst_41 = arith.constant dense<0.000000e+00> : vector<128x256xf32>
    %96 = tpu.matmul %94, %95, %cst_41 {dimension_numbers = #tpu.dot_dimension_numbers<[1], [0], [0], [1], [0, 0, 1, 1], [], []>} : vector<128x512xbf16>, vector<512x256xbf16>, vector<128x256xf32> -> vector<128x256xf32>
    %c0_42 = arith.constant 0 : index
    %c0_43 = arith.constant 0 : index
    %97 = vector.load %arg12[%c0_42, %c0_43] : memref<1x256xf32, #tpu.memory_space<vmem>>, vector<1x256xf32>
    %c0_44 = arith.constant 0 : index
    %c0_45 = arith.constant 0 : index
    %98 = vector.load %arg13[%c0_44, %c0_45] : memref<1x256xf32, #tpu.memory_space<vmem>>, vector<1x256xf32>
    %99 = vector.shape_cast %96 : vector<128x256xf32> to vector<16x8x256xf32>
    %cst_46 = arith.constant dense<0.000000e+00> : vector<16x256xf32>
    %100 = vector.multi_reduction <add>, %99, %cst_46 [1] : vector<16x8x256xf32> to vector<16x256xf32>
    %101 = vector.shape_cast %100 : vector<16x256xf32> to vector<16x1x256xf32>
    %cst_47 = arith.constant 8.000000e+00 : f32
    %102 = vector.broadcast %cst_47 : f32 to vector<16x1x256xf32>
    %103 = arith.divf %101, %102 : vector<16x1x256xf32>
    %104 = vector.broadcast %103 : vector<16x1x256xf32> to vector<16x8x256xf32>
    %105 = arith.subf %99, %104 : vector<16x8x256xf32>
    %106 = arith.mulf %105, %105 : vector<16x8x256xf32>
    %cst_48 = arith.constant dense<0.000000e+00> : vector<16x256xf32>
    %107 = vector.multi_reduction <add>, %106, %cst_48 [1] : vector<16x8x256xf32> to vector<16x256xf32>
    %108 = vector.shape_cast %107 : vector<16x256xf32> to vector<16x1x256xf32>
    %cst_49 = arith.constant 8.000000e+00 : f32
    %109 = vector.broadcast %cst_49 : f32 to vector<16x1x256xf32>
    %110 = arith.divf %108, %109 : vector<16x1x256xf32>
    %cst_50 = arith.constant 9.99999974E-6 : f32
    %111 = vector.broadcast %cst_50 : f32 to vector<16x1x256xf32>
    %112 = arith.addf %110, %111 : vector<16x1x256xf32>
    %113 = math.rsqrt %112 : vector<16x1x256xf32>
    %114 = vector.shape_cast %97 : vector<1x256xf32> to vector<1x1x256xf32>
    %115 = vector.broadcast %114 : vector<1x1x256xf32> to vector<16x1x256xf32>
    %116 = arith.mulf %115, %113 : vector<16x1x256xf32>
    %117 = vector.broadcast %116 : vector<16x1x256xf32> to vector<16x8x256xf32>
    %118 = arith.mulf %105, %117 : vector<16x8x256xf32>
    %119 = vector.shape_cast %98 : vector<1x256xf32> to vector<1x1x256xf32>
    %120 = vector.broadcast %119 : vector<1x1x256xf32> to vector<16x8x256xf32>
    %121 = arith.addf %118, %120 : vector<16x8x256xf32>
    %cst_51 = arith.constant 0.000000e+00 : f32
    %122 = vector.broadcast %cst_51 : f32 to vector<16x8x256xf32>
    %123 = arith.maximumf %121, %122 : vector<16x8x256xf32>
    %124 = vector.shape_cast %123 : vector<16x8x256xf32> to vector<128x256xf32>
    %125 = arith.truncf %124 : vector<128x256xf32> to vector<128x256xbf16>
    %c0_52 = arith.constant 0 : index
    %c0_53 = arith.constant 0 : index
    %126 = vector.load %arg14[%c0_52, %c0_53] : memref<256x128xbf16, #tpu.memory_space<vmem>>, vector<256x128xbf16>
    %cst_54 = arith.constant dense<0.000000e+00> : vector<128x128xf32>
    %127 = tpu.matmul %125, %126, %cst_54 {dimension_numbers = #tpu.dot_dimension_numbers<[1], [0], [0], [1], [0, 0, 1, 1], [], []>} : vector<128x256xbf16>, vector<256x128xbf16>, vector<128x128xf32> -> vector<128x128xf32>
    %c0_55 = arith.constant 0 : index
    %c0_56 = arith.constant 0 : index
    %128 = vector.load %arg15[%c0_55, %c0_56] : memref<1x128xf32, #tpu.memory_space<vmem>>, vector<1x128xf32>
    %129 = vector.broadcast %128 : vector<1x128xf32> to vector<128x128xf32>
    %130 = arith.addf %127, %129 : vector<128x128xf32>
    %c0_57 = arith.constant 0 : index
    %c0_58 = arith.constant 0 : index
    %131 = vector.load %arg16[%c0_57, %c0_58] : memref<128x128xf32, #tpu.memory_space<vmem>>, vector<128x128xf32>
    tpu.vector_store %arg16[%c0_57, %c0_58], %130 {strides = array<i32>} : memref<128x128xf32, #tpu.memory_space<vmem>>, vector<128x128xf32>,
    return
  }
  func.func @transform_0(%arg0: i32) -> (i32, i32) {
    %c0_i32 = arith.constant 0 : i32
    %c0_i32_0 = arith.constant 0 : i32
    return %arg0, %c0_i32 : i32, i32
  }
  func.func @transform_1(%arg0: i32) -> (i32, i32) {
    %c0_i32 = arith.constant 0 : i32
    %c0_i32_0 = arith.constant 0 : i32
    %c0_i32_1 = arith.constant 0 : i32
    return %c0_i32, %c0_i32_0 : i32, i32
  }
  func.func @transform_2(%arg0: i32) -> (i32, i32) {
    %c0_i32 = arith.constant 0 : i32
    %c0_i32_0 = arith.constant 0 : i32
    %c0_i32_1 = arith.constant 0 : i32
    return %c0_i32, %c0_i32_0 : i32, i32
  }
  func.func @transform_3(%arg0: i32) -> (i32, i32) {
    %c0_i32 = arith.constant 0 : i32
    %c0_i32_0 = arith.constant 0 : i32
    %c0_i32_1 = arith.constant 0 : i32
    return %c0_i32, %c0_i32_0 : i32, i32
  }
  func.func @transform_4(%arg0: i32) -> (i32, i32) {
    %c0_i32 = arith.constant 0 : i32
    %c0_i32_0 = arith.constant 0 : i32
    %c0_i32_1 = arith.constant 0 : i32
    return %c0_i32, %c0_i32_0 : i32, i32
  }
  func.func @transform_5(%arg0: i32) -> (i32, i32) {
    %c0_i32 = arith.constant 0 : i32
    %c0_i32_0 = arith.constant 0 : i32
    %c0_i32_1 = arith.constant 0 : i32
    return %c0_i32, %c0_i32_0 : i32, i32
  }
  func.func @transform_6(%arg0: i32) -> (i32, i32) {
    %c0_i32 = arith.constant 0 : i32
    %c0_i32_0 = arith.constant 0 : i32
    %c0_i32_1 = arith.constant 0 : i32
    return %c0_i32, %c0_i32_0 : i32, i32
  }
  func.func @transform_7(%arg0: i32) -> (i32, i32) {
    %c0_i32 = arith.constant 0 : i32
    %c0_i32_0 = arith.constant 0 : i32
    %c0_i32_1 = arith.constant 0 : i32
    return %c0_i32, %c0_i32_0 : i32, i32
  }
  func.func @transform_8(%arg0: i32) -> (i32, i32) {
    %c0_i32 = arith.constant 0 : i32
    %c0_i32_0 = arith.constant 0 : i32
    %c0_i32_1 = arith.constant 0 : i32
    return %c0_i32, %c0_i32_0 : i32, i32
  }
  func.func @transform_9(%arg0: i32) -> (i32, i32) {
    %c0_i32 = arith.constant 0 : i32
    %c0_i32_0 = arith.constant 0 : i32
    %c0_i32_1 = arith.constant 0 : i32
    return %c0_i32, %c0_i32_0 : i32, i32
  }
  func.func @transform_10(%arg0: i32) -> (i32, i32) {
    %c0_i32 = arith.constant 0 : i32
    %c0_i32_0 = arith.constant 0 : i32
    %c0_i32_1 = arith.constant 0 : i32
    return %c0_i32, %c0_i32_0 : i32, i32
  }
  func.func @transform_11(%arg0: i32) -> (i32, i32) {
    %c0_i32 = arith.constant 0 : i32
    %c0_i32_0 = arith.constant 0 : i32
    %c0_i32_1 = arith.constant 0 : i32
    return %c0_i32, %c0_i32_0 : i32, i32
  }
  func.func @transform_12(%arg0: i32) -> (i32, i32) {
    %c0_i32 = arith.constant 0 : i32
    %c0_i32_0 = arith.constant 0 : i32
    %c0_i32_1 = arith.constant 0 : i32
    return %c0_i32, %c0_i32_0 : i32, i32
  }
  func.func @transform_13(%arg0: i32) -> (i32, i32) {
    %c0_i32 = arith.constant 0 : i32
    %c0_i32_0 = arith.constant 0 : i32
    %c0_i32_1 = arith.constant 0 : i32
    return %c0_i32, %c0_i32_0 : i32, i32
  }
  func.func @transform_14(%arg0: i32) -> (i32, i32) {
    %c0_i32 = arith.constant 0 : i32
    %c0_i32_0 = arith.constant 0 : i32
    %c0_i32_1 = arith.constant 0 : i32
    return %c0_i32, %c0_i32_0 : i32, i32
  }
  func.func @transform_15(%arg0: i32) -> (i32, i32) {
    %c0_i32 = arith.constant 0 : i32
    %c0_i32_0 = arith.constant 0 : i32
    return %arg0, %c0_i32 : i32, i32
  }
}

</mosaic_0001>

<bundles_post_ra>
// kernel: tpu_custom_call.1
= control target key start
LH: loop header
LB: loop body
LE: loop exit
PB: predicated region body
PF: predicated region fallthrough
CT: control target
= control target key end

     0   :  { %20 = vsyncpa [#allocation3], 0  ;;  %s18461_s0 = inlined_call_operand.vmem [shape: f32[256,64], index: 0, kind: input, shape index: {}]   ;;  %s18462_s1 = inlined_call_operand.vmem [shape: bf16[64,512], index: 1, kind: input, shape index: {}]   ;;  %s18463_s2 = inlined_call_operand.vmem [shape: f32[1,512], index: 2, kind: input, shape index: {}]   ;;  %s18464_s3 = inlined_call_operand.vmem [shape: f32[1,512], index: 3, kind: input, shape index: {}]   ;;  %s18465_s4 = inlined_call_operand.hbm [shape: bf16[512,512], index: 4, kind: input, shape index: {}]   ;;  %s18466_s5 = inlined_call_operand.vmem [shape: f32[1,512], index: 5, kind: input, shape index: {}]   ;;  %s18467_s6 = inlined_call_operand.vmem [shape: f32[1,512], index: 6, kind: input, shape index: {}]   ;;  %s18468_s7 = inlined_call_operand.hbm [shape: bf16[512,512], index: 7, kind: input, shape index: {}]   ;;  %s18469_s8 = inlined_call_operand.vmem [shape: f32[1,512], index: 8, kind: input, shape index: {}]   ;;  %s18470_s9 = inlined_call_operand.vmem [shape: f32[1,512], index: 9, kind: input, shape index: {}]   ;;  %s18471_s10 = inlined_call_operand.hbm [shape: bf16[512,256], index: 10, kind: input, shape index: {}]   ;;  %s18472_s11 = inlined_call_operand.vmem [shape: f32[1,256], index: 11, kind: input, shape index: {}]   ;;  %s18473_s12 = inlined_call_operand.vmem [shape: f32[1,256], index: 12, kind: input, shape index: {}]   ;;  %s18474_s13 = inlined_call_operand.vmem [shape: bf16[256,128], index: 13, kind: input, shape index: {}]   ;;  %s18475_s14 = inlined_call_operand.vmem [shape: f32[1,128], index: 14, kind: input, shape index: {}]   ;;  %s18476_s15 = inlined_call_operand.hbm [shape: f32[256,128], index: 15, kind: output, shape index: {}]  }
   0x1   :  { %21 = vsyncpa [#allocation6], 0 }
   0x2   :  { %22 = vsyncpa [#allocation4], 0 }
   0x3   :  { %24 = vsyncpa [#allocation4 + $0x1], 0  ;;  %s13903_s18 = smov 0   ;;  %s13905_s19 = smov 0  }
   0x4   :  { %s13907_s20 = smov 0   ;;  %s13909_s21 = smov 0  }
   0x5 LB: > { %18649 = sst [smem:[#allocation12_spill]] %s13797_s18  ;;  %s13924_s22 = sadd.s32 4294967295, %s13809_s21   ;;  %s13809_s21 = sphi %s13909_s21, %s19013_s21   ;;  %s13805_s20 = sphi %s13907_s20, %s19018_s20   ;;  %s13801_s19 = sphi %s13905_s19, %s19017_s19   ;;  %s13797_s18 = sphi %s13903_s18, %s19016_s18  }
   0x6   : > { %18650 = sst [smem:[#allocation13_spill]] %s13805_s20  ;;  %s12144_s23 = sadd.s32 4294967294, %s13809_s21  }
   0x7   : > { %18651 = sst [smem:[#allocation14_spill]] %s13809_s21  ;;  %s13928_s24 = sadd.s32 1, %s13809_s21  }
   0x8   : > { %18652 = sst [smem:[#allocation15_spill]] %s13928_s24  ;;  %s357_s25 = sadd.s32 1, %s13805_s20 }
   0x9   : > { %s354_s26 = ssub.s32 %s13809_s21, %s13928_s24  ;;  %p367_p0 = scmp.ne.s32.totalorder %s13805_s20, %s13801_s19 }
   0xa   : > { %p355_p1 = scmp.eq.s32.totalorder %s354_s26, 0  ;;  %p368_p2 = scmp.eq.s32.totalorder %s13924_s22, 1 }
   0xb   : > { %p373_p3 = scmp.ne.s32.totalorder %s13801_s19, %s13797_s18  ;;  %p374_p4 = scmp.eq.s32.totalorder %s12144_s23, 1 }
   0xc   : > { %s13939_s27 = scalar_select %p355_p1, %s13805_s20, %s357_s25  }
   0xd   : > { %p13941_p5 = por %p368_p2, %p367_p0  ;;  %p13945_p6 = por %p374_p4, %p373_p3 }
   0xe   : > { %18653 = sst [smem:[#allocation16_spill]] %s13939_s27  ;;  %p12145_p7 = scmp.ge.s32.totalorder %s13809_s21, 1 }
   0xf   : > { %s18654_s28 = scalar_select %p13941_p5, 1, 0 }
  0x10   : > { %s18655_s29 = scalar_select %p13945_p6, 1, 0 }
  0x11   : > { %p381_p8 = scmp.lt.s32.totalorder %s13809_s21, 3  ;;  %p18482_p9 = scmp.eq.s32.totalorder %s13924_s22, 0 }
  0x12   : > { %18656 = sst [smem:[#allocation17_spill]] %s18655_s29  ;;  %s13811_s16 = smov [#allocation5]  }
  0x13   : > { %p13952_p10 = pnand %p12145_p7, %p381_p8  ;;  %s421_s17 = sshll.u32 %s13811_s16, 4  ;;  %s422_s17 = int_to_ptr.vmem [resolvable:$true] %s421_s17 }
  0x14   : > { %s13812_s25 = smov [#allocation2]   ;;  %s13813_s27 = smov [#allocation7]  }
  0x15   : > { %p12626_p11 = pneg %p13952_p10  ;;  %s402_s26 = sshll.u32 %s13812_s25, 4  ;;  %s403_s26 = int_to_ptr.vmem [resolvable:$true] %s402_s26 }
  0x16   : > { %s440_s20 = sshll.u32 %s13813_s27, 4  ;;  %s13674_s24 = scalar_lea.vmem %s422_s17, 16384  ;;  %s441_s20 = int_to_ptr.vmem [resolvable:$true] %s440_s20 }
  0x17   : > { %p13960_p12 = pnand %p18482_p9, %p12626_p11  ;;  %p13675_p0 = scmp.ne.s32.totalorder %s422_s17, %s13674_s24 }
  0x18   : > { %p13682_p3 = scmp.lt.s32.totalorder %s422_s17, %s422_s17  ;;  %p13683_p4 = scmp.lt.s32.totalorder %s13674_s24, %s13674_s24 }
  0x19   : > { %p13665_p13 = pneg %p13960_p12 }
  0x1a   : > { %p13684_p7 = por %p13683_p4, %p13682_p3 }
  0x1b   : > { %p13677_p1 = pnand %p13675_p0, %p13665_p13 }
  0x1d   : > { %p13678_p2 = pneg %p13677_p1 }
  0x1f   : > { %p13685_p8 = pnand %p13684_p7, %p13678_p2 }
  0x21   : > { %13688 = shalt.err (!%p13685_p8)
}
  0x22   : > { %s13814_s16 = smov 256   ;;  %s13815_s25 = smov 16  }
  0x23   : > { %12632 = dma.hbm_to_vmem [thread:$0]  (!%p13960_p12), %s18468_s7, 16384, %s422_s17, [#allocation6], %s13814_s16, %s13814_s16, %s13815_s25  }
  0x24   : > { %s13700_s18 = scalar_lea.vmem %s403_s26, 16384  ;;  %p13708_p9 = scmp.lt.s32.totalorder %s403_s26, %s403_s26 }
  0x25   : > { %p13701_p11 = scmp.ne.s32.totalorder %s403_s26, %s13700_s18  ;;  %p13709_p6 = scmp.lt.s32.totalorder %s13700_s18, %s13700_s18 }
  0x27   : > { %p13703_p0 = pnand %p13701_p11, %p13665_p13  ;;  %p13710_p3 = por %p13709_p6, %p13708_p9 }
  0x29   : > { %p13704_p1 = pneg %p13703_p0 }
  0x2b   : > { %p13711_p2 = pnand %p13710_p3, %p13704_p1 }
  0x2d   : > { %13714 = shalt.err (!%p13711_p2)
}
  0x2e   : > { %12629 = dma.hbm_to_vmem [thread:$0]  (!%p13960_p12), %s18465_s4, 16384, %s403_s26, [#allocation3], %s13814_s16, %s13814_s16, %s13815_s25  }
  0x2f   : > { %s13726_s29 = scalar_lea.vmem %s441_s20, 8192  ;;  %p13734_p11 = scmp.lt.s32.totalorder %s441_s20, %s441_s20 }
  0x30   : > { %p13727_p4 = scmp.ne.s32.totalorder %s441_s20, %s13726_s29  ;;  %p13735_p0 = scmp.lt.s32.totalorder %s13726_s29, %s13726_s29 }
  0x32   : > { %p13729_p7 = pnand %p13727_p4, %p13665_p13  ;;  %p13736_p5 = por %p13735_p0, %p13734_p11 }
  0x34   : > { %p13730_p8 = pneg %p13729_p7 }
  0x36   : > { %p13737_p6 = pnand %p13736_p5, %p13730_p8 }
  0x38   : > { %13740 = shalt.err (!%p13737_p6)
}
  0x39   : > { %s13816_s18 = smov 128   ;;  %s13817_s17 = smov 8  }
  0x3a   : > { %12635 = dma.hbm_to_vmem [thread:$0]  (!%p13960_p12), %s18471_s10, 8192, %s441_s20, [#allocation6], %s13816_s18, %s13816_s18, %s13817_s17  }
  0x3b   : > { %477 = sbr.rel (%p13952_p10) target bundleno = 2356 (0x934), region = 80 }
  0x40   : > { %p18659_p9 = scmp.eq.s32.totalorder %s13924_s22, 0 }
  0x42   : > { %13784 = dma.done.wait (%p18659_p9), [#allocation3], 16384   ;;  %p18660_p13 = pmov %p18659_p9 }
  0x43   : > { %p18661_p5 = pmov %p18659_p9 }
  0x44   : > { %13786 = vsyncadd (%p18660_p13), [#allocation3], 4294950912 }
  0x45   : > { %13788 = dma.done.wait (%p18661_p5), [#allocation6], 24576   ;;  %p18662_p1 = pmov %p18661_p5 }
  0x46   : > { %v13818_v0 = vmov 0   ;;  %s12155_s20 = sshll.u32 %s13924_s22, 4  ;;  %v12690_v1 = vld [vmem:[%s18462_s1 + $0x64] ss:$16 sps:$4 sm:$0xff]   ;;  %v12692_v2 = vld [vmem:[%s18462_s1 + $0x6c] ss:$16 sps:$4 sm:$0xff]   ;;  %v2136_v63 = vlaneseq }
  0x47   : > { %13790 = vsyncadd (%p18662_p1), [#allocation6], 4294942720  ;;  %718 = vmatprep.mubr.bf16.mxu0 %v13818_v0  ;;  %831 = vmatprep.mubr.bf16.mxu1 %v13818_v0  ;;  %p534_p10 = scmp.lt.s32.totalorder %s12155_s20, 31  ;;  %v12694_v3 = vld [vmem:[%s18462_s1 + $0x60] ss:$16 sps:$4 sm:$0xff]   ;;  %vm661_vm0 = vcmask 523264  }
  0x48   : > { %694 = vmatprep.subr.bf16.mxu0 %v12690_v1  ;;  %v12695_v4 = vld [vmem:[%s18462_s1 + $0x68] ss:$16 sps:$4 sm:$0xff]   ;;  %807 = vmatprep.subr.bf16.mxu1 %v12692_v2  ;;  %v12696_v5 = vld [vmem:[%s18462_s1 + $0x44] ss:$16 sps:$4 sm:$0xff]   ;;  %v12698_v6 = vld [vmem:[%s18462_s1 + $0x4c] ss:$16 sps:$4 sm:$0xff]  }
  0x49   : > { %s19020_s20 = smov (!%p534_p10, %s12155_s20), 31  ;;  %695 = vmatpush1.bf16.msra.mxu0 %v12694_v3  ;;  %808 = vmatpush1.bf16.msra.mxu1 %v12695_v4  ;;  %v12700_v7 = vld [vmem:[%s18462_s1 + $0x40] ss:$16 sps:$4 sm:$0xff]   ;;  %v12701_v8 = vld [vmem:[%s18462_s1 + $0x48] ss:$16 sps:$4 sm:$0xff]   ;;  %s530_s23 = sand.u32 1, %s13801_s19  }
  0x4a   : > { %696 = vmatprep.subr.bf16.mxu0 %v12696_v5  ;;  %809 = vmatprep.subr.bf16.mxu1 %v12698_v6  ;;  %v12702_v9 = vld [vmem:[%s18462_s1 + $0x24] ss:$16 sps:$4 sm:$0xff]   ;;  %s12156_s18 = sshll.u32 %s19020_s20, 3  ;;  %v12704_v10 = vld [vmem:[%s18462_s1 + $0x2c] ss:$16 sps:$4 sm:$0xff]   ;;  %s12154_s26 = sshll.u32 %s530_s23, 7 }
  0x4b   : > { %v12706_v11 = vld [vmem:[%s18462_s1 + $0x20] ss:$16 sps:$4 sm:$0xff]   ;;  %v12707_v12 = vld [vmem:[%s18462_s1 + $0x28] ss:$16 sps:$4 sm:$0xff]   ;;  %v12708_v13 = vld [vmem:[%s18462_s1 + $0x4] ss:$16 sps:$4 sm:$0xff]   ;;  %s14048_s27 = scalar_lea.vmem %s18461_s0, %s12156_s18 }
  0x4c   : > { %v12710_v14 = vld [vmem:[%s18462_s1 + $0xc] ss:$16 sps:$4 sm:$0xff]   ;;  %v12712_v15 = vld [vmem:[%s18462_s1] ss:$16 sps:$4 sm:$0xff]   ;;  %v12713_v16 = vld [vmem:[%s18462_s1 + $0x8] ss:$16 sps:$4 sm:$0xff]  }
  0x4d   : > { %697 = vmatpush1.bf16.msra.mxu0 %v12700_v7  ;;  %810 = vmatpush1.bf16.msra.mxu1 %v12701_v8  ;;  %v541_v17 = vld [vmem:[%s14048_s27] sm:$0xff]  ;;  %v542_v18 = vld [vmem:[%s14048_s27 + $0x8] sm:$0xff]  ;;  %v543_v20 = vld [vmem:[%s14048_s27 + $0x10] sm:$0xff]  ;;  %v13819_v61 = vmov 1966171168   ;;  %v14106_v7 = vshrl.u32 %v2136_v63, 7 }
  0x4e   : > { %698 = vmatprep.subr.bf16.mxu0 %v12702_v9  ;;  %811 = vmatprep.subr.bf16.mxu1 %v12704_v10  ;;  %v557_v19 = vpack.c.bf16 %v542_v18, %v541_v17  ;;  %v544_v21 = vld [vmem:[%s14048_s27 + $0x18] sm:$0xff]  ;;  %v545_v23 = vld [vmem:[%s14048_s27 + $0x20] sm:$0xff]  ;;  %v546_v24 = vld [vmem:[%s14048_s27 + $0x28] sm:$0xff]  ;;  %v2134_v62 = vunpack.c.l.s4 %v13819_v61  ;;  %s18377_s25 = scalar_lea.vmem [#allocation8], %s12154_s26  ;;  %s12531_s20 = sshll.u32 %s13924_s22, 11 }
  0x4f   : > { %v558_v22 = vpack.c.bf16 %v544_v21, %v543_v20  ;;  %v559_v25 = vpack.c.bf16 %v546_v24, %v545_v23  ;;  %v547_v26 = vld [vmem:[%s14048_s27 + $0x30] sm:$0xff]  ;;  %v548_v27 = vld [vmem:[%s14048_s27 + $0x38] sm:$0xff]  ;;  %v549_v29 = vld [vmem:[%s14048_s27 + $0x40] sm:$0xff]  ;;  %s12051_s24 = sshll.u32 %s18377_s25, 4  ;;  %s18421_s21 = scalar_lea.sflag [#allocation4], %s530_s23  ;;  %s18415_s24 = int_to_ptr.vmem [resolvable:$true] %s12051_s24 }
  0x50   : > { %v560_v28 = vpack.c.bf16 %v548_v27, %v547_v26  ;;  %v550_v30 = vld [vmem:[%s14048_s27 + $0x48] sm:$0xff]  ;;  %v551_v32 = vld [vmem:[%s14048_s27 + $0x50] sm:$0xff]  ;;  %v552_v33 = vld [vmem:[%s14048_s27 + $0x58] sm:$0xff]  ;;  %v2135_v6 = vunpack.c.0.s8 %v2134_v62  ;;  %s13741_s22 = scalar_lea.vmem %s18415_s24, 2048  ;;  %p19008_p3 = scmp.ne.s32.totalorder %s18654_s28, 0 }
  0x51   : > { %699 = vmatpush1.bf16.msra.mxu0 %v12706_v11  ;;  %812 = vmatpush1.bf16.msra.mxu1 %v12707_v12  ;;  %v561_v31 = vpack.c.bf16 %v550_v30, %v549_v29  ;;  %v562_v34 = vpack.c.bf16 %v552_v33, %v551_v32  ;;  %v553_v35 = vld [vmem:[%s14048_s27 + $0x60] sm:$0xff]  ;;  %v554_v36 = vld [vmem:[%s14048_s27 + $0x68] sm:$0xff]  ;;  %v555_v38 = vld [vmem:[%s14048_s27 + $0x70] sm:$0xff]  ;;  %p13742_p12 = scmp.ne.s32.totalorder %s18415_s24, %s13741_s22  ;;  %s13820_s30 = smov [#allocation8]  }
  0x52   : > { %700 = vmatprep.subr.bf16.mxu0 %v12708_v13  ;;  %813 = vmatprep.subr.bf16.mxu1 %v12710_v14  ;;  %v563_v37 = vpack.c.bf16 %v554_v36, %v553_v35  ;;  %v556_v39 = vld [vmem:[%s14048_s27 + $0x78] sm:$0xff]  ;;  %v12716_v41 = vld [vmem:[#allocation2 + $0xe4] ss:$16 sps:$4 sm:$0xff]   ;;  %v12714_v43 = vld [vmem:[#allocation2 + $0xe0] ss:$16 sps:$4 sm:$0xff]   ;;  %v14117_v18 = vsub.s32 %v2135_v6, %v14106_v7  ;;  %s18413_s27 = scalar_lea.hbm %s18476_s15, %s12531_s20  ;;  %s13745_s26 = sshll.u32 %s13820_s30, 4  ;;  %s13746_s26 = int_to_ptr.vmem [resolvable:$false] %s13745_s26 }
  0x53   : > { %v564_v40 = vpack.c.bf16 %v556_v39, %v555_v38  ;;  %v12719_v42 = vld [vmem:[#allocation2 + $0x2e4] ss:$16 sps:$4 sm:$0xff]   ;;  %v12717_v44 = vld [vmem:[#allocation2 + $0x2e0] ss:$16 sps:$4 sm:$0xff]   ;;  %p13743_p2 = pnand %p13742_p12, %p19008_p3  ;;  %s13747_s18 = scalar_lea.vmem %s13746_s26, 4096 }
  0x54   : > { %v12722_v45 = vld [vmem:[#allocation2 + $0xc4] ss:$16 sps:$4 sm:$0xff]   ;;  %v12720_v47 = vld [vmem:[#allocation2 + $0xc0] ss:$16 sps:$4 sm:$0xff]   ;;  %p13748_p7 = scmp.lt.s32.totalorder %s18415_s24, %s13746_s26  ;;  %p13749_p8 = scmp.lt.s32.totalorder %s13747_s18, %s13741_s22 }
  0x55   : > { %701 = vmatpush1.bf16.msra.mxu0 %v12712_v15  ;;  %814 = vmatpush1.bf16.msra.mxu1 %v12713_v16  ;;  %v12725_v46 = vld [vmem:[#allocation2 + $0x2c4] ss:$16 sps:$4 sm:$0xff]   ;;  %v12723_v48 = vld [vmem:[#allocation2 + $0x2c0] ss:$16 sps:$4 sm:$0xff]   ;;  %p13744_p4 = pneg %p13743_p2 }
  0x56   : > { %3896 = vmatprep.subr.bf16.mxu0 %v12716_v41  ;;  %4009 = vmatprep.subr.bf16.mxu1 %v12719_v42  ;;  %v12728_v49 = vld [vmem:[#allocation2 + $0xa4] ss:$16 sps:$4 sm:$0xff]   ;;  %v12726_v51 = vld [vmem:[#allocation2 + $0xa0] ss:$16 sps:$4 sm:$0xff]   ;;  %p13750_p11 = por %p13749_p8, %p13748_p7 }
  0x57   : > { %v12731_v50 = vld [vmem:[#allocation2 + $0x2a4] ss:$16 sps:$4 sm:$0xff]   ;;  %v12729_v52 = vld [vmem:[#allocation2 + $0x2a0] ss:$16 sps:$4 sm:$0xff]  }
  0x58   : > { %12173 = vmatmul.mubr.msk.bf16.vlgmr.msra.gmra.mxu0 %vm661_vm0, %v557_v19  ;;  %12181 = vmatmul.mubr.msk.bf16.vlgmr.msra.gmra.mxu1 %vm661_vm0, %v557_v19  ;;  %v12734_v53 = vld [vmem:[#allocation2 + $0x84] ss:$16 sps:$4 sm:$0xff]   ;;  %v12732_v55 = vld [vmem:[#allocation2 + $0x80] ss:$16 sps:$4 sm:$0xff]   ;;  %p13751_p0 = pnand %p13750_p11, %p13744_p4 }
  0x59   : > { %728 = vmatprep.mubr.bf16.mxu0 %v13818_v0  ;;  %841 = vmatprep.mubr.bf16.mxu1 %v13818_v0  ;;  %v12737_v54 = vld [vmem:[#allocation2 + $0x284] ss:$16 sps:$4 sm:$0xff]   ;;  %v12735_v56 = vld [vmem:[#allocation2 + $0x280] ss:$16 sps:$4 sm:$0xff]  }
  0x5a   : > { %3897 = vmatpush1.bf16.msra.mxu0 %v12714_v43  ;;  %4010 = vmatpush1.bf16.msra.mxu1 %v12717_v44  ;;  %v12740_v57 = vld [vmem:[#allocation2 + $0x64] ss:$16 sps:$4 sm:$0xff]   ;;  %v12738_v59 = vld [vmem:[#allocation2 + $0x60] ss:$16 sps:$4 sm:$0xff]  }
  0x5b   : > { %3898 = vmatprep.subr.bf16.mxu0 %v12722_v45  ;;  %4011 = vmatprep.subr.bf16.mxu1 %v12725_v46  ;;  %v12743_v58 = vld [vmem:[#allocation2 + $0x264] ss:$16 sps:$4 sm:$0xff]   ;;  %v12741_v60 = vld [vmem:[#allocation2 + $0x260] ss:$16 sps:$4 sm:$0xff]  }
  0x5e   : > { %3899 = vmatpush1.bf16.msra.mxu0 %v12720_v47  ;;  %4012 = vmatpush1.bf16.msra.mxu1 %v12723_v48 }
  0x5f   : > { %3900 = vmatprep.subr.bf16.mxu0 %v12728_v49  ;;  %4013 = vmatprep.subr.bf16.mxu1 %v12731_v50 }
  0x60   : > { %12174 = vmatmul.mubr.msk.bf16.gmra.mxu0 %vm661_vm0, %v558_v22  ;;  %12182 = vmatmul.mubr.msk.bf16.gmra.mxu1 %vm661_vm0, %v558_v22 }
  0x61   : > { %738 = vmatprep.mubr.bf16.mxu0 %v13818_v0  ;;  %851 = vmatprep.mubr.bf16.mxu1 %v13818_v0 }
  0x62   : > { %3901 = vmatpush1.bf16.msra.mxu0 %v12726_v51  ;;  %4014 = vmatpush1.bf16.msra.mxu1 %v12729_v52  ;;  %v12746_v51 = vld [vmem:[#allocation2 + $0x44] ss:$16 sps:$4 sm:$0xff]  }
  0x63   : > { %3902 = vmatprep.subr.bf16.mxu0 %v12734_v53  ;;  %4015 = vmatprep.subr.bf16.mxu1 %v12737_v54  ;;  %v12749_v52 = vld [vmem:[#allocation2 + $0x244] ss:$16 sps:$4 sm:$0xff]  }
  0x66   : > { %3903 = vmatpush1.bf16.msra.mxu0 %v12732_v55  ;;  %4016 = vmatpush1.bf16.msra.mxu1 %v12735_v56 }
  0x67   : > { %3904 = vmatprep.subr.bf16.mxu0 %v12740_v57  ;;  %4017 = vmatprep.subr.bf16.mxu1 %v12743_v58  ;;  %v12744_v57 = vld [vmem:[#allocation2 + $0x40] ss:$16 sps:$4 sm:$0xff]  }
  0x68   : > { %12175 = vmatmul.mubr.msk.bf16.gmra.mxu0 %vm661_vm0, %v559_v25  ;;  %12183 = vmatmul.mubr.msk.bf16.gmra.mxu1 %vm661_vm0, %v559_v25  ;;  %v12747_v58 = vld [vmem:[#allocation2 + $0x240] ss:$16 sps:$4 sm:$0xff]  }
  0x69   : > { %748 = vmatprep.mubr.bf16.mxu0 %v13818_v0  ;;  %861 = vmatprep.mubr.bf16.mxu1 %v13818_v0 }
  0x6a   : > { %3905 = vmatpush1.bf16.msra.mxu0 %v12738_v59  ;;  %4018 = vmatpush1.bf16.msra.mxu1 %v12741_v60 }
  0x6b   : > { %3906 = vmatprep.subr.bf16.mxu0 %v12746_v51  ;;  %4019 = vmatprep.subr.bf16.mxu1 %v12749_v52 }
  0x6e   : > { %3907 = vmatpush1.bf16.msra.mxu0 %v12744_v57  ;;  %4020 = vmatpush1.bf16.msra.mxu1 %v12747_v58 }
  0x70   : > { %12176 = vmatmul.mubr.msk.bf16.gmra.mxu0 %vm661_vm0, %v560_v28  ;;  %12184 = vmatmul.mubr.msk.bf16.gmra.mxu1 %vm661_vm0, %v560_v28 }
  0x71   : > { %758 = vmatprep.mubr.bf16.mxu0 %v13818_v0  ;;  %871 = vmatprep.mubr.bf16.mxu1 %v13818_v0 }
  0x78   : > { %12177 = vmatmul.mubr.msk.bf16.gmra.mxu0 %vm661_vm0, %v561_v31  ;;  %12185 = vmatmul.mubr.msk.bf16.gmra.mxu1 %vm661_vm0, %v561_v31 }
  0x79   : > { %768 = vmatprep.mubr.bf16.mxu0 %v13818_v0  ;;  %881 = vmatprep.mubr.bf16.mxu1 %v13818_v0 }
  0x80   : > { %12178 = vmatmul.mubr.msk.bf16.gmra.mxu0 %vm661_vm0, %v562_v34  ;;  %12186 = vmatmul.mubr.msk.bf16.gmra.mxu1 %vm661_vm0, %v562_v34 }
  0x81   : > { %778 = vmatprep.mubr.bf16.mxu0 %v13818_v0  ;;  %891 = vmatprep.mubr.bf16.mxu1 %v13818_v0 }
  0x88   : > { %12179 = vmatmul.mubr.msk.bf16.gmra.mxu0 %vm661_vm0, %v563_v37  ;;  %12187 = vmatmul.mubr.msk.bf16.gmra.mxu1 %vm661_vm0, %v563_v37 }
  0x89   : > { %788 = vmatprep.mubr.bf16.mxu0 %v13818_v0  ;;  %901 = vmatprep.mubr.bf16.mxu1 %v13818_v0 }
  0x90   : > { %12180 = vmatmul.mubr.msk.bf16.gmra.mxu0 %vm661_vm0, %v564_v40  ;;  %12188 = vmatmul.mubr.msk.bf16.gmra.mxu1 %vm661_vm0, %v564_v40 }
 0x118   : > { %v720_v0 = vpop.f32.mrf.mxu0  ;;  %v833_v1 = vpop.f32.mrf.mxu1 }
 0x119   : > { %v914_v2 = vrot.slane %v720_v0, 4  ;;  %v926_v3 = vrot.slane %v833_v1, 4 }
 0x11a   : > { %v14102_v4 = vpop.f32.mrf.mxu0  ;;  %v14104_v5 = vpop.f32.mrf.mxu1 }
 0x11b   : > { %v915_v8 = vadd.f32 %v914_v2, %v720_v0  ;;  %v927_v9 = vadd.f32 %v926_v3, %v833_v1  ;;  %v920_v10 = vrot.slane %v14102_v4, 4  ;;  %v932_v11 = vrot.slane %v14104_v5, 4 }
 0x11c   : > { %v14110_v12 = vpop.f32.mrf.mxu0  ;;  %v14112_v13 = vpop.f32.mrf.mxu1 }
 0x11d   : > { %v916_v14 = vrot.slane %v915_v8, 2  ;;  %v928_v15 = vrot.slane %v927_v9, 2  ;;  %v921_v16 = vadd.f32 %v920_v10, %v14102_v4  ;;  %v933_v17 = vadd.f32 %v932_v11, %v14104_v5 }
 0x11e   : > { %v938_v19 = vrot.slane %v14110_v12, 4  ;;  %v950_v20 = vrot.slane %v14112_v13, 4  ;;  %v14121_v21 = vpop.f32.mrf.mxu0  ;;  %v14123_v22 = vpop.f32.mrf.mxu1 }
 0x11f   : > { %v917_v23 = vadd.f32 %v916_v14, %v915_v8  ;;  %v929_v24 = vadd.f32 %v928_v15, %v927_v9  ;;  %v922_v25 = vrot.slane %v921_v16, 2  ;;  %v934_v26 = vrot.slane %v933_v17, 2 }
 0x120   : > { %v939_v27 = vadd.f32 %v938_v19, %v14110_v12  ;;  %v951_v28 = vadd.f32 %v950_v20, %v14112_v13  ;;  %v944_v29 = vrot.slane %v14121_v21, 4  ;;  %v956_v30 = vrot.slane %v14123_v22, 4  ;;  %v14169_v57 = vpop.f32.mrf.mxu0 }
 0x121   : > { %v918_v31 = vrot.slane %v917_v23, 1  ;;  %v930_v32 = vrot.slane %v929_v24, 1  ;;  %v923_v33 = vadd.f32 %v922_v25, %v921_v16  ;;  %v935_v34 = vadd.f32 %v934_v26, %v933_v17 }
 0x122   : > { %v940_v35 = vrot.slane %v939_v27, 2  ;;  %v952_v36 = vrot.slane %v951_v28, 2  ;;  %v945_v37 = vadd.f32 %v944_v29, %v14121_v21  ;;  %v957_v38 = vadd.f32 %v956_v30, %v14123_v22 }
 0x123   : > { %v919_v39 = vadd.f32 %v918_v31, %v917_v23  ;;  %v931_v40 = vadd.f32 %v930_v32, %v929_v24  ;;  %v924_v41 = vrot.slane %v923_v33, 1  ;;  %v936_v42 = vrot.slane %v935_v34, 1 }
 0x124   : > { %v941_v43 = vadd.f32 %v940_v35, %v939_v27  ;;  %v953_v44 = vadd.f32 %v952_v36, %v951_v28  ;;  %v946_v45 = vrot.slane %v945_v37, 2  ;;  %v958_v46 = vrot.slane %v957_v38, 2 }
 0x125   : > { %v1299_v47 = vmul.f32 0.125, %v919_v39  ;;  %v1301_v48 = vmul.f32 0.125, %v931_v40  ;;  %v925_v49 = vadd.f32 %v924_v41, %v923_v33  ;;  %v937_v50 = vadd.f32 %v936_v42, %v935_v34 }
 0x126   : > { %v942_v53 = vrot.slane %v941_v43, 1  ;;  %v954_v54 = vrot.slane %v953_v44, 1  ;;  %v947_v55 = vadd.f32 %v946_v45, %v945_v37  ;;  %v959_v56 = vadd.f32 %v958_v46, %v957_v38 }
 0x127   : > { %v14131_v59 = vsub.f32 %v720_v0, %v1299_v47  ;;  %v14133_v60 = vsub.f32 %v833_v1, %v1301_v48  ;;  %v1300_v61 = vmul.f32 0.125, %v925_v49  ;;  %v1302_v62 = vmul.f32 0.125, %v937_v50 }
 0x128   : > { %v943_v63 = vadd.f32 %v942_v53, %v941_v43  ;;  %v955_v2 = vadd.f32 %v954_v54, %v953_v44  ;;  %v948_v3 = vrot.slane %v947_v55, 1  ;;  %v960_v6 = vrot.slane %v959_v56, 1 }
 0x129   : > { %v1427_v8 = vmul.f32 %v14131_v59, %v14131_v59  ;;  %v1429_v9 = vmul.f32 %v14133_v60, %v14133_v60  ;;  %v14140_v0 = vsub.f32 %v14102_v4, %v1300_v61  ;;  %v14143_v1 = vsub.f32 %v14104_v5, %v1302_v62 }
 0x12a   : > { %v1303_v10 = vmul.f32 0.125, %v943_v63  ;;  %v1305_v11 = vmul.f32 0.125, %v955_v2  ;;  %v949_v14 = vadd.f32 %v948_v3, %v947_v55  ;;  %v961_v15 = vadd.f32 %v960_v6, %v959_v56  ;;  %v14171_v2 = vpop.f32.mrf.mxu1 }
 0x12b   : > { %v1491_v16 = vrot.slane %v1427_v8, 4  ;;  %v1503_v17 = vrot.slane %v1429_v9, 4  ;;  %v1428_v19 = vmul.f32 %v14140_v0, %v14140_v0  ;;  %v1430_v20 = vmul.f32 %v14143_v1, %v14143_v1 }
 0x12c   : > { %v14150_v23 = vsub.f32 %v14110_v12, %v1303_v10  ;;  %v14153_v4 = vsub.f32 %v14112_v13, %v1305_v11  ;;  %v1304_v5 = vmul.f32 0.125, %v949_v14  ;;  %v1306_v24 = vmul.f32 0.125, %v961_v15 }
 0x12d   : > { %v1492_v25 = vadd.f32 %v1491_v16, %v1427_v8  ;;  %v1504_v26 = vadd.f32 %v1503_v17, %v1429_v9  ;;  %v1497_v27 = vrot.slane %v1428_v19, 4  ;;  %v1509_v28 = vrot.slane %v1430_v20, 4 }
 0x12e   : > { %v1431_v29 = vmul.f32 %v14150_v23, %v14150_v23  ;;  %v1433_v30 = vmul.f32 %v14153_v4, %v14153_v4  ;;  %v14160_v31 = vsub.f32 %v14121_v21, %v1304_v5  ;;  %v14163_v12 = vsub.f32 %v14123_v22, %v1306_v24  ;;  %v14173_v5 = vpop.f32.mrf.mxu0 }
 0x12f   : > { %v1493_v13 = vrot.slane %v1492_v25, 2  ;;  %v1505_v32 = vrot.slane %v1504_v26, 2  ;;  %v1498_v33 = vadd.f32 %v1497_v27, %v1428_v19  ;;  %v1510_v34 = vadd.f32 %v1509_v28, %v1430_v20  ;;  %v14175_v28 = vpop.f32.mrf.mxu1 }
 0x130   : > { %v1515_v35 = vrot.slane %v1431_v29, 4  ;;  %v1527_v36 = vrot.slane %v1433_v30, 4  ;;  %v1432_v37 = vmul.f32 %v14160_v31, %v14160_v31  ;;  %v1434_v38 = vmul.f32 %v14163_v12, %v14163_v12 }
 0x131   : > { %v1494_v39 = vadd.f32 %v1493_v13, %v1492_v25  ;;  %v1506_v40 = vadd.f32 %v1505_v32, %v1504_v26  ;;  %v1499_v41 = vrot.slane %v1498_v33, 2  ;;  %v1511_v21 = vrot.slane %v1510_v34, 2 }
 0x132   : > { %v1516_v42 = vadd.f32 %v1515_v35, %v1431_v29  ;;  %v1528_v43 = vadd.f32 %v1527_v36, %v1433_v30  ;;  %v1521_v22 = vrot.slane %v1432_v37, 4  ;;  %v1533_v44 = vrot.slane %v1434_v38, 4  ;;  %v12752_v35 = vld [vmem:[#allocation2 + $0x24] ss:$16 sps:$4 sm:$0xff]  }
 0x133   : > { %v1495_v45 = vrot.slane %v1494_v39, 1  ;;  %v1507_v46 = vrot.slane %v1506_v40, 1  ;;  %v1500_v47 = vadd.f32 %v1499_v41, %v1498_v33  ;;  %v1512_v48 = vadd.f32 %v1511_v21, %v1510_v34  ;;  %v12755_v36 = vld [vmem:[#allocation2 + $0x224] ss:$16 sps:$4 sm:$0xff]   ;;  %v12750_v41 = vld [vmem:[#allocation2 + $0x20] ss:$16 sps:$4 sm:$0xff]   ;;  %3908 = vmatprep.subr.bf16.mxu0 %v12752_v35 }
 0x134   : > { %v1517_v49 = vrot.slane %v1516_v42, 2  ;;  %v1529_v50 = vrot.slane %v1528_v43, 2  ;;  %v1522_v51 = vadd.f32 %v1521_v22, %v1432_v37  ;;  %v1534_v52 = vadd.f32 %v1533_v44, %v1434_v38  ;;  %v12753_v21 = vld [vmem:[#allocation2 + $0x220] ss:$16 sps:$4 sm:$0xff]   ;;  %v14182_v44 = vpop.f32.mrf.mxu1  ;;  %4021 = vmatprep.subr.bf16.mxu1 %v12755_v36  ;;  %3909 = vmatpush1.bf16.msra.mxu0 %v12750_v41 }
 0x135   : > { %v1496_v53 = vadd.f32 %v1495_v45, %v1494_v39  ;;  %v1508_v54 = vadd.f32 %v1507_v46, %v1506_v40  ;;  %v1501_v55 = vrot.slane %v1500_v47, 1  ;;  %v1513_v56 = vrot.slane %v1512_v48, 1  ;;  %v14180_v40 = vpop.f32.mrf.mxu0  ;;  %4022 = vmatpush1.bf16.msra.mxu1 %v12753_v21 }
 0x136   : > { %v1518_v58 = vadd.f32 %v1517_v49, %v1516_v42  ;;  %v1530_v61 = vadd.f32 %v1529_v50, %v1528_v43  ;;  %v1523_v62 = vrot.slane %v1522_v51, 2  ;;  %v1535_v63 = vrot.slane %v1534_v52, 2 }
 0x137   : > { %v1875_v3 = vmul.f32 0.125, %v1496_v53  ;;  %v1877_v6 = vmul.f32 0.125, %v1508_v54  ;;  %v1502_v8 = vadd.f32 %v1501_v55, %v1500_v47  ;;  %v1514_v9 = vadd.f32 %v1513_v56, %v1512_v48  ;;  %v14188_v55 = vpop.f32.mrf.mxu0 }
 0x138   : > { %v1519_v10 = vrot.slane %v1518_v58, 1  ;;  %v1531_v11 = vrot.slane %v1530_v61, 1  ;;  %v1524_v14 = vadd.f32 %v1523_v62, %v1522_v51  ;;  %v1536_v15 = vadd.f32 %v1535_v63, %v1534_v52  ;;  %v14193_v62 = vpop.f32.mrf.mxu1 }
 0x139   : > { %v1939_v16 = vadd.f32 1e-05, %v1875_v3  ;;  %v1941_v17 = vadd.f32 1e-05, %v1877_v6  ;;  %v1876_v19 = vmul.f32 0.125, %v1502_v8  ;;  %v1878_v20 = vmul.f32 0.125, %v1514_v9 }
 0x13a   : > { %v1520_v24 = vadd.f32 %v1519_v10, %v1518_v58  ;;  %v1532_v25 = vadd.f32 %v1531_v11, %v1530_v61  ;;  %v1525_v26 = vrot.slane %v1524_v14, 1  ;;  %v1537_v27 = vrot.slane %v1536_v15, 1 }
 0x13b   : > { %13210 = vrsqrt.f32 %v1939_v16  ;;  %v1940_v29 = vadd.f32 1e-05, %v1876_v19  ;;  %v1942_v30 = vadd.f32 1e-05, %v1878_v20  ;;  %v962_v13 = vrot.slane %v14169_v57, 4 }
 0x13c   : > { %13212 = vrsqrt.f32 %v1941_v17  ;;  %v1879_v32 = vmul.f32 0.125, %v1520_v24  ;;  %v1881_v33 = vmul.f32 0.125, %v1532_v25  ;;  %v1526_v34 = vadd.f32 %v1525_v26, %v1524_v14 }
 0x13d   : > { %13214 = vrsqrt.f32 %v1940_v29  ;;  %v1538_v37 = vadd.f32 %v1537_v27, %v1536_v15  ;;  %v963_v38 = vadd.f32 %v962_v13, %v14169_v57  ;;  %v974_v39 = vrot.slane %v14171_v2, 4 }
 0x13e   : > { %13216 = vrsqrt.f32 %v1942_v30  ;;  %v1943_v42 = vadd.f32 1e-05, %v1879_v32  ;;  %v1945_v43 = vadd.f32 1e-05, %v1881_v33  ;;  %v1880_v22 = vmul.f32 0.125, %v1526_v34 }
 0x13f   : > { %v1882_v45 = vmul.f32 0.125, %v1538_v37  ;;  %v964_v46 = vrot.slane %v963_v38, 2  ;;  %v975_v47 = vadd.f32 %v974_v39, %v14171_v2  ;;  %v968_v48 = vrot.slane %v14173_v5, 4 }
 0x140   : > { %13218 = vrsqrt.f32 %v1943_v42  ;;  %v1944_v49 = vadd.f32 1e-05, %v1880_v22  ;;  %v980_v50 = vrot.slane %v14175_v28, 4  ;;  %v986_v51 = vrot.slane %v14180_v40, 4 }
 0x141   : > { %13220 = vrsqrt.f32 %v1945_v43  ;;  %v1946_v52 = vadd.f32 1e-05, %v1882_v45  ;;  %v965_v53 = vadd.f32 %v964_v46, %v963_v38  ;;  %v976_v54 = vrot.slane %v975_v47, 2  ;;  %v12758_v46 = vld [vmem:[#allocation2 + $0x4] ss:$16 sps:$4 sm:$0xff]  }
 0x142   : > { %13222 = vrsqrt.f32 %v1944_v49  ;;  %v969_v56 = vadd.f32 %v968_v48, %v14173_v5  ;;  %v981_v58 = vadd.f32 %v980_v50, %v14175_v28  ;;  %v987_v61 = vadd.f32 %v986_v51, %v14180_v40  ;;  %3910 = vmatprep.subr.bf16.mxu0 %v12758_v46 }
 0x143   : > { %13224 = vrsqrt.f32 %v1946_v52  ;;  %v966_v63 = vrot.slane %v965_v53, 1  ;;  %v977_v3 = vadd.f32 %v976_v54, %v975_v47  ;;  %v998_v6 = vrot.slane %v14182_v44, 4  ;;  %v12761_v47 = vld [vmem:[#allocation2 + $0x204] ss:$16 sps:$4 sm:$0xff]   ;;  %v12756_v52 = vld [vmem:[#allocation2] ss:$16 sps:$4 sm:$0xff]  }
 0x144   : > { %v970_v8 = vrot.slane %v969_v56, 2  ;;  %v982_v9 = vrot.slane %v981_v58, 2  ;;  %v988_v10 = vrot.slane %v987_v61, 2  ;;  %v992_v11 = vrot.slane %v14188_v55, 4  ;;  %4023 = vmatprep.subr.bf16.mxu1 %v12761_v47  ;;  %3911 = vmatpush1.bf16.msra.mxu0 %v12756_v52 }
 0x145   : > { %v967_v14 = vadd.f32 %v966_v63, %v965_v53  ;;  %v978_v15 = vrot.slane %v977_v3, 1  ;;  %v999_v16 = vadd.f32 %v998_v6, %v14182_v44  ;;  %v1004_v17 = vrot.slane %v14193_v62, 4  ;;  %v12759_v53 = vld [vmem:[#allocation2 + $0x200] ss:$16 sps:$4 sm:$0xff]  }
 0x146   : > { %v971_v19 = vadd.f32 %v970_v8, %v969_v56  ;;  %v983_v20 = vadd.f32 %v982_v9, %v981_v58  ;;  %v989_v24 = vadd.f32 %v988_v10, %v987_v61  ;;  %v993_v25 = vadd.f32 %v992_v11, %v14188_v55  ;;  %4024 = vmatpush1.bf16.msra.mxu1 %v12759_v53 }
 0x147   : > { %v14201_v26 = vsub.s32 3, %v14106_v7  ;;  %v1307_v27 = vmul.f32 0.125, %v967_v14  ;;  %v979_v29 = vadd.f32 %v978_v15, %v977_v3  ;;  %v1000_v30 = vrot.slane %v999_v16, 2 }
 0x148   : > { %v13211_v13 = vpop.eup %13210  ;;  %v972_v32 = vrot.slane %v971_v19, 1  ;;  %v984_v33 = vrot.slane %v983_v20, 1  ;;  %v990_v34 = vrot.slane %v989_v24, 1  ;;  %v994_v35 = vrot.slane %v993_v25, 2 }
 0x149   : > { %v13213_v36 = vpop.eup %13212  ;;  %v14204_v37 = vsub.f32 %v14169_v57, %v1307_v27  ;;  %v1309_v38 = vmul.f32 0.125, %v979_v29  ;;  %v1001_v39 = vadd.f32 %v1000_v30, %v999_v16  ;;  %v14207_v41 = vadd.f32 %v1004_v17, %v14193_v62 }
 0x14a   : > { %v13215_v21 = vpop.eup %13214  ;;  %v973_v42 = vadd.f32 %v972_v32, %v971_v19  ;;  %v985_v43 = vadd.f32 %v984_v33, %v983_v20  ;;  %v991_v22 = vadd.f32 %v990_v34, %v989_v24  ;;  %v14209_v45 = vadd.f32 %v994_v35, %v993_v25 }
 0x14b   : > { %v13217_v48 = vpop.eup %13216  ;;  %v2131_v49 = vcombine.low %v13211_v13, %v13215_v21  ;;  %v1435_v50 = vmul.f32 %v14204_v37, %v14204_v37  ;;  %v14214_v57 = vsub.f32 %v14171_v2, %v1309_v38  ;;  %v1002_v51 = vrot.slane %v1001_v39, 1 }
 0x14c   : > { %v2132_v54 = vcombine.low %v13213_v36, %v13217_v48  ;;  %v1308_v56 = vmul.f32 0.125, %v973_v42  ;;  %v1310_v58 = vmul.f32 0.125, %v985_v43  ;;  %v1311_v61 = vmul.f32 0.125, %v991_v22 }
 0x14d   : > { %18663 = vst [vmem:[#allocation18_spill] sm:$0xff] %v14214_v57  ;;  %v13219_v63 = vpop.eup %13218  ;;  %v2139_v3 = vrot.slane %v2131_v49, %v14117_v18  ;;  %v1539_v6 = vrot.slane %v1435_v50, 4  ;;  %v1437_v8 = vmul.f32 %v14214_v57, %v14214_v57  ;;  %v1003_v9 = vadd.f32 %v1002_v51, %v1001_v39 }
 0x14e   : > { %v13221_v2 = vpop.eup %13220  ;;  %v2146_v10 = vrot.slane %v2132_v54, %v14117_v18  ;;  %v14221_v11 = vsub.f32 %v14173_v5, %v1308_v56  ;;  %v14224_v14 = vsub.f32 %v14175_v28, %v1310_v58  ;;  %v14227_v15 = vsub.f32 %v14180_v40, %v1311_v61  ;;  %v14237_v28 = vld [vmem:[%s18463_s2] sm:$0xf] }
 0x14f   : > { %v13223_v16 = vpop.eup %13222  ;;  %v1540_v17 = vadd.f32 %v1539_v6, %v1435_v50  ;;  %v1551_v19 = vrot.slane %v1437_v8, 4  ;;  %v1313_v20 = vmul.f32 0.125, %v1003_v9  ;;  %v996_v24 = vrot.slane %v14209_v45, 1 }
 0x150   : > { %v13225_v25 = vpop.eup %13224  ;;  %v2147_v27 = vcombine.low %v2139_v3, %v2146_v10  ;;  %v2155_v29 = vcombine.low %v13219_v63, %v13223_v16  ;;  %v1436_v30 = vmul.f32 %v14221_v11, %v14221_v11  ;;  %v1438_v5 = vmul.f32 %v14224_v14, %v14224_v14 }
 0x151   : > { %v2156_v40 = vcombine.low %v13221_v2, %v13225_v25  ;;  %v1541_v13 = vrot.slane %v1540_v17, 2  ;;  %v1552_v32 = vadd.f32 %v1551_v19, %v1437_v8  ;;  %v1439_v33 = vmul.f32 %v14227_v15, %v14227_v15 }
 0x152   : > { %v2154_v34 = vrot.slane %v2147_v27, %v14117_v18  ;;  %v2163_v35 = vrot.slane %v2155_v29, %v14117_v18  ;;  %v1545_v36 = vrot.slane %v1436_v30, 4  ;;  %v1557_v38 = vrot.slane %v1438_v5, 4 }
 0x153   : > { %v2170_v39 = vrot.slane %v2156_v40, %v14117_v18  ;;  %v1542_v21 = vadd.f32 %v1541_v13, %v1540_v17  ;;  %v1553_v42 = vrot.slane %v1552_v32, 2  ;;  %v1563_v43 = vrot.slane %v1439_v33, 4 }
 0x154   : > { %v14245_v22 = vmul.f32 %v2154_v34, %v14237_v28  ;;  %v1546_v46 = vadd.f32 %v1545_v36, %v1436_v30  ;;  %v1558_v47 = vadd.f32 %v1557_v38, %v1438_v5  ;;  %v14248_v48 = vsub.f32 %v14182_v44, %v1313_v20 }
 0x155   : > { %v2171_v49 = vcombine.low %v2163_v35, %v2170_v39  ;;  %v1543_v50 = vrot.slane %v1542_v21, 1  ;;  %v1554_v51 = vadd.f32 %v1553_v42, %v1552_v32  ;;  %v1564_v52 = vadd.f32 %v1563_v43, %v1439_v33  ;;  %v14263_v32 = vpop.f32.mrf.mxu0  ;;  %v14270_v43 = vpop.f32.mrf.mxu1 }
 0x156   : > { %18664 = vst [vmem:[#allocation19_spill] sm:$0xff] %v14248_v48  ;;  %v2578_v53 = vrot.slane %v14245_v22, %v14201_v26  ;;  %v1547_v54 = vrot.slane %v1546_v46, 2  ;;  %v1559_v56 = vrot.slane %v1558_v47, 2  ;;  %v1441_v58 = vmul.f32 %v14248_v48, %v14248_v48 }
 0x157   : > { %v2178_v61 = vrot.slane %v2171_v49, %v14117_v18  ;;  %v1544_v63 = vadd.f32 %v1543_v50, %v1542_v21  ;;  %v1555_v3 = vrot.slane %v1554_v51, 1  ;;  %v1565_v6 = vrot.slane %v1564_v52, 2  ;;  %v14274_v50 = vpop.f32.mrf.mxu0 }
 0x158   : > { %v1548_v8 = vadd.f32 %v1547_v54, %v1546_v46  ;;  %v1560_v44 = vadd.f32 %v1559_v56, %v1558_v47  ;;  %v1575_v9 = vrot.slane %v1441_v58, 4  ;;  %v1006_v2 = vrot.slane %v14207_v41, 2 }
 0x159   : > { %v14257_v10 = vmul.f32 %v2178_v61, %v14237_v28  ;;  %v1883_v16 = vmul.f32 0.125, %v1544_v63  ;;  %v1556_v17 = vadd.f32 %v1555_v3, %v1554_v51  ;;  %v1566_v19 = vadd.f32 %v1565_v6, %v1564_v52  ;;  %v14281_v6 = vpop.f32.mrf.mxu1 }
 0x15a   : > { %v1549_v20 = vrot.slane %v1548_v8, 1  ;;  %v1561_v25 = vrot.slane %v1560_v44, 1  ;;  %v1576_v27 = vadd.f32 %v1575_v9, %v1441_v58  ;;  %v997_v29 = vadd.f32 %v996_v24, %v14209_v45 }
 0x15b   : > { %v14261_v30 = vmul.f32 %v2578_v53, %v14143_v1  ;;  %v1947_v5 = vadd.f32 1e-05, %v1883_v16  ;;  %v1885_v40 = vmul.f32 0.125, %v1556_v17  ;;  %v1567_v13 = vrot.slane %v1566_v19, 1 }
 0x15c   : > { %v1550_v33 = vadd.f32 %v1549_v20, %v1548_v8  ;;  %v1562_v34 = vadd.f32 %v1561_v25, %v1560_v44  ;;  %v1577_v35 = vrot.slane %v1576_v27, 2  ;;  %v1312_v36 = vmul.f32 0.125, %v997_v29 }
 0x15d   : > { %v2594_v38 = vrot.slane %v14257_v10, %v14201_v26  ;;  %13226 = vrsqrt.f32 %v1947_v5  ;;  %v1949_v39 = vadd.f32 1e-05, %v1885_v40  ;;  %v1568_v21 = vadd.f32 %v1567_v13, %v1566_v19 }
 0x15e   : > { %v1884_v42 = vmul.f32 0.125, %v1550_v33  ;;  %v1886_v45 = vmul.f32 0.125, %v1562_v34  ;;  %v1578_v24 = vadd.f32 %v1577_v35, %v1576_v27  ;;  %v14268_v1 = vsub.f32 %v14188_v55, %v1312_v36 }
 0x15f   : > { %13228 = vrsqrt.f32 %v1949_v39  ;;  %v1887_v46 = vmul.f32 0.125, %v1568_v21  ;;  %v1007_v47 = vadd.f32 %v1006_v2, %v14207_v41  ;;  %v1010_v49 = vrot.slane %v14263_v32, 4  ;;  %v14284_v2 = vpop.f32.mrf.mxu0  ;;  %v14293_v21 = vpop.f32.mrf.mxu1 }
 0x160   : > { %v1948_v51 = vadd.f32 1e-05, %v1884_v42  ;;  %v1950_v52 = vadd.f32 1e-05, %v1886_v45  ;;  %v1579_v53 = vrot.slane %v1578_v24, 1  ;;  %v1440_v54 = vmul.f32 %v14268_v1, %v14268_v1 }
 0x161   : > { %v1951_v56 = vadd.f32 1e-05, %v1887_v46  ;;  %v1008_v58 = vrot.slane %v1007_v47, 1  ;;  %v1011_v55 = vadd.f32 %v1010_v49, %v14263_v32  ;;  %v1022_v61 = vrot.slane %v14270_v43, 4  ;;  %v12762_v42 = vld [vmem:[#allocation2 + $0x1e0] ss:$16 sps:$4 sm:$0xff]  }
 0x162   : > { %13230 = vrsqrt.f32 %v1948_v51  ;;  %v1580_v63 = vadd.f32 %v1579_v53, %v1578_v24  ;;  %v1569_v3 = vrot.slane %v1440_v54, 4  ;;  %v1016_v41 = vrot.slane %v14274_v50, 4  ;;  %v12764_v45 = vld [vmem:[#allocation2 + $0x1e4] ss:$16 sps:$4 sm:$0xff]   ;;  %v12765_v49 = vld [vmem:[#allocation2 + $0x3e0] ss:$16 sps:$4 sm:$0xff]  }
 0x163   : > { %13232 = vrsqrt.f32 %v1950_v52  ;;  %v1009_v8 = vadd.f32 %v1008_v58, %v1007_v47  ;;  %v1012_v44 = vrot.slane %v1011_v55, 2  ;;  %v1023_v9 = vadd.f32 %v1022_v61, %v14270_v43  ;;  %v12767_v51 = vld [vmem:[#allocation2 + $0x3e4] ss:$16 sps:$4 sm:$0xff]   ;;  %3912 = vmatprep.subr.bf16.mxu0 %v12764_v45 }
 0x164   : > { %13234 = vrsqrt.f32 %v1951_v56  ;;  %v1889_v16 = vmul.f32 0.125, %v1580_v63  ;;  %v1570_v17 = vadd.f32 %v1569_v3, %v1440_v54  ;;  %v1017_v19 = vadd.f32 %v1016_v41, %v14274_v50  ;;  %4025 = vmatprep.subr.bf16.mxu1 %v12767_v51  ;;  %3913 = vmatpush2.bf16.msra.mxu0 %v12762_v42 }
 0x165   : > { %v1314_v20 = vmul.f32 0.125, %v1009_v8  ;;  %v1013_v25 = vadd.f32 %v1012_v44, %v1011_v55  ;;  %v1024_v27 = vrot.slane %v1023_v9, 2  ;;  %v1028_v29 = vrot.slane %v14281_v6, 4  ;;  %4026 = vmatpush2.bf16.msra.mxu1 %v12765_v49 }
 0x166   : > { %v1953_v5 = vadd.f32 1e-05, %v1889_v16  ;;  %v1571_v40 = vrot.slane %v1570_v17, 2  ;;  %v1018_v13 = vrot.slane %v1017_v19, 2  ;;  %v1034_v33 = vrot.slane %v14284_v2, 4 }
 0x167   : > { %v14290_v34 = vsub.f32 %v14193_v62, %v1314_v20  ;;  %v1014_v35 = vrot.slane %v1013_v25, 1  ;;  %v1025_v36 = vadd.f32 %v1024_v27, %v1023_v9  ;;  %v1029_v39 = vadd.f32 %v1028_v29, %v14281_v6 }
 0x168   : > { %13236 = vrsqrt.f32 %v1953_v5  ;;  %v1572_v24 = vadd.f32 %v1571_v40, %v1570_v17  ;;  %v1019_v46 = vadd.f32 %v1018_v13, %v1017_v19  ;;  %v1035_v47 = vadd.f32 %v1034_v33, %v14284_v2 }
 0x169   : > { %v1442_v52 = vmul.f32 %v14290_v34, %v14290_v34  ;;  %v1015_v62 = vadd.f32 %v1014_v35, %v1013_v25  ;;  %v1026_v53 = vrot.slane %v1025_v36, 1  ;;  %v1030_v54 = vrot.slane %v1029_v39, 2 }
 0x16a   : > { %v13227_v56 = vpop.eup %13226  ;;  %v1573_v58 = vrot.slane %v1572_v24, 1  ;;  %v1020_v55 = vrot.slane %v1019_v46, 1  ;;  %v1036_v61 = vrot.slane %v1035_v47, 2  ;;  %v1046_v63 = vrot.slane %v14293_v21, 4 }
 0x16b   : > { %v1581_v3 = vrot.slane %v1442_v52, 4  ;;  %v1315_v41 = vmul.f32 0.125, %v1015_v62  ;;  %v1027_v8 = vadd.f32 %v1026_v53, %v1025_v36  ;;  %v1031_v44 = vadd.f32 %v1030_v54, %v1029_v39  ;;  %v12773_v62 = vld [vmem:[#allocation2 + $0x3c4] ss:$16 sps:$4 sm:$0xff]  }
 0x16c   : > { %v13229_v9 = vpop.eup %13228  ;;  %v1574_v16 = vadd.f32 %v1573_v58, %v1572_v24  ;;  %v1021_v17 = vadd.f32 %v1020_v55, %v1019_v46  ;;  %v1037_v19 = vadd.f32 %v1036_v61, %v1035_v47  ;;  %v1047_v20 = vadd.f32 %v1046_v63, %v14293_v21  ;;  %v12771_v63 = vld [vmem:[#allocation2 + $0x3c0] ss:$16 sps:$4 sm:$0xff]   ;;  %4027 = vmatprep.subr.bf16.mxu1 %v12773_v62 }
 0x16d   : > { %v1582_v25 = vadd.f32 %v1581_v3, %v1442_v52  ;;  %v14301_v27 = vsub.f32 %v14263_v32, %v1315_v41  ;;  %v1317_v29 = vmul.f32 0.125, %v1027_v8  ;;  %v1032_v5 = vrot.slane %v1031_v44, 1  ;;  %v12770_v52 = vld [vmem:[#allocation2 + $0x1c4] ss:$16 sps:$4 sm:$0xff]   ;;  %4028 = vmatpush2.bf16.msra.mxu1 %v12771_v63 }
 0x16e   : > { %v1888_v40 = vmul.f32 0.125, %v1574_v16  ;;  %v1316_v13 = vmul.f32 0.125, %v1021_v17  ;;  %v1038_v33 = vrot.slane %v1037_v19, 1  ;;  %v1048_v35 = vrot.slane %v1047_v20, 2  ;;  %3914 = vmatprep.subr.bf16.mxu0 %v12770_v52 }
 0x16f   : > { %18665 = vst [vmem:[#allocation20_spill] sm:$0xff] %v14301_v27  ;;  %v13231_v42 = vpop.eup %13230  ;;  %v1583_v36 = vrot.slane %v1582_v25, 2  ;;  %v1443_v39 = vmul.f32 %v14301_v27, %v14301_v27  ;;  %v14306_v45 = vsub.f32 %v14270_v43, %v1317_v29  ;;  %v1033_v24 = vadd.f32 %v1032_v5, %v1031_v44  ;;  %v12768_v43 = vld [vmem:[#allocation2 + $0x1c0] ss:$16 sps:$4 sm:$0xff]  }
 0x170   : > { %v13233_v46 = vpop.eup %13232  ;;  %v2179_v47 = vcombine.low %v13227_v56, %v13231_v42  ;;  %v1952_v49 = vadd.f32 1e-05, %v1888_v40  ;;  %v14309_v32 = vsub.f32 %v14274_v50, %v1316_v13  ;;  %v1039_v51 = vadd.f32 %v1038_v33, %v1037_v19  ;;  %3915 = vmatpush2.bf16.msra.mxu0 %v12768_v43 }
 0x171   : > { %18666 = vst [vmem:[#allocation21_spill] sm:$0xff] %v14306_v45  ;;  %v14311_v53 = vpop.eup %13234  ;;  %v2180_v54 = vcombine.low %v13229_v9, %v13233_v46  ;;  %v1584_v58 = vadd.f32 %v1583_v36, %v1582_v25  ;;  %v1587_v55 = vrot.slane %v1443_v39, 4  ;;  %v1445_v61 = vmul.f32 %v14306_v45, %v14306_v45 }
 0x172   : > { %18667 = vst [vmem:[#allocation22_spill] sm:$0xff] %v14309_v32  ;;  %v2187_v3 = vrot.slane %v2179_v47, %v14117_v18  ;;  %13238 = vrsqrt.f32 %v1952_v49  ;;  %v1444_v50 = vmul.f32 %v14309_v32, %v14309_v32  ;;  %v1318_v56 = vmul.f32 0.125, %v1033_v24 }
 0x173   : > { %v2194_v41 = vrot.slane %v2180_v54, %v14117_v18  ;;  %v1585_v8 = vrot.slane %v1584_v58, 1  ;;  %v1588_v44 = vadd.f32 %v1587_v55, %v1443_v39  ;;  %v1599_v9 = vrot.slane %v1445_v61, 4 }
 0x174   : > { %v1593_v16 = vrot.slane %v1444_v50, 4  ;;  %v14320_v17 = vsub.f32 %v14281_v6, %v1318_v56  ;;  %v1319_v19 = vmul.f32 0.125, %v1039_v51  ;;  %v1049_v25 = vadd.f32 %v1048_v35, %v1047_v20 }
 0x175   : > { %v14322_v29 = vpop.eup %13236  ;;  %v2195_v5 = vcombine.low %v2187_v3, %v2194_v41  ;;  %v1586_v40 = vadd.f32 %v1585_v8, %v1584_v58  ;;  %v1589_v13 = vrot.slane %v1588_v44, 2  ;;  %v1600_v33 = vadd.f32 %v1599_v9, %v1445_v61  ;;  %v14335_v3 = vpop.f32.mrf.mxu0 }
 0x176   : > { %v1594_v42 = vadd.f32 %v1593_v16, %v1444_v50  ;;  %v1446_v36 = vmul.f32 %v14320_v17, %v14320_v17  ;;  %v14327_v39 = vsub.f32 %v14284_v2, %v1319_v19  ;;  %v1050_v24 = vrot.slane %v1049_v25, 1  ;;  %v14342_v19 = vpop.f32.mrf.mxu1 }
 0x177   : > { %v2202_v46 = vrot.slane %v2195_v5, %v14117_v18  ;;  %v1890_v6 = vmul.f32 0.125, %v1586_v40  ;;  %v1590_v47 = vadd.f32 %v1589_v13, %v1588_v44  ;;  %v1601_v49 = vrot.slane %v1600_v33, 2 }
 0x178   : > { %18668 = vst [vmem:[#allocation23_spill] sm:$0xff] %v14327_v39  ;;  %v1595_v20 = vrot.slane %v1594_v42, 2  ;;  %v1605_v35 = vrot.slane %v1446_v36, 4  ;;  %v1447_v51 = vmul.f32 %v14327_v39, %v14327_v39  ;;  %v1051_v52 = vadd.f32 %v1050_v24, %v1049_v25 }
 0x179   : > { %v14333_v62 = vmul.f32 %v2202_v46, %v14237_v28  ;;  %v1954_v54 = vadd.f32 1e-05, %v1890_v6  ;;  %v1591_v58 = vrot.slane %v1590_v47, 1  ;;  %v1602_v55 = vadd.f32 %v1601_v49, %v1600_v33 }
 0x17a   : > { %v1596_v2 = vadd.f32 %v1595_v20, %v1594_v42  ;;  %v1606_v61 = vadd.f32 %v1605_v35, %v1446_v36  ;;  %v1611_v43 = vrot.slane %v1447_v51, 4  ;;  %v1321_v63 = vmul.f32 0.125, %v1051_v52  ;;  %v14355_v20 = vpop.f32.mrf.mxu0 }
 0x17b   : > { %v2610_v50 = vrot.slane %v14333_v62, %v14201_v26  ;;  %13240 = vrsqrt.f32 %v1954_v54  ;;  %v1592_v56 = vadd.f32 %v1591_v58, %v1590_v47  ;;  %v1603_v41 = vrot.slane %v1602_v55, 1 }
 0x17c   : > { %v1597_v8 = vrot.slane %v1596_v2, 1  ;;  %v1607_v44 = vrot.slane %v1606_v61, 2  ;;  %v1612_v9 = vadd.f32 %v1611_v43, %v1447_v51  ;;  %v14340_v16 = vsub.f32 %v14293_v21, %v1321_v63  ;;  %v14361_v63 = vpop.f32.mrf.mxu1 }
 0x17d   : > { %v14348_v25 = vmul.f32 %v2594_v38, %v14163_v12  ;;  %v1891_v5 = vmul.f32 0.125, %v1592_v56  ;;  %v1604_v40 = vadd.f32 %v1603_v41, %v1602_v55  ;;  %v1040_v13 = vrot.slane %v14335_v3, 4 }
 0x17e   : > { %18669 = vst [vmem:[#allocation24_spill] sm:$0xff] %v14340_v16  ;;  %v1598_v33 = vadd.f32 %v1597_v8, %v1596_v2  ;;  %v1608_v42 = vadd.f32 %v1607_v44, %v1606_v61  ;;  %v1613_v36 = vrot.slane %v1612_v9, 2  ;;  %v1449_v24 = vmul.f32 %v14340_v16, %v14340_v16 }
 0x17f   : > { %v13239_v21 = vpop.eup %13238  ;;  %v1955_v46 = vadd.f32 1e-05, %v1891_v5  ;;  %v1893_v6 = vmul.f32 0.125, %v1604_v40  ;;  %v1041_v47 = vadd.f32 %v1040_v13, %v14335_v3  ;;  %v1052_v49 = vrot.slane %v14342_v19, 4 }
 0x180   : > { %v14358_v12 = vmul.f32 %v2610_v50, %v14224_v14  ;;  %v1892_v38 = vmul.f32 0.125, %v1598_v33  ;;  %v1609_v35 = vrot.slane %v1608_v42, 1  ;;  %v1614_v51 = vadd.f32 %v1613_v36, %v1612_v9  ;;  %v14364_v50 = vpop.f32.mrf.mxu0 }
 0x181   : > { %v2203_v52 = vcombine.low %v14311_v53, %v13239_v21  ;;  %v1957_v54 = vadd.f32 1e-05, %v1893_v6  ;;  %v1623_v58 = vrot.slane %v1449_v24, 4  ;;  %v1042_v55 = vrot.slane %v1041_v47, 2 }
 0x182   : > { %13242 = vrsqrt.f32 %v1955_v46  ;;  %v1956_v2 = vadd.f32 1e-05, %v1892_v38  ;;  %v1610_v61 = vadd.f32 %v1609_v35, %v1608_v42  ;;  %v1615_v43 = vrot.slane %v1614_v51, 1 }
 0x183   : > { %13244 = vrsqrt.f32 %v1957_v54  ;;  %v1624_v56 = vadd.f32 %v1623_v58, %v1449_v24  ;;  %v1043_v41 = vadd.f32 %v1042_v55, %v1041_v47  ;;  %v1053_v14 = vadd.f32 %v1052_v49, %v14342_v19 }
 0x184   : > { %13246 = vrsqrt.f32 %v1956_v2  ;;  %v1894_v8 = vmul.f32 0.125, %v1610_v61  ;;  %v1616_v44 = vadd.f32 %v1615_v43, %v1614_v51  ;;  %v1058_v53 = vrot.slane %v14355_v20, 4  ;;  %v14374_v61 = vpop.f32.mrf.mxu1 }
 0x185   : > { %v1625_v9 = vrot.slane %v1624_v56, 2  ;;  %v1044_v5 = vrot.slane %v1043_v41, 1  ;;  %v1054_v40 = vrot.slane %v1053_v14, 2  ;;  %v1070_v13 = vrot.slane %v14361_v63, 4 }
 0x186   : > { %v1958_v33 = vadd.f32 1e-05, %v1894_v8  ;;  %v1895_v42 = vmul.f32 0.125, %v1616_v44  ;;  %v1059_v36 = vadd.f32 %v1058_v53, %v14355_v20  ;;  %v1064_v24 = vrot.slane %v14364_v50, 4 }
 0x187   : > { %v1626_v21 = vadd.f32 %v1625_v9, %v1624_v56  ;;  %v1045_v46 = vadd.f32 %v1044_v5, %v1043_v41  ;;  %v1055_v6 = vadd.f32 %v1054_v40, %v1053_v14  ;;  %v1071_v47 = vadd.f32 %v1070_v13, %v14361_v63  ;;  %v12776_v9 = vld [vmem:[#allocation2 + $0x1a4] ss:$16 sps:$4 sm:$0xff]  }
 0x188   : > { %v13241_v49 = vpop.eup %13240  ;;  %v2211_v38 = vrot.slane %v2203_v52, %v14117_v18  ;;  %13248 = vrsqrt.f32 %v1958_v33  ;;  %v1060_v35 = vrot.slane %v1059_v36, 2  ;;  %v1065_v51 = vadd.f32 %v1064_v24, %v14364_v50  ;;  %v12779_v5 = vld [vmem:[#allocation2 + $0x3a4] ss:$16 sps:$4 sm:$0xff]   ;;  %v12774_v24 = vld [vmem:[#allocation2 + $0x1a0] ss:$16 sps:$4 sm:$0xff]   ;;  %3916 = vmatprep.subr.bf16.mxu0 %v12776_v9 }
 0x189   : > { %v2204_v54 = vcombine.low %v14322_v29, %v13241_v49  ;;  %v1627_v58 = vrot.slane %v1626_v21, 1  ;;  %v1320_v55 = vmul.f32 0.125, %v1045_v46  ;;  %v1056_v2 = vrot.slane %v1055_v6, 1  ;;  %v12777_v46 = vld [vmem:[#allocation2 + $0x3a0] ss:$16 sps:$4 sm:$0xff]   ;;  %4029 = vmatprep.subr.bf16.mxu1 %v12779_v5  ;;  %3917 = vmatpush2.bf16.msra.mxu0 %v12774_v24 }
 0x18a   : > { %v1959_v43 = vadd.f32 1e-05, %v1895_v42  ;;  %v1061_v56 = vadd.f32 %v1060_v35, %v1059_v36  ;;  %v1072_v41 = vrot.slane %v1071_v47, 2  ;;  %v1066_v14 = vrot.slane %v1065_v51, 2  ;;  %4030 = vmatpush2.bf16.msra.mxu1 %v12777_v46 }
 0x18b   : > { %v2218_v8 = vrot.slane %v2204_v54, %v14117_v18  ;;  %v1628_v44 = vadd.f32 %v1627_v58, %v1626_v21  ;;  %v14378_v52 = vsub.f32 %v14335_v3, %v1320_v55  ;;  %v1057_v53 = vadd.f32 %v1056_v2, %v1055_v6 }
 0x18c   : > { %v1062_v40 = vrot.slane %v1061_v56, 1  ;;  %v1073_v29 = vadd.f32 %v1072_v41, %v1071_v47  ;;  %v1067_v13 = vadd.f32 %v1066_v14, %v1065_v51  ;;  %v1076_v33 = vrot.slane %v14374_v61, 4 }
 0x18d   : > { %18670 = vst [vmem:[#allocation25_spill] sm:$0xff] %v14378_v52  ;;  %v2219_v42 = vcombine.low %v2211_v38, %v2218_v8  ;;  %v1897_v36 = vmul.f32 0.125, %v1628_v44  ;;  %v1448_v49 = vmul.f32 %v14378_v52, %v14378_v52  ;;  %v1322_v35 = vmul.f32 0.125, %v1057_v53 }
 0x18e   : > { %v1063_v3 = vadd.f32 %v1062_v40, %v1061_v56  ;;  %v1074_v21 = vrot.slane %v1073_v29, 1  ;;  %v1068_v6 = vrot.slane %v1067_v13, 1  ;;  %v1077_v54 = vadd.f32 %v1076_v33, %v14374_v61 }
 0x18f   : > { %v13243_v47 = vpop.eup %13242  ;;  %v2226_v51 = vrot.slane %v2219_v42, %v14117_v18  ;;  %v1961_v58 = vadd.f32 1e-05, %v1897_v36  ;;  %v1617_v55 = vrot.slane %v1448_v49, 4  ;;  %v14386_v38 = vsub.f32 %v14342_v19, %v1322_v35 }
 0x190   : > { %v13245_v2 = vpop.eup %13244  ;;  %v1323_v41 = vmul.f32 0.125, %v1063_v3  ;;  %v1075_v14 = vadd.f32 %v1074_v21, %v1073_v29  ;;  %v1069_v8 = vadd.f32 %v1068_v6, %v1067_v13  ;;  %v1078_v44 = vrot.slane %v1077_v54, 2 }
 0x191   : > { %v13247_v56 = vpop.eup %13246  ;;  %v14389_v53 = vmul.f32 %v2226_v51, %v14237_v28  ;;  %13250 = vrsqrt.f32 %v1959_v43  ;;  %v1618_v9 = vadd.f32 %v1617_v55, %v1448_v49  ;;  %v1450_v5 = vmul.f32 %v14386_v38, %v14386_v38 }
 0x192   : > { %v2227_v40 = vcombine.low %v13243_v47, %v13247_v56  ;;  %v14394_v33 = vsub.f32 %v14355_v20, %v1323_v41  ;;  %v1325_v19 = vmul.f32 0.125, %v1075_v14  ;;  %v1324_v24 = vmul.f32 0.125, %v1069_v8  ;;  %v14406_v20 = vpop.f32.mrf.mxu0 }
 0x193   : > { %13252 = vrsqrt.f32 %v1961_v58  ;;  %v1619_v46 = vrot.slane %v1618_v9, 2  ;;  %v1629_v29 = vrot.slane %v1450_v5, 4  ;;  %v1079_v13 = vadd.f32 %v1078_v44, %v1077_v54 }
 0x194   : > { %18671 = vst [vmem:[#allocation26_spill] sm:$0xff] %v14394_v33  ;;  %v2626_v42 = vrot.slane %v14389_v53, %v14201_v26  ;;  %v1451_v43 = vmul.f32 %v14394_v33, %v14394_v33  ;;  %v14401_v36 = vsub.f32 %v14361_v63, %v1325_v19  ;;  %v14404_v49 = vsub.f32 %v14364_v50, %v1324_v24 }
 0x195   : > { %v13249_v35 = vpop.eup %13248  ;;  %v2235_v3 = vrot.slane %v2227_v40, %v14117_v18  ;;  %v1620_v21 = vadd.f32 %v1619_v46, %v1618_v9  ;;  %v1630_v6 = vadd.f32 %v1629_v29, %v1450_v5  ;;  %v1080_v54 = vrot.slane %v1079_v13, 1 }
 0x196   : > { %18672 = vst [vmem:[#allocation27_spill] sm:$0xff] %v14401_v36  ;;  %18673 = vst [vmem:[#allocation28_spill] sm:$0xff] %v14404_v49  ;;  %v2228_v47 = vcombine.low %v13245_v2, %v13249_v35  ;;  %v1635_v51 = vrot.slane %v1451_v43, 4  ;;  %v1453_v58 = vmul.f32 %v14401_v36, %v14401_v36  ;;  %v1452_v63 = vmul.f32 %v14404_v49, %v14404_v49 }
 0x197   : > { %v1621_v55 = vrot.slane %v1620_v21, 1  ;;  %v1631_v41 = vrot.slane %v1630_v6, 2  ;;  %v1081_v50 = vadd.f32 %v1080_v54, %v1079_v13  ;;  %v1082_v14 = vrot.slane %v14406_v20, 4 }
 0x198   : > { %v2242_v8 = vrot.slane %v2228_v47, %v14117_v18  ;;  %v1636_v44 = vadd.f32 %v1635_v51, %v1451_v43  ;;  %v1647_v56 = vrot.slane %v1453_v58, 4  ;;  %v1641_v9 = vrot.slane %v1452_v63, 4 }
 0x199   : > { %v1622_v5 = vadd.f32 %v1621_v55, %v1620_v21  ;;  %v1632_v40 = vadd.f32 %v1631_v41, %v1630_v6  ;;  %v1326_v2 = vmul.f32 0.125, %v1081_v50  ;;  %v1083_v19 = vadd.f32 %v1082_v14, %v14406_v20  ;;  %v14422_v41 = vpop.f32.mrf.mxu1 }
 0x19a   : > { %v2243_v24 = vcombine.low %v2235_v3, %v2242_v8  ;;  %v1637_v46 = vrot.slane %v1636_v44, 2  ;;  %v1648_v29 = vadd.f32 %v1647_v56, %v1453_v58  ;;  %v1642_v35 = vadd.f32 %v1641_v9, %v1452_v63  ;;  %v12782_v8 = vld [vmem:[#allocation2 + $0x184] ss:$16 sps:$4 sm:$0xff]   ;;  %v12780_v9 = vld [vmem:[#allocation2 + $0x180] ss:$16 sps:$4 sm:$0xff]  }
 0x19b   : > { %v1896_v36 = vmul.f32 0.125, %v1622_v5  ;;  %v1633_v33 = vrot.slane %v1632_v40, 1  ;;  %v14417_v13 = vsub.f32 %v14374_v61, %v1326_v2  ;;  %v1084_v54 = vrot.slane %v1083_v19, 2  ;;  %3918 = vmatprep.subr.bf16.mxu0 %v12782_v8 }
 0x19c   : > { %v2250_v47 = vrot.slane %v2243_v24, %v14117_v18  ;;  %v1638_v43 = vadd.f32 %v1637_v46, %v1636_v44  ;;  %v1649_v51 = vrot.slane %v1648_v29, 2  ;;  %v1643_v49 = vrot.slane %v1642_v35, 2  ;;  %v12785_v44 = vld [vmem:[#allocation2 + $0x384] ss:$16 sps:$4 sm:$0xff]   ;;  %v14434_v46 = vpop.f32.mrf.mxu0  ;;  %3919 = vmatpush2.bf16.msra.mxu0 %v12780_v9 }
 0x19d   : > { %v1960_v21 = vadd.f32 1e-05, %v1896_v36  ;;  %v1634_v6 = vadd.f32 %v1633_v33, %v1632_v40  ;;  %v1454_v55 = vmul.f32 %v14417_v13, %v14417_v13  ;;  %v1085_v3 = vadd.f32 %v1084_v54, %v1083_v19  ;;  %4031 = vmatprep.subr.bf16.mxu1 %v12785_v44 }
 0x19e   : > { %v14424_v58 = vpop.eup %13250  ;;  %v14427_v63 = vmul.f32 %v2250_v47, %v14237_v28  ;;  %v1639_v61 = vrot.slane %v1638_v43, 1  ;;  %v1650_v50 = vadd.f32 %v1649_v51, %v1648_v29  ;;  %v1644_v14 = vadd.f32 %v1643_v49, %v1642_v35  ;;  %v12783_v29 = vld [vmem:[#allocation2 + $0x380] ss:$16 sps:$4 sm:$0xff]   ;;  %v14437_v51 = vpop.f32.mrf.mxu1 }
 0x19f   : > { %13254 = vrsqrt.f32 %v1960_v21  ;;  %v1898_v56 = vmul.f32 0.125, %v1634_v6  ;;  %v1653_v36 = vrot.slane %v1454_v55, 4  ;;  %v1086_v33 = vrot.slane %v1085_v3, 1  ;;  %4032 = vmatpush2.bf16.msra.mxu1 %v12783_v29 }
 0x1a0   : > { %18674 = vst [vmem:[#allocation29_spill] sm:$0xff] %v14427_v63  ;;  %v14429_v5 = vpop.eup %13252  ;;  %v14432_v40 = vmul.f32 %v2626_v42, %v14290_v34  ;;  %v1640_v2 = vadd.f32 %v1639_v61, %v1638_v43  ;;  %v1651_v19 = vrot.slane %v1650_v50, 1  ;;  %v1645_v24 = vrot.slane %v1644_v14, 1 }
 0x1a1   : > { %v1962_v49 = vadd.f32 1e-05, %v1898_v56  ;;  %v1654_v35 = vadd.f32 %v1653_v36, %v1454_v55  ;;  %v1087_v54 = vadd.f32 %v1086_v33, %v1085_v3  ;;  %v1094_v47 = vrot.slane %v14422_v41, 4  ;;  %v14443_v36 = vpop.f32.mrf.mxu0 }
 0x1a2   : > { %v1899_v42 = vmul.f32 0.125, %v1640_v2  ;;  %v1652_v43 = vadd.f32 %v1651_v19, %v1650_v50  ;;  %v1646_v21 = vadd.f32 %v1645_v24, %v1644_v14  ;;  %v1088_v56 = vrot.slane %v14434_v46, 4  ;;  %v14449_v14 = vpop.f32.mrf.mxu1 }
 0x1a3   : > { %13256 = vrsqrt.f32 %v1962_v49  ;;  %v1655_v6 = vrot.slane %v1654_v35, 2  ;;  %v1327_v61 = vmul.f32 0.125, %v1087_v54  ;;  %v1095_v8 = vadd.f32 %v1094_v47, %v14422_v41 }
 0x1a4   : > { %v1963_v44 = vadd.f32 1e-05, %v1899_v42  ;;  %v1901_v55 = vmul.f32 0.125, %v1652_v43  ;;  %v1900_v3 = vmul.f32 0.125, %v1646_v21  ;;  %v1100_v50 = vrot.slane %v14437_v51, 4  ;;  %v14457_v21 = vpop.f32.mrf.mxu0 }
 0x1a5   : > { %v1656_v33 = vadd.f32 %v1655_v6, %v1654_v35  ;;  %v14446_v9 = vsub.f32 %v14406_v20, %v1327_v61  ;;  %v1096_v2 = vrot.slane %v1095_v8, 2  ;;  %v1089_v29 = vadd.f32 %v1088_v56, %v14434_v46 }
 0x1a6   : > { %13258 = vrsqrt.f32 %v1963_v44  ;;  %v1965_v19 = vadd.f32 1e-05, %v1901_v55  ;;  %v1964_v24 = vadd.f32 1e-05, %v1900_v3  ;;  %v1101_v35 = vadd.f32 %v1100_v50, %v14437_v51 }
 0x1a7   : > { %18675 = vst [vmem:[#allocation30_spill] sm:$0xff] %v14446_v9  ;;  %v1657_v49 = vrot.slane %v1656_v33, 1  ;;  %v1455_v54 = vmul.f32 %v14446_v9, %v14446_v9  ;;  %v1097_v47 = vadd.f32 %v1096_v2, %v1095_v8  ;;  %v1090_v20 = vrot.slane %v1089_v29, 2 }
 0x1a8   : > { %13260 = vrsqrt.f32 %v1965_v19  ;;  %v1106_v42 = vrot.slane %v14443_v36, 4  ;;  %v1118_v43 = vrot.slane %v14449_v14, 4  ;;  %v1102_v3 = vrot.slane %v1101_v35, 2 }
 0x1a9   : > { %13262 = vrsqrt.f32 %v1964_v24  ;;  %v1658_v6 = vadd.f32 %v1657_v49, %v1656_v33  ;;  %v1659_v61 = vrot.slane %v1455_v54, 4  ;;  %v1098_v44 = vrot.slane %v1097_v47, 1 }
 0x1aa   : > { %v1091_v55 = vadd.f32 %v1090_v20, %v1089_v29  ;;  %v1107_v56 = vadd.f32 %v1106_v42, %v14443_v36  ;;  %v1119_v8 = vadd.f32 %v1118_v43, %v14449_v14  ;;  %v1112_v34 = vrot.slane %v14457_v21, 4 }
 0x1ab   : > { %v1902_v2 = vmul.f32 0.125, %v1658_v6  ;;  %v1660_v50 = vadd.f32 %v1659_v61, %v1455_v54  ;;  %v1099_v19 = vadd.f32 %v1098_v44, %v1097_v47  ;;  %v1103_v45 = vadd.f32 %v1102_v3, %v1101_v35 }
 0x1ac   : > { %v13255_v9 = vpop.eup %13254  ;;  %v1092_v16 = vrot.slane %v1091_v55, 1  ;;  %v1108_v39 = vrot.slane %v1107_v56, 2  ;;  %v1120_v27 = vrot.slane %v1119_v8, 2 }
 0x1ad   : > { %v2251_v33 = vcombine.low %v14424_v58, %v13255_v9  ;;  %v1966_v24 = vadd.f32 1e-05, %v1902_v2  ;;  %v1661_v49 = vrot.slane %v1660_v50, 2  ;;  %v1329_v29 = vmul.f32 0.125, %v1099_v19  ;;  %v12788_v58 = vld [vmem:[#allocation2 + $0x164] ss:$16 sps:$4 sm:$0xff]  }
 0x1ae   : > { %v1093_v20 = vadd.f32 %v1092_v16, %v1091_v55  ;;  %v1104_v52 = vrot.slane %v1103_v45, 1  ;;  %v1109_v42 = vadd.f32 %v1108_v39, %v1107_v56  ;;  %v1121_v32 = vadd.f32 %v1120_v27, %v1119_v8  ;;  %v12786_v16 = vld [vmem:[#allocation2 + $0x160] ss:$16 sps:$4 sm:$0xff]   ;;  %3920 = vmatprep.subr.bf16.mxu0 %v12788_v58 }
 0x1af   : > { %v2259_v43 = vrot.slane %v2251_v33, %v14117_v18  ;;  %13264 = vrsqrt.f32 %v1966_v24  ;;  %v1662_v54 = vadd.f32 %v1661_v49, %v1660_v50  ;;  %v14465_v47 = vsub.f32 %v14422_v41, %v1329_v29  ;;  %v12789_v55 = vld [vmem:[#allocation2 + $0x360] ss:$16 sps:$4 sm:$0xff]   ;;  %3921 = vmatpush2.bf16.msra.mxu0 %v12786_v16 }
 0x1b0   : > { %v13257_v6 = vpop.eup %13256  ;;  %v1328_v35 = vmul.f32 0.125, %v1093_v20  ;;  %v1105_v61 = vadd.f32 %v1104_v52, %v1103_v45  ;;  %v1110_v44 = vrot.slane %v1109_v42, 1  ;;  %v1122_v3 = vrot.slane %v1121_v32, 1  ;;  %v12791_v45 = vld [vmem:[#allocation2 + $0x364] ss:$16 sps:$4 sm:$0xff]  }
 0x1b1   : > { %18676 = vst [vmem:[#allocation31_spill] sm:$0xff] %v14465_v47  ;;  %v2252_v9 = vcombine.low %v14429_v5, %v13257_v6  ;;  %v1663_v2 = vrot.slane %v1662_v54, 1  ;;  %v1457_v39 = vmul.f32 %v14465_v47, %v14465_v47  ;;  %v1113_v27 = vadd.f32 %v1112_v34, %v14457_v21  ;;  %4033 = vmatprep.subr.bf16.mxu1 %v12791_v45  ;;  %v12800_v47 = vld [vmem:[#allocation2 + $0x124] ss:$16 sps:$4 sm:$0xff]  }
 0x1b2   : > { %v14472_v56 = vsub.f32 %v14434_v46, %v1328_v35  ;;  %v1330_v41 = vmul.f32 0.125, %v1105_v61  ;;  %v1111_v8 = vadd.f32 %v1110_v44, %v1109_v42  ;;  %v1123_v50 = vadd.f32 %v1122_v3, %v1121_v32  ;;  %4034 = vmatpush2.bf16.msra.mxu1 %v12789_v55 }
 0x1b3   : > { %v13259_v52 = vpop.eup %13258  ;;  %v2266_v19 = vrot.slane %v2252_v9, %v14117_v18  ;;  %v1664_v5 = vadd.f32 %v1663_v2, %v1662_v54  ;;  %v1671_v33 = vrot.slane %v1457_v39, 4  ;;  %v1114_v24 = vrot.slane %v1113_v27, 2 }
 0x1b4   : > { %18677 = vst [vmem:[#allocation32_spill] sm:$0xff] %v14472_v56  ;;  %v1456_v34 = vmul.f32 %v14472_v56, %v14472_v56  ;;  %v14478_v49 = vsub.f32 %v14437_v51, %v1330_v41  ;;  %v1331_v46 = vmul.f32 0.125, %v1111_v8  ;;  %v1333_v29 = vmul.f32 0.125, %v1123_v50  ;;  %v14493_v41 = vpop.f32.mrf.mxu1  ;;  %v12803_v56 = vld [vmem:[#allocation2 + $0x324] ss:$16 sps:$4 sm:$0xff]  }
 0x1b5   : > { %v13261_v20 = vpop.eup %13260  ;;  %v2267_v32 = vcombine.low %v2259_v43, %v2266_v19  ;;  %v1903_v42 = vmul.f32 0.125, %v1664_v5  ;;  %v1672_v6 = vadd.f32 %v1671_v33, %v1457_v39  ;;  %v1115_v35 = vadd.f32 %v1114_v24, %v1113_v27 }
 0x1b6   : > { %v13263_v61 = vpop.eup %13262  ;;  %v1665_v54 = vrot.slane %v1456_v34, 4  ;;  %v1458_v44 = vmul.f32 %v14478_v49, %v14478_v49  ;;  %v14483_v3 = vsub.f32 %v14443_v36, %v1331_v46  ;;  %v14486_v51 = vsub.f32 %v14449_v14, %v1333_v29 }
 0x1b7   : > { %v2274_v58 = vrot.slane %v2267_v32, %v14117_v18  ;;  %v2275_v9 = vcombine.low %v13259_v52, %v13263_v61  ;;  %v1967_v2 = vadd.f32 1e-05, %v1903_v42  ;;  %v1673_v43 = vrot.slane %v1672_v6, 2 }
 0x1b8   : > { %18678 = vst [vmem:[#allocation33_spill] sm:$0xff] %v14483_v3  ;;  %18679 = vst [vmem:[#allocation34_spill] sm:$0xff] %v14486_v51  ;;  %v1666_v16 = vadd.f32 %v1665_v54, %v1456_v34  ;;  %v1677_v39 = vrot.slane %v1458_v44, 4  ;;  %v1459_v27 = vmul.f32 %v14483_v3, %v14483_v3  ;;  %v1461_v55 = vmul.f32 %v14486_v51, %v14486_v51 }
 0x1b9   : > { %v18680_v36 = vrot.slane %v14427_v63, %v14201_v26  ;;  %v14502_v8 = vmul.f32 %v2274_v58, %v14237_v28  ;;  %v2283_v50 = vrot.slane %v2275_v9, %v14117_v18  ;;  %v1674_v45 = vadd.f32 %v1673_v43, %v1672_v6 }
 0x1ba   : > { %v1667_v52 = vrot.slane %v1666_v16, 2  ;;  %v1678_v19 = vadd.f32 %v1677_v39, %v1458_v44  ;;  %v1683_v5 = vrot.slane %v1459_v27, 4  ;;  %v1695_v33 = vrot.slane %v1461_v55, 4 }
 0x1bb   : > { %v14499_v14 = vmul.f32 %v18680_v36, %v14320_v17  ;;  %18682 = vst [vmem:[#allocation36_spill] sm:$0xff] %v14502_v8  ;;  %13266 = vrsqrt.f32 %v1967_v2  ;;  %v1675_v24 = vrot.slane %v1674_v45, 1  ;;  %v1116_v34 = vrot.slane %v1115_v35, 1 }
 0x1bc   : > { %v1124_v46 = vrot.slane %v14493_v41, 4  ;;  %v13265_v29 = vpop.eup %13264  ;;  %v1668_v32 = vadd.f32 %v1667_v52, %v1666_v16  ;;  %v1679_v42 = vrot.slane %v1678_v19, 2  ;;  %v1684_v17 = vadd.f32 %v1683_v5, %v1459_v27 }
 0x1bd   : > { %18681 = vst [vmem:[#allocation35_spill] sm:$0xff] %v14499_v14  ;;  %v1696_v61 = vadd.f32 %v1695_v33, %v1461_v55  ;;  %v2658_v28 = vrot.slane %v14502_v8, %v14201_v26  ;;  %v2276_v54 = vcombine.low %v13261_v20, %v13265_v29  ;;  %v1676_v58 = vadd.f32 %v1675_v24, %v1674_v45 }
 0x1be   : > { %v1117_v6 = vadd.f32 %v1116_v34, %v1115_v35  ;;  %v1669_v9 = vrot.slane %v1668_v32, 1  ;;  %v1680_v44 = vadd.f32 %v1679_v42, %v1678_v19  ;;  %v1685_v43 = vrot.slane %v1684_v17, 2  ;;  %v14516_v19 = vpop.f32.mrf.mxu0  ;;  %v14518_v42 = vpop.f32.mrf.mxu1 }
 0x1bf   : > { %v1697_v39 = vrot.slane %v1696_v61, 2  ;;  %v2290_v2 = vrot.slane %v2276_v54, %v14117_v18  ;;  %v1905_v36 = vmul.f32 0.125, %v1676_v58  ;;  %v1125_v3 = vadd.f32 %v1124_v46, %v14493_v41 }
 0x1c0   : > { %v1332_v51 = vmul.f32 0.125, %v1117_v6  ;;  %v1670_v16 = vadd.f32 %v1669_v9, %v1668_v32  ;;  %v1681_v52 = vrot.slane %v1680_v44, 1  ;;  %v1686_v27 = vadd.f32 %v1685_v43, %v1684_v17 }
 0x1c1   : > { %v1698_v55 = vadd.f32 %v1697_v39, %v1696_v61  ;;  %v14511_v5 = vmul.f32 %v2658_v28, %v14386_v38  ;;  %v2291_v20 = vcombine.low %v2283_v50, %v2290_v2  ;;  %v1126_v45 = vrot.slane %v1125_v3, 2  ;;  %v14526_v28 = vld [vmem:[%s18463_s2] sm:$0xf]  ;;  %v14534_v2 = vpop.f32.mrf.mxu1 }
 0x1c2   : > { %v14514_v35 = vsub.f32 %v14457_v21, %v1332_v51  ;;  %v1904_v33 = vmul.f32 0.125, %v1670_v16  ;;  %v1682_v24 = vadd.f32 %v1681_v52, %v1680_v44  ;;  %v1687_v34 = vrot.slane %v1686_v27, 1  ;;  %v14532_v44 = vpop.f32.mrf.mxu0 }
 0x1c3   : > { %18683 = vst [vmem:[#allocation37_spill] sm:$0xff] %v14511_v5  ;;  %v1699_v29 = vrot.slane %v1698_v55, 1  ;;  %v2298_v46 = vrot.slane %v2291_v20, %v14117_v18  ;;  %v1969_v32 = vadd.f32 1e-05, %v1905_v36  ;;  %v1127_v17 = vadd.f32 %v1126_v45, %v1125_v3 }
 0x1c4   : > { %18684 = vst [vmem:[#allocation38_spill] sm:$0xff] %v14514_v35  ;;  %v1460_v38 = vmul.f32 %v14514_v35, %v14514_v35  ;;  %v1968_v50 = vadd.f32 1e-05, %v1904_v33  ;;  %v1906_v61 = vmul.f32 0.125, %v1682_v24  ;;  %v1688_v21 = vadd.f32 %v1687_v34, %v1686_v27 }
 0x1c5   : > { %v1700_v51 = vadd.f32 %v1699_v29, %v1698_v55  ;;  %v14529_v54 = vmul.f32 %v14526_v28, %v2298_v46  ;;  %v1128_v6 = vrot.slane %v1127_v17, 1  ;;  %v1130_v9 = vrot.slane %v14516_v19, 4  ;;  %v14542_v46 = vpop.f32.mrf.mxu0 }
 0x1c6   : > { %v1689_v58 = vrot.slane %v1460_v38, 4  ;;  %13268 = vrsqrt.f32 %v1968_v50  ;;  %v1970_v3 = vadd.f32 1e-05, %v1906_v61  ;;  %v1907_v43 = vmul.f32 0.125, %v1688_v21  ;;  %v14547_v50 = vpop.f32.mrf.mxu1 }
 0x1c7   : > { %v1909_v39 = vmul.f32 0.125, %v1700_v51  ;;  %13270 = vrsqrt.f32 %v1969_v32  ;;  %v1129_v16 = vadd.f32 %v1128_v6, %v1127_v17  ;;  %v1131_v52 = vadd.f32 %v1130_v9, %v14516_v19  ;;  %v12797_v6 = vld [vmem:[#allocation2 + $0x344] ss:$16 sps:$4 sm:$0xff]  }
 0x1c8   : > { %v1690_v36 = vadd.f32 %v1689_v58, %v1460_v38  ;;  %v14537_v27 = vpop.eup %13266  ;;  %13272 = vrsqrt.f32 %v1970_v3  ;;  %v1971_v55 = vadd.f32 1e-05, %v1907_v43  ;;  %v1142_v45 = vrot.slane %v14518_v42, 4  ;;  %v12794_v58 = vld [vmem:[#allocation2 + $0x144] ss:$16 sps:$4 sm:$0xff]   ;;  %4035 = vmatprep.subr.bf16.mxu1 %v12797_v6 }
 0x1c9   : > { %v1973_v20 = vadd.f32 1e-05, %v1909_v39  ;;  %v1334_v34 = vmul.f32 0.125, %v1129_v16  ;;  %v1132_v29 = vrot.slane %v1131_v52, 2  ;;  %v1136_v38 = vrot.slane %v14532_v44, 4  ;;  %3922 = vmatprep.subr.bf16.mxu0 %v12794_v58 }
 0x1ca   : > { %v1691_v24 = vrot.slane %v1690_v36, 2  ;;  %13274 = vrsqrt.f32 %v1971_v55  ;;  %v1143_v32 = vadd.f32 %v1142_v45, %v14518_v42  ;;  %v1148_v17 = vrot.slane %v14534_v2, 4  ;;  %v12792_v16 = vld [vmem:[#allocation2 + $0x140] ss:$16 sps:$4 sm:$0xff]  }
 0x1cb   : > { %13276 = vrsqrt.f32 %v1973_v20  ;;  %v14550_v21 = vsub.f32 %v14493_v41, %v1334_v34  ;;  %v1133_v51 = vadd.f32 %v1132_v29, %v1131_v52  ;;  %v1137_v3 = vadd.f32 %v1136_v38, %v14532_v44  ;;  %v12795_v55 = vld [vmem:[#allocation2 + $0x340] ss:$16 sps:$4 sm:$0xff]   ;;  %3923 = vmatpush2.bf16.msra.mxu0 %v12792_v16 }
 0x1cc   : > { %v1692_v61 = vadd.f32 %v1691_v24, %v1690_v36  ;;  %v1144_v9 = vrot.slane %v1143_v32, 2  ;;  %v1149_v43 = vadd.f32 %v1148_v17, %v14534_v2  ;;  %v1154_v39 = vrot.slane %v14542_v46, 4  ;;  %4036 = vmatpush2.bf16.msra.mxu1 %v12795_v55  ;;  %v12798_v58 = vld [vmem:[#allocation2 + $0x120] ss:$16 sps:$4 sm:$0xff]   ;;  %3924 = vmatprep.subr.bf16.mxu0 %v12800_v47 }
 0x1cd   : > { %v1462_v20 = vmul.f32 %v14550_v21, %v14550_v21  ;;  %v1134_v36 = vrot.slane %v1133_v51, 1  ;;  %v1166_v41 = vrot.slane %v14547_v50, 4  ;;  %v1138_v24 = vrot.slane %v1137_v3, 2  ;;  %v12801_v6 = vld [vmem:[#allocation2 + $0x320] ss:$16 sps:$4 sm:$0xff]   ;;  %4037 = vmatprep.subr.bf16.mxu1 %v12803_v56 }
 0x1ce   : > { %v1693_v45 = vrot.slane %v1692_v61, 1  ;;  %v1145_v52 = vadd.f32 %v1144_v9, %v1143_v32  ;;  %v1150_v34 = vrot.slane %v1149_v43, 2  ;;  %v1155_v29 = vadd.f32 %v1154_v39, %v14542_v46 }
 0x1cf   : > { %v1701_v17 = vrot.slane %v1462_v20, 4  ;;  %v1135_v33 = vadd.f32 %v1134_v36, %v1133_v51  ;;  %v1167_v35 = vadd.f32 %v1166_v41, %v14547_v50  ;;  %v1139_v14 = vadd.f32 %v1138_v24, %v1137_v3  ;;  %3925 = vmatpush2.bf16.msra.mxu0 %v12798_v58  ;;  %v12806_v41 = vld [vmem:[#allocation2 + $0x104] ss:$16 sps:$4 sm:$0xff]  }
 0x1d0   : > { %v1694_v38 = vadd.f32 %v1693_v45, %v1692_v61  ;;  %v1146_v5 = vrot.slane %v1145_v52, 1  ;;  %v1151_v8 = vadd.f32 %v1150_v34, %v1149_v43  ;;  %v1156_v63 = vrot.slane %v1155_v29, 2  ;;  %4038 = vmatpush2.bf16.msra.mxu1 %v12801_v6  ;;  %3926 = vmatprep.subr.bf16.mxu0 %v12806_v41 }
 0x1d1   : > { %v1702_v9 = vadd.f32 %v1701_v17, %v1462_v20  ;;  %v1335_v48 = vmul.f32 0.125, %v1135_v33  ;;  %v1168_v57 = vrot.slane %v1167_v35, 2  ;;  %v1140_v61 = vrot.slane %v1139_v14, 1 }
 0x1d2   : > { %v1908_v32 = vmul.f32 0.125, %v1694_v38  ;;  %v1147_v39 = vadd.f32 %v1146_v5, %v1145_v52  ;;  %v1152_v16 = vrot.slane %v1151_v8, 1  ;;  %v1157_v51 = vadd.f32 %v1156_v63, %v1155_v29  ;;  %v12804_v5 = vld [vmem:[#allocation2 + $0x100] ss:$16 sps:$4 sm:$0xff]  }
 0x1d3   : > { %v13269_v55 = vpop.eup %13268  ;;  %v1703_v36 = vrot.slane %v1702_v9, 2  ;;  %v14561_v3 = vsub.f32 %v14516_v19, %v1335_v48  ;;  %v1169_v43 = vadd.f32 %v1168_v57, %v1167_v35  ;;  %v1141_v47 = vadd.f32 %v1140_v61, %v1139_v14  ;;  %v12807_v52 = vld [vmem:[#allocation2 + $0x300] ss:$16 sps:$4 sm:$0xff]   ;;  %v12809_v48 = vld [vmem:[#allocation2 + $0x304] ss:$16 sps:$4 sm:$0xff]   ;;  %3927 = vmatpush2.bf16.msra.mxu0 %v12804_v5 }
 0x1d4   : > { %v1972_v45 = vadd.f32 1e-05, %v1908_v32  ;;  %v13271_v24 = vpop.eup %13270  ;;  %v2299_v33 = vcombine.low %v14537_v27, %v13269_v55  ;;  %v1337_v20 = vmul.f32 0.125, %v1147_v39  ;;  %v1153_v56 = vadd.f32 %v1152_v16, %v1151_v8  ;;  %4039 = vmatprep.subr.bf16.mxu1 %v12809_v48 }
 0x1d5   : > { %18685 = vst [vmem:[#allocation39_spill] sm:$0xff] %v14561_v3  ;;  %v13273_v34 = vpop.eup %13272  ;;  %v1704_v63 = vadd.f32 %v1703_v36, %v1702_v9  ;;  %v1463_v29 = vmul.f32 %v14561_v3, %v14561_v3  ;;  %v1158_v38 = vrot.slane %v1157_v51, 1  ;;  %v1336_v27 = vmul.f32 0.125, %v1141_v47  ;;  %4040 = vmatpush2.bf16.msra.mxu1 %v12807_v52 }
 0x1d6   : > { %13278 = vrsqrt.f32 %v1972_v45  ;;  %v2300_v19 = vcombine.low %v13271_v24, %v13273_v34  ;;  %v2307_v57 = vrot.slane %v2299_v33, %v14117_v18  ;;  %v14568_v35 = vsub.f32 %v14518_v42, %v1337_v20 }
 0x1d7   : > { %v14570_v14 = vpop.eup %13274  ;;  %v1705_v8 = vrot.slane %v1704_v63, 1  ;;  %v1707_v17 = vrot.slane %v1463_v29, 4  ;;  %v1338_v58 = vmul.f32 0.125, %v1153_v56  ;;  %v1159_v6 = vadd.f32 %v1158_v38, %v1157_v51 }
 0x1d8   : > { %18686 = vst [vmem:[#allocation40_spill] sm:$0xff] %v14568_v35  ;;  %v14572_v32 = vpop.eup %13276  ;;  %v2314_v9 = vrot.slane %v2300_v19, %v14117_v18  ;;  %v1465_v39 = vmul.f32 %v14568_v35, %v14568_v35  ;;  %v14578_v61 = vsub.f32 %v14532_v44, %v1336_v27  ;;  %v1170_v42 = vrot.slane %v1169_v43, 1 }
 0x1d9   : > { %v1706_v16 = vadd.f32 %v1705_v8, %v1704_v63  ;;  %v1708_v55 = vadd.f32 %v1707_v17, %v1463_v29  ;;  %v14581_v45 = vsub.f32 %v14534_v2, %v1338_v58  ;;  %v1339_v36 = vmul.f32 0.125, %v1159_v6 }
 0x1da   : > { %18687 = vst [vmem:[#allocation41_spill] sm:$0xff] %v14578_v61  ;;  %v2315_v51 = vcombine.low %v2307_v57, %v2314_v9  ;;  %v1719_v41 = vrot.slane %v1465_v39, 4  ;;  %v1464_v24 = vmul.f32 %v14578_v61, %v14578_v61  ;;  %v1171_v33 = vadd.f32 %v1170_v42, %v1169_v43 }
 0x1db   : > { %v1910_v20 = vmul.f32 0.125, %v1706_v16  ;;  %v1709_v47 = vrot.slane %v1708_v55, 2  ;;  %v1466_v44 = vmul.f32 %v14581_v45, %v14581_v45  ;;  %v14588_v56 = vsub.f32 %v14542_v46, %v1339_v36  ;;  %v14599_v46 = vpop.f32.mrf.mxu0 }
 0x1dc   : > { %v2322_v5 = vrot.slane %v2315_v51, %v14117_v18  ;;  %v1720_v52 = vadd.f32 %v1719_v41, %v1465_v39  ;;  %v1713_v2 = vrot.slane %v1464_v24, 4  ;;  %v1341_v34 = vmul.f32 0.125, %v1171_v33  ;;  %v12812_v41 = vld [vmem:[#allocation2 + $0xec] ss:$16 sps:$4 sm:$0xff]  }
 0x1dd   : > { %18688 = vst [vmem:[#allocation42_spill] sm:$0xff] %v14588_v56  ;;  %v1974_v63 = vadd.f32 1e-05, %v1910_v20  ;;  %v1710_v29 = vadd.f32 %v1709_v47, %v1708_v55  ;;  %v1725_v38 = vrot.slane %v1466_v44, 4  ;;  %v1467_v48 = vmul.f32 %v14588_v56, %v14588_v56  ;;  %4122 = vmatprep.subr.bf16.mxu0 %v12812_v41 }
 0x1de   : > { %v14594_v43 = vmul.f32 %v14526_v28, %v2322_v5  ;;  %v1721_v19 = vrot.slane %v1720_v52, 2  ;;  %v1714_v57 = vadd.f32 %v1713_v2, %v1464_v24  ;;  %v14597_v27 = vsub.f32 %v14547_v50, %v1341_v34  ;;  %v12815_v24 = vld [vmem:[#allocation2 + $0x2ec] ss:$16 sps:$4 sm:$0xff]  }
 0x1df   : > { %13280 = vrsqrt.f32 %v1974_v63  ;;  %v1711_v8 = vrot.slane %v1710_v29, 1  ;;  %v1726_v17 = vadd.f32 %v1725_v38, %v1466_v44  ;;  %v1731_v58 = vrot.slane %v1467_v48, 4  ;;  %4235 = vmatprep.subr.bf16.mxu1 %v12815_v24 }
 0x1e0   : > { %18689 = vst [vmem:[#allocation43_spill] sm:$0xff] %v14597_v27  ;;  %v18690_v6 = vrot.slane %v14529_v54, %v14201_v26  ;;  %v1722_v39 = vadd.f32 %v1721_v19, %v1720_v52  ;;  %v1715_v42 = vrot.slane %v1714_v57, 2  ;;  %v1469_v16 = vmul.f32 %v14597_v27, %v14597_v27  ;;  %v14614_v19 = vpop.f32.mrf.mxu1 }
 0x1e1   : > { %v1712_v55 = vadd.f32 %v1711_v8, %v1710_v29  ;;  %v1727_v50 = vrot.slane %v1726_v17, 2  ;;  %v1732_v36 = vadd.f32 %v1731_v58, %v1467_v48  ;;  %v1160_v51 = vrot.slane %v14599_v46, 4 }
 0x1e2   : > { %v14605_v9 = vmul.f32 %v18690_v6, %v14417_v13  ;;  %v2690_v20 = vrot.slane %v14594_v43, %v14201_v26  ;;  %v1723_v47 = vrot.slane %v1722_v39, 1  ;;  %v1716_v44 = vadd.f32 %v1715_v42, %v1714_v57 }
 0x1e3   : > { %v13279_v33 = vpop.eup %13278  ;;  %v1743_v13 = vrot.slane %v1469_v16, 4  ;;  %v1911_v52 = vmul.f32 0.125, %v1712_v55  ;;  %v1728_v2 = vadd.f32 %v1727_v50, %v1726_v17  ;;  %v1733_v34 = vrot.slane %v1732_v36, 2  ;;  %v14619_v50 = vpop.f32.mrf.mxu0 }
 0x1e4   : > { %v2323_v5 = vcombine.low %v14570_v14, %v13279_v33  ;;  %v1724_v63 = vadd.f32 %v1723_v47, %v1722_v39  ;;  %v1717_v29 = vrot.slane %v1716_v44, 1  ;;  %v1161_v48 = vadd.f32 %v1160_v51, %v14599_v46 }
 0x1e5   : > { %v1744_v38 = vadd.f32 %v1743_v13, %v1469_v16  ;;  %v1975_v58 = vadd.f32 1e-05, %v1911_v52  ;;  %v1729_v57 = vrot.slane %v1728_v2, 1  ;;  %v1734_v6 = vadd.f32 %v1733_v34, %v1732_v36 }
 0x1e6   : > { %v14617_v8 = vrot.slane %v2323_v5, %v14117_v18  ;;  %v1913_v42 = vmul.f32 0.125, %v1724_v63  ;;  %v1718_v14 = vadd.f32 %v1717_v29, %v1716_v44  ;;  %v1162_v17 = vrot.slane %v1161_v48, 2  ;;  %v14624_v44 = vpop.f32.mrf.mxu1 }
 0x1e7   : > { %v1745_v55 = vrot.slane %v1744_v38, 2  ;;  %13282 = vrsqrt.f32 %v1975_v58  ;;  %v1730_v39 = vadd.f32 %v1729_v57, %v1728_v2  ;;  %v1735_v41 = vrot.slane %v1734_v6, 1 }
 0x1e8   : > { %v1172_v16 = vrot.slane %v14614_v19, 4  ;;  %v1977_v51 = vadd.f32 1e-05, %v1913_v42  ;;  %v1912_v24 = vmul.f32 0.125, %v1718_v14  ;;  %v1163_v47 = vadd.f32 %v1162_v17, %v1161_v48 }
 0x1e9   : > { %v1746_v33 = vadd.f32 %v1745_v55, %v1744_v38  ;;  %v1914_v13 = vmul.f32 0.125, %v1730_v39  ;;  %v1736_v5 = vadd.f32 %v1735_v41, %v1734_v6  ;;  %v1178_v36 = vrot.slane %v14619_v50, 4  ;;  %v14628_v55 = vpop.f32.mrf.mxu0 }
 0x1ea   : > { %v1173_v52 = vadd.f32 %v1172_v16, %v14614_v19  ;;  %13284 = vrsqrt.f32 %v1977_v51  ;;  %v1976_v34 = vadd.f32 1e-05, %v1912_v24  ;;  %v1164_v29 = vrot.slane %v1163_v47, 1 }
 0x1eb   : > { %v1747_v63 = vrot.slane %v1746_v33, 1  ;;  %v1978_v2 = vadd.f32 1e-05, %v1914_v13  ;;  %v1915_v58 = vmul.f32 0.125, %v1736_v5  ;;  %v1179_v42 = vadd.f32 %v1178_v36, %v14619_v50  ;;  %v14632_v5 = vpop.f32.mrf.mxu1 }
 0x1ec   : > { %v1174_v57 = vrot.slane %v1173_v52, 2  ;;  %v13281_v14 = vpop.eup %13280  ;;  %13286 = vrsqrt.f32 %v1976_v34  ;;  %v1165_v48 = vadd.f32 %v1164_v29, %v1163_v47  ;;  %v1190_v6 = vrot.slane %v14624_v44, 4 }
 0x1ed   : > { %v1748_v38 = vadd.f32 %v1747_v63, %v1746_v33  ;;  %v2324_v17 = vcombine.low %v14572_v32, %v13281_v14  ;;  %13288 = vrsqrt.f32 %v1978_v2  ;;  %v1979_v39 = vadd.f32 1e-05, %v1915_v58 }
 0x1ee   : > { %v1175_v41 = vadd.f32 %v1174_v57, %v1173_v52  ;;  %v1340_v51 = vmul.f32 0.125, %v1165_v48  ;;  %v1180_v24 = vrot.slane %v1179_v42, 2  ;;  %v1191_v13 = vadd.f32 %v1190_v6, %v14624_v44 }
 0x1ef   : > { %v1917_v16 = vmul.f32 0.125, %v1748_v38  ;;  %v14635_v36 = vmul.f32 %v2690_v20, %v14478_v49  ;;  %v2338_v33 = vrot.slane %v2324_v17, %v14117_v18  ;;  %v1184_v34 = vrot.slane %v14628_v55, 4  ;;  %v14645_v49 = vpop.f32.mrf.mxu0 }
 0x1f0   : > { %v1176_v47 = vrot.slane %v1175_v41, 1  ;;  %13290 = vrsqrt.f32 %v1979_v39  ;;  %v14640_v32 = vsub.f32 %v14599_v46, %v1340_v51  ;;  %v1181_v52 = vadd.f32 %v1180_v24, %v1179_v42 }
 0x1f1   : > { %v1192_v63 = vrot.slane %v1191_v13, 2  ;;  %v2339_v29 = vcombine.low %v14617_v8, %v2338_v33  ;;  %v1185_v58 = vadd.f32 %v1184_v34, %v14628_v55  ;;  %v1196_v57 = vrot.slane %v14632_v5, 4 }
 0x1f2   : > { %18691 = vst [vmem:[#allocation44_spill] sm:$0xff] %v14640_v32  ;;  %v1177_v2 = vadd.f32 %v1176_v47, %v1175_v41  ;;  %v1981_v20 = vadd.f32 1e-05, %v1917_v16  ;;  %v1468_v14 = vmul.f32 %v14640_v32, %v14640_v32  ;;  %v1182_v38 = vrot.slane %v1181_v52, 1 }
 0x1f3   : > { %v1193_v48 = vadd.f32 %v1192_v63, %v1191_v13  ;;  %v2346_v46 = vrot.slane %v2339_v29, %v14117_v18  ;;  %v1186_v42 = vrot.slane %v1185_v58, 2  ;;  %v1197_v17 = vadd.f32 %v1196_v57, %v14632_v5 }
 0x1f4   : > { %v1342_v6 = vmul.f32 0.125, %v1177_v2  ;;  %v13283_v8 = vpop.eup %13282  ;;  %v1737_v39 = vrot.slane %v1468_v14, 4  ;;  %v1183_v41 = vadd.f32 %v1182_v38, %v1181_v52  ;;  %v1202_v24 = vrot.slane %v14645_v49, 4 }
 0x1f5   : > { %v1194_v51 = vrot.slane %v1193_v48, 1  ;;  %v14653_v33 = vmul.f32 %v14526_v28, %v2346_v46  ;;  %v1187_v47 = vadd.f32 %v1186_v42, %v1185_v58  ;;  %v1198_v13 = vrot.slane %v1197_v17, 2 }
 0x1f6   : > { %v14656_v16 = vsub.f32 %v14614_v19, %v1342_v6  ;;  %v1738_v34 = vadd.f32 %v1737_v39, %v1468_v14  ;;  %v1343_v63 = vmul.f32 0.125, %v1183_v41  ;;  %v1203_v2 = vadd.f32 %v1202_v24, %v14645_v49 }
 0x1f7   : > { %v1195_v29 = vadd.f32 %v1194_v51, %v1193_v48  ;;  %v13285_v57 = vpop.eup %13284  ;;  %13292 = vrsqrt.f32 %v1981_v20  ;;  %v1188_v38 = vrot.slane %v1187_v47, 1  ;;  %v1199_v27 = vadd.f32 %v1198_v13, %v1197_v17 }
 0x1f8   : > { %v1470_v52 = vmul.f32 %v14656_v16, %v14656_v16  ;;  %v2706_v46 = vrot.slane %v14653_v33, %v14201_v26  ;;  %v1739_v56 = vrot.slane %v1738_v34, 2  ;;  %v14664_v19 = vsub.f32 %v14619_v50, %v1343_v63 }
 0x1f9   : > { %v1345_v58 = vmul.f32 0.125, %v1195_v29  ;;  %v13287_v14 = vpop.eup %13286  ;;  %v1189_v48 = vadd.f32 %v1188_v38, %v1187_v47  ;;  %v1200_v42 = vrot.slane %v1199_v27, 1  ;;  %v1204_v39 = vrot.slane %v1203_v2, 2 }
 0x1fa   : > { %18692 = vst [vmem:[#allocation45_spill] sm:$0xff] %v14664_v19  ;;  %v1749_v6 = vrot.slane %v1470_v52, 4  ;;  %v13289_v41 = vpop.eup %13288  ;;  %v2347_v20 = vcombine.low %v13283_v8, %v13287_v14  ;;  %v1740_v51 = vadd.f32 %v1739_v56, %v1738_v34  ;;  %v1471_v24 = vmul.f32 %v14664_v19, %v14664_v19 }
 0x1fb   : > { %v14669_v17 = vsub.f32 %v14624_v44, %v1345_v58  ;;  %v2348_v13 = vcombine.low %v13285_v57, %v13289_v41  ;;  %v1344_v35 = vmul.f32 0.125, %v1189_v48  ;;  %v1201_v50 = vadd.f32 %v1200_v42, %v1199_v27 }
 0x1fc   : > { %v1750_v32 = vadd.f32 %v1749_v6, %v1470_v52  ;;  %v2355_v63 = vrot.slane %v2347_v20, %v14117_v18  ;;  %v1741_v29 = vrot.slane %v1740_v51, 1  ;;  %v1755_v3 = vrot.slane %v1471_v24, 4 }
 0x1fd   : > { %18693 = vst [vmem:[#allocation46_spill] sm:$0xff] %v14669_v17  ;;  %v1473_v47 = vmul.f32 %v14669_v17, %v14669_v17  ;;  %v14674_v38 = vpop.eup %13290  ;;  %v2362_v56 = vrot.slane %v2348_v13, %v14117_v18  ;;  %v14678_v34 = vsub.f32 %v14628_v55, %v1344_v35  ;;  %v1346_v44 = vmul.f32 0.125, %v1201_v50 }
 0x1fe   : > { %v1751_v8 = vrot.slane %v1750_v32, 2  ;;  %v1742_v57 = vadd.f32 %v1741_v29, %v1740_v51  ;;  %v1756_v52 = vadd.f32 %v1755_v3, %v1471_v24  ;;  %v1205_v27 = vadd.f32 %v1204_v39, %v1203_v2 }
 0x1ff   : > { %18694 = vst [vmem:[#allocation47_spill] sm:$0xff] %v14678_v34  ;;  %v1767_v58 = vrot.slane %v1473_v47, 4  ;;  %v2363_v14 = vcombine.low %v2355_v63, %v2362_v56  ;;  %v1472_v48 = vmul.f32 %v14678_v34, %v14678_v34  ;;  %v14683_v42 = vsub.f32 %v14632_v5, %v1346_v44  ;;  %v14691_v56 = vpop.f32.mrf.mxu1 }
 0x200   : > { %v1752_v6 = vadd.f32 %v1751_v8, %v1750_v32  ;;  %v1916_v41 = vmul.f32 0.125, %v1742_v57  ;;  %v1757_v20 = vrot.slane %v1756_v52, 2  ;;  %v1206_v17 = vrot.slane %v1205_v27, 1 }
 0x201   : > { %v1768_v13 = vadd.f32 %v1767_v58, %v1473_v47  ;;  %v2370_v35 = vrot.slane %v2363_v14, %v14117_v18  ;;  %v1761_v50 = vrot.slane %v1472_v48, 4  ;;  %v1474_v3 = vmul.f32 %v14683_v42, %v14683_v42 }
 0x202   : > { %v1753_v55 = vrot.slane %v1752_v6, 1  ;;  %v1980_v2 = vadd.f32 1e-05, %v1916_v41  ;;  %v1758_v39 = vadd.f32 %v1757_v20, %v1756_v52  ;;  %v1207_v51 = vadd.f32 %v1206_v17, %v1205_v27  ;;  %v14702_v20 = vpop.f32.mrf.mxu0 }
 0x203   : > { %v1769_v32 = vrot.slane %v1768_v13, 2  ;;  %v14689_v24 = vmul.f32 %v14526_v28, %v2370_v35  ;;  %v1762_v63 = vadd.f32 %v1761_v50, %v1472_v48  ;;  %v1773_v29 = vrot.slane %v1474_v3, 4 }
 0x204   : > { %v1754_v5 = vadd.f32 %v1753_v55, %v1752_v6  ;;  %v14693_v47 = vpop.eup %13292  ;;  %13294 = vrsqrt.f32 %v1980_v2  ;;  %v1759_v8 = vrot.slane %v1758_v39, 1  ;;  %v1347_v57 = vmul.f32 0.125, %v1207_v51 }
 0x205   : > { %18695 = vst [vmem:[#allocation48_spill] sm:$0xff] %v14689_v24  ;;  %v1770_v44 = vadd.f32 %v1769_v32, %v1768_v13  ;;  %v14696_v58 = vmul.f32 %v2706_v46, %v14550_v21  ;;  %v1763_v14 = vrot.slane %v1762_v63, 2  ;;  %v1774_v17 = vadd.f32 %v1773_v29, %v1474_v3 }
 0x206   : > { %v1918_v52 = vmul.f32 0.125, %v1754_v5  ;;  %v1760_v27 = vadd.f32 %v1759_v8, %v1758_v39  ;;  %v14699_v6 = vsub.f32 %v14645_v49, %v1347_v57  ;;  %v1214_v48 = vrot.slane %v14691_v56, 4  ;;  %v14709_v39 = vpop.f32.mrf.mxu1 }
 0x207   : > { %18696 = vst [vmem:[#allocation49_spill] sm:$0xff] %v14696_v58  ;;  %v1771_v41 = vrot.slane %v1770_v44, 1  ;;  %v2722_v35 = vrot.slane %v14689_v24, %v14201_v26  ;;  %v1764_v55 = vadd.f32 %v1763_v14, %v1762_v63  ;;  %v1775_v50 = vrot.slane %v1774_v17, 2 }
 0x208   : > { %18697 = vst [vmem:[#allocation50_spill] sm:$0xff] %v14699_v6  ;;  %v1982_v13 = vadd.f32 1e-05, %v1918_v52  ;;  %v1919_v21 = vmul.f32 0.125, %v1760_v27  ;;  %v1475_v3 = vmul.f32 %v14699_v6, %v14699_v6  ;;  %v1215_v2 = vadd.f32 %v1214_v48, %v14691_v56  ;;  %v14714_v27 = vpop.f32.mrf.mxu0 }
 0x209   : > { %v1772_v46 = vadd.f32 %v1771_v41, %v1770_v44  ;;  %v1765_v49 = vrot.slane %v1764_v55, 1  ;;  %v1776_v32 = vadd.f32 %v1775_v50, %v1774_v17  ;;  %v1208_v51 = vrot.slane %v14702_v20, 4 }
 0x20a   : > { %13296 = vrsqrt.f32 %v1982_v13  ;;  %v1983_v5 = vadd.f32 1e-05, %v1919_v21  ;;  %v1779_v8 = vrot.slane %v1475_v3, 4  ;;  %v1216_v57 = vrot.slane %v1215_v2, 2 }
 0x20b   : > { %v1921_v29 = vmul.f32 0.125, %v1772_v46  ;;  %v1766_v63 = vadd.f32 %v1765_v49, %v1764_v55  ;;  %v1777_v52 = vrot.slane %v1776_v32, 1  ;;  %v1209_v44 = vadd.f32 %v1208_v51, %v14702_v20  ;;  %v14717_v46 = vpop.f32.mrf.mxu1 }
 0x20c   : > { %v1220_v14 = vrot.slane %v14709_v39, 4  ;;  %13298 = vrsqrt.f32 %v1983_v5  ;;  %v1780_v48 = vadd.f32 %v1779_v8, %v1475_v3  ;;  %v1217_v13 = vadd.f32 %v1216_v57, %v1215_v2 }
 0x20d   : > { %v1985_v41 = vadd.f32 1e-05, %v1921_v29  ;;  %v1920_v6 = vmul.f32 0.125, %v1766_v63  ;;  %v1778_v17 = vadd.f32 %v1777_v52, %v1776_v32  ;;  %v1210_v50 = vrot.slane %v1209_v44, 2 }
 0x20e   : > { %v1221_v21 = vadd.f32 %v1220_v14, %v14709_v39  ;;  %v1781_v55 = vrot.slane %v1780_v48, 2  ;;  %v1218_v49 = vrot.slane %v1217_v13, 1  ;;  %v1226_v51 = vrot.slane %v14714_v27, 4 }
 0x20f   : > { %13300 = vrsqrt.f32 %v1985_v41  ;;  %v1984_v19 = vadd.f32 1e-05, %v1920_v6  ;;  %v1922_v34 = vmul.f32 0.125, %v1778_v17  ;;  %v1211_v58 = vadd.f32 %v1210_v50, %v1209_v44  ;;  %v14723_v6 = vpop.f32.mrf.mxu0 }
 0x210   : > { %v1222_v61 = vrot.slane %v1221_v21, 2  ;;  %v1782_v5 = vadd.f32 %v1781_v55, %v1780_v48  ;;  %v1219_v29 = vadd.f32 %v1218_v49, %v1217_v13  ;;  %v1227_v3 = vadd.f32 %v1226_v51, %v14714_v27  ;;  %v14733_v49 = vpop.f32.mrf.mxu1 }
 0x211   : > { %v1238_v2 = vrot.slane %v14717_v46, 4  ;;  %v13295_v32 = vpop.eup %13294  ;;  %13302 = vrsqrt.f32 %v1984_v19  ;;  %v1986_v8 = vadd.f32 1e-05, %v1922_v34  ;;  %v1212_v57 = vrot.slane %v1211_v58, 1 }
 0x212   : > { %v1223_v63 = vadd.f32 %v1222_v61, %v1221_v21  ;;  %v2371_v52 = vcombine.low %v14674_v38, %v13295_v32  ;;  %v1783_v14 = vrot.slane %v1782_v5, 1  ;;  %v1349_v41 = vmul.f32 0.125, %v1219_v29 }
 0x213   : > { %v1228_v24 = vrot.slane %v1227_v3, 2  ;;  %13304 = vrsqrt.f32 %v1986_v8  ;;  %v1213_v44 = vadd.f32 %v1212_v57, %v1211_v58  ;;  %v1239_v13 = vadd.f32 %v1238_v2, %v14717_v46 }
 0x214   : > { %v1224_v48 = vrot.slane %v1223_v63, 1  ;;  %v14727_v17 = vmul.f32 %v2722_v35, %v14581_v45  ;;  %v1784_v50 = vadd.f32 %v1783_v14, %v1782_v5  ;;  %v14730_v19 = vsub.f32 %v14691_v56, %v1349_v41 }
 0x215   : > { %v1229_v61 = vadd.f32 %v1228_v24, %v1227_v3  ;;  %v1348_v34 = vmul.f32 0.125, %v1213_v44  ;;  %v1240_v21 = vrot.slane %v1239_v13, 2  ;;  %v1232_v55 = vrot.slane %v14723_v6, 4 }
 0x216   : > { %18698 = vst [vmem:[#allocation51_spill] sm:$0xff] %v14727_v17  ;;  %18699 = vst [vmem:[#allocation52_spill] sm:$0xff] %v14730_v19  ;;  %v1225_v38 = vadd.f32 %v1224_v48, %v1223_v63  ;;  %v2379_v58 = vrot.slane %v2371_v52, %v14117_v18  ;;  %v1923_v29 = vmul.f32 0.125, %v1784_v50  ;;  %v1477_v45 = vmul.f32 %v14730_v19, %v14730_v19 }
 0x217   : > { %v13297_v51 = vpop.eup %13296  ;;  %v1230_v35 = vrot.slane %v1229_v61, 1  ;;  %v14740_v56 = vsub.f32 %v14702_v20, %v1348_v34  ;;  %v1241_v3 = vadd.f32 %v1240_v21, %v1239_v13  ;;  %v1233_v8 = vadd.f32 %v1232_v55, %v14723_v6 }
 0x218   : > { %v2372_v5 = vcombine.low %v14693_v47, %v13297_v51  ;;  %v1350_v24 = vmul.f32 0.125, %v1225_v38  ;;  %v1791_v2 = vrot.slane %v1477_v45, 4  ;;  %v1244_v57 = vrot.slane %v14733_v49, 4 }
 0x219   : > { %18700 = vst [vmem:[#allocation53_spill] sm:$0xff] %v14740_v56  ;;  %v1231_v32 = vadd.f32 %v1230_v35, %v1229_v61  ;;  %v13299_v63 = vpop.eup %13298  ;;  %v1476_v14 = vmul.f32 %v14740_v56, %v14740_v56  ;;  %v1242_v47 = vrot.slane %v1241_v3, 1  ;;  %v1987_v20 = vadd.f32 1e-05, %v1923_v29 }
 0x21a   : > { %v2386_v52 = vrot.slane %v2372_v5, %v14117_v18  ;;  %v14748_v41 = vsub.f32 %v14709_v39, %v1350_v24  ;;  %v1792_v44 = vadd.f32 %v1791_v2, %v1477_v45  ;;  %v1234_v13 = vrot.slane %v1233_v8, 2 }
 0x21b   : > { %v1351_v48 = vmul.f32 0.125, %v1231_v32  ;;  %v1785_v34 = vrot.slane %v1476_v14, 4  ;;  %v1243_v21 = vadd.f32 %v1242_v47, %v1241_v3  ;;  %v1245_v39 = vadd.f32 %v1244_v57, %v14733_v49 }
 0x21c   : > { %v13301_v50 = vpop.eup %13300  ;;  %v2387_v61 = vcombine.low %v2379_v58, %v2386_v52  ;;  %v1478_v38 = vmul.f32 %v14748_v41, %v14748_v41  ;;  %v1793_v55 = vrot.slane %v1792_v44, 2  ;;  %v1235_v35 = vadd.f32 %v1234_v13, %v1233_v8 }
 0x21d   : > { %v14753_v51 = vsub.f32 %v14714_v27, %v1351_v48  ;;  %v1786_v29 = vadd.f32 %v1785_v34, %v1476_v14  ;;  %v1353_v24 = vmul.f32 0.125, %v1243_v21  ;;  %13306 = vrsqrt.f32 %v1987_v20 }
 0x21e   : > { %v2394_v5 = vrot.slane %v2387_v61, %v14117_v18  ;;  %v1797_v45 = vrot.slane %v1478_v38, 4  ;;  %v13303_v2 = vpop.eup %13302  ;;  %v1794_v58 = vadd.f32 %v1793_v55, %v1792_v44  ;;  %v1236_v52 = vrot.slane %v1235_v35, 1 }
 0x21f   : > { %18701 = vst [vmem:[#allocation54_spill] sm:$0xff] %v14753_v51  ;;  %v1479_v32 = vmul.f32 %v14753_v51, %v14753_v51  ;;  %v2395_v27 = vcombine.low %v13299_v63, %v13303_v2  ;;  %v1787_v47 = vrot.slane %v1786_v29, 2  ;;  %v14763_v14 = vsub.f32 %v14717_v46, %v1353_v24 }
 0x220   : > { %v14760_v3 = vmul.f32 %v14526_v28, %v2394_v5  ;;  %v1798_v8 = vadd.f32 %v1797_v45, %v1478_v38  ;;  %v13305_v48 = vpop.eup %13304  ;;  %v1795_v57 = vrot.slane %v1794_v58, 1  ;;  %v1237_v61 = vadd.f32 %v1236_v52, %v1235_v35 }
 0x221   : > { %v1803_v13 = vrot.slane %v1479_v32, 4  ;;  %18703 = vst [vmem:[#allocation56_spill] sm:$0xff] %v14763_v14  ;;  %v2396_v34 = vcombine.low %v13301_v50, %v13305_v48  ;;  %v2403_v20 = vrot.slane %v2395_v27, %v14117_v18  ;;  %v1788_v44 = vadd.f32 %v1787_v47, %v1786_v29 }
 0x222   : > { %18702 = vst [vmem:[#allocation55_spill] sm:$0xff] %v14760_v3  ;;  %v1246_v21 = vrot.slane %v1245_v39, 2  ;;  %v1796_v55 = vadd.f32 %v1795_v57, %v1794_v58  ;;  %v1799_v19 = vrot.slane %v1798_v8, 2  ;;  %v1481_v63 = vmul.f32 %v14763_v14, %v14763_v14 }
 0x223   : > { %v1804_v51 = vadd.f32 %v1803_v13, %v1479_v32  ;;  %v2738_v38 = vrot.slane %v14760_v3, %v14201_v26  ;;  %v2410_v5 = vrot.slane %v2396_v34, %v14117_v18  ;;  %v1789_v45 = vrot.slane %v1788_v44, 1 }
 0x224   : > { %v1352_v46 = vmul.f32 0.125, %v1237_v61  ;;  %v1925_v24 = vmul.f32 0.125, %v1796_v55  ;;  %v1800_v35 = vadd.f32 %v1799_v19, %v1798_v8  ;;  %v1815_v2 = vrot.slane %v1481_v63, 4  ;;  %v14777_v19 = vpop.f32.mrf.mxu0  ;;  %v14782_v55 = vpop.f32.mrf.mxu1 }
 0x225   : > { %v1805_v50 = vrot.slane %v1804_v51, 2  ;;  %v2411_v52 = vcombine.low %v2403_v20, %v2410_v5  ;;  %v1790_v29 = vadd.f32 %v1789_v45, %v1788_v44  ;;  %v1247_v32 = vadd.f32 %v1246_v21, %v1245_v39 }
 0x226   : > { %v14772_v58 = vsub.f32 %v14723_v6, %v1352_v46  ;;  %v1989_v27 = vadd.f32 1e-05, %v1925_v24  ;;  %v1801_v47 = vrot.slane %v1800_v35, 1  ;;  %v1816_v57 = vadd.f32 %v1815_v2, %v1481_v63 }
 0x227   : > { %v1806_v48 = vadd.f32 %v1805_v50, %v1804_v51  ;;  %v2418_v13 = vrot.slane %v2411_v52, %v14117_v18  ;;  %v1924_v14 = vmul.f32 0.125, %v1790_v29  ;;  %v1248_v34 = vrot.slane %v1247_v32, 1 }
 0x228   : > { %18704 = vst [vmem:[#allocation57_spill] sm:$0xff] %v14772_v58  ;;  %v1480_v61 = vmul.f32 %v14772_v58, %v14772_v58  ;;  %13308 = vrsqrt.f32 %v1989_v27  ;;  %v1802_v8 = vadd.f32 %v1801_v47, %v1800_v35  ;;  %v1817_v44 = vrot.slane %v1816_v57, 2 }
 0x229   : > { %v1807_v20 = vrot.slane %v1806_v48, 1  ;;  %v14780_v6 = vmul.f32 %v14526_v28, %v2418_v13  ;;  %v1988_v39 = vadd.f32 1e-05, %v1924_v14  ;;  %v1249_v51 = vadd.f32 %v1248_v34, %v1247_v32  ;;  %v14790_v28 = vpop.f32.mrf.mxu0 }
 0x22a   : > { %v1809_v21 = vrot.slane %v1480_v61, 4  ;;  %v1926_v63 = vmul.f32 0.125, %v1802_v8  ;;  %v1818_v45 = vadd.f32 %v1817_v44, %v1816_v57  ;;  %v1250_v46 = vrot.slane %v14777_v19, 4  ;;  %v14785_v24 = vpop.eup %13306 }
 0x22b   : > { %v1808_v5 = vadd.f32 %v1807_v20, %v1806_v48  ;;  %v14788_v50 = vmul.f32 %v2738_v38, %v14656_v16  ;;  %13310 = vrsqrt.f32 %v1988_v39  ;;  %v1354_v2 = vmul.f32 0.125, %v1249_v51  ;;  %v14799_v38 = vpop.f32.mrf.mxu1  ;;  %v14805_v39 = vpop.f32.mrf.mxu0 }
 0x22c   : > { %v1810_v35 = vadd.f32 %v1809_v21, %v1480_v61  ;;  %v1990_v14 = vadd.f32 1e-05, %v1926_v63  ;;  %v1819_v29 = vrot.slane %v1818_v45, 1  ;;  %v1251_v32 = vadd.f32 %v1250_v46, %v14777_v19 }
 0x22d   : > { %18705 = vst [vmem:[#allocation58_spill] sm:$0xff] %v14788_v50  ;;  %v1927_v52 = vmul.f32 0.125, %v1808_v5  ;;  %v14796_v48 = vsub.f32 %v14733_v49, %v1354_v2  ;;  %v1262_v16 = vrot.slane %v14782_v55, 4  ;;  %v1256_v44 = vrot.slane %v14790_v28, 4 }
 0x22e   : > { %v1811_v47 = vrot.slane %v1810_v35, 2  ;;  %13312 = vrsqrt.f32 %v1990_v14  ;;  %v1820_v13 = vadd.f32 %v1819_v29, %v1818_v45  ;;  %v1252_v61 = vrot.slane %v1251_v32, 2 }
 0x22f   : > { %v1991_v57 = vadd.f32 1e-05, %v1927_v52  ;;  %v1482_v8 = vmul.f32 %v14796_v48, %v14796_v48  ;;  %v1263_v20 = vadd.f32 %v1262_v16, %v14782_v55  ;;  %v1268_v51 = vrot.slane %v14799_v38, 4 }
 0x230   : > { %v1812_v34 = vadd.f32 %v1811_v47, %v1810_v35  ;;  %v1929_v49 = vmul.f32 0.125, %v1820_v13  ;;  %v1253_v21 = vadd.f32 %v1252_v61, %v1251_v32  ;;  %v1257_v45 = vadd.f32 %v1256_v44, %v14790_v28 }
 0x231   : > { %13314 = vrsqrt.f32 %v1991_v57  ;;  %v1821_v5 = vrot.slane %v1482_v8, 4  ;;  %v1264_v46 = vrot.slane %v1263_v20, 2  ;;  %v1269_v14 = vadd.f32 %v1268_v51, %v14799_v38  ;;  %v14811_v57 = vpop.f32.mrf.mxu1 }
 0x232   : > { %v1813_v63 = vrot.slane %v1812_v34, 1  ;;  %v1993_v35 = vadd.f32 1e-05, %v1929_v49  ;;  %v1254_v2 = vrot.slane %v1253_v21, 1  ;;  %v1274_v52 = vrot.slane %v14805_v39, 4 }
 0x233   : > { %v1822_v47 = vadd.f32 %v1821_v5, %v1482_v8  ;;  %v1265_v16 = vadd.f32 %v1264_v46, %v1263_v20  ;;  %v1258_v27 = vrot.slane %v1257_v45, 2  ;;  %v1270_v13 = vrot.slane %v1269_v14, 2 }
 0x234   : > { %v1814_v29 = vadd.f32 %v1813_v63, %v1812_v34  ;;  %13316 = vrsqrt.f32 %v1993_v35  ;;  %v1255_v32 = vadd.f32 %v1254_v2, %v1253_v21  ;;  %v1275_v61 = vadd.f32 %v1274_v52, %v14805_v39 }
 0x235   : > { %v13309_v58 = vpop.eup %13308  ;;  %v1823_v44 = vrot.slane %v1822_v47, 2  ;;  %v1266_v49 = vrot.slane %v1265_v16, 1  ;;  %v1259_v50 = vadd.f32 %v1258_v27, %v1257_v45  ;;  %v1271_v51 = vadd.f32 %v1270_v13, %v1269_v14 }
 0x236   : > { %v1928_v56 = vmul.f32 0.125, %v1814_v29  ;;  %v1355_v3 = vmul.f32 0.125, %v1255_v32  ;;  %v1276_v17 = vrot.slane %v1275_v61, 2  ;;  %v1286_v34 = vrot.slane %v14811_v57, 4 }
 0x237   : > { %v1824_v20 = vadd.f32 %v1823_v44, %v1822_v47  ;;  %v1267_v63 = vadd.f32 %v1266_v49, %v1265_v16  ;;  %v1260_v5 = vrot.slane %v1259_v50, 1  ;;  %v1272_v35 = vrot.slane %v1271_v51, 1 }
 0x238   : > { %v1992_v8 = vadd.f32 1e-05, %v1928_v56  ;;  %v13311_v46 = vpop.eup %13310  ;;  %v14816_v21 = vsub.f32 %v14777_v19, %v1355_v3  ;;  %v1277_v2 = vadd.f32 %v1276_v17, %v1275_v61  ;;  %v1287_v52 = vadd.f32 %v1286_v34, %v14811_v57 }
 0x239   : > { %v2419_v29 = vcombine.low %v14785_v24, %v13311_v46  ;;  %v1825_v27 = vrot.slane %v1824_v20, 1  ;;  %v1357_v45 = vmul.f32 0.125, %v1267_v63  ;;  %v1261_v56 = vadd.f32 %v1260_v5, %v1259_v50 }
 0x23a   : > { %18706 = vst [vmem:[#allocation59_spill] sm:$0xff] %v14816_v21  ;;  %13318 = vrsqrt.f32 %v1992_v8  ;;  %v1483_v14 = vmul.f32 %v14816_v21, %v14816_v21  ;;  %v1273_v47 = vadd.f32 %v1272_v35, %v1271_v51  ;;  %v1278_v16 = vrot.slane %v1277_v2, 1 }
 0x23b   : > { %v13313_v32 = vpop.eup %13312  ;;  %v2427_v13 = vrot.slane %v2419_v29, %v14117_v18  ;;  %v1826_v3 = vadd.f32 %v1825_v27, %v1824_v20  ;;  %v14824_v19 = vsub.f32 %v14782_v55, %v1357_v45  ;;  %v1288_v17 = vrot.slane %v1287_v52, 2 }
 0x23c   : > { %v2420_v61 = vcombine.low %v13309_v58, %v13313_v32  ;;  %v1827_v44 = vrot.slane %v1483_v14, 4  ;;  %v1356_v24 = vmul.f32 0.125, %v1261_v56  ;;  %v1358_v49 = vmul.f32 0.125, %v1273_v47 }
 0x23d   : > { %18707 = vst [vmem:[#allocation60_spill] sm:$0xff] %v14824_v19  ;;  %v1930_v8 = vmul.f32 0.125, %v1826_v3  ;;  %v1485_v63 = vmul.f32 %v14824_v19, %v14824_v19  ;;  %v1279_v50 = vadd.f32 %v1278_v16, %v1277_v2  ;;  %v1289_v51 = vadd.f32 %v1288_v17, %v1287_v52  ;;  %v14839_v52 = vpop.f32.mrf.mxu0 }
 0x23e   : > { %v13315_v34 = vpop.eup %13314  ;;  %v2434_v5 = vrot.slane %v2420_v61, %v14117_v18  ;;  %v1828_v46 = vadd.f32 %v1827_v44, %v1483_v14  ;;  %v14830_v20 = vsub.f32 %v14790_v28, %v1356_v24  ;;  %v14833_v55 = vsub.f32 %v14799_v38, %v1358_v49 }
 0x23f   : > { %v1994_v58 = vadd.f32 1e-05, %v1930_v8  ;;  %v1839_v35 = vrot.slane %v1485_v63, 4  ;;  %v1359_v29 = vmul.f32 0.125, %v1279_v50  ;;  %v1290_v27 = vrot.slane %v1289_v51, 1 }
 0x240   : > { %18708 = vst [vmem:[#allocation61_spill] sm:$0xff] %v14830_v20  ;;  %v2435_v45 = vcombine.low %v2427_v13, %v2434_v5  ;;  %v1829_v56 = vrot.slane %v1828_v46, 2  ;;  %v1484_v47 = vmul.f32 %v14830_v20, %v14830_v20  ;;  %v1486_v2 = vmul.f32 %v14833_v55, %v14833_v55  ;;  %v14853_v8 = vld [vmem:[%s18463_s2] sm:$0xf] }
 0x241   : > { %v14841_v14 = vpop.eup %13316  ;;  %13320 = vrsqrt.f32 %v1994_v58  ;;  %v1840_v28 = vadd.f32 %v1839_v35, %v1485_v63  ;;  %v14844_v38 = vsub.f32 %v14805_v39, %v1359_v29  ;;  %v1291_v16 = vadd.f32 %v1290_v27, %v1289_v51 }
 0x242   : > { %v2442_v32 = vrot.slane %v2435_v45, %v14117_v18  ;;  %v1830_v13 = vadd.f32 %v1829_v56, %v1828_v46  ;;  %v1833_v3 = vrot.slane %v1484_v47, 4  ;;  %v1845_v17 = vrot.slane %v1486_v2, 4 }
 0x243   : > { %18709 = vst [vmem:[#allocation62_spill] sm:$0xff] %v14844_v38  ;;  %v1841_v61 = vrot.slane %v1840_v28, 2  ;;  %v1487_v44 = vmul.f32 %v14844_v38, %v14844_v38  ;;  %v1361_v24 = vmul.f32 0.125, %v1291_v16  ;;  %v1280_v49 = vrot.slane %v14839_v52, 4 }
 0x244   : > { %v14856_v39 = vmul.f32 %v14853_v8, %v2442_v32  ;;  %v1831_v63 = vrot.slane %v1830_v13, 1  ;;  %v1834_v50 = vadd.f32 %v1833_v3, %v1484_v47  ;;  %v1846_v51 = vadd.f32 %v1845_v17, %v1486_v2 }
 0x245   : > { %v18711_v5 = vrot.slane %v14780_v6, %v14201_v26  ;;  %v1842_v58 = vadd.f32 %v1841_v61, %v1840_v28  ;;  %v1851_v35 = vrot.slane %v1487_v44, 4  ;;  %v14865_v29 = vsub.f32 %v14811_v57, %v1361_v24  ;;  %v14872_v57 = vpop.f32.mrf.mxu1 }
 0x246   : > { %18710 = vst [vmem:[#allocation63_spill] sm:$0xff] %v14856_v39  ;;  %v1832_v45 = vadd.f32 %v1831_v63, %v1830_v13  ;;  %v1835_v56 = vrot.slane %v1834_v50, 2  ;;  %v1847_v16 = vrot.slane %v1846_v51, 2  ;;  %v1281_v32 = vadd.f32 %v1280_v49, %v14839_v52 }
 0x247   : > { %v14862_v46 = vmul.f32 %v18711_v5, %v14683_v42  ;;  %18713 = vst [vmem:[#allocation65_spill] sm:$0xff] %v14865_v29  ;;  %v13319_v27 = vpop.eup %13318  ;;  %v1843_v47 = vrot.slane %v1842_v58, 1  ;;  %v1852_v2 = vadd.f32 %v1851_v35, %v1487_v44  ;;  %v1489_v3 = vmul.f32 %v14865_v29, %v14865_v29 }
 0x248   : > { %v2443_v19 = vcombine.low %v13315_v34, %v13319_v27  ;;  %v2770_v42 = vrot.slane %v14856_v39, %v14201_v26  ;;  %v1931_v28 = vmul.f32 0.125, %v1832_v45  ;;  %v1836_v17 = vadd.f32 %v1835_v56, %v1834_v50 }
 0x249   : > { %18712 = vst [vmem:[#allocation64_spill] sm:$0xff] %v14862_v46  ;;  %v1848_v61 = vadd.f32 %v1847_v16, %v1846_v51  ;;  %v1844_v24 = vadd.f32 %v1843_v47, %v1842_v58  ;;  %v1853_v63 = vrot.slane %v1852_v2, 2  ;;  %v1863_v5 = vrot.slane %v1489_v3, 4 }
 0x24a   : > { %v2451_v13 = vrot.slane %v2443_v19, %v14117_v18  ;;  %v1995_v49 = vadd.f32 1e-05, %v1931_v28  ;;  %v1837_v34 = vrot.slane %v1836_v17, 1  ;;  %v1282_v44 = vrot.slane %v1281_v32, 2 }
 0x24b   : > { %v1849_v27 = vrot.slane %v1848_v61, 1  ;;  %v1933_v35 = vmul.f32 0.125, %v1844_v24  ;;  %v1854_v38 = vadd.f32 %v1853_v63, %v1852_v2  ;;  %v1864_v29 = vadd.f32 %v1863_v5, %v1489_v3 }
 0x24c   : > { %v1292_v21 = vrot.slane %v14872_v57, 4  ;;  %13322 = vrsqrt.f32 %v1995_v49  ;;  %v1838_v45 = vadd.f32 %v1837_v34, %v1836_v17  ;;  %v1283_v51 = vadd.f32 %v1282_v44, %v1281_v32 }
 0x24d   : > { %v1850_v50 = vadd.f32 %v1849_v27, %v1848_v61  ;;  %v1997_v56 = vadd.f32 1e-05, %v1933_v35  ;;  %v1855_v16 = vrot.slane %v1854_v38, 1  ;;  %v1865_v20 = vrot.slane %v1864_v29, 2 }
 0x24e   : > { %v1293_v19 = vadd.f32 %v1292_v21, %v14872_v57  ;;  %v13321_v58 = vpop.eup %13320  ;;  %v1932_v47 = vmul.f32 0.125, %v1838_v45  ;;  %v1284_v39 = vrot.slane %v1283_v51, 1  ;;  %v14878_v46 = vsub.s32 1, %v14106_v7 }
 0x24f   : > { %v1934_v28 = vmul.f32 0.125, %v1850_v50  ;;  %v2444_v2 = vcombine.low %v14841_v14, %v13321_v58  ;;  %13324 = vrsqrt.f32 %v1997_v56  ;;  %v1856_v3 = vadd.f32 %v1855_v16, %v1854_v38  ;;  %v14887_v14 = vld [vmem:[%s18464_s3] sm:$0xf] }
 0x250   : > { %18714 = vst [vmem:[#allocation66_spill] sm:$0xff] %v14878_v46  ;;  %v1866_v24 = vadd.f32 %v1865_v20, %v1864_v29  ;;  %v1996_v17 = vadd.f32 1e-05, %v1932_v47  ;;  %v1285_v32 = vadd.f32 %v1284_v39, %v1283_v51  ;;  %v1294_v63 = vrot.slane %v1293_v19, 2 }
 0x251   : > { %v1998_v61 = vadd.f32 1e-05, %v1934_v28  ;;  %v2458_v5 = vrot.slane %v2444_v2, %v14117_v18  ;;  %v1935_v49 = vmul.f32 0.125, %v1856_v3  ;;  %v2570_v34 = vrot.slane %v14245_v22, %v14878_v46 }
 0x252   : > { %v1867_v21 = vrot.slane %v1866_v24, 1  ;;  %13326 = vrsqrt.f32 %v1996_v17  ;;  %v1360_v27 = vmul.f32 0.125, %v1285_v32  ;;  %v1295_v44 = vadd.f32 %v1294_v63, %v1293_v19 }
 0x253   : > { %v2586_v20 = vrot.slane %v14257_v10, %v14878_v46  ;;  %v2459_v38 = vcombine.low %v2451_v13, %v2458_v5  ;;  %13328 = vrsqrt.f32 %v1998_v61  ;;  %v1999_v39 = vadd.f32 1e-05, %v1935_v49 }
 0x254   : > { %v1868_v29 = vadd.f32 %v1867_v21, %v1866_v24  ;;  %v14892_v35 = vsub.f32 %v14839_v52, %v1360_v27  ;;  %v1296_v45 = vrot.slane %v1295_v44, 1  ;;  %v2884_v50 = vmul.f32 %v2570_v34, %v14140_v0 }
 0x255   : > { %v2888_v51 = vmul.f32 %v2586_v20, %v14160_v31  ;;  %v14897_v56 = vmul.f32 %v2770_v42, %v14748_v41  ;;  %v2466_v16 = vrot.slane %v2459_v38, %v14117_v18  ;;  %v14902_v13 = vrot.slane %v14887_v14, %v14878_v46 }
 0x256   : > { %v1937_v19 = vmul.f32 0.125, %v1868_v29  ;;  %13330 = vrsqrt.f32 %v1999_v39  ;;  %v1488_v52 = vmul.f32 %v14892_v35, %v14892_v35  ;;  %v1297_v58 = vadd.f32 %v1296_v45, %v1295_v44 }
 0x257   : > { %v14908_v0 = vrot.slane %v14887_v14, %v14201_v26  ;;  %v14911_v31 = vmul.f32 %v14853_v8, %v2466_v16  ;;  %v2969_v41 = vadd.f32 %v14902_v13, %v2884_v50  ;;  %v2973_v42 = vadd.f32 %v14902_v13, %v2888_v51 }
 0x258   : > { %v14916_v47 = vsub.s32 0, %v14106_v7  ;;  %v1857_v28 = vrot.slane %v1488_v52, 4  ;;  %v1362_v2 = vmul.f32 0.125, %v1297_v58  ;;  %v14924_v32 = vadd.f32 1e-05, %v1937_v19 }
 0x259   : > { %v2971_v3 = vadd.f32 %v14908_v0, %v14261_v30  ;;  %v2975_v24 = vadd.f32 %v14908_v0, %v14348_v25  ;;  %v13323_v17 = vpop.eup %13322  ;;  %v2786_v61 = vrot.slane %v14911_v31, %v14201_v26  ;;  %v3033_v63 = vmax.f32 %v2969_v41, 0.0 }
 0x25a   : > { %18715 = vst [vmem:[#allocation67_spill] sm:$0xff] %v14916_v47  ;;  %v3037_v5 = vmax.f32 %v2973_v42, 0.0  ;;  %v1858_v49 = vadd.f32 %v1857_v28, %v1488_v52  ;;  %v14927_v21 = vsub.f32 %v14872_v57, %v1362_v2  ;;  %v2566_v25 = vrot.slane %v14245_v22, %v14916_v47 }
 0x25b   : > { %v3035_v34 = vmax.f32 %v2971_v3, 0.0  ;;  %v3039_v27 = vmax.f32 %v2975_v24, 0.0  ;;  %v14930_v44 = vmul.f32 %v2786_v61, %v14796_v48  ;;  %v2582_v20 = vrot.slane %v14257_v10, %v14916_v47 }
 0x25c   : > { %v14932_v30 = vpack.c.bf16 %v3037_v5, %v3033_v63  ;;  %v13325_v38 = vpop.eup %13324  ;;  %v1859_v39 = vrot.slane %v1858_v49, 2  ;;  %v1490_v29 = vmul.f32 %v14927_v21, %v14927_v21  ;;  %v14944_v45 = vrot.slane %v14887_v14, %v14916_v47 }
 0x25d   : > { %v14940_v57 = vpack.c.bf16 %v3039_v27, %v3035_v34  ;;  %v2883_v48 = vmul.f32 %v2566_v25, %v14131_v59  ;;  %v2887_v50 = vmul.f32 %v2582_v20, %v14150_v23  ;;  %v14950_v51 = vsub.s32 2, %v14106_v7  ;;  %v12810_v20 = vld [vmem:[#allocation2 + $0xe8] ss:$16 sps:$4 sm:$0xff]  }
 0x25e   : > { %3928 = vmatprep.mubr.bf16.mxu0 %v14932_v30  ;;  %v2602_v16 = vrot.slane %v14333_v62, %v14878_v46  ;;  %v1860_v19 = vadd.f32 %v1859_v39, %v1858_v49  ;;  %v1869_v52 = vrot.slane %v1490_v29, 4  ;;  %v2618_v58 = vrot.slane %v14389_v53, %v14878_v46 }
 0x25f   : > { %18716 = vst [vmem:[#allocation68_spill] sm:$0xff] %v14950_v51  ;;  %4041 = vmatprep.mubr.bf16.mxu1 %v14940_v57  ;;  %v2979_v41 = vadd.f32 %v14908_v0, %v14358_v12  ;;  %v13327_v42 = vpop.eup %13326  ;;  %v2968_v59 = vadd.f32 %v14944_v45, %v2883_v48  ;;  %v2972_v23 = vadd.f32 %v14944_v45, %v2887_v50 }
 0x260   : > { %v2574_v7 = vrot.slane %v14245_v22, %v14950_v51  ;;  %v2590_v28 = vrot.slane %v14257_v10, %v14950_v51  ;;  %v13329_v2 = vpop.eup %13328  ;;  %v2467_v3 = vcombine.low %v13323_v17, %v13327_v42  ;;  %v1861_v24 = vrot.slane %v1860_v19, 1 }
 0x261   : > { %v1870_v61 = vadd.f32 %v1869_v52, %v1490_v29  ;;  %v14967_v63 = vrot.slane %v14887_v14, %v14950_v51  ;;  %v2468_v12 = vcombine.low %v13325_v38, %v13329_v2  ;;  %v3032_v5 = vmax.f32 %v2968_v59, 0.0  ;;  %v12818_v38 = vld [vmem:[#allocation2 + $0xcc] ss:$16 sps:$4 sm:$0xff]  }
 0x262   : > { %v3036_v49 = vmax.f32 %v2972_v23, 0.0  ;;  %v2885_v34 = vmul.f32 %v2574_v7, %v14133_v60  ;;  %v2475_v27 = vrot.slane %v2467_v3, %v14117_v18  ;;  %v1862_v25 = vadd.f32 %v1861_v24, %v1860_v19  ;;  %v12813_v24 = vld [vmem:[#allocation2 + $0x2e8] ss:$16 sps:$4 sm:$0xff]  }
 0x263   : > { %v1871_v22 = vrot.slane %v1870_v61, 2  ;;  %v2889_v10 = vmul.f32 %v2590_v28, %v14153_v4  ;;  %v14972_v39 = vpop.eup %13330  ;;  %v2482_v17 = vrot.slane %v2468_v12, %v14117_v18  ;;  %v2892_v48 = vmul.f32 %v2602_v16, %v14221_v11  ;;  %v12816_v11 = vld [vmem:[#allocation2 + $0xc8] ss:$16 sps:$4 sm:$0xff]  }
 0x264   : > { %v14975_v29 = vpack.c.bf16 %v3036_v49, %v3032_v5  ;;  %v2970_v14 = vadd.f32 %v14967_v63, %v2885_v34  ;;  %v1936_v50 = vmul.f32 0.125, %v1862_v25  ;;  %v2896_v19 = vmul.f32 %v2618_v58, %v14268_v1  ;;  %v12821_v49 = vld [vmem:[#allocation2 + $0x2cc] ss:$16 sps:$4 sm:$0xff]  }
 0x265   : > { %v1872_v60 = vadd.f32 %v1871_v22, %v1870_v61  ;;  %v2974_v52 = vadd.f32 %v14967_v63, %v2889_v10  ;;  %v2483_v42 = vcombine.low %v2475_v27, %v2482_v17  ;;  %v2977_v59 = vadd.f32 %v14902_v13, %v2892_v48  ;;  %v12824_v25 = vld [vmem:[#allocation2 + $0xac] ss:$16 sps:$4 sm:$0xff]   ;;  %v12822_v17 = vld [vmem:[#allocation2 + $0xa8] ss:$16 sps:$4 sm:$0xff]  }
 0x266   : > { %3929 = vmatmul.mubr.bf16.vlgmr.msra.gmra.mxu0 %v14975_v29  ;;  %v3034_v4 = vmax.f32 %v2970_v14, 0.0  ;;  %v2983_v23 = vadd.f32 %v14908_v0, %v14432_v40  ;;  %v2000_v7 = vadd.f32 1e-05, %v1936_v50  ;;  %v2981_v16 = vadd.f32 %v14902_v13, %v2896_v19  ;;  %v12819_v50 = vld [vmem:[#allocation2 + $0x2c8] ss:$16 sps:$4 sm:$0xff]  }
 0x267   : > { %v1873_v28 = vrot.slane %v1872_v60, 1  ;;  %v3038_v2 = vmax.f32 %v2974_v52, 0.0  ;;  %4123 = vmatpush1.bf16.msra.mxu0 %v12810_v20  ;;  %v2490_v3 = vrot.slane %v2483_v42, %v14117_v18  ;;  %v3041_v1 = vmax.f32 %v2977_v59, 0.0  ;;  %v12830_v19 = vld [vmem:[#allocation2 + $0x8c] ss:$16 sps:$4 sm:$0xff]  }
 0x268   : > { %4124 = vmatprep.subr.bf16.mxu0 %v12818_v38  ;;  %v3043_v58 = vmax.f32 %v2979_v41, 0.0  ;;  %v3047_v61 = vmax.f32 %v2983_v23, 0.0  ;;  %13332 = vrsqrt.f32 %v2000_v7  ;;  %v3045_v40 = vmax.f32 %v2981_v16, 0.0  ;;  %v18718_v59 = vld [vmem:[#allocation19_spill] sm:$0xff] }
 0x269   : > { %v1874_v12 = vadd.f32 %v1873_v28, %v1872_v60  ;;  %v14987_v5 = vpack.c.bf16 %v3038_v2, %v3034_v4  ;;  %v14990_v34 = vmul.f32 %v14853_v8, %v2490_v3  ;;  %v2598_v22 = vrot.slane %v14333_v62, %v14916_v47  ;;  %v18720_v2 = vld [vmem:[#allocation36_spill] sm:$0xff] }
 0x26a   : > { %v14992_v27 = vpack.c.bf16 %v3047_v61, %v3043_v58  ;;  %v2614_v20 = vrot.slane %v14389_v53, %v14916_v47  ;;  %v14999_v10 = vpack.c.bf16 %v3045_v40, %v3041_v1  ;;  %v2606_v14 = vrot.slane %v14333_v62, %v14950_v51  ;;  %v12827_v62 = vld [vmem:[#allocation2 + $0x2ac] ss:$16 sps:$4 sm:$0xff]   ;;  %v18721_v1 = vld [vmem:[#allocation22_spill] sm:$0xff] }
 0x26b   : > { %v1938_v41 = vmul.f32 0.125, %v1874_v12  ;;  %4042 = vmatmul.mubr.bf16.vlgmr.msra.gmra.mxu1 %v14987_v5  ;;  %4125 = vmatpush1.bf16.msra.mxu0 %v12816_v11  ;;  %v2622_v38 = vrot.slane %v14389_v53, %v14950_v51  ;;  %v2802_v48 = vrot.slane %v14990_v34, %v14201_v26  ;;  %13334 = vrsqrt.f32 %v14924_v32  ;;  %v18717_v53 = vld [vmem:[#allocation18_spill] sm:$0xff]  ;;  %v18719_v32 = vld [vmem:[#allocation29_spill] sm:$0xff] }
 0x26c   : > { %4236 = vmatpush1.bf16.msra.mxu1 %v12813_v24  ;;  %4051 = vmatprep.mubr.bf16.mxu1 %v14992_v27  ;;  %v2891_v60 = vmul.f32 %v2598_v22, %v14204_v37  ;;  %v2895_v52 = vmul.f32 %v2614_v20, %v14227_v15  ;;  %v2893_v4 = vmul.f32 %v2606_v14, %v18717_v53  ;;  %v12828_v24 = vld [vmem:[#allocation2 + $0x88] ss:$16 sps:$4 sm:$0xff]   ;;  %v12833_v14 = vld [vmem:[#allocation2 + $0x28c] ss:$16 sps:$4 sm:$0xff]  }
 0x26d   : > { %v2002_v42 = vadd.f32 1e-05, %v1938_v41  ;;  %4237 = vmatprep.subr.bf16.mxu1 %v12821_v49  ;;  %3938 = vmatprep.mubr.bf16.mxu0 %v14999_v10  ;;  %v2897_v23 = vmul.f32 %v2622_v38, %v18718_v59  ;;  %v2634_v7 = vrot.slane %v18719_v32, %v14878_v46  ;;  %v15017_v28 = vmul.f32 %v2802_v48, %v14833_v55  ;;  %v12825_v55 = vld [vmem:[#allocation2 + $0x2a8] ss:$16 sps:$4 sm:$0xff]  }
 0x26e   : > { %4126 = vmatprep.subr.bf16.mxu0 %v12824_v25  ;;  %v2976_v37 = vadd.f32 %v14944_v45, %v2891_v60  ;;  %v2980_v15 = vadd.f32 %v14944_v45, %v2895_v52  ;;  %v2650_v11 = vrot.slane %v18720_v2, %v14878_v46  ;;  %v2978_v16 = vadd.f32 %v14967_v63, %v2893_v4  ;;  %v18722_v49 = vld [vmem:[#allocation25_spill] sm:$0xff]  ;;  %v18723_v25 = vld [vmem:[#allocation35_spill] sm:$0xff] }
 0x26f   : > { %13336 = vrsqrt.f32 %v2002_v42  ;;  %v2982_v3 = vadd.f32 %v14967_v63, %v2897_v23  ;;  %4127 = vmatpush1.bf16.msra.mxu0 %v12822_v17  ;;  %v2900_v58 = vmul.f32 %v2634_v7, %v18721_v1  ;;  %v2987_v22 = vadd.f32 %v14908_v0, %v18723_v25  ;;  %v18724_v17 = vld [vmem:[#allocation37_spill] sm:$0xff] }
 0x270   : > { %4238 = vmatpush1.bf16.msra.mxu1 %v12819_v50  ;;  %v3040_v61 = vmax.f32 %v2976_v37, 0.0  ;;  %v3044_v12 = vmax.f32 %v2980_v15, 0.0  ;;  %4128 = vmatprep.subr.bf16.mxu0 %v12830_v19  ;;  %v2904_v40 = vmul.f32 %v2650_v11, %v18722_v49  ;;  %v3042_v20 = vmax.f32 %v2978_v16, 0.0  ;;  %v12836_v19 = vld [vmem:[#allocation2 + $0x6c] ss:$16 sps:$4 sm:$0xff]   ;;  %v18725_v15 = vld [vmem:[#allocation20_spill] sm:$0xff] }
 0x271   : > { %4239 = vmatprep.subr.bf16.mxu1 %v12827_v62  ;;  %v3046_v41 = vmax.f32 %v2982_v3, 0.0  ;;  %v2985_v38 = vadd.f32 %v14902_v13, %v2900_v58  ;;  %v2991_v48 = vadd.f32 %v14908_v0, %v18724_v17  ;;  %v3051_v52 = vmax.f32 %v2987_v22, 0.0  ;;  %v12834_v59 = vld [vmem:[#allocation2 + $0x68] ss:$16 sps:$4 sm:$0xff]   ;;  %v12839_v1 = vld [vmem:[#allocation2 + $0x26c] ss:$16 sps:$4 sm:$0xff]  }
 0x272   : > { %v15032_v60 = vpack.c.bf16 %v3044_v12, %v3040_v61  ;;  %v2989_v50 = vadd.f32 %v14902_v13, %v2904_v40  ;;  %v2630_v42 = vrot.slane %v18719_v32, %v14916_v47  ;;  %v2646_v23 = vrot.slane %v18720_v2, %v14916_v47  ;;  %v12831_v7 = vld [vmem:[#allocation2 + $0x288] ss:$16 sps:$4 sm:$0xff]   ;;  %v12842_v12 = vld [vmem:[#allocation2 + $0x4c] ss:$16 sps:$4 sm:$0xff]   ;;  %v18728_v22 = vld [vmem:[#allocation24_spill] sm:$0xff] }
 0x273   : > { %v15037_v53 = vpack.c.bf16 %v3046_v41, %v3042_v20  ;;  %4129 = vmatpush1.bf16.msra.mxu0 %v12828_v24  ;;  %v3049_v62 = vmax.f32 %v2985_v38, 0.0  ;;  %v3055_v4 = vmax.f32 %v2991_v48, 0.0  ;;  %v2638_v16 = vrot.slane %v18719_v32, %v14950_v51  ;;  %v18726_v58 = vld [vmem:[#allocation23_spill] sm:$0xff]  ;;  %v18727_v25 = vld [vmem:[#allocation21_spill] sm:$0xff] }
 0x274   : > { %3939 = vmatmul.mubr.bf16.gmra.mxu0 %v15032_v60  ;;  %4240 = vmatpush1.bf16.msra.mxu1 %v12825_v55  ;;  %v3053_v37 = vmax.f32 %v2989_v50, 0.0  ;;  %v2899_v11 = vmul.f32 %v2630_v42, %v18725_v15  ;;  %v2654_v3 = vrot.slane %v18720_v2, %v14950_v51  ;;  %v2903_v61 = vmul.f32 %v2646_v23, %v18726_v58  ;;  %v12840_v38 = vld [vmem:[#allocation2 + $0x48] ss:$16 sps:$4 sm:$0xff]   ;;  %v18729_v42 = vld [vmem:[#allocation28_spill] sm:$0xff] }
 0x275   : > { %4052 = vmatmul.mubr.bf16.gmra.mxu1 %v15037_v53  ;;  %4241 = vmatprep.subr.bf16.mxu1 %v12833_v14  ;;  %v15048_v24 = vpack.c.bf16 %v3055_v4, %v3051_v52  ;;  %v2666_v55 = vrot.slane %v14529_v54, %v14878_v46  ;;  %v13333_v49 = vpop.eup %13332  ;;  %v2901_v2 = vmul.f32 %v2638_v16, %v18727_v25  ;;  %v12837_v48 = vld [vmem:[#allocation2 + $0x268] ss:$16 sps:$4 sm:$0xff]  }
 0x276   : > { %v15053_v40 = vpack.c.bf16 %v3053_v37, %v3049_v62  ;;  %4130 = vmatprep.subr.bf16.mxu0 %v12836_v19  ;;  %v2984_v32 = vadd.f32 %v14944_v45, %v2899_v11  ;;  %v2905_v20 = vmul.f32 %v2654_v3, %v18728_v22  ;;  %v2491_v41 = vcombine.low %v14972_v39, %v13333_v49  ;;  %v12848_v62 = vld [vmem:[#allocation2 + $0x2c] ss:$16 sps:$4 sm:$0xff]  }
 0x277   : > { %4061 = vmatprep.mubr.bf16.mxu1 %v15048_v24  ;;  %v2988_v14 = vadd.f32 %v14944_v45, %v2903_v61  ;;  %4131 = vmatpush1.bf16.msra.mxu0 %v12834_v59  ;;  %v2682_v17 = vrot.slane %v14594_v43, %v14878_v46  ;;  %v2986_v52 = vadd.f32 %v14967_v63, %v2901_v2  ;;  %v12845_v37 = vld [vmem:[#allocation2 + $0x24c] ss:$16 sps:$4 sm:$0xff]  }
 0x278   : > { %4242 = vmatpush1.bf16.msra.mxu1 %v12831_v7  ;;  %3948 = vmatprep.mubr.bf16.mxu0 %v15053_v40  ;;  %v3048_v50 = vmax.f32 %v2984_v32, 0.0  ;;  %v2990_v19 = vadd.f32 %v14967_v63, %v2905_v20  ;;  %v2908_v39 = vmul.f32 %v2666_v55, %v18729_v42  ;;  %v13335_v4 = vpop.eup %13334  ;;  %v15068_v23 = vrot.slane %v2491_v41, %v14117_v18  ;;  %v18730_v7 = vld [vmem:[#allocation32_spill] sm:$0xff] }
 0x279   : > { %4243 = vmatprep.subr.bf16.mxu1 %v12839_v1  ;;  %v3052_v59 = vmax.f32 %v2988_v14, 0.0  ;;  %4132 = vmatprep.subr.bf16.mxu0 %v12842_v12  ;;  %v2912_v15 = vmul.f32 %v2682_v17, %v18730_v7  ;;  %v2995_v11 = vadd.f32 %v14908_v0, %v14605_v9  ;;  %v3050_v16 = vmax.f32 %v2986_v52, 0.0  ;;  %v12846_v12 = vld [vmem:[#allocation2 + $0x28] ss:$16 sps:$4 sm:$0xff]   ;;  %v18731_v17 = vld [vmem:[#allocation26_spill] sm:$0xff] }
 0x27a   : > { %v3054_v3 = vmax.f32 %v2990_v19, 0.0  ;;  %v2993_v58 = vadd.f32 %v14902_v13, %v2908_v39  ;;  %v2999_v61 = vadd.f32 %v14908_v0, %v14635_v36  ;;  %v2662_v32 = vrot.slane %v14529_v54, %v14916_v47  ;;  %v12843_v9 = vld [vmem:[#allocation2 + $0x248] ss:$16 sps:$4 sm:$0xff]   ;;  %v18732_v19 = vld [vmem:[#allocation30_spill] sm:$0xff] }
 0x27b   : > { %v15076_v55 = vpack.c.bf16 %v3052_v59, %v3048_v50  ;;  %4133 = vmatpush1.bf16.msra.mxu0 %v12840_v38  ;;  %v2997_v1 = vadd.f32 %v14902_v13, %v2912_v15  ;;  %v3059_v49 = vmax.f32 %v2995_v11, 0.0  ;;  %v2678_v36 = vrot.slane %v14594_v43, %v14916_v47  ;;  %v12851_v38 = vld [vmem:[#allocation2 + $0x22c] ss:$16 sps:$4 sm:$0xff]   ;;  %v12852_v11 = vld [vmem:[#allocation2 + $0x8] ss:$16 sps:$4 sm:$0xff]  }
 0x27c   : > { %v13337_v25 = vpop.eup %13336  ;;  %v15081_v2 = vpack.c.bf16 %v3054_v3, %v3050_v16  ;;  %4244 = vmatpush1.bf16.msra.mxu1 %v12837_v48  ;;  %v3057_v22 = vmax.f32 %v2993_v58, 0.0  ;;  %v3063_v20 = vmax.f32 %v2999_v61, 0.0  ;;  %4134 = vmatprep.subr.bf16.mxu0 %v12848_v62  ;;  %v2907_v50 = vmul.f32 %v2662_v32, %v18731_v17  ;;  %v12854_v62 = vld [vmem:[#allocation2 + $0xc] ss:$16 sps:$4 sm:$0xff]   ;;  %v12849_v16 = vld [vmem:[#allocation2 + $0x228] ss:$16 sps:$4 sm:$0xff]  }
 0x27d   : > { %v2492_v41 = vcombine.low %v13335_v4, %v13337_v25  ;;  %3949 = vmatmul.mubr.bf16.gmra.mxu0 %v15076_v55  ;;  %4245 = vmatprep.subr.bf16.mxu1 %v12845_v37  ;;  %v3061_v14 = vmax.f32 %v2997_v1, 0.0  ;;  %v2670_v52 = vrot.slane %v14529_v54, %v14950_v51  ;;  %v2911_v42 = vmul.f32 %v2678_v36, %v18732_v19  ;;  %v18733_v54 = vld [vmem:[#allocation27_spill] sm:$0xff]  ;;  %v18735_v61 = vld [vmem:[#allocation48_spill] sm:$0xff] }
 0x27e   : > { %4062 = vmatmul.mubr.bf16.gmra.mxu1 %v15081_v2  ;;  %v15090_v48 = vpack.c.bf16 %v3063_v20, %v3059_v49  ;;  %v2686_v39 = vrot.slane %v14594_v43, %v14950_v51  ;;  %v2698_v4 = vrot.slane %v14653_v33, %v14878_v46  ;;  %v2992_v7 = vadd.f32 %v14944_v45, %v2907_v50  ;;  %v18734_v3 = vld [vmem:[#allocation31_spill] sm:$0xff]  ;;  %v18738_v50 = vld [vmem:[#allocation49_spill] sm:$0xff] }
 0x27f   : > { %v2506_v59 = vrot.slane %v2492_v41, %v14117_v18  ;;  %v15098_v37 = vpack.c.bf16 %v3061_v14, %v3057_v22  ;;  %v2909_v15 = vmul.f32 %v2670_v52, %v18733_v54  ;;  %4135 = vmatpush1.bf16.msra.mxu0 %v12846_v12  ;;  %v2996_v43 = vadd.f32 %v14944_v45, %v2911_v42  ;;  %v12860_v49 = vld [vmem:[#allocation2 + $0x1ec] ss:$16 sps:$4 sm:$0xff]   ;;  %v18736_v22 = vld [vmem:[#allocation38_spill] sm:$0xff] }
 0x280   : > { %4246 = vmatpush1.bf16.msra.mxu1 %v12843_v9  ;;  %4071 = vmatprep.mubr.bf16.mxu1 %v15090_v48  ;;  %v2913_v58 = vmul.f32 %v2686_v39, %v18734_v3  ;;  %v2714_v1 = vrot.slane %v18735_v61, %v14878_v46  ;;  %v3056_v25 = vmax.f32 %v2992_v7, 0.0  ;;  %v12857_v9 = vld [vmem:[#allocation2 + $0x20c] ss:$16 sps:$4 sm:$0xff]   ;;  %v2916_v20 = vmul.f32 %v2698_v4, %v18736_v22  ;;  %v12855_v3 = vld [vmem:[#allocation2 + $0x208] ss:$16 sps:$4 sm:$0xff]  }
 0x281   : > { %v2507_v32 = vcombine.low %v15068_v23, %v2506_v59  ;;  %3958 = vmatprep.mubr.bf16.mxu0 %v15098_v37  ;;  %4247 = vmatprep.subr.bf16.mxu1 %v12851_v38  ;;  %v2994_v12 = vadd.f32 %v14967_v63, %v2909_v15  ;;  %v3060_v36 = vmax.f32 %v2996_v43, 0.0  ;;  %v18737_v14 = vld [vmem:[#allocation41_spill] sm:$0xff]  ;;  %v3003_v52 = vadd.f32 %v14908_v0, %v18738_v50  ;;  %v18739_v42 = vld [vmem:[#allocation51_spill] sm:$0xff] }
 0x282   : > { %v2998_v41 = vadd.f32 %v14967_v63, %v2913_v58  ;;  %4136 = vmatprep.subr.bf16.mxu0 %v12854_v62  ;;  %v2920_v17 = vmul.f32 %v2714_v1, %v18737_v14  ;;  %v3001_v38 = vadd.f32 %v14902_v13, %v2916_v20  ;;  %v3007_v39 = vadd.f32 %v14908_v0, %v18739_v42  ;;  %v12858_v59 = vld [vmem:[#allocation2 + $0x1e8] ss:$16 sps:$4 sm:$0xff]   ;;  %v12866_v15 = vld [vmem:[#allocation2 + $0x1cc] ss:$16 sps:$4 sm:$0xff]   ;;  %v18743_v42 = vld [vmem:[#allocation40_spill] sm:$0xff] }
 0x283   : > { %v2514_v23 = vrot.slane %v2507_v32, %v14117_v18  ;;  %v3058_v19 = vmax.f32 %v2994_v12, 0.0  ;;  %4137 = vmatpush1.bf16.msra.mxu0 %v12852_v11  ;;  %v15119_v4 = vpack.c.bf16 %v3060_v36, %v3056_v25  ;;  %v3067_v54 = vmax.f32 %v3003_v52, 0.0  ;;  %v12863_v25 = vld [vmem:[#allocation2 + $0x3ec] ss:$16 sps:$4 sm:$0xff]   ;;  %v18742_v52 = vld [vmem:[#allocation34_spill] sm:$0xff] }
 0x284   : > { %v3062_v7 = vmax.f32 %v2998_v41, 0.0  ;;  %4248 = vmatpush1.bf16.msra.mxu1 %v12849_v16  ;;  %v3005_v62 = vadd.f32 %v14902_v13, %v2920_v17  ;;  %4138 = vmatprep.subr.bf16.mxu0 %v12860_v49  ;;  %v3065_v11 = vmax.f32 %v3001_v38, 0.0  ;;  %v3071_v58 = vmax.f32 %v3007_v39, 0.0  ;;  %v18740_v22 = vld [vmem:[#allocation33_spill] sm:$0xff]  ;;  %v18741_v17 = vld [vmem:[#allocation39_spill] sm:$0xff] }
 0x285   : > { %v15123_v43 = vmul.f32 %v14853_v8, %v2514_v23  ;;  %4249 = vmatprep.subr.bf16.mxu1 %v12857_v9  ;;  %v2694_v1 = vrot.slane %v14653_v33, %v14916_v47  ;;  %3959 = vmatmul.mubr.bf16.gmra.mxu0 %v15119_v4  ;;  %v2710_v49 = vrot.slane %v18735_v61, %v14916_v47  ;;  %v12864_v41 = vld [vmem:[#allocation2 + $0x1c8] ss:$16 sps:$4 sm:$0xff]   ;;  %v12872_v23 = vld [vmem:[#allocation2 + $0x1ac] ss:$16 sps:$4 sm:$0xff]  }
 0x286   : > { %v15128_v32 = vpack.c.bf16 %v3062_v7, %v3058_v19  ;;  %v3069_v16 = vmax.f32 %v3005_v62, 0.0  ;;  %v2702_v8 = vrot.slane %v14653_v33, %v14950_v51  ;;  %v15136_v9 = vpack.c.bf16 %v3071_v58, %v3067_v54  ;;  %v12861_v38 = vld [vmem:[#allocation2 + $0x3e8] ss:$16 sps:$4 sm:$0xff]   ;;  %v12869_v62 = vld [vmem:[#allocation2 + $0x3cc] ss:$16 sps:$4 sm:$0xff]   ;;  %v18745_v58 = vld [vmem:[#allocation58_spill] sm:$0xff] }
 0x287   : > { %v2818_v12 = vrot.slane %v15123_v43, %v14201_v26  ;;  %v2915_v20 = vmul.f32 %v2694_v1, %v18740_v22  ;;  %v2718_v36 = vrot.slane %v18735_v61, %v14950_v51  ;;  %4139 = vmatpush2.bf16.msra.mxu0 %v12858_v59  ;;  %v2919_v50 = vmul.f32 %v2710_v49, %v18741_v17  ;;  %v18744_v54 = vld [vmem:[#allocation55_spill] sm:$0xff]  ;;  %v18747_v22 = vld [vmem:[#allocation64_spill] sm:$0xff] }
 0x288   : > { %4072 = vmatmul.mubr.bf16.gmra.mxu1 %v15128_v32  ;;  %v15142_v14 = vpack.c.bf16 %v3069_v16, %v3065_v11  ;;  %v2917_v33 = vmul.f32 %v2702_v8, %v18742_v52  ;;  %4140 = vmatprep.subr.bf16.mxu0 %v12866_v15  ;;  %v2746_v11 = vrot.slane %v14780_v6, %v14878_v46  ;;  %v12870_v16 = vld [vmem:[#allocation2 + $0x1a8] ss:$16 sps:$4 sm:$0xff]   ;;  %v18746_v8 = vld [vmem:[#allocation44_spill] sm:$0xff] }
 0x289   : > { %v15147_v19 = vmul.f32 %v2818_v12, %v14927_v21  ;;  %4250 = vmatpush1.bf16.msra.mxu1 %v12855_v3  ;;  %4081 = vmatprep.mubr.bf16.mxu1 %v15136_v9  ;;  %v3000_v61 = vadd.f32 %v14944_v45, %v2915_v20  ;;  %v2921_v39 = vmul.f32 %v2718_v36, %v18743_v42  ;;  %v12878_v36 = vld [vmem:[#allocation2 + $0x18c] ss:$16 sps:$4 sm:$0xff]   ;;  %v12867_v42 = vld [vmem:[#allocation2 + $0x3c8] ss:$16 sps:$4 sm:$0xff]  }
 0x28a   : > { %3968 = vmatprep.mubr.bf16.mxu0 %v15142_v14  ;;  %4251 = vmatprep.subr.bf16.mxu1 %v12863_v25  ;;  %v3004_v59 = vadd.f32 %v14944_v45, %v2919_v50  ;;  %v3002_v7 = vadd.f32 %v14967_v63, %v2917_v33  ;;  %v2730_v21 = vrot.slane %v18744_v54, %v14878_v46  ;;  %v18748_v50 = vld [vmem:[#allocation47_spill] sm:$0xff] }
 0x28b   : > { %v3064_v15 = vmax.f32 %v3000_v61, 0.0  ;;  %v3006_v3 = vadd.f32 %v14967_v63, %v2921_v39  ;;  %4141 = vmatpush2.bf16.msra.mxu0 %v12864_v41  ;;  %v3011_v1 = vadd.f32 %v14908_v0, %v18745_v58  ;;  %v3015_v20 = vadd.f32 %v14908_v0, %v18747_v22 }
 0x28c   : > { %v3068_v25 = vmax.f32 %v3004_v59, 0.0  ;;  %v3066_v49 = vmax.f32 %v3002_v7, 0.0  ;;  %v2924_v12 = vmul.f32 %v2730_v21, %v18746_v8  ;;  %4142 = vmatprep.subr.bf16.mxu0 %v12872_v23  ;;  %v2928_v41 = vmul.f32 %v2746_v11, %v18748_v50  ;;  %v12875_v21 = vld [vmem:[#allocation2 + $0x3ac] ss:$16 sps:$4 sm:$0xff]  }
 0x28d   : > { %v3070_v17 = vmax.f32 %v3006_v3, 0.0  ;;  %4252 = vmatpush2.bf16.msra.mxu1 %v12861_v38  ;;  %v3075_v52 = vmax.f32 %v3011_v1, 0.0  ;;  %v2726_v33 = vrot.slane %v18744_v54, %v14916_v47  ;;  %v3079_v59 = vmax.f32 %v3015_v20, 0.0  ;;  %v18749_v3 = vld [vmem:[#allocation42_spill] sm:$0xff] }
 0x28e   : > { %v15168_v61 = vpack.c.bf16 %v3068_v25, %v3064_v15  ;;  %4253 = vmatprep.subr.bf16.mxu1 %v12869_v62  ;;  %v3009_v39 = vadd.f32 %v14902_v13, %v2924_v12  ;;  %v2742_v7 = vrot.slane %v14780_v6, %v14916_v47  ;;  %v3013_v38 = vadd.f32 %v14902_v13, %v2928_v41  ;;  %v12876_v15 = vld [vmem:[#allocation2 + $0x188] ss:$16 sps:$4 sm:$0xff]   ;;  %v12884_v12 = vld [vmem:[#allocation2 + $0x16c] ss:$16 sps:$4 sm:$0xff]  }
 0x28f   : > { %v15173_v23 = vpack.c.bf16 %v3070_v17, %v3066_v49  ;;  %v2923_v11 = vmul.f32 %v2726_v33, %v18749_v3  ;;  %v2734_v58 = vrot.slane %v18744_v54, %v14950_v51  ;;  %4143 = vmatpush2.bf16.msra.mxu0 %v12870_v16  ;;  %v15180_v1 = vpack.c.bf16 %v3079_v59, %v3075_v52  ;;  %v18750_v25 = vld [vmem:[#allocation45_spill] sm:$0xff]  ;;  %v18751_v54 = vld [vmem:[#allocation43_spill] sm:$0xff]  ;;  %v18753_v33 = vld [vmem:[#allocation46_spill] sm:$0xff] }
 0x290   : > { %3969 = vmatmul.mubr.bf16.gmra.mxu0 %v15168_v61  ;;  %v3073_v62 = vmax.f32 %v3009_v39, 0.0  ;;  %v2927_v8 = vmul.f32 %v2742_v7, %v18750_v25  ;;  %v2750_v49 = vrot.slane %v14780_v6, %v14950_v51  ;;  %4144 = vmatprep.subr.bf16.mxu0 %v12878_v36  ;;  %v3077_v22 = vmax.f32 %v3013_v38, 0.0  ;;  %v18752_v17 = vld [vmem:[#allocation63_spill] sm:$0xff]  ;;  %v18754_v3 = vld [vmem:[#allocation53_spill] sm:$0xff] }
 0x291   : > { %4082 = vmatmul.mubr.bf16.gmra.mxu1 %v15173_v23  ;;  %v3008_v20 = vadd.f32 %v14944_v45, %v2923_v11  ;;  %v2925_v16 = vmul.f32 %v2734_v58, %v18751_v54  ;;  %v2762_v50 = vrot.slane %v18752_v17, %v14878_v46  ;;  %v12873_v41 = vld [vmem:[#allocation2 + $0x3a8] ss:$16 sps:$4 sm:$0xff]   ;;  %v2778_v36 = vrot.slane %v14911_v31, %v14878_v46  ;;  %v12881_v38 = vld [vmem:[#allocation2 + $0x38c] ss:$16 sps:$4 sm:$0xff]  }
 0x292   : > { %4254 = vmatpush2.bf16.msra.mxu1 %v12867_v42  ;;  %4091 = vmatprep.mubr.bf16.mxu1 %v15180_v1  ;;  %v3012_v52 = vadd.f32 %v14944_v45, %v2927_v8  ;;  %v2929_v6 = vmul.f32 %v2750_v49, %v18753_v33  ;;  %v15195_v39 = vpack.c.bf16 %v3077_v22, %v3073_v62  ;;  %v12882_v11 = vld [vmem:[#allocation2 + $0x168] ss:$16 sps:$4 sm:$0xff]   ;;  %v12890_v62 = vld [vmem:[#allocation2 + $0x14c] ss:$16 sps:$4 sm:$0xff]  }
 0x293   : > { %4255 = vmatprep.subr.bf16.mxu1 %v12875_v21  ;;  %v3072_v59 = vmax.f32 %v3008_v20, 0.0  ;;  %v3010_v7 = vadd.f32 %v14967_v63, %v2925_v16  ;;  %4145 = vmatpush2.bf16.msra.mxu0 %v12876_v15  ;;  %v2932_v42 = vmul.f32 %v2762_v50, %v18754_v3  ;;  %v18755_v8 = vld [vmem:[#allocation57_spill] sm:$0xff]  ;;  %v3019_v49 = vadd.f32 %v14908_v0, %v14897_v56 }
 0x294   : > { %v3076_v58 = vmax.f32 %v3012_v52, 0.0  ;;  %v3014_v25 = vadd.f32 %v14967_v63, %v2929_v6  ;;  %v2936_v54 = vmul.f32 %v2778_v36, %v18755_v8  ;;  %4146 = vmatprep.subr.bf16.mxu0 %v12884_v12  ;;  %3978 = vmatprep.mubr.bf16.mxu0 %v15195_v39  ;;  %v3023_v15 = vadd.f32 %v14908_v0, %v14930_v44  ;;  %v12879_v12 = vld [vmem:[#allocation2 + $0x388] ss:$16 sps:$4 sm:$0xff]  }
 0x295   : > { %v3074_v21 = vmax.f32 %v3010_v7, 0.0  ;;  %v3017_v22 = vadd.f32 %v14902_v13, %v2932_v42  ;;  %v2758_v20 = vrot.slane %v18752_v17, %v14916_v47  ;;  %v3083_v56 = vmax.f32 %v3019_v49, 0.0  ;;  %v18756_v7 = vld [vmem:[#allocation50_spill] sm:$0xff]  ;;  %v12887_v42 = vld [vmem:[#allocation2 + $0x36c] ss:$16 sps:$4 sm:$0xff]  }
 0x296   : > { %v15209_v16 = vpack.c.bf16 %v3076_v58, %v3072_v59  ;;  %v3078_v50 = vmax.f32 %v3014_v25, 0.0  ;;  %4256 = vmatpush2.bf16.msra.mxu1 %v12873_v41  ;;  %v3021_v52 = vadd.f32 %v14902_v13, %v2936_v54  ;;  %v3087_v6 = vmax.f32 %v3023_v15, 0.0  ;;  %v18757_v25 = vld [vmem:[#allocation54_spill] sm:$0xff]  ;;  %v18759_v15 = vld [vmem:[#allocation56_spill] sm:$0xff] }
 0x297   : > { %4257 = vmatprep.subr.bf16.mxu1 %v12881_v38  ;;  %v3081_v33 = vmax.f32 %v3017_v22, 0.0  ;;  %v2774_v36 = vrot.slane %v14911_v31, %v14916_v47  ;;  %v2931_v3 = vmul.f32 %v2758_v20, %v18756_v7  ;;  %4147 = vmatpush2.bf16.msra.mxu0 %v12882_v11  ;;  %v2766_v41 = vrot.slane %v18752_v17, %v14950_v51  ;;  %v12888_v11 = vld [vmem:[#allocation2 + $0x148] ss:$16 sps:$4 sm:$0xff]   ;;  %v18758_v22 = vld [vmem:[#allocation52_spill] sm:$0xff] }
 0x298   : > { %3979 = vmatmul.mubr.bf16.gmra.mxu0 %v15209_v16  ;;  %v15216_v44 = vpack.c.bf16 %v3078_v50, %v3074_v21  ;;  %v3085_v59 = vmax.f32 %v3021_v52, 0.0  ;;  %v2782_v38 = vrot.slane %v14911_v31, %v14950_v51  ;;  %4148 = vmatprep.subr.bf16.mxu0 %v12890_v62  ;;  %v15222_v58 = vpack.c.bf16 %v3087_v6, %v3083_v56  ;;  %v12896_v62 = vld [vmem:[#allocation2 + $0x12c] ss:$16 sps:$4 sm:$0xff]   ;;  %v12885_v50 = vld [vmem:[#allocation2 + $0x368] ss:$16 sps:$4 sm:$0xff]  }
 0x299   : > { %v2935_v8 = vmul.f32 %v2774_v36, %v18757_v25  ;;  %v3016_v54 = vadd.f32 %v14944_v45, %v2931_v3  ;;  %v2794_v49 = vrot.slane %v14990_v34, %v14878_v46  ;;  %v2933_v17 = vmul.f32 %v2766_v41, %v18758_v22  ;;  %v18760_v56 = vld [vmem:[#allocation61_spill] sm:$0xff] }
 0x29a   : > { %4092 = vmatmul.mubr.bf16.gmra.mxu1 %v15216_v44  ;;  %v15229_v21 = vpack.c.bf16 %v3085_v59, %v3081_v33  ;;  %v2937_v20 = vmul.f32 %v2782_v38, %v18759_v15  ;;  %v2810_v31 = vrot.slane %v15123_v43, %v14878_v46  ;;  %v3027_v33 = vadd.f32 %v14908_v0, %v15017_v28  ;;  %v12893_v59 = vld [vmem:[#allocation2 + $0x34c] ss:$16 sps:$4 sm:$0xff]  }
 0x29b   : > { %4258 = vmatpush2.bf16.msra.mxu1 %v12879_v12  ;;  %4101 = vmatprep.mubr.bf16.mxu1 %v15222_v58  ;;  %v3020_v52 = vadd.f32 %v14944_v45, %v2935_v8  ;;  %v2940_v6 = vmul.f32 %v2794_v49, %v18760_v56  ;;  %v3080_v36 = vmax.f32 %v3016_v54, 0.0  ;;  %v3018_v7 = vadd.f32 %v14967_v63, %v2933_v17  ;;  %v12894_v54 = vld [vmem:[#allocation2 + $0x128] ss:$16 sps:$4 sm:$0xff]  }
 0x29c   : > { %3988 = vmatprep.mubr.bf16.mxu0 %v15229_v21  ;;  %4259 = vmatprep.subr.bf16.mxu1 %v12887_v42  ;;  %v3022_v3 = vadd.f32 %v14967_v63, %v2937_v20  ;;  %v2944_v12 = vmul.f32 %v2810_v31, %v14892_v35  ;;  %v3031_v25 = vadd.f32 %v14908_v0, %v15147_v19  ;;  %v3091_v8 = vmax.f32 %v3027_v33, 0.0  ;;  %v12891_v35 = vld [vmem:[#allocation2 + $0x348] ss:$16 sps:$4 sm:$0xff]   ;;  %v12899_v31 = vld [vmem:[#allocation2 + $0x32c] ss:$16 sps:$4 sm:$0xff]  }
 0x29d   : > { %v3084_v41 = vmax.f32 %v3020_v52, 0.0  ;;  %4149 = vmatpush2.bf16.msra.mxu0 %v12888_v11  ;;  %v3025_v38 = vadd.f32 %v14902_v13, %v2940_v6  ;;  %v3082_v28 = vmax.f32 %v3018_v7, 0.0  ;;  %v2790_v22 = vrot.slane %v14990_v34, %v14916_v47 }
 0x29e   : > { %v3086_v49 = vmax.f32 %v3022_v3, 0.0  ;;  %v3029_v42 = vadd.f32 %v14902_v13, %v2944_v12  ;;  %4150 = vmatprep.subr.bf16.mxu0 %v12896_v62  ;;  %v3095_v15 = vmax.f32 %v3031_v25, 0.0  ;;  %v2806_v20 = vrot.slane %v15123_v43, %v14916_v47  ;;  %v18761_v13 = vld [vmem:[#allocation59_spill] sm:$0xff]  ;;  %v18764_v25 = vld [vmem:[#allocation65_spill] sm:$0xff] }
 0x29f   : > { %v15250_v17 = vpack.c.bf16 %v3084_v41, %v3080_v36  ;;  %4260 = vmatpush2.bf16.msra.mxu1 %v12885_v50  ;;  %v3089_v11 = vmax.f32 %v3025_v38, 0.0  ;;  %v2939_v52 = vmul.f32 %v2790_v22, %v18761_v13  ;;  %v2798_v62 = vrot.slane %v14990_v34, %v14950_v51  ;;  %v18762_v50 = vld [vmem:[#allocation62_spill] sm:$0xff]  ;;  %v12902_v36 = vld [vmem:[#allocation2 + $0x10c] ss:$16 sps:$4 sm:$0xff]   ;;  %v12900_v41 = vld [vmem:[#allocation2 + $0x108] ss:$16 sps:$4 sm:$0xff]  }
 0x2a0   : > { %v15254_v0 = vpack.c.bf16 %v3086_v49, %v3082_v28  ;;  %4261 = vmatprep.subr.bf16.mxu1 %v12893_v59  ;;  %v3093_v19 = vmax.f32 %v3029_v42, 0.0  ;;  %v3127_v56 = vpack.c.bf16 %v3095_v15, %v3091_v8  ;;  %v2943_v6 = vmul.f32 %v2806_v20, %v18762_v50  ;;  %v18763_v59 = vld [vmem:[#allocation60_spill] sm:$0xff]  ;;  %v12897_v34 = vld [vmem:[#allocation2 + $0x328] ss:$16 sps:$4 sm:$0xff]   ;;  %v12905_v28 = vld [vmem:[#allocation2 + $0x30c] ss:$16 sps:$4 sm:$0xff]  }
 0x2a1   : > { %3989 = vmatmul.mubr.bf16.gmra.mxu0 %v15250_v17  ;;  %v2814_v33 = vrot.slane %v15123_v43, %v14950_v51  ;;  %v3024_v3 = vadd.f32 %v14944_v45, %v2939_v52  ;;  %v2941_v12 = vmul.f32 %v2798_v62, %v18763_v59  ;;  %v12903_v15 = vld [vmem:[#allocation2 + $0x308] ss:$16 sps:$4 sm:$0xff]  }
 0x2a2   : > { %4102 = vmatmul.mubr.bf16.gmra.mxu1 %v15254_v0  ;;  %v3125_v7 = vpack.c.bf16 %v3093_v19, %v3089_v11  ;;  %4151 = vmatpush2.bf16.msra.mxu0 %v12894_v54  ;;  %v3028_v38 = vadd.f32 %v14944_v45, %v2943_v6 }
 0x2a3   : > { %4262 = vmatpush2.bf16.msra.mxu1 %v12891_v35  ;;  %4111 = vmatprep.mubr.bf16.mxu1 %v3127_v56  ;;  %v2945_v8 = vmul.f32 %v2814_v33, %v18764_v25  ;;  %v3026_v43 = vadd.f32 %v14967_v63, %v2941_v12  ;;  %v3088_v49 = vmax.f32 %v3024_v3, 0.0 }
 0x2a4   : > { %3998 = vmatprep.mubr.bf16.mxu0 %v3125_v7  ;;  %4263 = vmatprep.subr.bf16.mxu1 %v12899_v31  ;;  %v3092_v42 = vmax.f32 %v3028_v38, 0.0 }
 0x2a5   : > { %v3030_v22 = vadd.f32 %v14967_v63, %v2945_v8  ;;  %4152 = vmatprep.subr.bf16.mxu0 %v12902_v36  ;;  %v3090_v11 = vmax.f32 %v3026_v43, 0.0 }
 0x2a6   : > { %4153 = vmatpush2.bf16.msra.mxu0 %v12900_v41  ;;  %v3124_v54 = vpack.c.bf16 %v3092_v42, %v3088_v49 }
 0x2a7   : > { %v3094_v35 = vmax.f32 %v3030_v22, 0.0  ;;  %4264 = vmatpush2.bf16.msra.mxu1 %v12897_v34 }
 0x2a8   : > { %4265 = vmatprep.subr.bf16.mxu1 %v12905_v28 }
 0x2a9   : > { %3999 = vmatmul.mubr.bf16.gmra.mxu0 %v3124_v54  ;;  %v3126_v45 = vpack.c.bf16 %v3094_v35, %v3090_v11 }
 0x2aa   : > { %4154 = vmatprep.mubr.bf16.mxu0 %v14932_v30 }
 0x2ab   : > { %4112 = vmatmul.mubr.bf16.gmra.mxu1 %v3126_v45 }
 0x2ac   : > { %4267 = vmatprep.mubr.bf16.mxu1 %v14940_v57  ;;  %4266 = vmatpush2.bf16.msra.mxu1 %v12903_v15 }
 0x2b1   : > { %4155 = vmatmul.mubr.bf16.vlgmr.msra.gmra.mxu0 %v14975_v29 }
 0x2b2   : > { %4164 = vmatprep.mubr.bf16.mxu0 %v14999_v10 }
 0x2b3   : > { %4268 = vmatmul.mubr.bf16.vlgmr.msra.gmra.mxu1 %v14987_v5 }
 0x2b4   : > { %4277 = vmatprep.mubr.bf16.mxu1 %v14992_v27 }
 0x2b9   : > { %4165 = vmatmul.mubr.bf16.gmra.mxu0 %v15032_v60 }
 0x2ba   : > { %4174 = vmatprep.mubr.bf16.mxu0 %v15053_v40 }
 0x2bb   : > { %4278 = vmatmul.mubr.bf16.gmra.mxu1 %v15037_v53 }
 0x2bc   : > { %4287 = vmatprep.mubr.bf16.mxu1 %v15048_v24 }
 0x2c1   : > { %4175 = vmatmul.mubr.bf16.gmra.mxu0 %v15076_v55 }
 0x2c2   : > { %4184 = vmatprep.mubr.bf16.mxu0 %v15098_v37 }
 0x2c3   : > { %4288 = vmatmul.mubr.bf16.gmra.mxu1 %v15081_v2 }
 0x2c4   : > { %4297 = vmatprep.mubr.bf16.mxu1 %v15090_v48 }
 0x2c9   : > { %4185 = vmatmul.mubr.bf16.gmra.mxu0 %v15119_v4 }
 0x2ca   : > { %4194 = vmatprep.mubr.bf16.mxu0 %v15142_v14 }
 0x2cb   : > { %4298 = vmatmul.mubr.bf16.gmra.mxu1 %v15128_v32 }
 0x2cc   : > { %4307 = vmatprep.mubr.bf16.mxu1 %v15136_v9 }
 0x2d1   : > { %4195 = vmatmul.mubr.bf16.gmra.mxu0 %v15168_v61 }
 0x2d2   : > { %4204 = vmatprep.mubr.bf16.mxu0 %v15195_v39 }
 0x2d3   : > { %4308 = vmatmul.mubr.bf16.gmra.mxu1 %v15173_v23 }
 0x2d4   : > { %4317 = vmatprep.mubr.bf16.mxu1 %v15180_v1 }
 0x2d9   : > { %4205 = vmatmul.mubr.bf16.gmra.mxu0 %v15209_v16 }
 0x2da   : > { %4214 = vmatprep.mubr.bf16.mxu0 %v15229_v21 }
 0x2db   : > { %4318 = vmatmul.mubr.bf16.gmra.mxu1 %v15216_v44 }
 0x2dc   : > { %4327 = vmatprep.mubr.bf16.mxu1 %v15222_v58 }
 0x2e1   : > { %4215 = vmatmul.mubr.bf16.gmra.mxu0 %v15250_v17 }
 0x2e2   : > { %4224 = vmatprep.mubr.bf16.mxu0 %v3125_v7 }
 0x2e3   : > { %4328 = vmatmul.mubr.bf16.gmra.mxu1 %v15254_v0 }
 0x2e4   : > { %4337 = vmatprep.mubr.bf16.mxu1 %v3127_v56 }
 0x2e9   : > { %4225 = vmatmul.mubr.bf16.gmra.mxu0 %v3124_v54 }
 0x2eb   : > { %4338 = vmatmul.mubr.bf16.gmra.mxu1 %v3126_v45 }
 0x326   : > { %v3930_v30 = vpop.f32.mrf.mxu0 }
 0x328   : > { %v3932_v57 = vpop.f32.mrf.mxu0 }
 0x32a   : > { %v3934_v29 = vpop.f32.mrf.mxu0 }
 0x32b   : > { %v4043_v63 = vpop.f32.mrf.mxu1 }
 0x32c   : > { %v4044_v5 = vadd.f32 %v4043_v63, %v3930_v30  ;;  %v3936_v24 = vpop.f32.mrf.mxu0 }
 0x32d   : > { %v4045_v27 = vpop.f32.mrf.mxu1 }
 0x32e   : > { %v4350_v10 = vrot.slane %v4044_v5, 4  ;;  %v4046_v60 = vadd.f32 %v4045_v27, %v3932_v57 }
 0x32f   : > { %v4047_v53 = vpop.f32.mrf.mxu1 }
 0x330   : > { %v4351_v40 = vadd.f32 %v4350_v10, %v4044_v5  ;;  %v4356_v55 = vrot.slane %v4046_v60, 4  ;;  %v4048_v2 = vadd.f32 %v4047_v53, %v3934_v29 }
 0x331   : > { %v4049_v48 = vpop.f32.mrf.mxu1 }
 0x332   : > { %v4352_v37 = vrot.slane %v4351_v40, 2  ;;  %v4357_v4 = vadd.f32 %v4356_v55, %v4046_v60  ;;  %v4374_v32 = vrot.slane %v4048_v2, 4  ;;  %v4050_v9 = vadd.f32 %v4049_v48, %v3936_v24 }
 0x334   : > { %v4353_v14 = vadd.f32 %v4352_v37, %v4351_v40  ;;  %v4358_v61 = vrot.slane %v4357_v4, 2  ;;  %v4375_v23 = vadd.f32 %v4374_v32, %v4048_v2  ;;  %v4380_v1 = vrot.slane %v4050_v9, 4  ;;  %v3940_v39 = vpop.f32.mrf.mxu0 }
 0x335   : > { %v4053_v16 = vpop.f32.mrf.mxu1 }
 0x336   : > { %v4354_v44 = vrot.slane %v4353_v14, 1  ;;  %v4359_v58 = vadd.f32 %v4358_v61, %v4357_v4  ;;  %v4376_v21 = vrot.slane %v4375_v23, 2  ;;  %v4381_v17 = vadd.f32 %v4380_v1, %v4050_v9  ;;  %v3942_v20 = vpop.f32.mrf.mxu0 }
 0x337   : > { %v15298_v0 = vadd.f32 %v4053_v16, %v3940_v39  ;;  %v4055_v19 = vpop.f32.mrf.mxu1 }
 0x338   : > { %v4355_v31 = vadd.f32 %v4354_v44, %v4353_v14  ;;  %v4360_v13 = vrot.slane %v4359_v58, 1  ;;  %v4377_v52 = vadd.f32 %v4376_v21, %v4375_v23  ;;  %v4382_v62 = vrot.slane %v4381_v17, 2  ;;  %v3944_v56 = vpop.f32.mrf.mxu0 }
 0x339   : > { %v4398_v50 = vrot.slane %v15298_v0, 4  ;;  %v15301_v6 = vadd.f32 %v4055_v19, %v3942_v20  ;;  %v4057_v33 = vpop.f32.mrf.mxu1 }
 0x33a   : > { %v4734_v36 = vmul.f32 0.125, %v4355_v31  ;;  %v4361_v7 = vadd.f32 %v4360_v13, %v4359_v58  ;;  %v4378_v3 = vrot.slane %v4377_v52, 1  ;;  %v4383_v59 = vadd.f32 %v4382_v62, %v4381_v17  ;;  %v3946_v12 = vpop.f32.mrf.mxu0 }
 0x33b   : > { %v4399_v41 = vadd.f32 %v4398_v50, %v15298_v0  ;;  %v4404_v34 = vrot.slane %v15301_v6, 4  ;;  %v15305_v38 = vadd.f32 %v4057_v33, %v3944_v56  ;;  %v4059_v25 = vpop.f32.mrf.mxu1 }
 0x33c   : > { %v15307_v8 = vsub.f32 %v4044_v5, %v4734_v36  ;;  %v4735_v43 = vmul.f32 0.125, %v4361_v7  ;;  %v4379_v28 = vadd.f32 %v4378_v3, %v4377_v52  ;;  %v4384_v49 = vrot.slane %v4383_v59, 1 }
 0x33d   : > { %v4400_v42 = vrot.slane %v4399_v41, 2  ;;  %v4405_v22 = vadd.f32 %v4404_v34, %v15301_v6  ;;  %v4422_v54 = vrot.slane %v15305_v38, 4  ;;  %v15311_v11 = vadd.f32 %v4059_v25, %v3946_v12  ;;  %v15330_v21 = vpop.f32.mrf.mxu0 }
 0x33e   : > { %18765 = vst [vmem:[#allocation18_spill] sm:$0xff] %v15307_v8  ;;  %v4862_v35 = vmul.f32 %v15307_v8, %v15307_v8  ;;  %v15315_v15 = vsub.f32 %v4046_v60, %v4735_v43  ;;  %v4738_v45 = vmul.f32 0.125, %v4379_v28  ;;  %v4385_v30 = vadd.f32 %v4384_v49, %v4383_v59  ;;  %v4063_v17 = vpop.f32.mrf.mxu1 }
 0x33f   : > { %v4401_v57 = vadd.f32 %v4400_v42, %v4399_v41  ;;  %v4406_v63 = vrot.slane %v4405_v22, 2  ;;  %v4423_v29 = vadd.f32 %v4422_v54, %v15305_v38  ;;  %v4428_v5 = vrot.slane %v15311_v11, 4  ;;  %v3952_v34 = vpop.f32.mrf.mxu0 }
 0x340   : > { %18766 = vst [vmem:[#allocation19_spill] sm:$0xff] %v15315_v15  ;;  %v4926_v27 = vrot.slane %v4862_v35, 4  ;;  %v4863_v10 = vmul.f32 %v15315_v15, %v15315_v15  ;;  %v15321_v53 = vsub.f32 %v4048_v2, %v4738_v45  ;;  %v4739_v24 = vmul.f32 0.125, %v4385_v30  ;;  %v4065_v25 = vpop.f32.mrf.mxu1 }
 0x341   : > { %v4402_v40 = vrot.slane %v4401_v57, 1  ;;  %v4407_v55 = vadd.f32 %v4406_v63, %v4405_v22  ;;  %v4424_v48 = vrot.slane %v4423_v29, 2  ;;  %v4429_v60 = vadd.f32 %v4428_v5, %v15311_v11 }
 0x342   : > { %18767 = vst [vmem:[#allocation29_spill] sm:$0xff] %v15321_v53  ;;  %v4927_v37 = vadd.f32 %v4926_v27, %v4862_v35  ;;  %v4932_v4 = vrot.slane %v4863_v10, 4  ;;  %v4866_v32 = vmul.f32 %v15321_v53, %v15321_v53  ;;  %v15326_v14 = vsub.f32 %v4050_v9, %v4739_v24  ;;  %v4067_v24 = vpop.f32.mrf.mxu1 }
 0x343   : > { %v4403_v61 = vadd.f32 %v4402_v40, %v4401_v57  ;;  %v4408_v23 = vrot.slane %v4407_v55, 1  ;;  %v4425_v1 = vadd.f32 %v4424_v48, %v4423_v29  ;;  %v4430_v39 = vrot.slane %v4429_v60, 2 }
 0x344   : > { %18768 = vst [vmem:[#allocation36_spill] sm:$0xff] %v15326_v14  ;;  %v4928_v16 = vrot.slane %v4927_v37, 2  ;;  %v4933_v2 = vadd.f32 %v4932_v4, %v4863_v10  ;;  %v4950_v44 = vrot.slane %v4866_v32, 4  ;;  %v4867_v58 = vmul.f32 %v15326_v14, %v15326_v14 }
 0x345   : > { %v4742_v20 = vmul.f32 0.125, %v4403_v61  ;;  %v4409_v19 = vadd.f32 %v4408_v23, %v4407_v55  ;;  %v4426_v31 = vrot.slane %v4425_v1, 1  ;;  %v4431_v13 = vadd.f32 %v4430_v39, %v4429_v60 }
 0x346   : > { %v4929_v52 = vadd.f32 %v4928_v16, %v4927_v37  ;;  %v4934_v9 = vrot.slane %v4933_v2, 2  ;;  %v4951_v62 = vadd.f32 %v4950_v44, %v4866_v32  ;;  %v4956_v56 = vrot.slane %v4867_v58, 4 }
 0x347   : > { %v15333_v50 = vsub.f32 %v15298_v0, %v4742_v20  ;;  %v4743_v33 = vmul.f32 0.125, %v4409_v19  ;;  %v4427_v36 = vadd.f32 %v4426_v31, %v4425_v1  ;;  %v4432_v7 = vrot.slane %v4431_v13, 1  ;;  %v4069_v20 = vpop.f32.mrf.mxu1 }
 0x348   : > { %v4930_v3 = vrot.slane %v4929_v52, 1  ;;  %v4935_v59 = vadd.f32 %v4934_v9, %v4933_v2  ;;  %v4952_v12 = vrot.slane %v4951_v62, 2  ;;  %v4957_v41 = vadd.f32 %v4956_v56, %v4867_v58 }
 0x349   : > { %18769 = vst [vmem:[#allocation22_spill] sm:$0xff] %v15333_v50  ;;  %v4870_v43 = vmul.f32 %v15333_v50, %v15333_v50  ;;  %v15338_v28 = vsub.f32 %v15301_v6, %v4743_v33  ;;  %v4746_v49 = vmul.f32 0.125, %v4427_v36  ;;  %v4433_v42 = vadd.f32 %v4432_v7, %v4431_v13  ;;  %v3954_v6 = vpop.f32.mrf.mxu0 }
 0x34a   : > { %v4931_v22 = vadd.f32 %v4930_v3, %v4929_v52  ;;  %v4936_v0 = vrot.slane %v4935_v59, 1  ;;  %v4953_v54 = vadd.f32 %v4952_v12, %v4951_v62  ;;  %v4958_v35 = vrot.slane %v4957_v41, 2 }
 0x34b   : > { %18770 = vst [vmem:[#allocation25_spill] sm:$0xff] %v15338_v28  ;;  %v4974_v45 = vrot.slane %v4870_v43, 4  ;;  %v4871_v30 = vmul.f32 %v15338_v28, %v15338_v28  ;;  %v15343_v57 = vsub.f32 %v15305_v38, %v4746_v49  ;;  %v4747_v63 = vmul.f32 0.125, %v4433_v42  ;;  %v3956_v58 = vpop.f32.mrf.mxu0 }
 0x34c   : > { %v5310_v29 = vmul.f32 0.125, %v4931_v22  ;;  %v4937_v5 = vadd.f32 %v4936_v0, %v4935_v59  ;;  %v4954_v27 = vrot.slane %v4953_v54, 1  ;;  %v4959_v10 = vadd.f32 %v4958_v35, %v4957_v41 }
 0x34d   : > { %18771 = vst [vmem:[#allocation35_spill] sm:$0xff] %v15343_v57  ;;  %v4975_v40 = vadd.f32 %v4974_v45, %v4870_v43  ;;  %v4980_v55 = vrot.slane %v4871_v30, 4  ;;  %v4874_v48 = vmul.f32 %v15343_v57, %v15343_v57  ;;  %v15348_v60 = vsub.f32 %v15311_v11, %v4747_v63  ;;  %v3960_v41 = vpop.f32.mrf.mxu0  ;;  %v4073_v43 = vpop.f32.mrf.mxu1 }
 0x34e   : > { %v5374_v37 = vadd.f32 1e-05, %v5310_v29  ;;  %v5311_v4 = vmul.f32 0.125, %v4937_v5  ;;  %v4955_v32 = vadd.f32 %v4954_v27, %v4953_v54  ;;  %v4960_v38 = vrot.slane %v4959_v10, 1 }
 0x34f   : > { %18772 = vst [vmem:[#allocation37_spill] sm:$0xff] %v15348_v60  ;;  %v4976_v61 = vrot.slane %v4975_v40, 2  ;;  %v4981_v23 = vadd.f32 %v4980_v55, %v4871_v30  ;;  %v4998_v1 = vrot.slane %v4874_v48, 4  ;;  %v4875_v39 = vmul.f32 %v15348_v60, %v15348_v60  ;;  %v3962_v27 = vpop.f32.mrf.mxu0 }
 0x350   : > { %13338 = vrsqrt.f32 %v5374_v37  ;;  %v5375_v16 = vadd.f32 1e-05, %v5311_v4  ;;  %v5314_v2 = vmul.f32 0.125, %v4955_v32  ;;  %v4961_v44 = vadd.f32 %v4960_v38, %v4959_v10  ;;  %v4075_v10 = vpop.f32.mrf.mxu1 }
 0x351   : > { %v4977_v19 = vadd.f32 %v4976_v61, %v4975_v40  ;;  %v4982_v31 = vrot.slane %v4981_v23, 2  ;;  %v4999_v11 = vadd.f32 %v4998_v1, %v4874_v48  ;;  %v5004_v13 = vrot.slane %v4875_v39, 4 }
 0x352   : > { %13340 = vrsqrt.f32 %v5375_v16  ;;  %v5378_v52 = vadd.f32 1e-05, %v5314_v2  ;;  %v5315_v9 = vmul.f32 0.125, %v4961_v44  ;;  %v15353_v62 = vadd.f32 %v4063_v17, %v15330_v21  ;;  %v3964_v44 = vpop.f32.mrf.mxu0 }
 0x353   : > { %v4978_v56 = vrot.slane %v4977_v19, 1  ;;  %v4983_v33 = vadd.f32 %v4982_v31, %v4981_v23  ;;  %v5000_v36 = vrot.slane %v4999_v11, 2  ;;  %v5005_v7 = vadd.f32 %v5004_v13, %v4875_v39 }
 0x354   : > { %13342 = vrsqrt.f32 %v5378_v52  ;;  %v5379_v3 = vadd.f32 1e-05, %v5315_v9  ;;  %v4446_v59 = vrot.slane %v15353_v62, 4  ;;  %v15356_v12 = vadd.f32 %v4065_v25, %v3952_v34 }
 0x355   : > { %v4979_v49 = vadd.f32 %v4978_v56, %v4977_v19  ;;  %v4984_v42 = vrot.slane %v4983_v33, 1  ;;  %v5001_v22 = vadd.f32 %v5000_v36, %v4999_v11  ;;  %v5006_v0 = vrot.slane %v5005_v7, 2 }
 0x356   : > { %13344 = vrsqrt.f32 %v5379_v3  ;;  %v4447_v21 = vadd.f32 %v4446_v59, %v15353_v62  ;;  %v4452_v17 = vrot.slane %v15356_v12, 4  ;;  %v15360_v54 = vadd.f32 %v4067_v24, %v3954_v6 }
 0x357   : > { %v5318_v35 = vmul.f32 0.125, %v4979_v49  ;;  %v4985_v45 = vadd.f32 %v4984_v42, %v4983_v33  ;;  %v5002_v30 = vrot.slane %v5001_v22, 1  ;;  %v5007_v63 = vadd.f32 %v5006_v0, %v5005_v7  ;;  %v3966_v0 = vpop.f32.mrf.mxu0 }
 0x358   : > { %v4448_v29 = vrot.slane %v4447_v21, 2  ;;  %v4453_v34 = vadd.f32 %v4452_v17, %v15356_v12  ;;  %v4470_v25 = vrot.slane %v15360_v54, 4  ;;  %v15364_v5 = vadd.f32 %v4069_v20, %v3956_v58  ;;  %v4077_v58 = vpop.f32.mrf.mxu1 }
 0x359   : > { %v5382_v40 = vadd.f32 1e-05, %v5318_v35  ;;  %v5319_v55 = vmul.f32 0.125, %v4985_v45  ;;  %v5003_v48 = vadd.f32 %v5002_v30, %v5001_v22  ;;  %v5008_v37 = vrot.slane %v5007_v63, 1 }
 0x35a   : > { %v4449_v4 = vadd.f32 %v4448_v29, %v4447_v21  ;;  %v4454_v6 = vrot.slane %v4453_v34, 2  ;;  %v4471_v24 = vadd.f32 %v4470_v25, %v15360_v54  ;;  %v4476_v32 = vrot.slane %v15364_v5, 4  ;;  %v4079_v21 = vpop.f32.mrf.mxu1  ;;  %v12911_v25 = vld [vmem:[#allocation5 + $0x2e4] ss:$16 sps:$4 sm:$0xff]  }
 0x35b   : > { %13346 = vrsqrt.f32 %v5382_v40  ;;  %v5383_v38 = vadd.f32 1e-05, %v5319_v55  ;;  %v5322_v61 = vmul.f32 0.125, %v5003_v48  ;;  %v5009_v23 = vadd.f32 %v5008_v37, %v5007_v63  ;;  %v12906_v37 = vld [vmem:[#allocation5 + $0xe0] ss:$16 sps:$4 sm:$0xff]   ;;  %7444 = vmatprep.subr.bf16.mxu1 %v12911_v25 }
 0x35c   : > { %v4450_v1 = vrot.slane %v4449_v4, 1  ;;  %v4455_v39 = vadd.f32 %v4454_v6, %v4453_v34  ;;  %v4472_v16 = vrot.slane %v4471_v24, 2  ;;  %v4477_v2 = vadd.f32 %v4476_v32, %v15364_v5  ;;  %v12908_v34 = vld [vmem:[#allocation5 + $0xe4] ss:$16 sps:$4 sm:$0xff]  }
 0x35d   : > { %v15369_v20 = vpop.eup %13338  ;;  %13348 = vrsqrt.f32 %v5383_v38  ;;  %v5386_v19 = vadd.f32 1e-05, %v5322_v61  ;;  %v5323_v31 = vmul.f32 0.125, %v5009_v23  ;;  %v15371_v11 = vadd.f32 %v4073_v43, %v3960_v41  ;;  %7331 = vmatprep.subr.bf16.mxu0 %v12908_v34 }
 0x35e   : > { %v4451_v13 = vadd.f32 %v4450_v1, %v4449_v4  ;;  %v4456_v52 = vrot.slane %v4455_v39, 1  ;;  %v4473_v9 = vadd.f32 %v4472_v16, %v4471_v24  ;;  %v4478_v56 = vrot.slane %v4477_v2, 2  ;;  %v12909_v4 = vld [vmem:[#allocation5 + $0x2e0] ss:$16 sps:$4 sm:$0xff]   ;;  %7332 = vmatpush1.bf16.msra.mxu0 %v12906_v37 }
 0x35f   : > { %v15373_v33 = vpop.eup %13340  ;;  %13350 = vrsqrt.f32 %v5386_v19  ;;  %v5387_v36 = vadd.f32 1e-05, %v5323_v31  ;;  %v4494_v7 = vrot.slane %v15371_v11, 4  ;;  %v15376_v3 = vadd.f32 %v4075_v10, %v3962_v27  ;;  %7445 = vmatpush1.bf16.msra.mxu1 %v12909_v4 }
 0x360   : > { %v4750_v59 = vmul.f32 0.125, %v4451_v13  ;;  %v4457_v49 = vadd.f32 %v4456_v52, %v4455_v39  ;;  %v4474_v42 = vrot.slane %v4473_v9, 1  ;;  %v4479_v22 = vadd.f32 %v4478_v56, %v4477_v2 }
 0x361   : > { %v15378_v41 = vpop.eup %13342  ;;  %13352 = vrsqrt.f32 %v5387_v36  ;;  %v4495_v43 = vadd.f32 %v4494_v7, %v15371_v11  ;;  %v4500_v17 = vrot.slane %v15376_v3, 4  ;;  %v15382_v35 = vadd.f32 %v4077_v58, %v3964_v44 }
 0x362   : > { %v15385_v45 = vsub.f32 %v15353_v62, %v4750_v59  ;;  %v4751_v30 = vmul.f32 0.125, %v4457_v49  ;;  %v4475_v63 = vadd.f32 %v4474_v42, %v4473_v9  ;;  %v4480_v29 = vrot.slane %v4479_v22, 1 }
 0x363   : > { %v15387_v27 = vpop.eup %13344  ;;  %v4496_v10 = vrot.slane %v4495_v43, 2  ;;  %v4501_v40 = vadd.f32 %v4500_v17, %v15376_v3  ;;  %v4518_v55 = vrot.slane %v15382_v35, 4  ;;  %v15391_v48 = vadd.f32 %v4079_v21, %v3966_v0  ;;  %v15417_v17 = vpop.f32.mrf.mxu0 }
 0x364   : > { %18773 = vst [vmem:[#allocation20_spill] sm:$0xff] %v15385_v45  ;;  %v4878_v62 = vmul.f32 %v15385_v45, %v15385_v45  ;;  %v15396_v6 = vsub.f32 %v15356_v12, %v4751_v30  ;;  %v4754_v24 = vmul.f32 0.125, %v4475_v63  ;;  %v4481_v32 = vadd.f32 %v4480_v29, %v4479_v22  ;;  %v15419_v30 = vpop.f32.mrf.mxu1 }
 0x365   : > { %v4497_v38 = vadd.f32 %v4496_v10, %v4495_v43  ;;  %v4502_v61 = vrot.slane %v4501_v40, 2  ;;  %v4519_v23 = vadd.f32 %v4518_v55, %v15382_v35  ;;  %v4524_v1 = vrot.slane %v15391_v48, 4 }
 0x366   : > { %18774 = vst [vmem:[#allocation23_spill] sm:$0xff] %v15396_v6  ;;  %v5022_v39 = vrot.slane %v4878_v62, 4  ;;  %v4879_v16 = vmul.f32 %v15396_v6, %v15396_v6  ;;  %v15403_v2 = vsub.f32 %v15360_v54, %v4754_v24  ;;  %v4755_v12 = vmul.f32 0.125, %v4481_v32 }
 0x367   : > { %v4498_v44 = vrot.slane %v4497_v38, 1  ;;  %v4503_v58 = vadd.f32 %v4502_v61, %v4501_v40  ;;  %v4520_v19 = vrot.slane %v4519_v23, 2  ;;  %v4525_v31 = vadd.f32 %v4524_v1, %v15391_v48 }
 0x368   : > { %18775 = vst [vmem:[#allocation21_spill] sm:$0xff] %v15403_v2  ;;  %v15406_v13 = vpop.eup %13346  ;;  %v5023_v52 = vadd.f32 %v5022_v39, %v4878_v62  ;;  %v5028_v9 = vrot.slane %v4879_v16, 4  ;;  %v4882_v56 = vmul.f32 %v15403_v2, %v15403_v2  ;;  %v15411_v36 = vsub.f32 %v15364_v5, %v4755_v12  ;;  %v4085_v12 = vpop.f32.mrf.mxu1 }
 0x369   : > { %v4499_v7 = vadd.f32 %v4498_v44, %v4497_v38  ;;  %v4504_v59 = vrot.slane %v4503_v58, 1  ;;  %v4521_v54 = vadd.f32 %v4520_v19, %v4519_v23  ;;  %v4526_v49 = vrot.slane %v4525_v31, 2 }
 0x36a   : > { %18776 = vst [vmem:[#allocation24_spill] sm:$0xff] %v15411_v36  ;;  %v15413_v42 = vpop.eup %13348  ;;  %v5024_v22 = vrot.slane %v5023_v52, 2  ;;  %v5029_v0 = vadd.f32 %v5028_v9, %v4879_v16  ;;  %v5046_v21 = vrot.slane %v4882_v56, 4  ;;  %v4883_v43 = vmul.f32 %v15411_v36, %v15411_v36  ;;  %v3972_v16 = vpop.f32.mrf.mxu0 }
 0x36b   : > { %v4758_v63 = vmul.f32 0.125, %v4499_v7  ;;  %v4505_v29 = vadd.f32 %v4504_v59, %v4503_v58  ;;  %v4522_v5 = vrot.slane %v4521_v54, 1  ;;  %v4527_v34 = vadd.f32 %v4526_v49, %v4525_v31 }
 0x36c   : > { %v15421_v25 = vpop.eup %13350  ;;  %v5025_v10 = vadd.f32 %v5024_v22, %v5023_v52  ;;  %v5030_v40 = vrot.slane %v5029_v0, 2  ;;  %v5047_v55 = vadd.f32 %v5046_v21, %v4882_v56  ;;  %v5052_v37 = vrot.slane %v4883_v43, 4 }
 0x36d   : > { %v15424_v4 = vsub.f32 %v15371_v11, %v4758_v63  ;;  %v4759_v62 = vmul.f32 0.125, %v4505_v29  ;;  %v4523_v24 = vadd.f32 %v4522_v5, %v4521_v54  ;;  %v4528_v32 = vrot.slane %v4527_v34, 1  ;;  %v4087_v63 = vpop.f32.mrf.mxu1 }
 0x36e   : > { %v15426_v38 = vpop.eup %13352  ;;  %v5026_v61 = vrot.slane %v5025_v10, 1  ;;  %v5031_v23 = vadd.f32 %v5030_v40, %v5029_v0  ;;  %v5048_v1 = vrot.slane %v5047_v55, 2  ;;  %v5053_v39 = vadd.f32 %v5052_v37, %v4883_v43 }
 0x36f   : > { %18777 = vst [vmem:[#allocation28_spill] sm:$0xff] %v15424_v4  ;;  %v4886_v44 = vmul.f32 %v15424_v4, %v15424_v4  ;;  %v15431_v58 = vsub.f32 %v15376_v3, %v4759_v62  ;;  %v4762_v19 = vmul.f32 0.125, %v4523_v24  ;;  %v4529_v11 = vadd.f32 %v4528_v32, %v4527_v34  ;;  %v3974_v3 = vpop.f32.mrf.mxu0 }
 0x370   : > { %v5027_v31 = vadd.f32 %v5026_v61, %v5025_v10  ;;  %v5032_v52 = vrot.slane %v5031_v23, 1  ;;  %v5049_v9 = vadd.f32 %v5048_v1, %v5047_v55  ;;  %v5054_v56 = vrot.slane %v5053_v39, 2 }
 0x371   : > { %18778 = vst [vmem:[#allocation32_spill] sm:$0xff] %v15431_v58  ;;  %v5070_v7 = vrot.slane %v4886_v44, 4  ;;  %v4887_v59 = vmul.f32 %v15431_v58, %v15431_v58  ;;  %v15436_v54 = vsub.f32 %v15382_v35, %v4762_v19  ;;  %v4763_v49 = vmul.f32 0.125, %v4529_v11  ;;  %v4089_v19 = vpop.f32.mrf.mxu1 }
 0x372   : > { %v5326_v22 = vmul.f32 0.125, %v5027_v31  ;;  %v5033_v0 = vadd.f32 %v5032_v52, %v5031_v23  ;;  %v5050_v21 = vrot.slane %v5049_v9, 1  ;;  %v5055_v43 = vadd.f32 %v5054_v56, %v5053_v39 }
 0x373   : > { %18779 = vst [vmem:[#allocation26_spill] sm:$0xff] %v15436_v54  ;;  %v5071_v29 = vadd.f32 %v5070_v7, %v4886_v44  ;;  %v5076_v5 = vrot.slane %v4887_v59, 4  ;;  %v4890_v34 = vmul.f32 %v15436_v54, %v15436_v54  ;;  %v15441_v10 = vsub.f32 %v15391_v48, %v4763_v49  ;;  %v3976_v44 = vpop.f32.mrf.mxu0 }
 0x374   : > { %v5390_v40 = vadd.f32 1e-05, %v5326_v22  ;;  %v5327_v55 = vmul.f32 0.125, %v5033_v0  ;;  %v5051_v37 = vadd.f32 %v5050_v21, %v5049_v9  ;;  %v5056_v35 = vrot.slane %v5055_v43, 1  ;;  %v12914_v21 = vld [vmem:[#allocation5 + $0xc4] ss:$16 sps:$4 sm:$0xff]  }
 0x375   : > { %18780 = vst [vmem:[#allocation30_spill] sm:$0xff] %v15441_v10  ;;  %v5072_v62 = vrot.slane %v5071_v29, 2  ;;  %v5077_v24 = vadd.f32 %v5076_v5, %v4887_v59  ;;  %v5094_v32 = vrot.slane %v4890_v34, 4  ;;  %v4891_v61 = vmul.f32 %v15441_v10, %v15441_v10  ;;  %v12917_v5 = vld [vmem:[#allocation5 + $0x2c4] ss:$16 sps:$4 sm:$0xff]   ;;  %7333 = vmatprep.subr.bf16.mxu0 %v12914_v21 }
 0x376   : > { %13354 = vrsqrt.f32 %v5390_v40  ;;  %v5391_v23 = vadd.f32 1e-05, %v5327_v55  ;;  %v5330_v1 = vmul.f32 0.125, %v5051_v37  ;;  %v5057_v39 = vadd.f32 %v5056_v35, %v5055_v43  ;;  %v4093_v55 = vpop.f32.mrf.mxu1  ;;  %v12912_v37 = vld [vmem:[#allocation5 + $0xc0] ss:$16 sps:$4 sm:$0xff]   ;;  %7446 = vmatprep.subr.bf16.mxu1 %v12917_v5 }
 0x377   : > { %v5073_v11 = vadd.f32 %v5072_v62, %v5071_v29  ;;  %v5078_v31 = vrot.slane %v5077_v24, 2  ;;  %v5095_v48 = vadd.f32 %v5094_v32, %v4890_v34  ;;  %v5100_v52 = vrot.slane %v4891_v61, 4  ;;  %v3980_v34 = vpop.f32.mrf.mxu0  ;;  %7334 = vmatpush1.bf16.msra.mxu0 %v12912_v37  ;;  %v12921_v37 = vld [vmem:[#allocation5 + $0x2a0] ss:$16 sps:$4 sm:$0xff]  }
 0x378   : > { %13356 = vrsqrt.f32 %v5391_v23  ;;  %v5394_v56 = vadd.f32 1e-05, %v5330_v1  ;;  %v5331_v9 = vmul.f32 0.125, %v5057_v39  ;;  %v15447_v7 = vadd.f32 %v15419_v30, %v15417_v17  ;;  %v12915_v30 = vld [vmem:[#allocation5 + $0x2c0] ss:$16 sps:$4 sm:$0xff]  }
 0x379   : > { %v5074_v59 = vrot.slane %v5073_v11, 1  ;;  %v5079_v49 = vadd.f32 %v5078_v31, %v5077_v24  ;;  %v5096_v22 = vrot.slane %v5095_v48, 2  ;;  %v5101_v0 = vadd.f32 %v5100_v52, %v4891_v61  ;;  %7447 = vmatpush1.bf16.msra.mxu1 %v12915_v30 }
 0x37a   : > { %13358 = vrsqrt.f32 %v5394_v56  ;;  %v5395_v43 = vadd.f32 1e-05, %v5331_v9  ;;  %v4542_v29 = vrot.slane %v15447_v7, 4  ;;  %v15450_v40 = vadd.f32 %v4085_v12, %v3972_v16  ;;  %v3982_v56 = vpop.f32.mrf.mxu0  ;;  %v4095_v9 = vpop.f32.mrf.mxu1 }
 0x37b   : > { %v5075_v35 = vadd.f32 %v5074_v59, %v5073_v11  ;;  %v5080_v62 = vrot.slane %v5079_v49, 1  ;;  %v5097_v32 = vadd.f32 %v5096_v22, %v5095_v48  ;;  %v5102_v17 = vrot.slane %v5101_v0, 2 }
 0x37c   : > { %13360 = vrsqrt.f32 %v5395_v43  ;;  %v4543_v24 = vadd.f32 %v4542_v29, %v15447_v7  ;;  %v4548_v61 = vrot.slane %v15450_v40, 4  ;;  %v15454_v23 = vadd.f32 %v4087_v63, %v3974_v3  ;;  %v12920_v63 = vld [vmem:[#allocation5 + $0xa4] ss:$16 sps:$4 sm:$0xff]   ;;  %v12918_v29 = vld [vmem:[#allocation5 + $0xa0] ss:$16 sps:$4 sm:$0xff]  }
 0x37d   : > { %v5334_v16 = vmul.f32 0.125, %v5075_v35  ;;  %v5081_v12 = vadd.f32 %v5080_v62, %v5079_v49  ;;  %v5098_v1 = vrot.slane %v5097_v32, 1  ;;  %v5103_v39 = vadd.f32 %v5102_v17, %v5101_v0  ;;  %7335 = vmatprep.subr.bf16.mxu0 %v12920_v63 }
 0x37e   : > { %v4544_v11 = vrot.slane %v4543_v24, 2  ;;  %v4549_v31 = vadd.f32 %v4548_v61, %v15450_v40  ;;  %v4566_v48 = vrot.slane %v15454_v23, 4  ;;  %v15458_v52 = vadd.f32 %v4089_v19, %v3976_v44  ;;  %v12923_v19 = vld [vmem:[#allocation5 + $0x2a4] ss:$16 sps:$4 sm:$0xff]   ;;  %7336 = vmatpush1.bf16.msra.mxu0 %v12918_v29 }
 0x37f   : > { %v5398_v59 = vadd.f32 1e-05, %v5334_v16  ;;  %v5335_v22 = vmul.f32 0.125, %v5081_v12  ;;  %v5099_v21 = vadd.f32 %v5098_v1, %v5097_v32  ;;  %v5104_v3 = vrot.slane %v5103_v39, 1  ;;  %v3984_v16 = vpop.f32.mrf.mxu0  ;;  %7448 = vmatprep.subr.bf16.mxu1 %v12923_v19 }
 0x380   : > { %v4545_v5 = vadd.f32 %v4544_v11, %v4543_v24  ;;  %v4550_v43 = vrot.slane %v4549_v31, 2  ;;  %v4567_v49 = vadd.f32 %v4566_v48, %v15454_v23  ;;  %v4572_v0 = vrot.slane %v15458_v52, 4  ;;  %v4097_v24 = vpop.f32.mrf.mxu1  ;;  %7449 = vmatpush1.bf16.msra.mxu1 %v12921_v37 }
 0x381   : > { %13362 = vrsqrt.f32 %v5398_v59  ;;  %v5399_v35 = vadd.f32 1e-05, %v5335_v22  ;;  %v5338_v62 = vmul.f32 0.125, %v5099_v21  ;;  %v5105_v44 = vadd.f32 %v5104_v3, %v5103_v39 }
 0x382   : > { %v4546_v17 = vrot.slane %v4545_v5, 1  ;;  %v4551_v30 = vadd.f32 %v4550_v43, %v4549_v31  ;;  %v4568_v61 = vrot.slane %v4567_v49, 2  ;;  %v4573_v32 = vadd.f32 %v4572_v0, %v15458_v52 }
 0x383   : > { %v15463_v12 = vpop.eup %13354  ;;  %13364 = vrsqrt.f32 %v5399_v35  ;;  %v5402_v1 = vadd.f32 1e-05, %v5338_v62  ;;  %v5339_v11 = vmul.f32 0.125, %v5105_v44  ;;  %v15465_v48 = vadd.f32 %v4093_v55, %v3980_v34  ;;  %v3986_v34 = vpop.f32.mrf.mxu0  ;;  %v12926_v44 = vld [vmem:[#allocation5 + $0x84] ss:$16 sps:$4 sm:$0xff]  }
 0x384   : > { %v4547_v59 = vadd.f32 %v4546_v17, %v4545_v5  ;;  %v4552_v39 = vrot.slane %v4551_v30, 1  ;;  %v4569_v22 = vadd.f32 %v4568_v61, %v4567_v49  ;;  %v4574_v21 = vrot.slane %v4573_v32, 2  ;;  %v4099_v55 = vpop.f32.mrf.mxu1  ;;  %v12929_v5 = vld [vmem:[#allocation5 + $0x284] ss:$16 sps:$4 sm:$0xff]   ;;  %v12924_v61 = vld [vmem:[#allocation5 + $0x80] ss:$16 sps:$4 sm:$0xff]   ;;  %7337 = vmatprep.subr.bf16.mxu0 %v12926_v44 }
 0x385   : > { %v15467_v31 = vpop.eup %13356  ;;  %13366 = vrsqrt.f32 %v5402_v1  ;;  %v5403_v3 = vadd.f32 1e-05, %v5339_v11  ;;  %v4590_v63 = vrot.slane %v15465_v48, 4  ;;  %v15470_v43 = vadd.f32 %v4095_v9, %v3982_v56  ;;  %v12927_v56 = vld [vmem:[#allocation5 + $0x280] ss:$16 sps:$4 sm:$0xff]   ;;  %7450 = vmatprep.subr.bf16.mxu1 %v12929_v5  ;;  %7338 = vmatpush1.bf16.msra.mxu0 %v12924_v61 }
 0x386   : > { %v4766_v0 = vmul.f32 0.125, %v4547_v59  ;;  %v4553_v29 = vadd.f32 %v4552_v39, %v4551_v30  ;;  %v4570_v35 = vrot.slane %v4569_v22, 1  ;;  %v4575_v62 = vadd.f32 %v4574_v21, %v4573_v32  ;;  %7451 = vmatpush1.bf16.msra.mxu1 %v12927_v56 }
 0x387   : > { %v15472_v19 = vpop.eup %13358  ;;  %13368 = vrsqrt.f32 %v5403_v3  ;;  %v4591_v49 = vadd.f32 %v4590_v63, %v15465_v48  ;;  %v4596_v37 = vrot.slane %v15470_v43, 4  ;;  %v15476_v17 = vadd.f32 %v4097_v24, %v3984_v16 }
 0x388   : > { %v15479_v9 = vsub.f32 %v15447_v7, %v4766_v0  ;;  %v4767_v30 = vmul.f32 0.125, %v4553_v29  ;;  %v4571_v32 = vadd.f32 %v4570_v35, %v4569_v22  ;;  %v4576_v1 = vrot.slane %v4575_v62, 1 }
 0x389   : > { %v15481_v11 = vpop.eup %13360  ;;  %v4592_v59 = vrot.slane %v4591_v49, 2  ;;  %v4597_v39 = vadd.f32 %v4596_v37, %v15470_v43  ;;  %v4614_v21 = vrot.slane %v15476_v17, 4  ;;  %v15485_v3 = vadd.f32 %v4099_v55, %v3986_v34 }
 0x38a   : > { %18781 = vst [vmem:[#allocation27_spill] sm:$0xff] %v15479_v9  ;;  %v4894_v7 = vmul.f32 %v15479_v9, %v15479_v9  ;;  %v15490_v16 = vsub.f32 %v15450_v40, %v4767_v30  ;;  %v4770_v24 = vmul.f32 0.125, %v4571_v32  ;;  %v4577_v22 = vadd.f32 %v4576_v1, %v4575_v62 }
 0x38b   : > { %v4593_v63 = vadd.f32 %v4592_v59, %v4591_v49  ;;  %v4598_v0 = vrot.slane %v4597_v39, 2  ;;  %v4615_v29 = vadd.f32 %v4614_v21, %v15476_v17  ;;  %v4620_v35 = vrot.slane %v15485_v3, 4 }
 0x38c   : > { %18782 = vst [vmem:[#allocation31_spill] sm:$0xff] %v15490_v16  ;;  %v5118_v44 = vrot.slane %v4894_v7, 4  ;;  %v4895_v34 = vmul.f32 %v15490_v16, %v15490_v16  ;;  %v15497_v55 = vsub.f32 %v15454_v23, %v4770_v24  ;;  %v4771_v5 = vmul.f32 0.125, %v4577_v22 }
 0x38d   : > { %v4594_v37 = vrot.slane %v4593_v63, 1  ;;  %v4599_v61 = vadd.f32 %v4598_v0, %v4597_v39  ;;  %v4616_v40 = vrot.slane %v4615_v29, 2  ;;  %v4621_v56 = vadd.f32 %v4620_v35, %v15485_v3 }
 0x38e   : > { %18783 = vst [vmem:[#allocation48_spill] sm:$0xff] %v15497_v55  ;;  %v15500_v62 = vpop.eup %13362  ;;  %v5119_v49 = vadd.f32 %v5118_v44, %v4894_v7  ;;  %v5124_v30 = vrot.slane %v4895_v34, 4  ;;  %v4898_v32 = vmul.f32 %v15497_v55, %v15497_v55  ;;  %v15505_v1 = vsub.f32 %v15458_v52, %v4771_v5  ;;  %v15511_v7 = vpop.f32.mrf.mxu0 }
 0x38f   : > { %v4595_v59 = vadd.f32 %v4594_v37, %v4593_v63  ;;  %v4600_v21 = vrot.slane %v4599_v61, 1  ;;  %v4617_v23 = vadd.f32 %v4616_v40, %v4615_v29  ;;  %v4622_v24 = vrot.slane %v4621_v56, 2  ;;  %v15513_v44 = vpop.f32.mrf.mxu1 }
 0x390   : > { %18784 = vst [vmem:[#allocation38_spill] sm:$0xff] %v15505_v1  ;;  %v15507_v22 = vpop.eup %13364  ;;  %v5120_v39 = vrot.slane %v5119_v49, 2  ;;  %v5125_v0 = vadd.f32 %v5124_v30, %v4895_v34  ;;  %v5142_v9 = vrot.slane %v4898_v32, 4  ;;  %v4899_v35 = vmul.f32 %v15505_v1, %v15505_v1 }
 0x391   : > { %v4774_v55 = vmul.f32 0.125, %v4595_v59  ;;  %v4601_v16 = vadd.f32 %v4600_v21, %v4599_v61  ;;  %v4618_v52 = vrot.slane %v4617_v23, 1  ;;  %v4623_v5 = vadd.f32 %v4622_v24, %v4621_v56  ;;  %v3992_v21 = vpop.f32.mrf.mxu0  ;;  %v4105_v56 = vpop.f32.mrf.mxu1 }
 0x392   : > { %v15515_v63 = vpop.eup %13366  ;;  %v5121_v29 = vadd.f32 %v5120_v39, %v5119_v49  ;;  %v5126_v37 = vrot.slane %v5125_v0, 2  ;;  %v5143_v40 = vadd.f32 %v5142_v9, %v4898_v32  ;;  %v5148_v54 = vrot.slane %v4899_v35, 4 }
 0x393   : > { %v15518_v34 = vsub.f32 %v15465_v48, %v4774_v55  ;;  %v4775_v30 = vmul.f32 0.125, %v4601_v16  ;;  %v4619_v4 = vadd.f32 %v4618_v52, %v4617_v23  ;;  %v4624_v1 = vrot.slane %v4623_v5, 1 }
 0x394   : > { %v15520_v10 = vpop.eup %13368  ;;  %v5122_v58 = vrot.slane %v5121_v29, 1  ;;  %v5127_v2 = vadd.f32 %v5126_v37, %v5125_v0  ;;  %v5144_v59 = vrot.slane %v5143_v40, 2  ;;  %v5149_v61 = vadd.f32 %v5148_v54, %v4899_v35 }
 0x395   : > { %18785 = vst [vmem:[#allocation41_spill] sm:$0xff] %v15518_v34  ;;  %v4902_v49 = vmul.f32 %v15518_v34, %v15518_v34  ;;  %v15525_v9 = vsub.f32 %v15470_v43, %v4775_v30  ;;  %v4778_v32 = vmul.f32 0.125, %v4619_v4  ;;  %v4625_v48 = vadd.f32 %v4624_v1, %v4623_v5  ;;  %v3994_v43 = vpop.f32.mrf.mxu0  ;;  %v4107_v30 = vpop.f32.mrf.mxu1 }
 0x396   : > { %v5123_v55 = vadd.f32 %v5122_v58, %v5121_v29  ;;  %v5128_v16 = vrot.slane %v5127_v2, 1  ;;  %v5145_v23 = vadd.f32 %v5144_v59, %v5143_v40  ;;  %v5150_v24 = vrot.slane %v5149_v61, 2 }
 0x397   : > { %18786 = vst [vmem:[#allocation49_spill] sm:$0xff] %v15525_v9  ;;  %v5166_v39 = vrot.slane %v4902_v49, 4  ;;  %v4903_v0 = vmul.f32 %v15525_v9, %v15525_v9  ;;  %v15530_v54 = vsub.f32 %v15476_v17, %v4778_v32  ;;  %v4779_v35 = vmul.f32 0.125, %v4625_v48 }
 0x398   : > { %v5342_v52 = vmul.f32 0.125, %v5123_v55  ;;  %v5129_v37 = vadd.f32 %v5128_v16, %v5127_v2  ;;  %v5146_v34 = vrot.slane %v5145_v23, 1  ;;  %v5151_v45 = vadd.f32 %v5150_v24, %v5149_v61  ;;  %v3996_v24 = vpop.f32.mrf.mxu0 }
 0x399   : > { %18787 = vst [vmem:[#allocation51_spill] sm:$0xff] %v15530_v54  ;;  %v5167_v4 = vadd.f32 %v5166_v39, %v4902_v49  ;;  %v5172_v1 = vrot.slane %v4903_v0, 4  ;;  %v4906_v58 = vmul.f32 %v15530_v54, %v15530_v54  ;;  %v15535_v5 = vsub.f32 %v15485_v3, %v4779_v35  ;;  %v4109_v39 = vpop.f32.mrf.mxu1 }
 0x39a   : > { %v5406_v29 = vadd.f32 1e-05, %v5342_v52  ;;  %v5343_v40 = vmul.f32 0.125, %v5129_v37  ;;  %v5147_v59 = vadd.f32 %v5146_v34, %v5145_v23  ;;  %v5152_v17 = vrot.slane %v5151_v45, 1 }
 0x39b   : > { %18788 = vst [vmem:[#allocation33_spill] sm:$0xff] %v15535_v5  ;;  %v5168_v32 = vrot.slane %v5167_v4, 2  ;;  %v5173_v48 = vadd.f32 %v5172_v1, %v4903_v0  ;;  %v5190_v55 = vrot.slane %v4906_v58, 4  ;;  %v4907_v2 = vmul.f32 %v15535_v5, %v15535_v5 }
 0x39c   : > { %13370 = vrsqrt.f32 %v5406_v29  ;;  %v5407_v61 = vadd.f32 1e-05, %v5343_v40  ;;  %v5346_v49 = vmul.f32 0.125, %v5147_v59  ;;  %v5153_v16 = vadd.f32 %v5152_v17, %v5151_v45  ;;  %v12932_v40 = vld [vmem:[#allocation5 + $0x64] ss:$16 sps:$4 sm:$0xff]  }
 0x39d   : > { %v5169_v54 = vadd.f32 %v5168_v32, %v5167_v4  ;;  %v5174_v9 = vrot.slane %v5173_v48, 2  ;;  %v5191_v3 = vadd.f32 %v5190_v55, %v4906_v58  ;;  %v5196_v35 = vrot.slane %v4907_v2, 4  ;;  %v12935_v59 = vld [vmem:[#allocation5 + $0x264] ss:$16 sps:$4 sm:$0xff]   ;;  %v4000_v58 = vpop.f32.mrf.mxu0  ;;  %v4113_v32 = vpop.f32.mrf.mxu1  ;;  %v12930_v55 = vld [vmem:[#allocation5 + $0x60] ss:$16 sps:$4 sm:$0xff]   ;;  %7339 = vmatprep.subr.bf16.mxu0 %v12932_v40 }
 0x39e   : > { %13372 = vrsqrt.f32 %v5407_v61  ;;  %v5410_v52 = vadd.f32 1e-05, %v5346_v49  ;;  %v5347_v34 = vmul.f32 0.125, %v5153_v16  ;;  %v15541_v23 = vadd.f32 %v15513_v44, %v15511_v7  ;;  %v12933_v44 = vld [vmem:[#allocation5 + $0x260] ss:$16 sps:$4 sm:$0xff]   ;;  %7452 = vmatprep.subr.bf16.mxu1 %v12935_v59  ;;  %7340 = vmatpush1.bf16.msra.mxu0 %v12930_v55 }
 0x39f   : > { %v5170_v0 = vrot.slane %v5169_v54, 1  ;;  %v5175_v37 = vadd.f32 %v5174_v9, %v5173_v48  ;;  %v5192_v1 = vrot.slane %v5191_v3, 2  ;;  %v5197_v29 = vadd.f32 %v5196_v35, %v4907_v2  ;;  %7453 = vmatpush1.bf16.msra.mxu1 %v12933_v44  ;;  %v4002_v59 = vpop.f32.mrf.mxu0 }
 0x3a0   : > { %13374 = vrsqrt.f32 %v5410_v52  ;;  %v5411_v45 = vadd.f32 1e-05, %v5347_v34  ;;  %v4638_v4 = vrot.slane %v15541_v23, 4  ;;  %v15544_v17 = vadd.f32 %v4105_v56, %v3992_v21  ;;  %v12941_v34 = vld [vmem:[#allocation5 + $0x244] ss:$16 sps:$4 sm:$0xff]  }
 0x3a1   : > { %v5171_v61 = vadd.f32 %v5170_v0, %v5169_v54  ;;  %v5176_v49 = vrot.slane %v5175_v37, 1  ;;  %v5193_v16 = vadd.f32 %v5192_v1, %v5191_v3  ;;  %v5198_v7 = vrot.slane %v5197_v29, 2  ;;  %v12938_v54 = vld [vmem:[#allocation5 + $0x44] ss:$16 sps:$4 sm:$0xff]   ;;  %7454 = vmatprep.subr.bf16.mxu1 %v12941_v34 }
 0x3a2   : > { %13376 = vrsqrt.f32 %v5411_v45  ;;  %v4639_v9 = vadd.f32 %v4638_v4, %v15541_v23  ;;  %v4644_v48 = vrot.slane %v15544_v17, 4  ;;  %v15548_v2 = vadd.f32 %v4107_v30, %v3994_v43  ;;  %v4115_v45 = vpop.f32.mrf.mxu1  ;;  %v12936_v4 = vld [vmem:[#allocation5 + $0x40] ss:$16 sps:$4 sm:$0xff]   ;;  %7341 = vmatprep.subr.bf16.mxu0 %v12938_v54  ;;  %v12944_v54 = vld [vmem:[#allocation5 + $0x24] ss:$16 sps:$4 sm:$0xff]  }
 0x3a3   : > { %v5350_v21 = vmul.f32 0.125, %v5171_v61  ;;  %v5177_v56 = vadd.f32 %v5176_v49, %v5175_v37  ;;  %v5194_v35 = vrot.slane %v5193_v16, 1  ;;  %v5199_v52 = vadd.f32 %v5198_v7, %v5197_v29  ;;  %v12939_v43 = vld [vmem:[#allocation5 + $0x240] ss:$16 sps:$4 sm:$0xff]   ;;  %7342 = vmatpush1.bf16.msra.mxu0 %v12936_v4 }
 0x3a4   : > { %v4640_v3 = vrot.slane %v4639_v9, 2  ;;  %v4645_v0 = vadd.f32 %v4644_v48, %v15544_v17  ;;  %v4662_v1 = vrot.slane %v15548_v2, 4  ;;  %v15552_v40 = vadd.f32 %v4109_v39, %v3996_v24  ;;  %7455 = vmatpush1.bf16.msra.mxu1 %v12939_v43  ;;  %7343 = vmatprep.subr.bf16.mxu0 %v12944_v54 }
 0x3a5   : > { %v5414_v30 = vadd.f32 1e-05, %v5350_v21  ;;  %v5351_v55 = vmul.f32 0.125, %v5177_v56  ;;  %v5195_v61 = vadd.f32 %v5194_v35, %v5193_v16  ;;  %v5200_v37 = vrot.slane %v5199_v52, 1  ;;  %v4004_v56 = vpop.f32.mrf.mxu0  ;;  %v4117_v35 = vpop.f32.mrf.mxu1 }
 0x3a6   : > { %v4641_v29 = vadd.f32 %v4640_v3, %v4639_v9  ;;  %v4646_v49 = vrot.slane %v4645_v0, 2  ;;  %v4663_v7 = vadd.f32 %v4662_v1, %v15548_v2  ;;  %v4668_v44 = vrot.slane %v15552_v40, 4  ;;  %v12947_v9 = vld [vmem:[#allocation5 + $0x224] ss:$16 sps:$4 sm:$0xff]  }
 0x3a7   : > { %13378 = vrsqrt.f32 %v5414_v30  ;;  %v5415_v24 = vadd.f32 1e-05, %v5351_v55  ;;  %v5354_v39 = vmul.f32 0.125, %v5195_v61  ;;  %v5201_v48 = vadd.f32 %v5200_v37, %v5199_v52  ;;  %v12942_v30 = vld [vmem:[#allocation5 + $0x20] ss:$16 sps:$4 sm:$0xff]   ;;  %7456 = vmatprep.subr.bf16.mxu1 %v12947_v9 }
 0x3a8   : > { %v4642_v5 = vrot.slane %v4641_v29, 1  ;;  %v4647_v36 = vadd.f32 %v4646_v49, %v4645_v0  ;;  %v4664_v21 = vrot.slane %v4663_v7, 2  ;;  %v4669_v16 = vadd.f32 %v4668_v44, %v15552_v40  ;;  %v12945_v0 = vld [vmem:[#allocation5 + $0x220] ss:$16 sps:$4 sm:$0xff]   ;;  %7344 = vmatpush1.bf16.msra.mxu0 %v12942_v30 }
 0x3a9   : > { %v15557_v34 = vpop.eup %13370  ;;  %13380 = vrsqrt.f32 %v5415_v24  ;;  %v5418_v3 = vadd.f32 1e-05, %v5354_v39  ;;  %v5355_v1 = vmul.f32 0.125, %v5201_v48  ;;  %v15559_v4 = vadd.f32 %v4113_v32, %v4000_v58  ;;  %7457 = vmatpush1.bf16.msra.mxu1 %v12945_v0 }
 0x3aa   : > { %v4643_v55 = vadd.f32 %v4642_v5, %v4641_v29  ;;  %v4648_v52 = vrot.slane %v4647_v36, 1  ;;  %v4665_v43 = vadd.f32 %v4664_v21, %v4663_v7  ;;  %v4670_v61 = vrot.slane %v4669_v16, 2  ;;  %v4006_v5 = vpop.f32.mrf.mxu0  ;;  %v4119_v29 = vpop.f32.mrf.mxu1 }
 0x3ab   : > { %v15561_v37 = vpop.eup %13372  ;;  %13382 = vrsqrt.f32 %v5418_v3  ;;  %v5419_v49 = vadd.f32 1e-05, %v5355_v1  ;;  %v4686_v44 = vrot.slane %v15559_v4, 4  ;;  %v15564_v6 = vadd.f32 %v4115_v45, %v4002_v59 }
 0x3ac   : > { %v4782_v24 = vmul.f32 0.125, %v4643_v55  ;;  %v4649_v58 = vadd.f32 %v4648_v52, %v4647_v36  ;;  %v4666_v32 = vrot.slane %v4665_v43, 1  ;;  %v4671_v39 = vadd.f32 %v4670_v61, %v4669_v16  ;;  %v4269_v60 = vpop.f32.mrf.mxu1 }
 0x3ad   : > { %v15566_v7 = vpop.eup %13374  ;;  %13384 = vrsqrt.f32 %v5419_v49  ;;  %v4687_v48 = vadd.f32 %v4686_v44, %v15559_v4  ;;  %v4692_v21 = vrot.slane %v15564_v6, 4  ;;  %v15570_v54 = vadd.f32 %v4117_v35, %v4004_v56 }
 0x3ae   : > { %v15573_v59 = vsub.f32 %v15541_v23, %v4782_v24  ;;  %v4783_v45 = vmul.f32 0.125, %v4649_v58  ;;  %v4667_v9 = vadd.f32 %v4666_v32, %v4665_v43  ;;  %v4672_v36 = vrot.slane %v4671_v39, 1 }
 0x3af   : > { %v15575_v3 = vpop.eup %13376  ;;  %v4688_v16 = vrot.slane %v4687_v48, 2  ;;  %v4693_v1 = vadd.f32 %v4692_v21, %v15564_v6  ;;  %v4710_v30 = vrot.slane %v15570_v54, 4  ;;  %v15579_v55 = vadd.f32 %v4119_v29, %v4006_v5 }
 0x3b0   : > { %18789 = vst [vmem:[#allocation39_spill] sm:$0xff] %v15573_v59  ;;  %v4910_v52 = vmul.f32 %v15573_v59, %v15573_v59  ;;  %v15584_v56 = vsub.f32 %v15544_v17, %v4783_v45  ;;  %v4786_v23 = vmul.f32 0.125, %v4667_v9  ;;  %v4673_v35 = vadd.f32 %v4672_v36, %v4671_v39  ;;  %v12950_v39 = vld [vmem:[#allocation5 + $0x4] ss:$16 sps:$4 sm:$0xff]  }
 0x3b1   : > { %v4689_v61 = vadd.f32 %v4688_v16, %v4687_v48  ;;  %v4694_v43 = vrot.slane %v4693_v1, 2  ;;  %v4711_v0 = vadd.f32 %v4710_v30, %v15570_v54  ;;  %v4716_v49 = vrot.slane %v15579_v55, 4  ;;  %v12953_v48 = vld [vmem:[#allocation5 + $0x204] ss:$16 sps:$4 sm:$0xff]   ;;  %7345 = vmatprep.subr.bf16.mxu0 %v12950_v39 }
 0x3b2   : > { %18790 = vst [vmem:[#allocation34_spill] sm:$0xff] %v15584_v56  ;;  %v5214_v44 = vrot.slane %v4910_v52, 4  ;;  %v4911_v24 = vmul.f32 %v15584_v56, %v15584_v56  ;;  %v15591_v58 = vsub.f32 %v15548_v2, %v4786_v23  ;;  %v4787_v32 = vmul.f32 0.125, %v4673_v35  ;;  %v12948_v2 = vld [vmem:[#allocation5] ss:$16 sps:$4 sm:$0xff]   ;;  %7458 = vmatprep.subr.bf16.mxu1 %v12953_v48  ;;  %v4156_v48 = vpop.f32.mrf.mxu0 }
 0x3b3   : > { %v4690_v5 = vrot.slane %v4689_v61, 1  ;;  %v4695_v29 = vadd.f32 %v4694_v43, %v4693_v1  ;;  %v4712_v17 = vrot.slane %v4711_v0, 2  ;;  %v4717_v21 = vadd.f32 %v4716_v49, %v15579_v55  ;;  %v12951_v23 = vld [vmem:[#allocation5 + $0x200] ss:$16 sps:$4 sm:$0xff]   ;;  %7346 = vmatpush1.bf16.msra.mxu0 %v12948_v2 }
 0x3b4   : > { %18791 = vst [vmem:[#allocation40_spill] sm:$0xff] %v15591_v58  ;;  %v15594_v45 = vpop.eup %13378  ;;  %v5215_v9 = vadd.f32 %v5214_v44, %v4910_v52  ;;  %v5220_v36 = vrot.slane %v4911_v24, 4  ;;  %v4914_v16 = vmul.f32 %v15591_v58, %v15591_v58  ;;  %v15599_v30 = vsub.f32 %v15552_v40, %v4787_v32  ;;  %7459 = vmatpush1.bf16.msra.mxu1 %v12951_v23 }
 0x3b5   : > { %v4691_v35 = vadd.f32 %v4690_v5, %v4689_v61  ;;  %v4696_v59 = vrot.slane %v4695_v29, 1  ;;  %v4713_v1 = vadd.f32 %v4712_v17, %v4711_v0  ;;  %v4718_v43 = vrot.slane %v4717_v21, 2 }
 0x3b6   : > { %18792 = vst [vmem:[#allocation55_spill] sm:$0xff] %v15599_v30  ;;  %v15601_v49 = vpop.eup %13380  ;;  %v5216_v56 = vrot.slane %v5215_v9, 2  ;;  %v5221_v57 = vadd.f32 %v5220_v36, %v4911_v24  ;;  %v5238_v52 = vrot.slane %v4914_v16, 4  ;;  %v4915_v44 = vmul.f32 %v15599_v30, %v15599_v30 }
 0x3b7   : > { %v4790_v40 = vmul.f32 0.125, %v4691_v35  ;;  %v4697_v32 = vadd.f32 %v4696_v59, %v4695_v29  ;;  %v4714_v58 = vrot.slane %v4713_v1, 1  ;;  %v4719_v50 = vadd.f32 %v4718_v43, %v4717_v21 }
 0x3b8   : > { %v15605_v61 = vpop.eup %13382  ;;  %v5217_v0 = vadd.f32 %v5216_v56, %v5215_v9  ;;  %v5222_v5 = vrot.slane %v5221_v57, 2  ;;  %v5239_v17 = vadd.f32 %v5238_v52, %v4914_v16  ;;  %v5244_v39 = vrot.slane %v4915_v44, 4 }
 0x3b9   : > { %v15608_v24 = vsub.f32 %v15559_v4, %v4790_v40  ;;  %v4791_v36 = vmul.f32 0.125, %v4697_v32  ;;  %v4715_v28 = vadd.f32 %v4714_v58, %v4713_v1  ;;  %v4720_v30 = vrot.slane %v4719_v50, 1  ;;  %v4158_v58 = vpop.f32.mrf.mxu0  ;;  %v4271_v1 = vpop.f32.mrf.mxu1 }
 0x3ba   : > { %v15610_v2 = vpop.eup %13384  ;;  %v5218_v23 = vrot.slane %v5217_v0, 1  ;;  %v5223_v59 = vadd.f32 %v5222_v5, %v5221_v57  ;;  %v5240_v29 = vrot.slane %v5239_v17, 2  ;;  %v5245_v21 = vadd.f32 %v5244_v39, %v4915_v44 }
 0x3bb   : > { %18793 = vst [vmem:[#allocation58_spill] sm:$0xff] %v15608_v24  ;;  %v4918_v56 = vmul.f32 %v15608_v24, %v15608_v24  ;;  %v15615_v9 = vsub.f32 %v15564_v6, %v4791_v36  ;;  %v4794_v16 = vmul.f32 0.125, %v4715_v28  ;;  %v4721_v35 = vadd.f32 %v4720_v30, %v4719_v50  ;;  %v4160_v53 = vpop.f32.mrf.mxu0 }
 0x3bc   : > { %v5219_v43 = vadd.f32 %v5218_v23, %v5217_v0  ;;  %v5224_v4 = vrot.slane %v5223_v59, 1  ;;  %v5241_v52 = vadd.f32 %v5240_v29, %v5239_v17  ;;  %v5246_v40 = vrot.slane %v5245_v21, 2 }
 0x3bd   : > { %18794 = vst [vmem:[#allocation44_spill] sm:$0xff] %v15615_v9  ;;  %v5262_v32 = vrot.slane %v4918_v56, 4  ;;  %v4919_v57 = vmul.f32 %v15615_v9, %v15615_v9  ;;  %v15620_v44 = vsub.f32 %v15570_v54, %v4794_v16  ;;  %v4795_v5 = vmul.f32 0.125, %v4721_v35  ;;  %v4273_v54 = vpop.f32.mrf.mxu1 }
 0x3be   : > { %v5358_v39 = vmul.f32 0.125, %v5219_v43  ;;  %v5225_v24 = vadd.f32 %v5224_v4, %v5223_v59  ;;  %v5242_v6 = vrot.slane %v5241_v52, 1  ;;  %v5247_v36 = vadd.f32 %v5246_v40, %v5245_v21 }
 0x3bf   : > { %18795 = vst [vmem:[#allocation64_spill] sm:$0xff] %v15620_v44  ;;  %v5263_v28 = vadd.f32 %v5262_v32, %v4918_v56  ;;  %v5268_v50 = vrot.slane %v4919_v57, 4  ;;  %v4922_v30 = vmul.f32 %v15620_v44, %v15620_v44  ;;  %v15625_v0 = vsub.f32 %v15579_v55, %v4795_v5  ;;  %v4275_v44 = vpop.f32.mrf.mxu1 }
 0x3c0   : > { %v5422_v17 = vadd.f32 1e-05, %v5358_v39  ;;  %v5359_v23 = vmul.f32 0.125, %v5225_v24  ;;  %v5243_v29 = vadd.f32 %v5242_v6, %v5241_v52  ;;  %v5248_v9 = vrot.slane %v5247_v36, 1  ;;  %v4162_v6 = vpop.f32.mrf.mxu0 }
 0x3c1   : > { %18796 = vst [vmem:[#allocation47_spill] sm:$0xff] %v15625_v0  ;;  %v5264_v16 = vrot.slane %v5263_v28, 2  ;;  %v5269_v35 = vadd.f32 %v5268_v50, %v4919_v57  ;;  %v5286_v43 = vrot.slane %v4922_v30, 4  ;;  %v4923_v59 = vmul.f32 %v15625_v0, %v15625_v0 }
 0x3c2   : > { %13386 = vrsqrt.f32 %v5422_v17  ;;  %v5423_v21 = vadd.f32 1e-05, %v5359_v23  ;;  %v5362_v56 = vmul.f32 0.125, %v5243_v29  ;;  %v5249_v4 = vadd.f32 %v5248_v9, %v5247_v36 }
 0x3c3   : > { %v5265_v40 = vadd.f32 %v5264_v16, %v5263_v28  ;;  %v5270_v32 = vrot.slane %v5269_v35, 2  ;;  %v5287_v55 = vadd.f32 %v5286_v43, %v4922_v30  ;;  %v5292_v5 = vrot.slane %v4923_v59, 4  ;;  %v4279_v43 = vpop.f32.mrf.mxu1 }
 0x3c4   : > { %13388 = vrsqrt.f32 %v5423_v21  ;;  %v5426_v24 = vadd.f32 1e-05, %v5362_v56  ;;  %v5363_v52 = vmul.f32 0.125, %v5249_v4  ;;  %v15629_v39 = vadd.f32 %v4269_v60, %v4156_v48 }
 0x3c5   : > { %v5266_v57 = vrot.slane %v5265_v40, 1  ;;  %v5271_v50 = vadd.f32 %v5270_v32, %v5269_v35  ;;  %v5288_v51 = vrot.slane %v5287_v55, 2  ;;  %v5293_v8 = vadd.f32 %v5292_v5, %v4923_v59  ;;  %v4166_v35 = vpop.f32.mrf.mxu0  ;;  %v12954_v5 = vld [vmem:[#allocation5 + $0x1e0] ss:$16 sps:$4 sm:$0xff]  }
 0x3c6   : > { %13390 = vrsqrt.f32 %v5426_v24  ;;  %v5427_v17 = vadd.f32 1e-05, %v5363_v52  ;;  %v4362_v23 = vrot.slane %v15629_v39, 4  ;;  %v15632_v9 = vadd.f32 %v4271_v1, %v4158_v58  ;;  %v12956_v58 = vld [vmem:[#allocation5 + $0x1e4] ss:$16 sps:$4 sm:$0xff]  }
 0x3c7   : > { %v5267_v36 = vadd.f32 %v5266_v57, %v5265_v40  ;;  %v5272_v28 = vrot.slane %v5271_v50, 1  ;;  %v5289_v30 = vadd.f32 %v5288_v51, %v5287_v55  ;;  %v5294_v29 = vrot.slane %v5293_v8, 2  ;;  %v12959_v1 = vld [vmem:[#allocation5 + $0x3e4] ss:$16 sps:$4 sm:$0xff]   ;;  %v12957_v24 = vld [vmem:[#allocation5 + $0x3e0] ss:$16 sps:$4 sm:$0xff]   ;;  %7347 = vmatprep.subr.bf16.mxu0 %v12956_v58 }
 0x3c8   : > { %13392 = vrsqrt.f32 %v5427_v17  ;;  %v4363_v60 = vadd.f32 %v4362_v23, %v15629_v39  ;;  %v4368_v48 = vrot.slane %v15632_v9, 4  ;;  %v5566_v16 = vcombine.low %v15369_v20, %v15373_v33  ;;  %7460 = vmatprep.subr.bf16.mxu1 %v12959_v1  ;;  %7348 = vmatpush2.bf16.msra.mxu0 %v12954_v5 }
 0x3c9   : > { %v5366_v59 = vmul.f32 0.125, %v5267_v36  ;;  %v5273_v21 = vadd.f32 %v5272_v28, %v5271_v50  ;;  %v5290_v56 = vrot.slane %v5289_v30, 1  ;;  %v5295_v4 = vadd.f32 %v5294_v29, %v5293_v8  ;;  %v4168_v36 = vpop.f32.mrf.mxu0  ;;  %v4281_v28 = vpop.f32.mrf.mxu1  ;;  %7461 = vmatpush2.bf16.msra.mxu1 %v12957_v24 }
 0x3ca   : > { %v4364_v40 = vrot.slane %v4363_v60, 2  ;;  %v4369_v51 = vadd.f32 %v4368_v48, %v15632_v9  ;;  %v15640_v32 = vrot.slane %v5566_v16, %v14117_v18  ;;  %v15642_v55 = vadd.f32 %v4273_v54, %v4160_v53  ;;  %v12962_v48 = vld [vmem:[#allocation5 + $0x1c4] ss:$16 sps:$4 sm:$0xff]  }
 0x3cb   : > { %v5430_v52 = vadd.f32 1e-05, %v5366_v59  ;;  %v5367_v20 = vmul.f32 0.125, %v5273_v21  ;;  %v5291_v33 = vadd.f32 %v5290_v56, %v5289_v30  ;;  %v5296_v57 = vrot.slane %v5295_v4, 1  ;;  %v12960_v21 = vld [vmem:[#allocation5 + $0x1c0] ss:$16 sps:$4 sm:$0xff]   ;;  %7349 = vmatprep.subr.bf16.mxu0 %v12962_v48 }
 0x3cc   : > { %v4365_v50 = vadd.f32 %v4364_v40, %v4363_v60  ;;  %v4370_v8 = vrot.slane %v4369_v51, 2  ;;  %v4386_v17 = vrot.slane %v15642_v55, 4  ;;  %v15645_v23 = vadd.f32 %v4275_v44, %v4162_v6  ;;  %v12963_v56 = vld [vmem:[#allocation5 + $0x3c0] ss:$16 sps:$4 sm:$0xff]   ;;  %v12965_v40 = vld [vmem:[#allocation5 + $0x3c4] ss:$16 sps:$4 sm:$0xff]   ;;  %7350 = vmatpush2.bf16.msra.mxu0 %v12960_v21 }
 0x3cd   : > { %13394 = vrsqrt.f32 %v5430_v52  ;;  %v5431_v53 = vadd.f32 1e-05, %v5367_v20  ;;  %v5370_v54 = vmul.f32 0.125, %v5291_v33  ;;  %v5297_v29 = vadd.f32 %v5296_v57, %v5295_v4  ;;  %v4170_v52 = vpop.f32.mrf.mxu0  ;;  %v4283_v20 = vpop.f32.mrf.mxu1  ;;  %7462 = vmatprep.subr.bf16.mxu1 %v12965_v40  ;;  %v12966_v48 = vld [vmem:[#allocation5 + $0x1a0] ss:$16 sps:$4 sm:$0xff]  }
 0x3ce   : > { %v4366_v16 = vrot.slane %v4365_v50, 1  ;;  %v4371_v30 = vadd.f32 %v4370_v8, %v4369_v51  ;;  %v4387_v59 = vadd.f32 %v4386_v17, %v15642_v55  ;;  %v4392_v60 = vrot.slane %v15645_v23, 4  ;;  %7463 = vmatpush2.bf16.msra.mxu1 %v12963_v56 }
 0x3cf   : > { %v15649_v58 = vpop.eup %13386  ;;  %13396 = vrsqrt.f32 %v5431_v53  ;;  %v5434_v44 = vadd.f32 1e-05, %v5370_v54  ;;  %v5371_v6 = vmul.f32 0.125, %v5297_v29  ;;  %v5590_v1 = vcombine.low %v15378_v41, %v15387_v27  ;;  %v12968_v41 = vld [vmem:[#allocation5 + $0x1a4] ss:$16 sps:$4 sm:$0xff]  }
 0x3d0   : > { %v4367_v4 = vadd.f32 %v4366_v16, %v4365_v50  ;;  %v4372_v5 = vrot.slane %v4371_v30, 1  ;;  %v4388_v24 = vrot.slane %v4387_v59, 2  ;;  %v4393_v51 = vadd.f32 %v4392_v60, %v15645_v23  ;;  %v12971_v27 = vld [vmem:[#allocation5 + $0x3a4] ss:$16 sps:$4 sm:$0xff]   ;;  %v12969_v16 = vld [vmem:[#allocation5 + $0x3a0] ss:$16 sps:$4 sm:$0xff]   ;;  %7351 = vmatprep.subr.bf16.mxu0 %v12968_v41 }
 0x3d1   : > { %v15654_v33 = vpop.eup %13388  ;;  %13398 = vrsqrt.f32 %v5434_v44  ;;  %v5435_v57 = vadd.f32 1e-05, %v5371_v6  ;;  %v15657_v8 = vrot.slane %v5590_v1, %v14117_v18  ;;  %v15659_v17 = vadd.f32 %v4279_v43, %v4166_v35  ;;  %7464 = vmatprep.subr.bf16.mxu1 %v12971_v27  ;;  %v4172_v6 = vpop.f32.mrf.mxu0  ;;  %7352 = vmatpush2.bf16.msra.mxu0 %v12966_v48 }
 0x3d2   : > { %v4736_v50 = vmul.f32 0.125, %v4367_v4  ;;  %v4373_v53 = vadd.f32 %v4372_v5, %v4371_v30  ;;  %v4389_v54 = vadd.f32 %v4388_v24, %v4387_v59  ;;  %v4394_v29 = vrot.slane %v4393_v51, 2  ;;  %v4285_v1 = vpop.f32.mrf.mxu1  ;;  %7465 = vmatpush2.bf16.msra.mxu1 %v12969_v16 }
 0x3d3   : > { %v15661_v60 = vpop.eup %13390  ;;  %13400 = vrsqrt.f32 %v5435_v57  ;;  %v4410_v21 = vrot.slane %v15659_v17, 4  ;;  %v15664_v44 = vadd.f32 %v4281_v28, %v4168_v36  ;;  %v5614_v35 = vcombine.low %v15406_v13, %v15413_v42 }
 0x3d4   : > { %v15669_v43 = vsub.f32 %v15629_v39, %v4736_v50  ;;  %v4737_v30 = vmul.f32 0.125, %v4373_v53  ;;  %v4390_v59 = vrot.slane %v4389_v54, 1  ;;  %v4395_v56 = vadd.f32 %v4394_v29, %v4393_v51 }
 0x3d5   : > { %v15671_v40 = vpop.eup %13392  ;;  %v4411_v4 = vadd.f32 %v4410_v21, %v15659_v17  ;;  %v4416_v36 = vrot.slane %v15664_v44, 4  ;;  %v15676_v28 = vrot.slane %v5614_v35, %v14117_v18  ;;  %v15678_v13 = vadd.f32 %v4283_v20, %v4170_v52 }
 0x3d6   : > { %18797 = vst [vmem:[#allocation42_spill] sm:$0xff] %v15669_v43  ;;  %v4864_v42 = vmul.f32 %v15669_v43, %v15669_v43  ;;  %v15683_v39 = vsub.f32 %v15632_v9, %v4737_v30  ;;  %v4391_v5 = vadd.f32 %v4390_v59, %v4389_v54  ;;  %v4396_v24 = vrot.slane %v4395_v56, 1 }
 0x3d7   : > { %v4412_v51 = vrot.slane %v4411_v4, 2  ;;  %v4417_v57 = vadd.f32 %v4416_v36, %v15664_v44  ;;  %v4434_v41 = vrot.slane %v15678_v13, 4  ;;  %v15687_v27 = vadd.f32 %v4285_v1, %v4172_v6 }
 0x3d8   : > { %v4938_v50 = vrot.slane %v4864_v42, 4  ;;  %v4865_v52 = vmul.f32 %v15683_v39, %v15683_v39  ;;  %v4740_v20 = vmul.f32 0.125, %v4391_v5  ;;  %v4397_v53 = vadd.f32 %v4396_v24, %v4395_v56 }
 0x3d9   : > { %v4413_v29 = vadd.f32 %v4412_v51, %v4411_v4  ;;  %v4418_v48 = vrot.slane %v4417_v57, 2  ;;  %v4435_v9 = vadd.f32 %v4434_v41, %v15678_v13  ;;  %v4440_v54 = vrot.slane %v15687_v27, 4 }
 0x3da   : > { %v15693_v16 = vpop.eup %13394  ;;  %v4939_v21 = vadd.f32 %v4938_v50, %v4864_v42  ;;  %v4944_v35 = vrot.slane %v4865_v52, 4  ;;  %v15696_v30 = vsub.f32 %v15642_v55, %v4740_v20  ;;  %v4741_v59 = vmul.f32 0.125, %v4397_v53 }
 0x3db   : > { %v4414_v6 = vrot.slane %v4413_v29, 1  ;;  %v4419_v1 = vadd.f32 %v4418_v48, %v4417_v57  ;;  %v4436_v36 = vrot.slane %v4435_v9, 2  ;;  %v4441_v5 = vadd.f32 %v4440_v54, %v15687_v27 }
 0x3dc   : > { %18798 = vst [vmem:[#allocation45_spill] sm:$0xff] %v15696_v30  ;;  %v15699_v56 = vpop.eup %13396  ;;  %v4940_v4 = vrot.slane %v4939_v21, 2  ;;  %v4945_v24 = vadd.f32 %v4944_v35, %v4865_v52  ;;  %v4868_v51 = vmul.f32 %v15696_v30, %v15696_v30  ;;  %v15704_v41 = vsub.f32 %v15645_v23, %v4741_v59 }
 0x3dd   : > { %v4415_v42 = vadd.f32 %v4414_v6, %v4413_v29  ;;  %v4420_v50 = vrot.slane %v4419_v1, 1  ;;  %v4437_v55 = vadd.f32 %v4436_v36, %v4435_v9  ;;  %v4442_v20 = vrot.slane %v4441_v5, 2 }
 0x3de   : > { %v15706_v53 = vpop.eup %13398  ;;  %v4941_v57 = vadd.f32 %v4940_v4, %v4939_v21  ;;  %v4946_v48 = vrot.slane %v4945_v24, 2  ;;  %v4962_v0 = vrot.slane %v4868_v51, 4  ;;  %v4869_v54 = vmul.f32 %v15704_v41, %v15704_v41 }
 0x3df   : > { %18799 = vst [vmem:[#allocation43_spill] sm:$0xff] %v15706_v53  ;;  %v4744_v43 = vmul.f32 0.125, %v4415_v42  ;;  %v4421_v52 = vadd.f32 %v4420_v50, %v4419_v1  ;;  %v4438_v35 = vrot.slane %v4437_v55, 1  ;;  %v4443_v47 = vadd.f32 %v4442_v20, %v4441_v5  ;;  %v4289_v20 = vpop.f32.mrf.mxu1 }
 0x3e0   : > { %v15710_v30 = vpop.eup %13400  ;;  %v4942_v23 = vrot.slane %v4941_v57, 1  ;;  %v4947_v59 = vadd.f32 %v4946_v48, %v4945_v24  ;;  %v4963_v29 = vadd.f32 %v4962_v0, %v4868_v51  ;;  %v4968_v6 = vrot.slane %v4869_v54, 4 }
 0x3e1   : > { %v15713_v9 = vsub.f32 %v15659_v17, %v4744_v43  ;;  %v4745_v36 = vmul.f32 0.125, %v4421_v52  ;;  %v4439_v21 = vadd.f32 %v4438_v35, %v4437_v55  ;;  %v4444_v4 = vrot.slane %v4443_v47, 1  ;;  %v4176_v43 = vpop.f32.mrf.mxu0 }
 0x3e2   : > { %v4943_v14 = vadd.f32 %v4942_v23, %v4941_v57  ;;  %v4948_v15 = vrot.slane %v4947_v59, 1  ;;  %v4964_v46 = vrot.slane %v4963_v29, 2  ;;  %v4969_v53 = vadd.f32 %v4968_v6, %v4869_v54 }
 0x3e3   : > { %18800 = vst [vmem:[#allocation63_spill] sm:$0xff] %v15713_v9  ;;  %v4872_v1 = vmul.f32 %v15713_v9, %v15713_v9  ;;  %v15718_v5 = vsub.f32 %v15664_v44, %v4745_v36  ;;  %v4748_v42 = vmul.f32 0.125, %v4439_v21  ;;  %v4445_v24 = vadd.f32 %v4444_v4, %v4443_v47  ;;  %v4178_v36 = vpop.f32.mrf.mxu0 }
 0x3e4   : > { %v5312_v0 = vmul.f32 0.125, %v4943_v14  ;;  %v4949_v51 = vadd.f32 %v4948_v15, %v4947_v59  ;;  %v4965_v50 = vadd.f32 %v4964_v46, %v4963_v29  ;;  %v4970_v17 = vrot.slane %v4969_v53, 2 }
 0x3e5   : > { %v4986_v55 = vrot.slane %v4872_v1, 4  ;;  %v4873_v57 = vmul.f32 %v15718_v5, %v15718_v5  ;;  %v15723_v48 = vsub.f32 %v15678_v13, %v4748_v42  ;;  %v4749_v54 = vmul.f32 0.125, %v4445_v24  ;;  %v4291_v13 = vpop.f32.mrf.mxu1 }
 0x3e6   : > { %v5376_v52 = vadd.f32 1e-05, %v5312_v0  ;;  %v5313_v35 = vmul.f32 0.125, %v4949_v51  ;;  %v4966_v44 = vrot.slane %v4965_v50, 1  ;;  %v4971_v23 = vadd.f32 %v4970_v17, %v4969_v53 }
 0x3e7   : > { %18801 = vst [vmem:[#allocation46_spill] sm:$0xff] %v15723_v48  ;;  %v4987_v6 = vadd.f32 %v4986_v55, %v4872_v1  ;;  %v4992_v47 = vrot.slane %v4873_v57, 4  ;;  %v4876_v46 = vmul.f32 %v15723_v48, %v15723_v48  ;;  %v15728_v15 = vsub.f32 %v15687_v27, %v4749_v54  ;;  %v12977_v48 = vld [vmem:[#allocation5 + $0x384] ss:$16 sps:$4 sm:$0xff]  }
 0x3e8   : > { %13402 = vrsqrt.f32 %v5376_v52  ;;  %v5377_v14 = vadd.f32 1e-05, %v5313_v35  ;;  %v4967_v59 = vadd.f32 %v4966_v44, %v4965_v50  ;;  %v4972_v29 = vrot.slane %v4971_v23, 1  ;;  %v4180_v35 = vpop.f32.mrf.mxu0  ;;  %v4293_v44 = vpop.f32.mrf.mxu1  ;;  %7466 = vmatprep.subr.bf16.mxu1 %v12977_v48 }
 0x3e9   : > { %v4988_v21 = vrot.slane %v4987_v6, 2  ;;  %v4993_v4 = vadd.f32 %v4992_v47, %v4873_v57  ;;  %v5010_v42 = vrot.slane %v4876_v46, 4  ;;  %v4877_v53 = vmul.f32 %v15728_v15, %v15728_v15 }
 0x3ea   : > { %13404 = vrsqrt.f32 %v5377_v14  ;;  %v5316_v1 = vmul.f32 0.125, %v4967_v59  ;;  %v4973_v24 = vadd.f32 %v4972_v29, %v4971_v23  ;;  %v5638_v0 = vcombine.low %v15421_v25, %v15426_v38  ;;  %v12974_v29 = vld [vmem:[#allocation5 + $0x184] ss:$16 sps:$4 sm:$0xff]  }
 0x3eb   : > { %v4989_v27 = vadd.f32 %v4988_v21, %v4987_v6  ;;  %v4994_v51 = vrot.slane %v4993_v4, 2  ;;  %v5011_v17 = vadd.f32 %v5010_v42, %v4876_v46  ;;  %v5016_v55 = vrot.slane %v4877_v53, 4  ;;  %v12972_v46 = vld [vmem:[#allocation5 + $0x180] ss:$16 sps:$4 sm:$0xff]   ;;  %7353 = vmatprep.subr.bf16.mxu0 %v12974_v29 }
 0x3ec   : > { %v5380_v50 = vadd.f32 1e-05, %v5316_v1  ;;  %v5317_v54 = vmul.f32 0.125, %v4973_v24  ;;  %v15735_v52 = vrot.slane %v5638_v0, %v14117_v18  ;;  %v15737_v57 = vadd.f32 %v4289_v20, %v4176_v43  ;;  %v12975_v20 = vld [vmem:[#allocation5 + $0x380] ss:$16 sps:$4 sm:$0xff]   ;;  %v4182_v0 = vpop.f32.mrf.mxu0  ;;  %7354 = vmatpush2.bf16.msra.mxu0 %v12972_v46 }
 0x3ed   : > { %v4990_v47 = vrot.slane %v4989_v27, 1  ;;  %v4995_v14 = vadd.f32 %v4994_v51, %v4993_v4  ;;  %v5012_v59 = vrot.slane %v5011_v17, 2  ;;  %v5017_v23 = vadd.f32 %v5016_v55, %v4877_v53  ;;  %v4295_v51 = vpop.f32.mrf.mxu1  ;;  %7467 = vmatpush2.bf16.msra.mxu1 %v12975_v20  ;;  %v12981_v20 = vld [vmem:[#allocation5 + $0x360] ss:$16 sps:$4 sm:$0xff]  }
 0x3ee   : > { %13406 = vrsqrt.f32 %v5380_v50  ;;  %v5381_v25 = vadd.f32 1e-05, %v5317_v54  ;;  %v4458_v38 = vrot.slane %v15737_v57, 4  ;;  %v15740_v6 = vadd.f32 %v4291_v13, %v4178_v36 }
 0x3ef   : > { %v4991_v21 = vadd.f32 %v4990_v47, %v4989_v27  ;;  %v4996_v42 = vrot.slane %v4995_v14, 1  ;;  %v5013_v1 = vadd.f32 %v5012_v59, %v5011_v17  ;;  %v5018_v43 = vrot.slane %v5017_v23, 2  ;;  %v12980_v47 = vld [vmem:[#allocation5 + $0x164] ss:$16 sps:$4 sm:$0xff]  }
 0x3f0   : > { %13408 = vrsqrt.f32 %v5381_v25  ;;  %v4459_v4 = vadd.f32 %v4458_v38, %v15737_v57  ;;  %v4464_v53 = vrot.slane %v15740_v6, 4  ;;  %v5662_v24 = vcombine.low %v15463_v12, %v15467_v31  ;;  %v12983_v59 = vld [vmem:[#allocation5 + $0x364] ss:$16 sps:$4 sm:$0xff]   ;;  %v12978_v38 = vld [vmem:[#allocation5 + $0x160] ss:$16 sps:$4 sm:$0xff]   ;;  %7355 = vmatprep.subr.bf16.mxu0 %v12980_v47 }
 0x3f1   : > { %v5320_v36 = vmul.f32 0.125, %v4991_v21  ;;  %v4997_v13 = vadd.f32 %v4996_v42, %v4995_v14  ;;  %v5014_v27 = vrot.slane %v5013_v1, 1  ;;  %v5019_v55 = vadd.f32 %v5018_v43, %v5017_v23  ;;  %v4186_v42 = vpop.f32.mrf.mxu0  ;;  %v4299_v43 = vpop.f32.mrf.mxu1  ;;  %7468 = vmatprep.subr.bf16.mxu1 %v12983_v59  ;;  %7356 = vmatpush2.bf16.msra.mxu0 %v12978_v38 }
 0x3f2   : > { %v4460_v17 = vrot.slane %v4459_v4, 2  ;;  %v4465_v50 = vadd.f32 %v4464_v53, %v15740_v6  ;;  %v15748_v48 = vrot.slane %v5662_v24, %v14117_v18  ;;  %v15750_v54 = vadd.f32 %v4293_v44, %v4180_v35  ;;  %7469 = vmatpush2.bf16.msra.mxu1 %v12981_v20 }
 0x3f3   : > { %v5384_v29 = vadd.f32 1e-05, %v5320_v36  ;;  %v5321_v12 = vmul.f32 0.125, %v4997_v13  ;;  %v5015_v31 = vadd.f32 %v5014_v27, %v5013_v1  ;;  %v5020_v25 = vrot.slane %v5019_v55, 1  ;;  %v4301_v38 = vpop.f32.mrf.mxu1 }
 0x3f4   : > { %v4461_v46 = vadd.f32 %v4460_v17, %v4459_v4  ;;  %v4466_v14 = vrot.slane %v4465_v50, 2  ;;  %v4482_v23 = vrot.slane %v15750_v54, 4  ;;  %v15753_v21 = vadd.f32 %v4295_v51, %v4182_v0  ;;  %v12986_v0 = vld [vmem:[#allocation5 + $0x144] ss:$16 sps:$4 sm:$0xff]  }
 0x3f5   : > { %v13403_v35 = vpop.eup %13402  ;;  %13410 = vrsqrt.f32 %v5384_v29  ;;  %v5385_v44 = vadd.f32 1e-05, %v5321_v12  ;;  %v5324_v53 = vmul.f32 0.125, %v5015_v31  ;;  %v5021_v24 = vadd.f32 %v5020_v25, %v5019_v55  ;;  %v12989_v51 = vld [vmem:[#allocation5 + $0x344] ss:$16 sps:$4 sm:$0xff]   ;;  %7357 = vmatprep.subr.bf16.mxu0 %v12986_v0 }
 0x3f6   : > { %v4462_v1 = vrot.slane %v4461_v46, 1  ;;  %v4467_v36 = vadd.f32 %v4466_v14, %v4465_v50  ;;  %v4483_v4 = vadd.f32 %v4482_v23, %v15750_v54  ;;  %v4488_v13 = vrot.slane %v15753_v21, 4  ;;  %v12984_v29 = vld [vmem:[#allocation5 + $0x140] ss:$16 sps:$4 sm:$0xff]   ;;  %v4188_v50 = vpop.f32.mrf.mxu0  ;;  %7470 = vmatprep.subr.bf16.mxu1 %v12989_v51 }
 0x3f7   : > { %v13405_v27 = vpop.eup %13404  ;;  %13412 = vrsqrt.f32 %v5385_v44  ;;  %v5388_v17 = vadd.f32 1e-05, %v5324_v53  ;;  %v5325_v47 = vmul.f32 0.125, %v5021_v24  ;;  %v5686_v59 = vcombine.low %v15472_v19, %v15481_v11  ;;  %v12987_v14 = vld [vmem:[#allocation5 + $0x340] ss:$16 sps:$4 sm:$0xff]   ;;  %7358 = vmatpush2.bf16.msra.mxu0 %v12984_v29 }
 0x3f8   : > { %v5567_v12 = vcombine.low %v13403_v35, %v13405_v27  ;;  %v4463_v55 = vadd.f32 %v4462_v1, %v4461_v46  ;;  %v4468_v31 = vrot.slane %v4467_v36, 1  ;;  %v4484_v25 = vrot.slane %v4483_v4, 2  ;;  %7471 = vmatpush2.bf16.msra.mxu1 %v12987_v14  ;;  %v12992_v53 = vld [vmem:[#allocation5 + $0x124] ss:$16 sps:$4 sm:$0xff]  }
 0x3f9   : > { %13414 = vrsqrt.f32 %v5388_v17  ;;  %v5389_v23 = vadd.f32 1e-05, %v5325_v47  ;;  %v4489_v20 = vadd.f32 %v4488_v13, %v15753_v21  ;;  %v15761_v44 = vrot.slane %v5686_v59, %v14117_v18  ;;  %v12995_v24 = vld [vmem:[#allocation5 + $0x324] ss:$16 sps:$4 sm:$0xff]   ;;  %v12990_v13 = vld [vmem:[#allocation5 + $0x120] ss:$16 sps:$4 sm:$0xff]   ;;  %7359 = vmatprep.subr.bf16.mxu0 %v12992_v53 }
 0x3fa   : > { %v5581_v19 = vrot.slane %v5567_v12, %v14117_v18  ;;  %v4752_v11 = vmul.f32 0.125, %v4463_v55  ;;  %v4469_v35 = vadd.f32 %v4468_v31, %v4467_v36  ;;  %v4485_v46 = vadd.f32 %v4484_v25, %v4483_v4  ;;  %v12993_v17 = vld [vmem:[#allocation5 + $0x320] ss:$16 sps:$4 sm:$0xff]   ;;  %7472 = vmatprep.subr.bf16.mxu1 %v12995_v24  ;;  %v13001_v14 = vld [vmem:[#allocation5 + $0x304] ss:$16 sps:$4 sm:$0xff]  }
 0x3fb   : > { %v13407_v1 = vpop.eup %13406  ;;  %13416 = vrsqrt.f32 %v5389_v23  ;;  %v4490_v0 = vrot.slane %v4489_v20, 2  ;;  %v15764_v51 = vadd.f32 %v4299_v43, %v4186_v42  ;;  %v15766_v27 = vadd.f32 %v4301_v38, %v4188_v50  ;;  %v15775_v12 = vld [vmem:[%s18466_s5] sm:$0xf]  ;;  %7360 = vmatpush2.bf16.msra.mxu0 %v12990_v13  ;;  %v12998_v38 = vld [vmem:[#allocation5 + $0x104] ss:$16 sps:$4 sm:$0xff]  }
 0x3fc   : > { %v5582_v47 = vcombine.low %v15640_v32, %v5581_v19  ;;  %v15770_v59 = vsub.f32 %v15737_v57, %v4752_v11  ;;  %v4753_v29 = vmul.f32 0.125, %v4469_v35  ;;  %v4486_v36 = vrot.slane %v4485_v46, 1  ;;  %7473 = vmatpush2.bf16.msra.mxu1 %v12993_v17  ;;  %v12996_v35 = vld [vmem:[#allocation5 + $0x100] ss:$16 sps:$4 sm:$0xff]   ;;  %7361 = vmatprep.subr.bf16.mxu0 %v12998_v38 }
 0x3fd   : > { %v13409_v4 = vpop.eup %13408  ;;  %v4491_v42 = vadd.f32 %v4490_v0, %v4489_v20  ;;  %v4506_v43 = vrot.slane %v15764_v51, 4  ;;  %v4512_v55 = vrot.slane %v15766_v27, 4  ;;  %v12999_v53 = vld [vmem:[#allocation5 + $0x300] ss:$16 sps:$4 sm:$0xff]   ;;  %7474 = vmatprep.subr.bf16.mxu1 %v13001_v14 }
 0x3fe   : > { %18802 = vst [vmem:[#allocation53_spill] sm:$0xff] %v15770_v59  ;;  %v5589_v57 = vrot.slane %v5582_v47, %v14117_v18  ;;  %v5591_v31 = vcombine.low %v13407_v1, %v13409_v4  ;;  %v4880_v25 = vmul.f32 %v15770_v59, %v15770_v59  ;;  %v15785_v50 = vsub.f32 %v15740_v6, %v4753_v29 }
 0x3ff   : > { %v4487_v23 = vadd.f32 %v4486_v36, %v4485_v46  ;;  %v4492_v20 = vrot.slane %v4491_v42, 1  ;;  %v4507_v19 = vadd.f32 %v4506_v43, %v15764_v51  ;;  %v4513_v11 = vadd.f32 %v4512_v55, %v15766_v27  ;;  %7362 = vmatpush2.bf16.msra.mxu0 %v12996_v35 }
 0x400   : > { %v15790_v24 = vmul.f32 %v5589_v57, %v15775_v12  ;;  %v5605_v1 = vrot.slane %v5591_v31, %v14117_v18  ;;  %v5034_v0 = vrot.slane %v4880_v25, 4  ;;  %v4881_v6 = vmul.f32 %v15785_v50, %v15785_v50  ;;  %7475 = vmatpush2.bf16.msra.mxu1 %v12999_v53 }
 0x401   : > { %v4756_v13 = vmul.f32 0.125, %v4487_v23  ;;  %v4493_v46 = vadd.f32 %v4492_v20, %v4491_v42  ;;  %v4508_v17 = vrot.slane %v4507_v19, 2  ;;  %v4514_v47 = vrot.slane %v4513_v11, 2 }
 0x402   : > { %18803 = vst [vmem:[#allocation57_spill] sm:$0xff] %v15790_v24  ;;  %v13411_v29 = vpop.eup %13410  ;;  %v6013_v36 = vrot.slane %v15790_v24, %v14201_v26  ;;  %v5606_v4 = vcombine.low %v15657_v8, %v5605_v1  ;;  %v5035_v43 = vadd.f32 %v5034_v0, %v4880_v25  ;;  %v5040_v55 = vrot.slane %v4881_v6, 4  ;;  %v15813_v0 = vpop.f32.mrf.mxu0  ;;  %v13007_v24 = vld [vmem:[#allocation5 + $0x2ec] ss:$16 sps:$4 sm:$0xff]  }
 0x403   : > { %v15799_v57 = vsub.f32 %v15750_v54, %v4756_v13  ;;  %v4757_v31 = vmul.f32 0.125, %v4493_v46  ;;  %v4509_v38 = vadd.f32 %v4508_v17, %v4507_v19  ;;  %v4515_v14 = vadd.f32 %v4514_v47, %v4513_v11  ;;  %v15815_v13 = vpop.f32.mrf.mxu1  ;;  %7670 = vmatprep.subr.bf16.mxu1 %v13007_v24 }
 0x404   : > { %v13413_v23 = vpop.eup %13412  ;;  %v15802_v42 = vmul.f32 %v6013_v36, %v15683_v39  ;;  %v5613_v20 = vrot.slane %v5606_v4, %v14117_v18  ;;  %v5036_v35 = vrot.slane %v5035_v43, 2  ;;  %v5041_v32 = vadd.f32 %v5040_v55, %v4881_v6 }
 0x405   : > { %18804 = vst [vmem:[#allocation50_spill] sm:$0xff] %v15799_v57  ;;  %v5615_v59 = vcombine.low %v13411_v29, %v13413_v23  ;;  %v4884_v8 = vmul.f32 %v15799_v57, %v15799_v57  ;;  %v15808_v25 = vsub.f32 %v15753_v21, %v4757_v31  ;;  %v4510_v54 = vrot.slane %v4509_v38, 1 }
 0x406   : > { %18805 = vst [vmem:[#allocation54_spill] sm:$0xff] %v15802_v42  ;;  %v13415_v53 = vpop.eup %13414  ;;  %v15811_v19 = vmul.f32 %v5613_v20, %v15775_v12  ;;  %v5037_v11 = vadd.f32 %v5036_v35, %v5035_v43  ;;  %v5042_v1 = vrot.slane %v5041_v32, 2  ;;  %v4516_v39 = vrot.slane %v4515_v14, 1  ;;  %v4192_v42 = vpop.f32.mrf.mxu0 }
 0x407   : > { %v5629_v6 = vrot.slane %v5615_v59, %v14117_v18  ;;  %v5058_v46 = vrot.slane %v4884_v8, 4  ;;  %v4885_v17 = vmul.f32 %v15808_v25, %v15808_v25  ;;  %v4511_v21 = vadd.f32 %v4510_v54, %v4509_v38  ;;  %v4305_v38 = vpop.f32.mrf.mxu1  ;;  %v13004_v54 = vld [vmem:[#allocation5 + $0xec] ss:$16 sps:$4 sm:$0xff]  }
 0x408   : > { %18806 = vst [vmem:[#allocation52_spill] sm:$0xff] %v15811_v19  ;;  %v13417_v47 = vpop.eup %13416  ;;  %v6029_v29 = vrot.slane %v15811_v19, %v14201_v26  ;;  %v5038_v36 = vrot.slane %v5037_v11, 1  ;;  %v5043_v4 = vadd.f32 %v5042_v1, %v5041_v32  ;;  %v4517_v43 = vadd.f32 %v4516_v39, %v4515_v14  ;;  %7557 = vmatprep.subr.bf16.mxu0 %v13004_v54 }
 0x409   : > { %v5630_v55 = vcombine.low %v15676_v28, %v5629_v6  ;;  %v5639_v31 = vcombine.low %v13415_v53, %v13417_v47  ;;  %v5059_v23 = vadd.f32 %v5058_v46, %v4884_v8  ;;  %v5064_v20 = vrot.slane %v4885_v17, 4 }
 0x40a   : > { %v15824_v35 = vmul.f32 %v6029_v29, %v15704_v41  ;;  %v5039_v59 = vadd.f32 %v5038_v36, %v5037_v11  ;;  %v5044_v57 = vrot.slane %v5043_v4, 1  ;;  %v4760_v9 = vmul.f32 0.125, %v4511_v21 }
 0x40b   : > { %v5637_v19 = vrot.slane %v5630_v55, %v14117_v18  ;;  %v5653_v32 = vrot.slane %v5639_v31, %v14117_v18  ;;  %v5060_v14 = vrot.slane %v5059_v23, 2  ;;  %v5065_v1 = vadd.f32 %v5064_v20, %v4885_v17 }
 0x40c   : > { %v5328_v28 = vmul.f32 0.125, %v5039_v59  ;;  %v5045_v53 = vadd.f32 %v5044_v57, %v5043_v4  ;;  %v15829_v8 = vsub.f32 %v15764_v51, %v4760_v9  ;;  %v4761_v41 = vmul.f32 0.125, %v4517_v43  ;;  %v4196_v9 = vpop.f32.mrf.mxu0  ;;  %v4309_v51 = vpop.f32.mrf.mxu1 }
 0x40d   : > { %v15832_v11 = vmul.f32 %v5637_v19, %v15775_v12  ;;  %v5654_v39 = vcombine.low %v15735_v52, %v5653_v32  ;;  %v5061_v6 = vadd.f32 %v5060_v14, %v5059_v23  ;;  %v5066_v46 = vrot.slane %v5065_v1, 2 }
 0x40e   : > { %v5392_v21 = vadd.f32 1e-05, %v5328_v28  ;;  %v5329_v47 = vmul.f32 0.125, %v5045_v53  ;;  %v4888_v17 = vmul.f32 %v15829_v8, %v15829_v8  ;;  %v15838_v57 = vsub.f32 %v15766_v27, %v4761_v41  ;;  %v4198_v14 = vpop.f32.mrf.mxu0 }
 0x40f   : > { %v6045_v24 = vrot.slane %v15832_v11, %v14201_v26  ;;  %v5661_v19 = vrot.slane %v5654_v39, %v14117_v18  ;;  %v5062_v29 = vrot.slane %v5061_v6, 1  ;;  %v5067_v36 = vadd.f32 %v5066_v46, %v5065_v1  ;;  %v4311_v1 = vpop.f32.mrf.mxu1 }
 0x410   : > { %13418 = vrsqrt.f32 %v5392_v21  ;;  %v5393_v52 = vadd.f32 1e-05, %v5329_v47  ;;  %v5082_v4 = vrot.slane %v4888_v17, 4  ;;  %v4889_v43 = vmul.f32 %v15838_v57, %v15838_v57 }
 0x411   : > { %v15846_v55 = vmul.f32 %v6045_v24, %v15718_v5  ;;  %v15849_v27 = vmul.f32 %v5661_v19, %v15775_v12  ;;  %v5063_v31 = vadd.f32 %v5062_v29, %v5061_v6  ;;  %v5068_v23 = vrot.slane %v5067_v36, 1 }
 0x412   : > { %13420 = vrsqrt.f32 %v5393_v52  ;;  %v5083_v20 = vadd.f32 %v5082_v4, %v4888_v17  ;;  %v5088_v59 = vrot.slane %v4889_v43, 4  ;;  %v18807_v54 = vcombine.low %v15500_v62, %v15507_v22 }
 0x413   : > { %v6061_v5 = vrot.slane %v15849_v27, %v14201_v26  ;;  %v5332_v28 = vmul.f32 0.125, %v5063_v31  ;;  %v5069_v53 = vadd.f32 %v5068_v23, %v5067_v36  ;;  %v15861_v41 = vadd.f32 %v15815_v13, %v15813_v0  ;;  %v4200_v13 = vpop.f32.mrf.mxu0 }
 0x414   : > { %v15855_v32 = vrot.slane %v18807_v54, %v14117_v18  ;;  %v5084_v39 = vrot.slane %v5083_v20, 2  ;;  %v5089_v6 = vadd.f32 %v5088_v59, %v4889_v43  ;;  %v15863_v46 = vadd.f32 %v4305_v38, %v4192_v42  ;;  %v4313_v42 = vpop.f32.mrf.mxu1 }
 0x415   : > { %v5734_v62 = vcombine.low %v15515_v63, %v15520_v10  ;;  %v15868_v22 = vmul.f32 %v6061_v5, %v15728_v15  ;;  %v5396_v21 = vadd.f32 1e-05, %v5332_v28  ;;  %v5333_v47 = vmul.f32 0.125, %v5069_v53 }
 0x416   : > { %v4530_v17 = vrot.slane %v15861_v41, 4  ;;  %v5085_v24 = vadd.f32 %v5084_v39, %v5083_v20  ;;  %v5090_v19 = vrot.slane %v5089_v6, 2  ;;  %v4536_v29 = vrot.slane %v15863_v46, 4 }
 0x417   : > { %v15873_v0 = vrot.slane %v5734_v62, %v14117_v18  ;;  %13422 = vrsqrt.f32 %v5396_v21  ;;  %v5397_v38 = vadd.f32 1e-05, %v5333_v47  ;;  %v15876_v63 = vadd.f32 %v4309_v51, %v4196_v9  ;;  %v4202_v9 = vpop.f32.mrf.mxu0  ;;  %v4315_v51 = vpop.f32.mrf.mxu1 }
 0x418   : > { %v4531_v10 = vadd.f32 %v4530_v17, %v15861_v41  ;;  %v5086_v15 = vrot.slane %v5085_v24, 1  ;;  %v5091_v36 = vadd.f32 %v5090_v19, %v5089_v6  ;;  %v4537_v52 = vadd.f32 %v4536_v29, %v15863_v46 }
 0x419   : > { %v15879_v4 = vadd.f32 %v4311_v1, %v4198_v14  ;;  %13424 = vrsqrt.f32 %v5397_v38  ;;  %v4554_v31 = vrot.slane %v15876_v63, 4  ;;  %v5758_v23 = vcombine.low %v15557_v34, %v15561_v37 }
 0x41a   : > { %v4532_v43 = vrot.slane %v4531_v10, 2  ;;  %v5087_v20 = vadd.f32 %v5086_v15, %v5085_v24  ;;  %v5092_v59 = vrot.slane %v5091_v36, 1  ;;  %v4538_v54 = vrot.slane %v4537_v52, 2 }
 0x41b   : > { %v4560_v5 = vrot.slane %v15879_v4, 4  ;;  %v4555_v53 = vadd.f32 %v4554_v31, %v15876_v63  ;;  %v15887_v14 = vrot.slane %v5758_v23, %v14117_v18  ;;  %v15889_v1 = vadd.f32 %v4313_v42, %v4200_v13 }
 0x41c   : > { %v4533_v28 = vadd.f32 %v4532_v43, %v4531_v10  ;;  %v5336_v39 = vmul.f32 0.125, %v5087_v20  ;;  %v5093_v6 = vadd.f32 %v5092_v59, %v5091_v36  ;;  %v4539_v62 = vadd.f32 %v4538_v54, %v4537_v52 }
 0x41d   : > { %v4561_v34 = vadd.f32 %v4560_v5, %v15879_v4  ;;  %v13419_v37 = vpop.eup %13418  ;;  %v4556_v47 = vrot.slane %v4555_v53, 2  ;;  %v4578_v17 = vrot.slane %v15889_v1, 4  ;;  %v15893_v24 = vadd.f32 %v4315_v51, %v4202_v9 }
 0x41e   : > { %v4534_v21 = vrot.slane %v4533_v28, 1  ;;  %v5400_v19 = vadd.f32 1e-05, %v5336_v39  ;;  %v5337_v29 = vmul.f32 0.125, %v5093_v6  ;;  %v4540_v38 = vrot.slane %v4539_v62, 1 }
 0x41f   : > { %v4562_v10 = vrot.slane %v4561_v34, 2  ;;  %v13421_v15 = vpop.eup %13420  ;;  %v4557_v13 = vadd.f32 %v4556_v47, %v4555_v53  ;;  %v4579_v42 = vadd.f32 %v4578_v17, %v15889_v1  ;;  %v4584_v36 = vrot.slane %v15893_v24, 4 }
 0x420   : > { %v4535_v43 = vadd.f32 %v4534_v21, %v4533_v28  ;;  %v5663_v52 = vcombine.low %v13419_v37, %v13421_v15  ;;  %13426 = vrsqrt.f32 %v5400_v19  ;;  %v5401_v31 = vadd.f32 1e-05, %v5337_v29 }
 0x421   : > { %v4541_v23 = vadd.f32 %v4540_v38, %v4539_v62  ;;  %v4558_v59 = vrot.slane %v4557_v13, 1  ;;  %v4563_v54 = vadd.f32 %v4562_v10, %v4561_v34  ;;  %v4580_v5 = vrot.slane %v4579_v42, 2 }
 0x422   : > { %v4764_v20 = vmul.f32 0.125, %v4535_v43  ;;  %v5677_v9 = vrot.slane %v5663_v52, %v14117_v18  ;;  %13428 = vrsqrt.f32 %v5401_v31  ;;  %v4585_v39 = vadd.f32 %v4584_v36, %v15893_v24 }
 0x423   : > { %v4765_v51 = vmul.f32 0.125, %v4541_v23  ;;  %v4559_v53 = vadd.f32 %v4558_v59, %v4557_v13  ;;  %v4564_v6 = vrot.slane %v4563_v54, 1  ;;  %v4581_v21 = vadd.f32 %v4580_v5, %v4579_v42 }
 0x424   : > { %v15900_v28 = vsub.f32 %v15861_v41, %v4764_v20  ;;  %v13423_v37 = vpop.eup %13422  ;;  %v5678_v47 = vcombine.low %v15748_v48, %v5677_v9  ;;  %v4586_v34 = vrot.slane %v4585_v39, 2  ;;  %v5782_v17 = vcombine.low %v15566_v7, %v15575_v3  ;;  %v4206_v9 = vpop.f32.mrf.mxu0 }
 0x425   : > { %v15904_v62 = vsub.f32 %v15863_v46, %v4765_v51  ;;  %v4768_v29 = vmul.f32 0.125, %v4559_v53  ;;  %v4565_v38 = vadd.f32 %v4564_v6, %v4563_v54  ;;  %v4582_v41 = vrot.slane %v4581_v21, 1  ;;  %v4319_v51 = vpop.f32.mrf.mxu1 }
 0x426   : > { %18808 = vst [vmem:[#allocation56_spill] sm:$0xff] %v15900_v28  ;;  %v4892_v19 = vmul.f32 %v15900_v28, %v15900_v28  ;;  %v13425_v10 = vpop.eup %13424  ;;  %v5685_v15 = vrot.slane %v5678_v47, %v14117_v18  ;;  %v4587_v48 = vadd.f32 %v4586_v34, %v4585_v39  ;;  %v15914_v46 = vrot.slane %v5782_v17, %v14117_v18 }
 0x427   : > { %v4893_v43 = vmul.f32 %v15904_v62, %v15904_v62  ;;  %v5687_v13 = vcombine.low %v13423_v37, %v13425_v10  ;;  %v15917_v7 = vsub.f32 %v15876_v63, %v4768_v29  ;;  %v4769_v3 = vmul.f32 0.125, %v4565_v38 }
 0x428   : > { %v5106_v42 = vrot.slane %v4892_v19, 4  ;;  %v15920_v36 = vmul.f32 %v5685_v15, %v15775_v12  ;;  %v4583_v31 = vadd.f32 %v4582_v41, %v4581_v21  ;;  %v4588_v23 = vrot.slane %v4587_v48, 1 }
 0x429   : > { %18809 = vst [vmem:[#allocation61_spill] sm:$0xff] %v15917_v7  ;;  %v5112_v52 = vrot.slane %v4893_v43, 4  ;;  %v5701_v20 = vrot.slane %v5687_v13, %v14117_v18  ;;  %v4896_v54 = vmul.f32 %v15917_v7, %v15917_v7  ;;  %v15926_v5 = vsub.f32 %v15879_v4, %v4769_v3 }
 0x42a   : > { %v5107_v59 = vadd.f32 %v5106_v42, %v4892_v19  ;;  %v6077_v63 = vrot.slane %v15920_v36, %v14201_v26  ;;  %v4772_v53 = vmul.f32 0.125, %v4583_v31  ;;  %v4589_v6 = vadd.f32 %v4588_v23, %v4587_v48  ;;  %v4321_v48 = vpop.f32.mrf.mxu1 }
 0x42b   : > { %v5113_v39 = vadd.f32 %v5112_v52, %v4893_v43  ;;  %v5702_v21 = vcombine.low %v15761_v44, %v5701_v20  ;;  %v5130_v47 = vrot.slane %v4896_v54, 4  ;;  %v4897_v34 = vmul.f32 %v15926_v5, %v15926_v5  ;;  %v4208_v44 = vpop.f32.mrf.mxu0 }
 0x42c   : > { %v5108_v37 = vrot.slane %v5107_v59, 2  ;;  %v15934_v17 = vmul.f32 %v6077_v63, %v15785_v50  ;;  %v15937_v19 = vsub.f32 %v15889_v1, %v4772_v53  ;;  %v4773_v29 = vmul.f32 0.125, %v4589_v6 }
 0x42d   : > { %v5114_v4 = vrot.slane %v5113_v39, 2  ;;  %v13427_v38 = vpop.eup %13426  ;;  %v5709_v41 = vrot.slane %v5702_v21, %v14117_v18  ;;  %v5131_v15 = vadd.f32 %v5130_v47, %v4896_v54  ;;  %v5136_v43 = vrot.slane %v4897_v34, 4  ;;  %v4323_v21 = vpop.f32.mrf.mxu1 }
 0x42e   : > { %18810 = vst [vmem:[#allocation59_spill] sm:$0xff] %v15937_v19  ;;  %v5109_v10 = vadd.f32 %v5108_v37, %v5107_v59  ;;  %v4900_v42 = vmul.f32 %v15937_v19, %v15937_v19  ;;  %v15943_v50 = vsub.f32 %v15893_v24, %v4773_v29  ;;  %v15945_v3 = vadd.f32 %v4319_v51, %v4206_v9  ;;  %v4210_v51 = vpop.f32.mrf.mxu0 }
 0x42f   : > { %v5115_v13 = vadd.f32 %v5114_v4, %v5113_v39  ;;  %v13429_v1 = vpop.eup %13428  ;;  %v15948_v52 = vmul.f32 %v5709_v41, %v15775_v12  ;;  %v5132_v23 = vrot.slane %v5131_v15, 2  ;;  %v5137_v20 = vadd.f32 %v5136_v43, %v4897_v34 }
 0x430   : > { %v5110_v31 = vrot.slane %v5109_v10, 1  ;;  %v5711_v59 = vcombine.low %v13427_v38, %v13429_v1  ;;  %v5154_v63 = vrot.slane %v4900_v42, 4  ;;  %v4901_v39 = vmul.f32 %v15943_v50, %v15943_v50 }
 0x431   : > { %v5116_v54 = vrot.slane %v5115_v13, 1  ;;  %v6093_v53 = vrot.slane %v15948_v52, %v14201_v26  ;;  %v5133_v6 = vadd.f32 %v5132_v23, %v5131_v15  ;;  %v5138_v9 = vrot.slane %v5137_v20, 2 }
 0x432   : > { %v5111_v24 = vadd.f32 %v5110_v31, %v5109_v10  ;;  %v5725_v37 = vrot.slane %v5711_v59, %v14117_v18  ;;  %v5155_v4 = vadd.f32 %v5154_v63, %v4900_v42  ;;  %v5160_v29 = vrot.slane %v4901_v39, 4  ;;  %v4212_v59 = vpop.f32.mrf.mxu0 }
 0x433   : > { %v5117_v47 = vadd.f32 %v5116_v54, %v5115_v13  ;;  %v15956_v34 = vmul.f32 %v6093_v53, %v15808_v25  ;;  %v5134_v41 = vrot.slane %v5133_v6, 1  ;;  %v5139_v43 = vadd.f32 %v5138_v9, %v5137_v20  ;;  %v4325_v13 = vpop.f32.mrf.mxu1 }
 0x434   : > { %v5340_v38 = vmul.f32 0.125, %v5111_v24  ;;  %v5726_v1 = vcombine.low %v15855_v32, %v5725_v37  ;;  %v5156_v7 = vrot.slane %v5155_v4, 2  ;;  %v5161_v10 = vadd.f32 %v5160_v29, %v4901_v39 }
 0x435   : > { %v5341_v19 = vmul.f32 0.125, %v5117_v47  ;;  %v5135_v31 = vadd.f32 %v5134_v41, %v5133_v6  ;;  %v5140_v23 = vrot.slane %v5139_v43, 1  ;;  %v4602_v28 = vrot.slane %v15945_v3, 4 }
 0x436   : > { %v5404_v15 = vadd.f32 1e-05, %v5340_v38  ;;  %v5733_v42 = vrot.slane %v5726_v1, %v14117_v18  ;;  %v5157_v25 = vadd.f32 %v5156_v7, %v5155_v4  ;;  %v5162_v63 = vrot.slane %v5161_v10, 2  ;;  %v4216_v38 = vpop.f32.mrf.mxu0 }
 0x437   : > { %v5405_v54 = vadd.f32 1e-05, %v5341_v19  ;;  %v5344_v53 = vmul.f32 0.125, %v5135_v31  ;;  %v5141_v20 = vadd.f32 %v5140_v23, %v5139_v43  ;;  %v4603_v32 = vadd.f32 %v4602_v28, %v15945_v3  ;;  %v4329_v19 = vpop.f32.mrf.mxu1 }
 0x438   : > { %13430 = vrsqrt.f32 %v5404_v15  ;;  %v15963_v24 = vmul.f32 %v5733_v42, %v15775_v12  ;;  %v5158_v39 = vrot.slane %v5157_v25, 1  ;;  %v5163_v6 = vadd.f32 %v5162_v63, %v5161_v10 }
 0x439   : > { %13432 = vrsqrt.f32 %v5405_v54  ;;  %v5408_v9 = vadd.f32 1e-05, %v5344_v53  ;;  %v5345_v37 = vmul.f32 0.125, %v5141_v20  ;;  %v4604_v47 = vrot.slane %v4603_v32, 2 }
 0x43a   : > { %v15965_v29 = vadd.f32 %v4321_v48, %v4208_v44  ;;  %v6109_v7 = vrot.slane %v15963_v24, %v14201_v26  ;;  %v5159_v4 = vadd.f32 %v5158_v39, %v5157_v25  ;;  %v5164_v41 = vrot.slane %v5163_v6, 1 }
 0x43b   : > { %v5806_v28 = vcombine.low %v15594_v45, %v15601_v49  ;;  %13434 = vrsqrt.f32 %v5408_v9  ;;  %v5409_v43 = vadd.f32 1e-05, %v5345_v37  ;;  %v4605_v1 = vadd.f32 %v4604_v47, %v4603_v32  ;;  %v4218_v45 = vpop.f32.mrf.mxu0  ;;  %v4331_v49 = vpop.f32.mrf.mxu1 }
 0x43c   : > { %v4608_v10 = vrot.slane %v15965_v29, 4  ;;  %v15973_v15 = vmul.f32 %v6109_v7, %v15838_v57  ;;  %v5348_v44 = vmul.f32 0.125, %v5159_v4  ;;  %v5165_v48 = vadd.f32 %v5164_v41, %v5163_v6 }
 0x43d   : > { %v15976_v31 = vrot.slane %v5806_v28, %v14117_v18  ;;  %13436 = vrsqrt.f32 %v5409_v43  ;;  %v4606_v23 = vrot.slane %v4605_v1, 1  ;;  %v15979_v54 = vadd.f32 %v4323_v21, %v4210_v51 }
 0x43e   : > { %v4609_v42 = vadd.f32 %v4608_v10, %v15965_v29  ;;  %v5412_v25 = vadd.f32 1e-05, %v5348_v44  ;;  %v5349_v63 = vmul.f32 0.125, %v5165_v48  ;;  %v15981_v53 = vadd.f32 %v4325_v13, %v4212_v59 }
 0x43f   : > { %v5830_v57 = vcombine.low %v15605_v61, %v15610_v2  ;;  %v4607_v20 = vadd.f32 %v4606_v23, %v4605_v1  ;;  %v4626_v39 = vrot.slane %v15979_v54, 4  ;;  %v15986_v6 = vadd.f32 %v4329_v19, %v4216_v38  ;;  %v4220_v61 = vpop.f32.mrf.mxu0  ;;  %v4333_v2 = vpop.f32.mrf.mxu1 }
 0x440   : > { %v4610_v32 = vrot.slane %v4609_v42, 2  ;;  %13438 = vrsqrt.f32 %v5412_v25  ;;  %v5413_v9 = vadd.f32 1e-05, %v5349_v63  ;;  %v4632_v51 = vrot.slane %v15981_v53, 4 }
 0x441   : > { %v15990_v21 = vrot.slane %v5830_v57, %v14117_v18  ;;  %v4776_v37 = vmul.f32 0.125, %v4607_v20  ;;  %v4627_v59 = vadd.f32 %v4626_v39, %v15979_v54  ;;  %v4650_v13 = vrot.slane %v15986_v6, 4 }
 0x442   : > { %v4611_v47 = vadd.f32 %v4610_v32, %v4609_v42  ;;  %13440 = vrsqrt.f32 %v5413_v9  ;;  %v4633_v7 = vadd.f32 %v4632_v51, %v15981_v53  ;;  %v15995_v38 = vadd.f32 %v4331_v49, %v4218_v45 }
 0x443   : > { %v5854_v19 = vcombine.low %v15649_v58, %v15654_v33  ;;  %v16000_v4 = vsub.f32 %v15945_v3, %v4776_v37  ;;  %v4628_v28 = vrot.slane %v4627_v59, 2  ;;  %v4651_v43 = vadd.f32 %v4650_v13, %v15986_v6 }
 0x444   : > { %v4612_v41 = vrot.slane %v4611_v47, 1  ;;  %v4634_v10 = vrot.slane %v4633_v7, 2  ;;  %v4656_v44 = vrot.slane %v15995_v38, 4  ;;  %v16007_v23 = vadd.f32 %v4333_v2, %v4220_v61 }
 0x445   : > { %18811 = vst [vmem:[#allocation62_spill] sm:$0xff] %v16000_v4  ;;  %v13431_v1 = vpop.eup %13430  ;;  %v16005_v48 = vrot.slane %v5854_v19, %v14117_v18  ;;  %v4904_v58 = vmul.f32 %v16000_v4, %v16000_v4  ;;  %v4629_v3 = vadd.f32 %v4628_v28, %v4627_v59  ;;  %v4652_v45 = vrot.slane %v4651_v43, 2 }
 0x446   : > { %v13433_v42 = vpop.eup %13432  ;;  %v4613_v33 = vadd.f32 %v4612_v41, %v4611_v47  ;;  %v4635_v25 = vadd.f32 %v4634_v10, %v4633_v7  ;;  %v4657_v63 = vadd.f32 %v4656_v44, %v15995_v38  ;;  %v4674_v57 = vrot.slane %v16007_v23, 4 }
 0x447   : > { %v5735_v49 = vcombine.low %v13431_v1, %v13433_v42  ;;  %v5178_v20 = vrot.slane %v4904_v58, 4  ;;  %v4630_v39 = vrot.slane %v4629_v3, 1  ;;  %v4653_v9 = vadd.f32 %v4652_v45, %v4651_v43 }
 0x448   : > { %v4777_v32 = vmul.f32 0.125, %v4613_v33  ;;  %v13435_v51 = vpop.eup %13434  ;;  %v4636_v13 = vrot.slane %v4635_v25, 1  ;;  %v4658_v61 = vrot.slane %v4657_v63, 2  ;;  %v16015_v2 = vadd.f32 %v4674_v57, %v16007_v23 }
 0x449   : > { %v5749_v37 = vrot.slane %v5735_v49, %v14117_v18  ;;  %v5179_v47 = vadd.f32 %v5178_v20, %v4904_v58  ;;  %v4631_v7 = vadd.f32 %v4630_v39, %v4629_v3  ;;  %v4654_v19 = vrot.slane %v4653_v9, 1 }
 0x44a   : > { %v16018_v59 = vsub.f32 %v15965_v29, %v4777_v32  ;;  %v13437_v41 = vpop.eup %13436  ;;  %v4637_v1 = vadd.f32 %v4636_v13, %v4635_v25  ;;  %v4659_v10 = vadd.f32 %v4658_v61, %v4657_v63  ;;  %v4676_v43 = vrot.slane %v16015_v2, 2 }
 0x44b   : > { %v5750_v28 = vcombine.low %v15873_v0, %v5749_v37  ;;  %v5759_v44 = vcombine.low %v13435_v51, %v13437_v41  ;;  %v5180_v42 = vrot.slane %v5179_v47, 2  ;;  %v4780_v45 = vmul.f32 0.125, %v4631_v7 }
 0x44c   : > { %v4905_v33 = vmul.f32 %v16018_v59, %v16018_v59  ;;  %v4781_v49 = vmul.f32 0.125, %v4637_v1  ;;  %v4655_v29 = vadd.f32 %v4654_v19, %v4653_v9  ;;  %v4660_v57 = vrot.slane %v4659_v10, 1 }
 0x44d   : > { %v5757_v58 = vrot.slane %v5750_v28, %v14117_v18  ;;  %v13439_v3 = vpop.eup %13438  ;;  %v5773_v20 = vrot.slane %v5759_v44, %v14117_v18  ;;  %v5181_v32 = vadd.f32 %v5180_v42, %v5179_v47  ;;  %v16027_v25 = vsub.f32 %v15979_v54, %v4780_v45 }
 0x44e   : > { %v5184_v0 = vrot.slane %v4905_v33, 4  ;;  %v16033_v39 = vsub.f32 %v15981_v53, %v4781_v49  ;;  %v4784_v51 = vmul.f32 0.125, %v4655_v29  ;;  %v4661_v37 = vadd.f32 %v4660_v57, %v4659_v10  ;;  %v4222_v57 = vpop.f32.mrf.mxu0 }
 0x44f   : > { %18812 = vst [vmem:[#allocation60_spill] sm:$0xff] %v16027_v25  ;;  %v16030_v63 = vmul.f32 %v5757_v58, %v15775_v12  ;;  %v13441_v13 = vpop.eup %13440  ;;  %v5774_v9 = vcombine.low %v15887_v14, %v5773_v20  ;;  %v5182_v61 = vrot.slane %v5181_v32, 1  ;;  %v4908_v47 = vmul.f32 %v16027_v25, %v16027_v25 }
 0x450   : > { %v5185_v7 = vadd.f32 %v5184_v0, %v4905_v33  ;;  %v5783_v19 = vcombine.low %v13439_v3, %v13441_v13  ;;  %v4909_v41 = vmul.f32 %v16033_v39, %v16033_v39  ;;  %v16043_v53 = vsub.f32 %v15986_v6, %v4784_v51  ;;  %v4335_v3 = vpop.f32.mrf.mxu1 }
 0x451   : > { %v6125_v54 = vrot.slane %v16030_v63, %v14201_v26  ;;  %v5781_v28 = vrot.slane %v5774_v9, %v14117_v18  ;;  %v5183_v1 = vadd.f32 %v5182_v61, %v5181_v32  ;;  %v5202_v14 = vrot.slane %v4908_v47, 4 }
 0x452   : > { %18813 = vst [vmem:[#allocation65_spill] sm:$0xff] %v16043_v53  ;;  %v5186_v10 = vrot.slane %v5185_v7, 2  ;;  %v5797_v42 = vrot.slane %v5783_v19, %v14117_v18  ;;  %v5208_v33 = vrot.slane %v4909_v41, 4  ;;  %v4912_v45 = vmul.f32 %v16043_v53, %v16043_v53 }
 0x453   : > { %v16047_v44 = vmul.f32 %v6125_v54, %v15904_v62  ;;  %v16053_v58 = vmul.f32 %v5781_v28, %v15775_v12  ;;  %v5352_v49 = vmul.f32 0.125, %v5183_v1  ;;  %v5203_v29 = vadd.f32 %v5202_v14, %v4908_v47  ;;  %v4339_v1 = vpop.f32.mrf.mxu1 }
 0x454   : > { %v5187_v6 = vadd.f32 %v5186_v10, %v5185_v7  ;;  %v5798_v20 = vcombine.low %v15914_v46, %v5797_v42  ;;  %v5209_v32 = vadd.f32 %v5208_v33, %v4909_v41  ;;  %v5226_v0 = vrot.slane %v4912_v45, 4 }
 0x455   : > { %v4785_v62 = vmul.f32 0.125, %v4661_v37  ;;  %v6141_v51 = vrot.slane %v16053_v58, %v14201_v26  ;;  %v5416_v13 = vadd.f32 1e-05, %v5352_v49  ;;  %v5204_v61 = vrot.slane %v5203_v29, 2  ;;  %v4226_v37 = vpop.f32.mrf.mxu0 }
 0x456   : > { %v5188_v9 = vrot.slane %v5187_v6, 1  ;;  %v5805_v54 = vrot.slane %v5798_v20, %v14117_v18  ;;  %v5210_v19 = vrot.slane %v5209_v32, 2  ;;  %v5227_v28 = vadd.f32 %v5226_v0, %v4912_v45 }
 0x457   : > { %v16060_v7 = vsub.f32 %v15995_v38, %v4785_v62  ;;  %v16063_v47 = vmul.f32 %v6141_v51, %v15926_v5  ;;  %13442 = vrsqrt.f32 %v5416_v13  ;;  %v5205_v41 = vadd.f32 %v5204_v61, %v5203_v29  ;;  %v4228_v13 = vpop.f32.mrf.mxu0 }
 0x458   : > { %v5189_v46 = vadd.f32 %v5188_v9, %v5187_v6  ;;  %v16066_v10 = vmul.f32 %v5805_v54, %v15775_v12  ;;  %v5211_v14 = vadd.f32 %v5210_v19, %v5209_v32  ;;  %v5228_v42 = vrot.slane %v5227_v28, 2  ;;  %v4341_v9 = vpop.f32.mrf.mxu1 }
 0x459   : > { %v4913_v33 = vmul.f32 %v16060_v7, %v16060_v7  ;;  %v5206_v49 = vrot.slane %v5205_v41, 1  ;;  %v4677_v5 = vadd.f32 %v4676_v43, %v16015_v2  ;;  %v16073_v38 = vadd.f32 %v4335_v3, %v4222_v57 }
 0x45a   : > { %v5353_v45 = vmul.f32 0.125, %v5189_v46  ;;  %v6157_v6 = vrot.slane %v16066_v10, %v14201_v26  ;;  %v5212_v29 = vrot.slane %v5211_v14, 1  ;;  %v5229_v20 = vadd.f32 %v5228_v42, %v5227_v28 }
 0x45b   : > { %v5232_v12 = vrot.slane %v4913_v33, 4  ;;  %v5207_v32 = vadd.f32 %v5206_v49, %v5205_v41  ;;  %v4678_v62 = vrot.slane %v4677_v5, 1  ;;  %v4680_v51 = vrot.slane %v16073_v38, 4 }
 0x45c   : > { %v5417_v0 = vadd.f32 1e-05, %v5353_v45  ;;  %v16079_v61 = vmul.f32 %v6157_v6, %v15943_v50  ;;  %v5213_v54 = vadd.f32 %v5212_v29, %v5211_v14  ;;  %v5230_v2 = vrot.slane %v5229_v20, 1  ;;  %v4230_v50 = vpop.f32.mrf.mxu0  ;;  %v4343_v14 = vpop.f32.mrf.mxu1 }
 0x45d   : > { %v5233_v43 = vadd.f32 %v5232_v12, %v4913_v33  ;;  %v5356_v57 = vmul.f32 0.125, %v5207_v32  ;;  %v4679_v3 = vadd.f32 %v4678_v62, %v4677_v5  ;;  %v4681_v19 = vadd.f32 %v4680_v51, %v16073_v38 }
 0x45e   : > { %18814 = vst [vmem:[#allocation69_spill] sm:$0xff] %v16079_v61  ;;  %13444 = vrsqrt.f32 %v5417_v0  ;;  %v5357_v28 = vmul.f32 0.125, %v5213_v54  ;;  %v5231_v46 = vadd.f32 %v5230_v2, %v5229_v20  ;;  %v5878_v41 = vcombine.low %v15661_v60, %v15671_v40  ;;  %v4232_v54 = vpop.f32.mrf.mxu0 }
 0x45f   : > { %v5234_v42 = vrot.slane %v5233_v43, 2  ;;  %v5420_v45 = vadd.f32 1e-05, %v5356_v57  ;;  %v4788_v49 = vmul.f32 0.125, %v4679_v3  ;;  %v4682_v53 = vrot.slane %v4681_v19, 2 }
 0x460   : > { %v16084_v25 = vadd.f32 %v4339_v1, %v4226_v37  ;;  %v5421_v6 = vadd.f32 1e-05, %v5357_v28  ;;  %v5360_v33 = vmul.f32 0.125, %v5231_v46  ;;  %v16087_v5 = vrot.slane %v5878_v41, %v14117_v18 }
 0x461   : > { %v5235_v29 = vadd.f32 %v5234_v42, %v5233_v43  ;;  %13446 = vrsqrt.f32 %v5420_v45  ;;  %v16090_v20 = vsub.f32 %v16007_v23, %v4788_v49  ;;  %v4683_v12 = vadd.f32 %v4682_v53, %v4681_v19  ;;  %v4345_v23 = vpop.f32.mrf.mxu1  ;;  %v18816_v49 = vld [vmem:[#allocation43_spill] sm:$0xff] }
 0x462   : > { %v4698_v60 = vrot.slane %v16084_v25, 4  ;;  %13448 = vrsqrt.f32 %v5421_v6  ;;  %v5424_v40 = vadd.f32 1e-05, %v5360_v33  ;;  %v16093_v37 = vadd.f32 %v4341_v9, %v4228_v13 }
 0x463   : > { %18815 = vst [vmem:[#allocation70_spill] sm:$0xff] %v16090_v20  ;;  %v5236_v0 = vrot.slane %v5235_v29, 1  ;;  %v4916_v1 = vmul.f32 %v16090_v20, %v16090_v20  ;;  %v4684_v32 = vrot.slane %v4683_v12, 1  ;;  %v5902_v51 = vcombine.low %v15693_v16, %v15699_v56 }
 0x464   : > { %v4699_v62 = vadd.f32 %v4698_v60, %v16084_v25  ;;  %v13443_v2 = vpop.eup %13442  ;;  %13450 = vrsqrt.f32 %v5424_v40  ;;  %v4704_v43 = vrot.slane %v16093_v37, 4  ;;  %v16101_v57 = vadd.f32 %v4343_v14, %v4230_v50 }
 0x465   : > { %v5237_v53 = vadd.f32 %v5236_v0, %v5235_v29  ;;  %v5250_v13 = vrot.slane %v4916_v1, 4  ;;  %v4685_v9 = vadd.f32 %v4684_v32, %v4683_v12  ;;  %v16104_v19 = vrot.slane %v5902_v51, %v14117_v18 }
 0x466   : > { %v4700_v3 = vrot.slane %v4699_v62, 2  ;;  %v4705_v46 = vadd.f32 %v4704_v43, %v16093_v37  ;;  %v4722_v16 = vrot.slane %v16101_v57, 4  ;;  %v16108_v56 = vadd.f32 %v4345_v23, %v4232_v54 }
 0x467   : > { %v5361_v28 = vmul.f32 0.125, %v5237_v53  ;;  %v5251_v42 = vadd.f32 %v5250_v13, %v4916_v1  ;;  %v4789_v41 = vmul.f32 0.125, %v4685_v9  ;;  %v5926_v50 = vcombine.low %v18816_v49, %v15710_v30  ;;  %v18817_v9 = vld [vmem:[#allocation66_spill] sm:$0xff] }
 0x468   : > { %v4701_v45 = vadd.f32 %v4700_v3, %v4699_v62  ;;  %v4706_v6 = vrot.slane %v4705_v46, 2  ;;  %v4723_v33 = vadd.f32 %v4722_v16, %v16101_v57  ;;  %v4728_v29 = vrot.slane %v16108_v56, 4  ;;  %v18818_v3 = vld [vmem:[#allocation57_spill] sm:$0xff] }
 0x469   : > { %v5425_v14 = vadd.f32 1e-05, %v5361_v28  ;;  %v5252_v12 = vrot.slane %v5251_v42, 2  ;;  %v16115_v60 = vsub.f32 %v16073_v38, %v4789_v41  ;;  %v16118_v0 = vrot.slane %v5926_v50, %v14117_v18 }
 0x46a   : > { %v4702_v40 = vrot.slane %v4701_v45, 1  ;;  %v4707_v32 = vadd.f32 %v4706_v6, %v4705_v46  ;;  %v4724_v62 = vrot.slane %v4723_v33, 2  ;;  %v4729_v30 = vadd.f32 %v4728_v29, %v16108_v56 }
 0x46b   : > { %v13445_v1 = vpop.eup %13444  ;;  %13452 = vrsqrt.f32 %v5425_v14  ;;  %v5253_v54 = vadd.f32 %v5252_v12, %v5251_v42  ;;  %v4917_v23 = vmul.f32 %v16115_v60, %v16115_v60  ;;  %v6005_v28 = vrot.slane %v18818_v3, %v18817_v9  ;;  %v18819_v42 = vld [vmem:[#allocation52_spill] sm:$0xff] }
 0x46c   : > { %v5807_v51 = vcombine.low %v13443_v2, %v13445_v1  ;;  %v4703_v53 = vadd.f32 %v4702_v40, %v4701_v45  ;;  %v4708_v43 = vrot.slane %v4707_v32, 1  ;;  %v4725_v13 = vadd.f32 %v4724_v62, %v4723_v33 }
 0x46d   : > { %v4730_v38 = vrot.slane %v4729_v30, 2  ;;  %v5254_v41 = vrot.slane %v5253_v54, 1  ;;  %v5256_v49 = vrot.slane %v4917_v23, 4  ;;  %v6021_v29 = vrot.slane %v18819_v42, %v18817_v9 }
 0x46e   : > { %v5821_v16 = vrot.slane %v5807_v51, %v14117_v18  ;;  %v4792_v46 = vmul.f32 0.125, %v4703_v53  ;;  %v13447_v50 = vpop.eup %13446  ;;  %v4709_v14 = vadd.f32 %v4708_v43, %v4707_v32  ;;  %v4726_v6 = vrot.slane %v4725_v13, 1 }
 0x46f   : > { %v4731_v2 = vadd.f32 %v4730_v38, %v4729_v30  ;;  %v13449_v12 = vpop.eup %13448  ;;  %v5255_v33 = vadd.f32 %v5254_v41, %v5253_v54  ;;  %v5257_v40 = vadd.f32 %v5256_v49, %v4917_v23  ;;  %v16142_v23 = vld [vmem:[%s18466_s5] sm:$0xf] }
 0x470   : > { %v5822_v45 = vcombine.low %v15976_v31, %v5821_v16  ;;  %v16130_v1 = vsub.f32 %v16084_v25, %v4792_v46  ;;  %v5831_v62 = vcombine.low %v13447_v50, %v13449_v12  ;;  %v4793_v51 = vmul.f32 0.125, %v4709_v14 }
 0x471   : > { %v4727_v20 = vadd.f32 %v4726_v6, %v4725_v13  ;;  %v4732_v4 = vrot.slane %v4731_v2, 1  ;;  %v13451_v53 = vpop.eup %13450  ;;  %v5364_v43 = vmul.f32 0.125, %v5255_v33  ;;  %v5258_v30 = vrot.slane %v5257_v40, 2 }
 0x472   : > { %v5829_v32 = vrot.slane %v5822_v45, %v14117_v18  ;;  %v4920_v38 = vmul.f32 %v16130_v1, %v16130_v1  ;;  %v5845_v61 = vrot.slane %v5831_v62, %v14117_v18  ;;  %v16137_v31 = vsub.f32 %v16093_v37, %v4793_v51  ;;  %v18821_v62 = vld [vmem:[#allocation19_spill] sm:$0xff] }
 0x473   : > { %v4796_v54 = vmul.f32 0.125, %v4727_v20  ;;  %v4733_v25 = vadd.f32 %v4732_v4, %v4731_v2  ;;  %v5428_v16 = vadd.f32 1e-05, %v5364_v43  ;;  %v5259_v41 = vadd.f32 %v5258_v30, %v5257_v40 }
 0x474   : > { %v16145_v13 = vmul.f32 %v16142_v23, %v5829_v32  ;;  %v5274_v49 = vrot.slane %v4920_v38, 4  ;;  %v5846_v46 = vcombine.low %v15990_v21, %v5845_v61  ;;  %v4921_v50 = vmul.f32 %v16137_v31, %v16137_v31 }
 0x475   : > { %v16151_v37 = vsub.f32 %v16101_v57, %v4796_v54  ;;  %v4797_v4 = vmul.f32 0.125, %v4733_v25  ;;  %13454 = vrsqrt.f32 %v5428_v16  ;;  %v5260_v14 = vrot.slane %v5259_v41, 1  ;;  %v16171_v54 = vld [vmem:[%s18467_s6] sm:$0xf]  ;;  %v18822_v16 = vld [vmem:[#allocation36_spill] sm:$0xff] }
 0x476   : > { %v6173_v20 = vrot.slane %v16145_v13, %v14201_v26  ;;  %v5275_v6 = vadd.f32 %v5274_v49, %v4920_v38  ;;  %v5853_v2 = vrot.slane %v5846_v46, %v14117_v18  ;;  %v5280_v12 = vrot.slane %v4921_v50, 4 }
 0x477   : > { %18820 = vst [vmem:[#allocation43_spill] sm:$0xff] %v16151_v37  ;;  %v4924_v45 = vmul.f32 %v16151_v37, %v16151_v37  ;;  %v16159_v21 = vsub.f32 %v16108_v56, %v4797_v4  ;;  %v5261_v33 = vadd.f32 %v5260_v14, %v5259_v41  ;;  %v6319_v51 = vmul.f32 %v6005_v28, %v18821_v62 }
 0x478   : > { %v13453_v61 = vpop.eup %13452  ;;  %v16162_v57 = vmul.f32 %v6173_v20, %v16018_v59  ;;  %v5276_v40 = vrot.slane %v5275_v6, 2  ;;  %v16166_v32 = vmul.f32 %v16142_v23, %v5853_v2  ;;  %v5281_v30 = vadd.f32 %v5280_v12, %v4921_v50 }
 0x479   : > { %v5855_v43 = vcombine.low %v13451_v53, %v13453_v61  ;;  %v5298_v38 = vrot.slane %v4924_v45, 4  ;;  %v5365_v56 = vmul.f32 0.125, %v5261_v33  ;;  %v4925_v59 = vmul.f32 %v16159_v21, %v16159_v21 }
 0x47a   : > { %v5277_v25 = vadd.f32 %v5276_v40, %v5275_v6  ;;  %v6323_v41 = vmul.f32 %v6021_v29, %v18822_v16  ;;  %v6189_v28 = vrot.slane %v16166_v32, %v14201_v26  ;;  %v5282_v53 = vrot.slane %v5281_v30, 2 }
 0x47b   : > { %v5869_v49 = vrot.slane %v5855_v43, %v14117_v18  ;;  %v5299_v46 = vadd.f32 %v5298_v38, %v4924_v45  ;;  %v5429_v50 = vadd.f32 1e-05, %v5365_v56  ;;  %v5304_v20 = vrot.slane %v4925_v59, 4 }
 0x47c   : > { %v5278_v4 = vrot.slane %v5277_v25, 1  ;;  %v16181_v14 = vrot.slane %v16171_v54, %v18817_v9  ;;  %v16184_v6 = vmul.f32 %v6189_v28, %v16033_v39  ;;  %v5283_v29 = vadd.f32 %v5282_v53, %v5281_v30 }
 0x47d   : > { %v5870_v2 = vcombine.low %v16005_v48, %v5869_v49  ;;  %v5300_v12 = vrot.slane %v5299_v46, 2  ;;  %13456 = vrsqrt.f32 %v5429_v50  ;;  %v5305_v33 = vadd.f32 %v5304_v20, %v4925_v59  ;;  %v18823_v49 = vld [vmem:[#allocation54_spill] sm:$0xff] }
 0x47e   : > { %v5279_v61 = vadd.f32 %v5278_v4, %v5277_v25  ;;  %v6404_v40 = vadd.f32 %v16181_v14, %v6319_v51  ;;  %v5284_v62 = vrot.slane %v5283_v29, 1  ;;  %v6408_v38 = vadd.f32 %v16181_v14, %v6323_v41 }
 0x47f   : > { %v5877_v45 = vrot.slane %v5870_v2, %v14117_v18  ;;  %v5301_v43 = vadd.f32 %v5300_v12, %v5299_v46  ;;  %v5306_v16 = vrot.slane %v5305_v33, 2  ;;  %v16192_v39 = vrot.slane %v16171_v54, %v14201_v26 }
 0x480   : > { %v5368_v56 = vmul.f32 0.125, %v5279_v61  ;;  %v6468_v37 = vmax.f32 %v6404_v40, 0.0  ;;  %v5285_v30 = vadd.f32 %v5284_v62, %v5283_v29  ;;  %v6472_v59 = vmax.f32 %v6408_v38, 0.0 }
 0x481   : > { %v16195_v48 = vmul.f32 %v16142_v23, %v5877_v45  ;;  %v5302_v25 = vrot.slane %v5301_v43, 1  ;;  %v5307_v28 = vadd.f32 %v5306_v16, %v5305_v33  ;;  %v6406_v53 = vadd.f32 %v16192_v39, %v18823_v49  ;;  %v18825_v16 = vld [vmem:[#allocation18_spill] sm:$0xff] }
 0x482   : > { %v5432_v51 = vadd.f32 1e-05, %v5368_v56  ;;  %v6410_v41 = vadd.f32 %v16192_v39, %v15824_v35  ;;  %v13455_v46 = vpop.eup %13454  ;;  %v5369_v4 = vmul.f32 0.125, %v5285_v30  ;;  %v16203_v2 = vpack.c.bf16 %v6472_v59, %v6468_v37  ;;  %v18824_v35 = vld [vmem:[#allocation67_spill] sm:$0xff] }
 0x483   : > { %v6205_v50 = vrot.slane %v16195_v48, %v14201_v26  ;;  %v5303_v20 = vadd.f32 %v5302_v25, %v5301_v43  ;;  %v5308_v29 = vrot.slane %v5307_v28, 1  ;;  %v6470_v12 = vmax.f32 %v6406_v53, 0.0  ;;  %v18826_v25 = vld [vmem:[#allocation68_spill] sm:$0xff] }
 0x484   : > { %13458 = vrsqrt.f32 %v5432_v51  ;;  %v6474_v61 = vmax.f32 %v6410_v41, 0.0  ;;  %v5433_v40 = vadd.f32 1e-05, %v5369_v4  ;;  %7363 = vmatprep.mubr.bf16.mxu0 %v16203_v2  ;;  %v6001_v62 = vrot.slane %v18818_v3, %v18824_v35  ;;  %v18828_v4 = vld [vmem:[#allocation42_spill] sm:$0xff] }
 0x485   : > { %v16206_v33 = vmul.f32 %v6205_v50, %v16060_v7  ;;  %v5372_v45 = vmul.f32 0.125, %v5303_v20  ;;  %v5309_v38 = vadd.f32 %v5308_v29, %v5307_v28  ;;  %v6017_v37 = vrot.slane %v18819_v42, %v18824_v35  ;;  %v18827_v28 = vld [vmem:[#allocation29_spill] sm:$0xff] }
 0x486   : > { %v16211_v56 = vpack.c.bf16 %v6474_v61, %v6470_v12  ;;  %v16217_v43 = vrot.slane %v16171_v54, %v18824_v35  ;;  %13460 = vrsqrt.f32 %v5433_v40  ;;  %v6318_v30 = vmul.f32 %v6001_v62, %v18825_v16  ;;  %v18829_v61 = vld [vmem:[#allocation45_spill] sm:$0xff] }
 0x487   : > { %v5436_v7 = vadd.f32 1e-05, %v5372_v45  ;;  %v6009_v59 = vrot.slane %v18818_v3, %v18826_v25  ;;  %v5373_v51 = vmul.f32 0.125, %v5309_v38  ;;  %v6322_v49 = vmul.f32 %v6017_v37, %v18827_v28  ;;  %v18830_v38 = vld [vmem:[#allocation25_spill] sm:$0xff] }
 0x488   : > { %7476 = vmatprep.mubr.bf16.mxu1 %v16211_v56  ;;  %v6025_v53 = vrot.slane %v18819_v42, %v18826_v25  ;;  %v16228_v41 = vrot.slane %v16171_v54, %v18826_v25  ;;  %v6403_v50 = vadd.f32 %v16217_v43, %v6318_v30  ;;  %v6037_v3 = vrot.slane %v15832_v11, %v18817_v9 }
 0x489   : > { %13462 = vrsqrt.f32 %v5436_v7  ;;  %v6320_v20 = vmul.f32 %v6009_v59, %v18828_v4  ;;  %v5437_v29 = vadd.f32 1e-05, %v5373_v51  ;;  %v6407_v12 = vadd.f32 %v16217_v43, %v6322_v49  ;;  %v13002_v51 = vld [vmem:[#allocation5 + $0xe8] ss:$16 sps:$4 sm:$0xff]  }
 0x48a   : > { %v6324_v40 = vmul.f32 %v6025_v53, %v18829_v61  ;;  %v6053_v42 = vrot.slane %v15849_v27, %v18817_v9  ;;  %v13457_v45 = vpop.eup %13456  ;;  %v6467_v62 = vmax.f32 %v6403_v50, 0.0  ;;  %v6327_v37 = vmul.f32 %v6037_v3, %v18830_v38  ;;  %v18831_v49 = vld [vmem:[#allocation37_spill] sm:$0xff] }
 0x48b   : > { %v6405_v54 = vadd.f32 %v16228_v41, %v6320_v20  ;;  %v6414_v7 = vadd.f32 %v16192_v39, %v15846_v55  ;;  %v5879_v16 = vcombine.low %v13455_v46, %v13457_v45  ;;  %13464 = vrsqrt.f32 %v5437_v29  ;;  %v13010_v55 = vld [vmem:[#allocation5 + $0xcc] ss:$16 sps:$4 sm:$0xff]   ;;  %v13005_v29 = vld [vmem:[#allocation5 + $0x2e8] ss:$16 sps:$4 sm:$0xff]  }
 0x48c   : > { %v6471_v30 = vmax.f32 %v6407_v12, 0.0  ;;  %v6409_v59 = vadd.f32 %v16228_v41, %v6324_v40  ;;  %v6331_v53 = vmul.f32 %v6053_v42, %v18831_v49  ;;  %v6412_v4 = vadd.f32 %v16181_v14, %v6327_v37  ;;  %v13013_v38 = vld [vmem:[#allocation5 + $0x2cc] ss:$16 sps:$4 sm:$0xff]   ;;  %v18834_v49 = vld [vmem:[#allocation22_spill] sm:$0xff] }
 0x48d   : > { %v6469_v28 = vmax.f32 %v6405_v54, 0.0  ;;  %v6418_v50 = vadd.f32 %v16192_v39, %v15868_v22  ;;  %v5893_v20 = vrot.slane %v5879_v16, %v14117_v18  ;;  %v6478_v46 = vmax.f32 %v6414_v7, 0.0  ;;  %v13008_v16 = vld [vmem:[#allocation5 + $0xc8] ss:$16 sps:$4 sm:$0xff]  }
 0x48e   : > { %v16248_v3 = vpack.c.bf16 %v6471_v30, %v6467_v62  ;;  %v6473_v61 = vmax.f32 %v6409_v59, 0.0  ;;  %v6416_v12 = vadd.f32 %v16181_v14, %v6331_v53  ;;  %v6476_v40 = vmax.f32 %v6412_v4, 0.0  ;;  %v13016_v4 = vld [vmem:[#allocation5 + $0xac] ss:$16 sps:$4 sm:$0xff]  }
 0x48f   : > { %v6482_v45 = vmax.f32 %v6418_v50, 0.0  ;;  %v6033_v42 = vrot.slane %v15832_v11, %v18824_v35  ;;  %v5894_v54 = vcombine.low %v16087_v5, %v5893_v20  ;;  %v6049_v62 = vrot.slane %v15849_v27, %v18824_v35  ;;  %v18835_v50 = vld [vmem:[#allocation35_spill] sm:$0xff] }
 0x490   : > { %7364 = vmatmul.mubr.bf16.vlgmr.msra.gmra.mxu0 %v16248_v3  ;;  %v16255_v22 = vpack.c.bf16 %v6473_v61, %v6469_v28  ;;  %v6041_v37 = vrot.slane %v15832_v11, %v18826_v25  ;;  %v6480_v30 = vmax.f32 %v6416_v12, 0.0  ;;  %v6057_v5 = vrot.slane %v15849_v27, %v18826_v25  ;;  %v18836_v11 = vld [vmem:[#allocation63_spill] sm:$0xff] }
 0x491   : > { %v13459_v7 = vpop.eup %13458  ;;  %7558 = vmatpush1.bf16.msra.mxu0 %v13002_v51  ;;  %v16261_v59 = vpack.c.bf16 %v6482_v45, %v6478_v46  ;;  %v6326_v53 = vmul.f32 %v6033_v42, %v18834_v49  ;;  %v5901_v28 = vrot.slane %v5894_v54, %v14117_v18  ;;  %v6330_v20 = vmul.f32 %v6049_v62, %v18835_v50  ;;  %v13011_v51 = vld [vmem:[#allocation5 + $0x2c8] ss:$16 sps:$4 sm:$0xff]   ;;  %v18837_v45 = vld [vmem:[#allocation46_spill] sm:$0xff] }
 0x492   : > { %18832 = vst [vmem:[#allocation57_spill] sm:$0xff] %v16255_v22  ;;  %7477 = vmatmul.mubr.bf16.vlgmr.msra.gmra.mxu1 %v16255_v22  ;;  %7559 = vmatprep.subr.bf16.mxu0 %v13010_v55  ;;  %v6328_v61 = vmul.f32 %v6041_v37, %v18836_v11  ;;  %v16270_v12 = vpack.c.bf16 %v6480_v30, %v6476_v40  ;;  %v13019_v55 = vld [vmem:[#allocation5 + $0x2ac] ss:$16 sps:$4 sm:$0xff]   ;;  %v13014_v30 = vld [vmem:[#allocation5 + $0xa8] ss:$16 sps:$4 sm:$0xff]  }
 0x493   : > { %18833 = vst [vmem:[#allocation52_spill] sm:$0xff] %v16261_v59  ;;  %7671 = vmatpush1.bf16.msra.mxu1 %v13005_v29  ;;  %7486 = vmatprep.mubr.bf16.mxu1 %v16261_v59  ;;  %v6411_v46 = vadd.f32 %v16217_v43, %v6326_v53  ;;  %v6332_v27 = vmul.f32 %v6057_v5, %v18837_v45  ;;  %v13461_v42 = vpop.eup %13460  ;;  %v13022_v11 = vld [vmem:[#allocation5 + $0x8c] ss:$16 sps:$4 sm:$0xff]   ;;  %v13017_v22 = vld [vmem:[#allocation5 + $0x2a8] ss:$16 sps:$4 sm:$0xff]  }
 0x494   : > { %v16276_v54 = vmul.f32 %v16142_v23, %v5901_v28  ;;  %7672 = vmatprep.subr.bf16.mxu1 %v13013_v38  ;;  %v6415_v62 = vadd.f32 %v16217_v43, %v6330_v20  ;;  %v6413_v37 = vadd.f32 %v16228_v41, %v6328_v61  ;;  %v6069_v29 = vrot.slane %v15920_v36, %v18817_v9  ;;  %v18838_v61 = vld [vmem:[#allocation23_spill] sm:$0xff] }
 0x495   : > { %v5903_v40 = vcombine.low %v13459_v7, %v13461_v42  ;;  %7560 = vmatpush1.bf16.msra.mxu0 %v13008_v16  ;;  %7373 = vmatprep.mubr.bf16.mxu0 %v16270_v12  ;;  %v6475_v49 = vmax.f32 %v6411_v46, 0.0  ;;  %v6417_v53 = vadd.f32 %v16228_v41, %v6332_v27  ;;  %v6085_v5 = vrot.slane %v15948_v52, %v18817_v9  ;;  %v18839_v46 = vld [vmem:[#allocation24_spill] sm:$0xff] }
 0x496   : > { %v13463_v38 = vpop.eup %13462  ;;  %v6221_v28 = vrot.slane %v16276_v54, %v14201_v26  ;;  %7561 = vmatprep.subr.bf16.mxu0 %v13016_v4  ;;  %v6479_v50 = vmax.f32 %v6415_v62, 0.0  ;;  %v6477_v20 = vmax.f32 %v6413_v37, 0.0  ;;  %v6335_v7 = vmul.f32 %v6069_v29, %v18838_v61 }
 0x497   : > { %v5917_v16 = vrot.slane %v5903_v40, %v14117_v18  ;;  %7673 = vmatpush1.bf16.msra.mxu1 %v13011_v51  ;;  %v6481_v45 = vmax.f32 %v6417_v53, 0.0  ;;  %v6339_v42 = vmul.f32 %v6085_v5, %v18839_v46  ;;  %v6422_v27 = vadd.f32 %v16192_v39, %v15934_v17  ;;  %v13020_v53 = vld [vmem:[#allocation5 + $0x88] ss:$16 sps:$4 sm:$0xff]   ;;  %v13025_v17 = vld [vmem:[#allocation5 + $0x28c] ss:$16 sps:$4 sm:$0xff]  }
 0x498   : > { %v16294_v59 = vmul.f32 %v6221_v28, %v16115_v60  ;;  %7674 = vmatprep.subr.bf16.mxu1 %v13019_v55  ;;  %v16296_v4 = vpack.c.bf16 %v6479_v50, %v6475_v49  ;;  %v6420_v62 = vadd.f32 %v16181_v14, %v6335_v7  ;;  %v6426_v37 = vadd.f32 %v16192_v39, %v15956_v34  ;;  %v13465_v29 = vpop.eup %13464  ;;  %v13028_v50 = vld [vmem:[#allocation5 + $0x6c] ss:$16 sps:$4 sm:$0xff]  }
 0x499   : > { %v5918_v51 = vcombine.low %v16104_v19, %v5917_v16  ;;  %v16302_v40 = vpack.c.bf16 %v6481_v45, %v6477_v20  ;;  %7562 = vmatpush1.bf16.msra.mxu0 %v13014_v30  ;;  %v6424_v60 = vadd.f32 %v16181_v14, %v6339_v42  ;;  %v6486_v5 = vmax.f32 %v6422_v27, 0.0  ;;  %v18840_v16 = vld [vmem:[#allocation20_spill] sm:$0xff] }
 0x49a   : > { %v5927_v28 = vcombine.low %v13463_v38, %v13465_v29  ;;  %7374 = vmatmul.mubr.bf16.gmra.mxu0 %v16296_v4  ;;  %7563 = vmatprep.subr.bf16.mxu0 %v13022_v11  ;;  %v6484_v55 = vmax.f32 %v6420_v62, 0.0  ;;  %v6490_v49 = vmax.f32 %v6426_v37, 0.0  ;;  %v6065_v34 = vrot.slane %v15920_v36, %v18824_v35  ;;  %v13023_v11 = vld [vmem:[#allocation5 + $0x288] ss:$16 sps:$4 sm:$0xff]  }
 0x49b   : > { %v5925_v19 = vrot.slane %v5918_v51, %v14117_v18  ;;  %7487 = vmatmul.mubr.bf16.gmra.mxu1 %v16302_v40  ;;  %v6488_v30 = vmax.f32 %v6424_v60, 0.0  ;;  %v6081_v20 = vrot.slane %v15948_v52, %v18824_v35  ;;  %v6073_v38 = vrot.slane %v15920_v36, %v18826_v25  ;;  %v13026_v62 = vld [vmem:[#allocation5 + $0x68] ss:$16 sps:$4 sm:$0xff]   ;;  %v13031_v36 = vld [vmem:[#allocation5 + $0x26c] ss:$16 sps:$4 sm:$0xff]  }
 0x49c   : > { %v5941_v61 = vrot.slane %v5927_v28, %v14117_v18  ;;  %7675 = vmatpush1.bf16.msra.mxu1 %v13017_v22  ;;  %v16315_v7 = vpack.c.bf16 %v6490_v49, %v6486_v5  ;;  %v6334_v45 = vmul.f32 %v6065_v34, %v18840_v16  ;;  %v6089_v46 = vrot.slane %v15948_v52, %v18826_v25  ;;  %v18841_v37 = vld [vmem:[#allocation21_spill] sm:$0xff]  ;;  %v18843_v28 = vld [vmem:[#allocation50_spill] sm:$0xff] }
 0x49d   : > { %v16321_v42 = vmul.f32 %v16142_v23, %v5925_v19  ;;  %7676 = vmatprep.subr.bf16.mxu1 %v13025_v17  ;;  %7564 = vmatpush1.bf16.msra.mxu0 %v13020_v53  ;;  %v16323_v27 = vpack.c.bf16 %v6488_v30, %v6484_v55  ;;  %v6338_v29 = vmul.f32 %v6081_v20, %v18841_v37  ;;  %v18842_v60 = vld [vmem:[#allocation53_spill] sm:$0xff] }
 0x49e   : > { %v5942_v22 = vcombine.low %v16118_v0, %v5941_v61  ;;  %7496 = vmatprep.mubr.bf16.mxu1 %v16315_v7  ;;  %7565 = vmatprep.subr.bf16.mxu0 %v13028_v50  ;;  %v6419_v51 = vadd.f32 %v16217_v43, %v6334_v45  ;;  %v6336_v52 = vmul.f32 %v6073_v38, %v18842_v60  ;;  %v13034_v5 = vld [vmem:[#allocation5 + $0x4c] ss:$16 sps:$4 sm:$0xff]   ;;  %v13029_v50 = vld [vmem:[#allocation5 + $0x268] ss:$16 sps:$4 sm:$0xff]   ;;  %v18844_v45 = vld [vmem:[#allocation32_spill] sm:$0xff] }
 0x49f   : > { %v6237_v17 = vrot.slane %v16321_v42, %v14201_v26  ;;  %7383 = vmatprep.mubr.bf16.mxu0 %v16323_v27  ;;  %v6423_v53 = vadd.f32 %v16217_v43, %v6338_v29  ;;  %v6340_v55 = vmul.f32 %v6089_v46, %v18843_v28  ;;  %v6101_v0 = vrot.slane %v15963_v24, %v18817_v9  ;;  %v13037_v16 = vld [vmem:[#allocation5 + $0x24c] ss:$16 sps:$4 sm:$0xff]   ;;  %v13032_v29 = vld [vmem:[#allocation5 + $0x48] ss:$16 sps:$4 sm:$0xff]  }
 0x4a0   : > { %v5949_v49 = vrot.slane %v5942_v22, %v14117_v18  ;;  %7677 = vmatpush1.bf16.msra.mxu1 %v13023_v11  ;;  %v6483_v34 = vmax.f32 %v6419_v51, 0.0  ;;  %v6421_v19 = vadd.f32 %v16228_v41, %v6336_v52  ;;  %v6117_v30 = vrot.slane %v16030_v63, %v18817_v9  ;;  %v18845_v22 = vld [vmem:[#allocation30_spill] sm:$0xff] }
 0x4a1   : > { %v16342_v20 = vmul.f32 %v6237_v17, %v16137_v31  ;;  %7678 = vmatprep.subr.bf16.mxu1 %v13031_v36  ;;  %v6487_v38 = vmax.f32 %v6423_v53, 0.0  ;;  %v6425_v61 = vadd.f32 %v16228_v41, %v6340_v55  ;;  %7566 = vmatpush1.bf16.msra.mxu0 %v13026_v62  ;;  %v6343_v46 = vmul.f32 %v6101_v0, %v18844_v45  ;;  %v13040_v17 = vld [vmem:[#allocation5 + $0x2c] ss:$16 sps:$4 sm:$0xff]   ;;  %v13035_v53 = vld [vmem:[#allocation5 + $0x248] ss:$16 sps:$4 sm:$0xff]  }
 0x4a2   : > { %v16347_v11 = vmul.f32 %v16142_v23, %v5949_v49  ;;  %v6485_v37 = vmax.f32 %v6421_v19, 0.0  ;;  %7567 = vmatprep.subr.bf16.mxu0 %v13034_v5  ;;  %v6347_v51 = vmul.f32 %v6117_v30, %v18845_v22  ;;  %v6430_v31 = vadd.f32 %v16192_v39, %v15973_v15  ;;  %v13038_v30 = vld [vmem:[#allocation5 + $0x28] ss:$16 sps:$4 sm:$0xff]  }
 0x4a3   : > { %v16352_v60 = vpack.c.bf16 %v6487_v38, %v6483_v34  ;;  %v6489_v36 = vmax.f32 %v6425_v61, 0.0  ;;  %v6428_v52 = vadd.f32 %v16181_v14, %v6343_v46  ;;  %v6434_v62 = vadd.f32 %v16192_v39, %v16047_v44  ;;  %v13043_v44 = vld [vmem:[#allocation5 + $0x22c] ss:$16 sps:$4 sm:$0xff]   ;;  %v18846_v38 = vld [vmem:[#allocation28_spill] sm:$0xff]  ;;  %v18847_v46 = vld [vmem:[#allocation26_spill] sm:$0xff] }
 0x4a4   : > { %v6253_v23 = vrot.slane %v16347_v11, %v14201_v26  ;;  %7679 = vmatpush1.bf16.msra.mxu1 %v13029_v50  ;;  %v6432_v5 = vadd.f32 %v16181_v14, %v6347_v51  ;;  %v6494_v28 = vmax.f32 %v6430_v31, 0.0  ;;  %v6097_v15 = vrot.slane %v15963_v24, %v18824_v35  ;;  %v13041_v51 = vld [vmem:[#allocation5 + $0x228] ss:$16 sps:$4 sm:$0xff]  }
 0x4a5   : > { %7384 = vmatmul.mubr.bf16.gmra.mxu0 %v16352_v60  ;;  %v16363_v55 = vpack.c.bf16 %v6489_v36, %v6485_v37  ;;  %7680 = vmatprep.subr.bf16.mxu1 %v13037_v16  ;;  %v6492_v0 = vmax.f32 %v6428_v52, 0.0  ;;  %v6498_v49 = vmax.f32 %v6434_v62, 0.0  ;;  %v6113_v34 = vrot.slane %v16030_v63, %v18824_v35  ;;  %v18848_v62 = vld [vmem:[#allocation56_spill] sm:$0xff] }
 0x4a6   : > { %v16368_v50 = vmul.f32 %v6253_v23, %v16159_v21  ;;  %7568 = vmatpush1.bf16.msra.mxu0 %v13032_v29  ;;  %v6496_v19 = vmax.f32 %v6432_v5, 0.0  ;;  %v6342_v61 = vmul.f32 %v6097_v15, %v18846_v38  ;;  %v6105_v45 = vrot.slane %v15963_v24, %v18826_v25  ;;  %v13046_v21 = vld [vmem:[#allocation5 + $0xc] ss:$16 sps:$4 sm:$0xff]  }
 0x4a7   : > { %7497 = vmatmul.mubr.bf16.gmra.mxu1 %v16363_v55  ;;  %v16374_v16 = vpack.c.bf16 %v6498_v49, %v6494_v28  ;;  %7569 = vmatprep.subr.bf16.mxu0 %v13040_v17  ;;  %v6346_v37 = vmul.f32 %v6113_v34, %v18847_v46  ;;  %v6121_v22 = vrot.slane %v16030_v63, %v18826_v25  ;;  %v13049_v63 = vld [vmem:[#allocation5 + $0x20c] ss:$16 sps:$4 sm:$0xff]   ;;  %v18850_v34 = vld [vmem:[#allocation38_spill] sm:$0xff] }
 0x4a8   : > { %7681 = vmatpush1.bf16.msra.mxu1 %v13035_v53  ;;  %v16379_v29 = vpack.c.bf16 %v6496_v19, %v6492_v0  ;;  %v6427_v31 = vadd.f32 %v16217_v43, %v6342_v61  ;;  %v6344_v36 = vmul.f32 %v6105_v45, %v15829_v8  ;;  %v6133_v24 = vrot.slane %v16053_v58, %v18817_v9  ;;  %v13044_v8 = vld [vmem:[#allocation5 + $0x8] ss:$16 sps:$4 sm:$0xff]   ;;  %v13052_v45 = vld [vmem:[#allocation5 + $0x1ec] ss:$16 sps:$4 sm:$0xff]  }
 0x4a9   : > { %7506 = vmatprep.mubr.bf16.mxu1 %v16374_v16  ;;  %7682 = vmatprep.subr.bf16.mxu1 %v13043_v44  ;;  %v6431_v52 = vadd.f32 %v16217_v43, %v6346_v37  ;;  %v6348_v17 = vmul.f32 %v6121_v22, %v18848_v62  ;;  %v6149_v23 = vrot.slane %v16066_v10, %v18817_v9  ;;  %v18849_v28 = vld [vmem:[#allocation31_spill] sm:$0xff]  ;;  %v18851_v38 = vld [vmem:[#allocation69_spill] sm:$0xff] }
 0x4aa   : > { %7393 = vmatprep.mubr.bf16.mxu0 %v16379_v29  ;;  %v6491_v53 = vmax.f32 %v6427_v31, 0.0  ;;  %v6429_v5 = vadd.f32 %v16228_v41, %v6344_v36  ;;  %7570 = vmatpush1.bf16.msra.mxu0 %v13038_v30  ;;  %v6351_v15 = vmul.f32 %v6133_v24, %v18849_v28  ;;  %v6438_v0 = vadd.f32 %v16192_v39, %v16063_v47  ;;  %v13047_v37 = vld [vmem:[#allocation5 + $0x208] ss:$16 sps:$4 sm:$0xff]  }
 0x4ab   : > { %v6495_v49 = vmax.f32 %v6431_v52, 0.0  ;;  %v6433_v44 = vadd.f32 %v16228_v41, %v6348_v17  ;;  %7571 = vmatprep.subr.bf16.mxu0 %v13046_v21  ;;  %v6355_v19 = vmul.f32 %v6149_v23, %v18850_v34  ;;  %v6442_v61 = vadd.f32 %v16192_v39, %v18851_v38  ;;  %v13055_v52 = vld [vmem:[#allocation5 + $0x3ec] ss:$16 sps:$4 sm:$0xff]   ;;  %v13050_v17 = vld [vmem:[#allocation5 + $0x1e8] ss:$16 sps:$4 sm:$0xff]  }
 0x4ac   : > { %v6493_v46 = vmax.f32 %v6429_v5, 0.0  ;;  %7683 = vmatpush1.bf16.msra.mxu1 %v13041_v51  ;;  %v6436_v30 = vadd.f32 %v16181_v14, %v6351_v15  ;;  %v6502_v22 = vmax.f32 %v6438_v0, 0.0  ;;  %v6129_v31 = vrot.slane %v16053_v58, %v18824_v35  ;;  %v18852_v23 = vld [vmem:[#allocation27_spill] sm:$0xff]  ;;  %v18854_v38 = vld [vmem:[#allocation61_spill] sm:$0xff] }
 0x4ad   : > { %v16402_v47 = vpack.c.bf16 %v6495_v49, %v6491_v53  ;;  %v6497_v36 = vmax.f32 %v6433_v44, 0.0  ;;  %7684 = vmatprep.subr.bf16.mxu1 %v13049_v63  ;;  %v6440_v21 = vadd.f32 %v16181_v14, %v6355_v19  ;;  %v6506_v24 = vmax.f32 %v6442_v61, 0.0  ;;  %v13058_v0 = vld [vmem:[#allocation5 + $0x1cc] ss:$16 sps:$4 sm:$0xff]   ;;  %v13053_v49 = vld [vmem:[#allocation5 + $0x3e8] ss:$16 sps:$4 sm:$0xff]  }
 0x4ae   : > { %7572 = vmatpush1.bf16.msra.mxu0 %v13044_v8  ;;  %v6500_v62 = vmax.f32 %v6436_v30, 0.0  ;;  %v6145_v51 = vrot.slane %v16066_v10, %v18824_v35  ;;  %v6350_v5 = vmul.f32 %v6129_v31, %v18852_v23  ;;  %v6137_v28 = vrot.slane %v16053_v58, %v18826_v25  ;;  %v18853_v44 = vld [vmem:[#allocation48_spill] sm:$0xff] }
 0x4af   : > { %7394 = vmatmul.mubr.bf16.gmra.mxu0 %v16402_v47  ;;  %v16411_v53 = vpack.c.bf16 %v6497_v36, %v6493_v46  ;;  %v6504_v63 = vmax.f32 %v6440_v21, 0.0  ;;  %v16413_v15 = vpack.c.bf16 %v6506_v24, %v6502_v22  ;;  %7573 = vmatprep.subr.bf16.mxu0 %v13052_v45  ;;  %v6153_v8 = vrot.slane %v16066_v10, %v18826_v25  ;;  %v18855_v45 = vld [vmem:[#allocation59_spill] sm:$0xff]  ;;  %v18856_v21 = vld [vmem:[#allocation49_spill] sm:$0xff] }
 0x4b0   : > { %7685 = vmatpush1.bf16.msra.mxu1 %v13047_v37  ;;  %v6354_v34 = vmul.f32 %v6145_v51, %v18853_v44  ;;  %v6435_v19 = vadd.f32 %v16217_v43, %v6350_v5  ;;  %v6352_v58 = vmul.f32 %v6137_v28, %v18854_v38  ;;  %v6165_v61 = vrot.slane %v16145_v13, %v18817_v9  ;;  %v13061_v10 = vld [vmem:[#allocation5 + $0x3cc] ss:$16 sps:$4 sm:$0xff]   ;;  %v13056_v36 = vld [vmem:[#allocation5 + $0x1c8] ss:$16 sps:$4 sm:$0xff]  }
 0x4b1   : > { %7507 = vmatmul.mubr.bf16.gmra.mxu1 %v16411_v53  ;;  %v16423_v46 = vpack.c.bf16 %v6504_v63, %v6500_v62  ;;  %7686 = vmatprep.subr.bf16.mxu1 %v13055_v52  ;;  %v6356_v30 = vmul.f32 %v6153_v8, %v18855_v45  ;;  %v6181_v37 = vrot.slane %v16166_v32, %v18817_v9  ;;  %v18857_v51 = vld [vmem:[#allocation33_spill] sm:$0xff] }
 0x4b2   : > { %7516 = vmatprep.mubr.bf16.mxu1 %v16413_v15  ;;  %v6439_v22 = vadd.f32 %v16217_v43, %v6354_v34  ;;  %v6437_v31 = vadd.f32 %v16228_v41, %v6352_v58  ;;  %7574 = vmatpush2.bf16.msra.mxu0 %v13050_v17  ;;  %v6359_v24 = vmul.f32 %v6165_v61, %v18856_v21  ;;  %v6499_v62 = vmax.f32 %v6435_v19, 0.0  ;;  %v13064_v28 = vld [vmem:[#allocation5 + $0x1ac] ss:$16 sps:$4 sm:$0xff]   ;;  %v13059_v44 = vld [vmem:[#allocation5 + $0x3c8] ss:$16 sps:$4 sm:$0xff]  }
 0x4b3   : > { %7403 = vmatprep.mubr.bf16.mxu0 %v16423_v46  ;;  %v6441_v52 = vadd.f32 %v16228_v41, %v6356_v30  ;;  %7575 = vmatprep.subr.bf16.mxu0 %v13058_v0  ;;  %v6363_v23 = vmul.f32 %v6181_v37, %v18857_v51  ;;  %v6446_v5 = vadd.f32 %v16192_v39, %v16162_v57  ;;  %v13067_v58 = vld [vmem:[#allocation5 + $0x3ac] ss:$16 sps:$4 sm:$0xff]   ;;  %v13062_v30 = vld [vmem:[#allocation5 + $0x1a8] ss:$16 sps:$4 sm:$0xff]  }
 0x4b4   : > { %v6503_v63 = vmax.f32 %v6439_v22, 0.0  ;;  %v6501_v8 = vmax.f32 %v6437_v31, 0.0  ;;  %7687 = vmatpush2.bf16.msra.mxu1 %v13053_v49  ;;  %v6444_v17 = vadd.f32 %v16181_v14, %v6359_v24  ;;  %v6450_v34 = vadd.f32 %v16192_v39, %v16184_v6  ;;  %v13070_v24 = vld [vmem:[#allocation5 + $0x18c] ss:$16 sps:$4 sm:$0xff]  }
 0x4b5   : > { %v6505_v38 = vmax.f32 %v6441_v52, 0.0  ;;  %7688 = vmatprep.subr.bf16.mxu1 %v13061_v10  ;;  %v6448_v19 = vadd.f32 %v16181_v14, %v6363_v23  ;;  %v6510_v0 = vmax.f32 %v6446_v5, 0.0  ;;  %v6161_v61 = vrot.slane %v16145_v13, %v18824_v35  ;;  %v18858_v10 = vld [vmem:[#allocation41_spill] sm:$0xff]  ;;  %v18859_v52 = vld [vmem:[#allocation51_spill] sm:$0xff] }
 0x4b6   : > { %v16443_v57 = vpack.c.bf16 %v6503_v63, %v6499_v62  ;;  %7576 = vmatpush2.bf16.msra.mxu0 %v13056_v36  ;;  %v6508_v45 = vmax.f32 %v6444_v17, 0.0  ;;  %v6514_v49 = vmax.f32 %v6450_v34, 0.0  ;;  %v6177_v37 = vrot.slane %v16166_v32, %v18824_v35  ;;  %v13065_v62 = vld [vmem:[#allocation5 + $0x3a8] ss:$16 sps:$4 sm:$0xff]   ;;  %v18861_v17 = vld [vmem:[#allocation60_spill] sm:$0xff] }
 0x4b7   : > { %v16447_v22 = vpack.c.bf16 %v6505_v38, %v6501_v8  ;;  %v6512_v6 = vmax.f32 %v6448_v19, 0.0  ;;  %7577 = vmatprep.subr.bf16.mxu0 %v13064_v28  ;;  %v6358_v31 = vmul.f32 %v6161_v61, %v18858_v10  ;;  %v6169_v21 = vrot.slane %v16145_v13, %v18826_v25  ;;  %v18860_v13 = vld [vmem:[#allocation62_spill] sm:$0xff]  ;;  %v13073_v8 = vld [vmem:[#allocation5 + $0x38c] ss:$16 sps:$4 sm:$0xff]   ;;  %v13068_v38 = vld [vmem:[#allocation5 + $0x188] ss:$16 sps:$4 sm:$0xff]  }
 0x4b8   : > { %7404 = vmatmul.mubr.bf16.gmra.mxu0 %v16443_v57  ;;  %7689 = vmatpush2.bf16.msra.mxu1 %v13059_v44  ;;  %v16453_v36 = vpack.c.bf16 %v6514_v49, %v6510_v0  ;;  %v6362_v51 = vmul.f32 %v6177_v37, %v18859_v52  ;;  %v6185_v23 = vrot.slane %v16166_v32, %v18826_v25  ;;  %v13071_v37 = vld [vmem:[#allocation5 + $0x388] ss:$16 sps:$4 sm:$0xff]  }
 0x4b9   : > { %7517 = vmatmul.mubr.bf16.gmra.mxu1 %v16447_v22  ;;  %v16459_v5 = vpack.c.bf16 %v6512_v6, %v6508_v45  ;;  %7690 = vmatprep.subr.bf16.mxu1 %v13067_v58  ;;  %v6443_v28 = vadd.f32 %v16217_v43, %v6358_v31  ;;  %v6360_v63 = vmul.f32 %v6169_v21, %v18860_v13  ;;  %v13076_v45 = vld [vmem:[#allocation5 + $0x16c] ss:$16 sps:$4 sm:$0xff]   ;;  %v18862_v6 = vld [vmem:[#allocation34_spill] sm:$0xff] }
 0x4ba   : > { %7526 = vmatprep.mubr.bf16.mxu1 %v16453_v36  ;;  %v6447_v44 = vadd.f32 %v16217_v43, %v6362_v51  ;;  %v6364_v34 = vmul.f32 %v6185_v23, %v18861_v17  ;;  %7578 = vmatpush2.bf16.msra.mxu0 %v13062_v30  ;;  %v6197_v32 = vrot.slane %v16195_v48, %v18817_v9  ;;  %v13079_v23 = vld [vmem:[#allocation5 + $0x36c] ss:$16 sps:$4 sm:$0xff]  }
 0x4bb   : > { %7413 = vmatprep.mubr.bf16.mxu0 %v16459_v5  ;;  %v6507_v19 = vmax.f32 %v6443_v28, 0.0  ;;  %v6445_v0 = vadd.f32 %v16228_v41, %v6360_v63  ;;  %7579 = vmatprep.subr.bf16.mxu0 %v13070_v24  ;;  %v6213_v58 = vrot.slane %v16276_v54, %v18817_v9  ;;  %v6454_v61 = vadd.f32 %v16192_v39, %v16206_v33  ;;  %v18863_v24 = vld [vmem:[#allocation55_spill] sm:$0xff] }
 0x4bc   : > { %v6511_v49 = vmax.f32 %v6447_v44, 0.0  ;;  %v6449_v30 = vadd.f32 %v16228_v41, %v6364_v34  ;;  %7691 = vmatpush2.bf16.msra.mxu1 %v13065_v62  ;;  %v6367_v10 = vmul.f32 %v6197_v32, %v18862_v6  ;;  %v6458_v31 = vadd.f32 %v16192_v39, %v16294_v59  ;;  %v13074_v44 = vld [vmem:[#allocation5 + $0x168] ss:$16 sps:$4 sm:$0xff]  }
 0x4bd   : > { %v6509_v21 = vmax.f32 %v6445_v0, 0.0  ;;  %7692 = vmatprep.subr.bf16.mxu1 %v13073_v8  ;;  %v6371_v52 = vmul.f32 %v6213_v58, %v18863_v24  ;;  %v6518_v51 = vmax.f32 %v6454_v61, 0.0  ;;  %v6193_v33 = vrot.slane %v16195_v48, %v18824_v35  ;;  %v18864_v8 = vld [vmem:[#allocation39_spill] sm:$0xff] }
 0x4be   : > { %v16481_v28 = vpack.c.bf16 %v6511_v49, %v6507_v19  ;;  %v6513_v13 = vmax.f32 %v6449_v30, 0.0  ;;  %7580 = vmatpush2.bf16.msra.mxu0 %v13068_v38  ;;  %v6452_v62 = vadd.f32 %v16181_v14, %v6367_v10  ;;  %v6522_v63 = vmax.f32 %v6458_v31, 0.0  ;;  %v13082_v0 = vld [vmem:[#allocation5 + $0x14c] ss:$16 sps:$4 sm:$0xff]   ;;  %v13077_v61 = vld [vmem:[#allocation5 + $0x368] ss:$16 sps:$4 sm:$0xff]  }
 0x4bf   : > { %v6456_v17 = vadd.f32 %v16181_v14, %v6371_v52  ;;  %7581 = vmatprep.subr.bf16.mxu0 %v13076_v45  ;;  %v6209_v59 = vrot.slane %v16276_v54, %v18824_v35  ;;  %v6366_v34 = vmul.f32 %v6193_v33, %v18864_v8  ;;  %v6201_v32 = vrot.slane %v16195_v48, %v18826_v25  ;;  %v18865_v30 = vld [vmem:[#allocation40_spill] sm:$0xff]  ;;  %v18866_v48 = vld [vmem:[#allocation65_spill] sm:$0xff] }
 0x4c0   : > { %7414 = vmatmul.mubr.bf16.gmra.mxu0 %v16481_v28  ;;  %v16491_v19 = vpack.c.bf16 %v6513_v13, %v6509_v21  ;;  %7693 = vmatpush2.bf16.msra.mxu1 %v13071_v37  ;;  %v6516_v38 = vmax.f32 %v6452_v62, 0.0  ;;  %v16493_v58 = vpack.c.bf16 %v6522_v63, %v6518_v51  ;;  %v6217_v45 = vrot.slane %v16276_v54, %v18826_v25  ;;  %v13085_v24 = vld [vmem:[#allocation5 + $0x34c] ss:$16 sps:$4 sm:$0xff]   ;;  %v18867_v21 = vld [vmem:[#allocation70_spill] sm:$0xff]  ;;  %v13080_v52 = vld [vmem:[#allocation5 + $0x148] ss:$16 sps:$4 sm:$0xff]  }
 0x4c1   : > { %v6520_v49 = vmax.f32 %v6456_v17, 0.0  ;;  %7694 = vmatprep.subr.bf16.mxu1 %v13079_v23  ;;  %v6370_v6 = vmul.f32 %v6209_v59, %v18865_v30  ;;  %v6451_v10 = vadd.f32 %v16217_v43, %v6366_v34  ;;  %v6368_v31 = vmul.f32 %v6201_v32, %v18866_v48  ;;  %v13088_v63 = vld [vmem:[#allocation5 + $0x12c] ss:$16 sps:$4 sm:$0xff]   ;;  %v13083_v17 = vld [vmem:[#allocation5 + $0x348] ss:$16 sps:$4 sm:$0xff]   ;;  %v18868_v59 = vld [vmem:[#allocation44_spill] sm:$0xff] }
 0x4c2   : > { %7527 = vmatmul.mubr.bf16.gmra.mxu1 %v16491_v19  ;;  %v6372_v37 = vmul.f32 %v6217_v45, %v18867_v21  ;;  %7582 = vmatpush2.bf16.msra.mxu0 %v13074_v44  ;;  %v6229_v51 = vrot.slane %v16321_v42, %v18817_v9  ;;  %v6245_v54 = vrot.slane %v16347_v11, %v18817_v9  ;;  %v18869_v34 = vld [vmem:[#allocation47_spill] sm:$0xff] }
 0x4c3   : > { %v16506_v23 = vpack.c.bf16 %v6520_v49, %v6516_v38  ;;  %7536 = vmatprep.mubr.bf16.mxu1 %v16493_v58  ;;  %v6455_v33 = vadd.f32 %v16217_v43, %v6370_v6  ;;  %v6515_v13 = vmax.f32 %v6451_v10, 0.0  ;;  %v6453_v62 = vadd.f32 %v16228_v41, %v6368_v31  ;;  %7583 = vmatprep.subr.bf16.mxu0 %v13082_v0  ;;  %v13091_v30 = vld [vmem:[#allocation5 + $0x32c] ss:$16 sps:$4 sm:$0xff]  }
 0x4c4   : > { %v6457_v44 = vadd.f32 %v16228_v41, %v6372_v37  ;;  %7695 = vmatpush2.bf16.msra.mxu1 %v13077_v61  ;;  %v6375_v8 = vmul.f32 %v6229_v51, %v18868_v59  ;;  %v6379_v32 = vmul.f32 %v6245_v54, %v18869_v34  ;;  %v6462_v38 = vadd.f32 %v16192_v39, %v16342_v20  ;;  %v13086_v20 = vld [vmem:[#allocation5 + $0x128] ss:$16 sps:$4 sm:$0xff]   ;;  %v13094_v51 = vld [vmem:[#allocation5 + $0x10c] ss:$16 sps:$4 sm:$0xff]  }
 0x4c5   : > { %7423 = vmatprep.mubr.bf16.mxu0 %v16506_v23  ;;  %v6519_v45 = vmax.f32 %v6455_v33, 0.0  ;;  %v6517_v49 = vmax.f32 %v6453_v62, 0.0  ;;  %7696 = vmatprep.subr.bf16.mxu1 %v13085_v24  ;;  %v6466_v0 = vadd.f32 %v16192_v39, %v16368_v50  ;;  %v6225_v61 = vrot.slane %v16321_v42, %v18824_v35  ;;  %v18870_v39 = vld [vmem:[#allocation58_spill] sm:$0xff]  ;;  %v13089_v62 = vld [vmem:[#allocation5 + $0x328] ss:$16 sps:$4 sm:$0xff]  }
 0x4c6   : > { %v6521_v6 = vmax.f32 %v6457_v44, 0.0  ;;  %7584 = vmatpush2.bf16.msra.mxu0 %v13080_v52  ;;  %v6460_v10 = vadd.f32 %v16181_v14, %v6375_v8  ;;  %v6464_v48 = vadd.f32 %v16181_v14, %v6379_v32  ;;  %v6526_v31 = vmax.f32 %v6462_v38, 0.0  ;;  %v13097_v8 = vld [vmem:[#allocation5 + $0x30c] ss:$16 sps:$4 sm:$0xff]   ;;  %v13092_v38 = vld [vmem:[#allocation5 + $0x108] ss:$16 sps:$4 sm:$0xff]  }
 0x4c7   : > { %v16523_v21 = vpack.c.bf16 %v6519_v45, %v6515_v13  ;;  %v6530_v37 = vmax.f32 %v6466_v0, 0.0  ;;  %7585 = vmatprep.subr.bf16.mxu0 %v13088_v63  ;;  %v6241_v24 = vrot.slane %v16347_v11, %v18824_v35  ;;  %v6374_v50 = vmul.f32 %v6225_v61, %v18870_v39  ;;  %v18871_v63 = vld [vmem:[#allocation64_spill] sm:$0xff]  ;;  %v18872_v45 = vld [vmem:[#allocation43_spill] sm:$0xff] }
 0x4c8   : > { %v16528_v54 = vpack.c.bf16 %v6521_v6, %v6517_v49  ;;  %7697 = vmatpush2.bf16.msra.mxu1 %v13083_v17  ;;  %v6524_v52 = vmax.f32 %v6460_v10, 0.0  ;;  %v6528_v33 = vmax.f32 %v6464_v48, 0.0  ;;  %v6233_v14 = vrot.slane %v16321_v42, %v18826_v25 }
 0x4c9   : > { %7424 = vmatmul.mubr.bf16.gmra.mxu0 %v16523_v21  ;;  %v6562_v13 = vpack.c.bf16 %v6530_v37, %v6526_v31  ;;  %7698 = vmatprep.subr.bf16.mxu1 %v13091_v30  ;;  %v6378_v44 = vmul.f32 %v6241_v24, %v18871_v63  ;;  %v6459_v59 = vadd.f32 %v16217_v43, %v6374_v50  ;;  %v13095_v30 = vld [vmem:[#allocation5 + $0x308] ss:$16 sps:$4 sm:$0xff]  }
 0x4ca   : > { %7537 = vmatmul.mubr.bf16.gmra.mxu1 %v16528_v54  ;;  %v6560_v34 = vpack.c.bf16 %v6528_v33, %v6524_v52  ;;  %v6249_v17 = vrot.slane %v16347_v11, %v18826_v25  ;;  %v6376_v32 = vmul.f32 %v6233_v14, %v16130_v1  ;;  %7586 = vmatpush2.bf16.msra.mxu0 %v13086_v20  ;;  %v18873_v31 = vld [vmem:[#allocation57_spill] sm:$0xff]  ;;  %v18874_v20 = vld [vmem:[#allocation52_spill] sm:$0xff] }
 0x4cb   : > { %7546 = vmatprep.mubr.bf16.mxu1 %v6562_v13  ;;  %v6463_v42 = vadd.f32 %v16217_v43, %v6378_v44  ;;  %7587 = vmatprep.subr.bf16.mxu0 %v13094_v51  ;;  %v6523_v61 = vmax.f32 %v6459_v59, 0.0 }
 0x4cc   : > { %7433 = vmatprep.mubr.bf16.mxu0 %v6560_v34  ;;  %v6380_v49 = vmul.f32 %v6249_v17, %v18872_v45  ;;  %v6461_v0 = vadd.f32 %v16228_v41, %v6376_v32  ;;  %7699 = vmatpush2.bf16.msra.mxu1 %v13089_v62 }
 0x4cd   : > { %v6527_v6 = vmax.f32 %v6463_v42, 0.0  ;;  %7700 = vmatprep.subr.bf16.mxu1 %v13097_v8 }
 0x4ce   : > { %v6465_v11 = vadd.f32 %v16228_v41, %v6380_v49  ;;  %7588 = vmatpush2.bf16.msra.mxu0 %v13092_v38  ;;  %v6525_v10 = vmax.f32 %v6461_v0, 0.0 }
 0x4cf   : > { %v6559_v1 = vpack.c.bf16 %v6527_v6, %v6523_v61 }
 0x4d0   : > { %v6529_v48 = vmax.f32 %v6465_v11, 0.0  ;;  %7701 = vmatpush2.bf16.msra.mxu1 %v13095_v30 }
 0x4d1   : > { %7434 = vmatmul.mubr.bf16.gmra.mxu0 %v6559_v1 }
 0x4d2   : > { %v6561_v43 = vpack.c.bf16 %v6529_v48, %v6525_v10  ;;  %7589 = vmatprep.mubr.bf16.mxu0 %v16203_v2 }
 0x4d4   : > { %7547 = vmatmul.mubr.bf16.gmra.mxu1 %v6561_v43 }
 0x4d5   : > { %7702 = vmatprep.mubr.bf16.mxu1 %v16211_v56 }
 0x4d9   : > { %7590 = vmatmul.mubr.bf16.vlgmr.msra.gmra.mxu0 %v16248_v3 }
 0x4da   : > { %7599 = vmatprep.mubr.bf16.mxu0 %v16270_v12 }
 0x4dc   : > { %7703 = vmatmul.mubr.bf16.vlgmr.msra.gmra.mxu1 %v18873_v31 }
 0x4dd   : > { %7712 = vmatprep.mubr.bf16.mxu1 %v18874_v20 }
 0x4e1   : > { %7600 = vmatmul.mubr.bf16.gmra.mxu0 %v16296_v4 }
 0x4e2   : > { %7609 = vmatprep.mubr.bf16.mxu0 %v16323_v27 }
 0x4e4   : > { %7713 = vmatmul.mubr.bf16.gmra.mxu1 %v16302_v40 }
 0x4e5   : > { %7722 = vmatprep.mubr.bf16.mxu1 %v16315_v7 }
 0x4e9   : > { %7610 = vmatmul.mubr.bf16.gmra.mxu0 %v16352_v60 }
 0x4ea   : > { %7619 = vmatprep.mubr.bf16.mxu0 %v16379_v29 }
 0x4ec   : > { %7723 = vmatmul.mubr.bf16.gmra.mxu1 %v16363_v55 }
 0x4ed   : > { %7732 = vmatprep.mubr.bf16.mxu1 %v16374_v16 }
 0x4f1   : > { %7620 = vmatmul.mubr.bf16.gmra.mxu0 %v16402_v47 }
 0x4f2   : > { %7629 = vmatprep.mubr.bf16.mxu0 %v16423_v46 }
 0x4f4   : > { %7733 = vmatmul.mubr.bf16.gmra.mxu1 %v16411_v53 }
 0x4f5   : > { %7742 = vmatprep.mubr.bf16.mxu1 %v16413_v15 }
 0x4f9   : > { %7630 = vmatmul.mubr.bf16.gmra.mxu0 %v16443_v57 }
 0x4fa   : > { %7639 = vmatprep.mubr.bf16.mxu0 %v16459_v5 }
 0x4fc   : > { %7743 = vmatmul.mubr.bf16.gmra.mxu1 %v16447_v22 }
 0x4fd   : > { %7752 = vmatprep.mubr.bf16.mxu1 %v16453_v36 }
 0x501   : > { %7640 = vmatmul.mubr.bf16.gmra.mxu0 %v16481_v28 }
 0x502   : > { %7649 = vmatprep.mubr.bf16.mxu0 %v16506_v23 }
 0x504   : > { %7753 = vmatmul.mubr.bf16.gmra.mxu1 %v16491_v19 }
 0x505   : > { %7762 = vmatprep.mubr.bf16.mxu1 %v16493_v58 }
 0x509   : > { %7650 = vmatmul.mubr.bf16.gmra.mxu0 %v16523_v21 }
 0x50a   : > { %7659 = vmatprep.mubr.bf16.mxu0 %v6560_v34 }
 0x50c   : > { %7763 = vmatmul.mubr.bf16.gmra.mxu1 %v16528_v54 }
 0x50d   : > { %7772 = vmatprep.mubr.bf16.mxu1 %v6562_v13 }
 0x511   : > { %7660 = vmatmul.mubr.bf16.gmra.mxu0 %v6559_v1 }
 0x514   : > { %7773 = vmatmul.mubr.bf16.gmra.mxu1 %v6561_v43 }
 0x550   : > { %v7365_v2 = vpop.f32.mrf.mxu0 }
 0x552   : > { %v7478_v56 = vpop.f32.mrf.mxu1  ;;  %v7367_v41 = vpop.f32.mrf.mxu0 }
 0x553   : > { %v7479_v3 = vadd.f32 %v7478_v56, %v7365_v2 }
 0x554   : > { %v7480_v12 = vpop.f32.mrf.mxu1  ;;  %v7369_v4 = vpop.f32.mrf.mxu0 }
 0x555   : > { %v7785_v40 = vrot.slane %v7479_v3, 4  ;;  %v7481_v7 = vadd.f32 %v7480_v12, %v7367_v41 }
 0x556   : > { %v7482_v27 = vpop.f32.mrf.mxu1  ;;  %v7371_v60 = vpop.f32.mrf.mxu0 }
 0x557   : > { %v7786_v55 = vadd.f32 %v7785_v40, %v7479_v3  ;;  %v7791_v16 = vrot.slane %v7481_v7, 4  ;;  %v7483_v29 = vadd.f32 %v7482_v27, %v7369_v4 }
 0x558   : > { %v7484_v47 = vpop.f32.mrf.mxu1 }
 0x559   : > { %v7787_v53 = vrot.slane %v7786_v55, 2  ;;  %v7792_v15 = vadd.f32 %v7791_v16, %v7481_v7  ;;  %v7809_v46 = vrot.slane %v7483_v29, 4  ;;  %v7485_v57 = vadd.f32 %v7484_v47, %v7371_v60 }
 0x55a   : > { %v7375_v22 = vpop.f32.mrf.mxu0 }
 0x55b   : > { %v7788_v36 = vadd.f32 %v7787_v53, %v7786_v55  ;;  %v7793_v5 = vrot.slane %v7792_v15, 2  ;;  %v7810_v28 = vadd.f32 %v7809_v46, %v7483_v29  ;;  %v7815_v19 = vrot.slane %v7485_v57, 4  ;;  %v7488_v58 = vpop.f32.mrf.mxu1 }
 0x55c   : > { %v16571_v23 = vadd.f32 %v7488_v58, %v7375_v22  ;;  %v7377_v21 = vpop.f32.mrf.mxu0 }
 0x55d   : > { %v7789_v37 = vrot.slane %v7788_v36, 1  ;;  %v7794_v24 = vadd.f32 %v7793_v5, %v7792_v15  ;;  %v7811_v39 = vrot.slane %v7810_v28, 2  ;;  %v7816_v50 = vadd.f32 %v7815_v19, %v7485_v57  ;;  %v7490_v51 = vpop.f32.mrf.mxu1 }
 0x55e   : > { %v7833_v54 = vrot.slane %v16571_v23, 4  ;;  %v16574_v52 = vadd.f32 %v7490_v51, %v7377_v21  ;;  %v7379_v33 = vpop.f32.mrf.mxu0 }
 0x55f   : > { %v7790_v62 = vadd.f32 %v7789_v37, %v7788_v36  ;;  %v7795_v14 = vrot.slane %v7794_v24, 1  ;;  %v7812_v13 = vadd.f32 %v7811_v39, %v7810_v28  ;;  %v7817_v63 = vrot.slane %v7816_v50, 2  ;;  %v7492_v44 = vpop.f32.mrf.mxu1 }
 0x560   : > { %v7834_v59 = vadd.f32 %v7833_v54, %v16571_v23  ;;  %v7839_v8 = vrot.slane %v16574_v52, 4  ;;  %v16578_v34 = vadd.f32 %v7492_v44, %v7379_v33  ;;  %v7381_v17 = vpop.f32.mrf.mxu0 }
 0x561   : > { %v8169_v32 = vmul.f32 0.125, %v7790_v62  ;;  %v7796_v38 = vadd.f32 %v7795_v14, %v7794_v24  ;;  %v7813_v42 = vrot.slane %v7812_v13, 1  ;;  %v7818_v45 = vadd.f32 %v7817_v63, %v7816_v50  ;;  %v7494_v49 = vpop.f32.mrf.mxu1 }
 0x562   : > { %v7835_v0 = vrot.slane %v7834_v59, 2  ;;  %v7840_v30 = vadd.f32 %v7839_v8, %v16574_v52  ;;  %v7857_v61 = vrot.slane %v16578_v34, 4  ;;  %v16582_v6 = vadd.f32 %v7494_v49, %v7381_v17 }
 0x563   : > { %v16584_v11 = vsub.f32 %v7479_v3, %v8169_v32  ;;  %v8170_v1 = vmul.f32 0.125, %v7796_v38  ;;  %v7814_v10 = vadd.f32 %v7813_v42, %v7812_v13  ;;  %v7819_v48 = vrot.slane %v7818_v45, 1 }
 0x564   : > { %v7836_v43 = vadd.f32 %v7835_v0, %v7834_v59  ;;  %v7841_v31 = vrot.slane %v7840_v30, 2  ;;  %v7858_v20 = vadd.f32 %v7857_v61, %v16578_v34  ;;  %v7863_v2 = vrot.slane %v16582_v6, 4 }
 0x565   : > { %18875 = vst [vmem:[#allocation19_spill] sm:$0xff] %v16584_v11  ;;  %v8297_v56 = vmul.f32 %v16584_v11, %v16584_v11  ;;  %v16590_v41 = vsub.f32 %v7481_v7, %v8170_v1  ;;  %v8173_v12 = vmul.f32 0.125, %v7814_v10  ;;  %v7820_v4 = vadd.f32 %v7819_v48, %v7818_v45  ;;  %v16601_v58 = vpop.f32.mrf.mxu0 }
 0x566   : > { %v7837_v40 = vrot.slane %v7836_v43, 1  ;;  %v7842_v27 = vadd.f32 %v7841_v31, %v7840_v30  ;;  %v7859_v3 = vrot.slane %v7858_v20, 2  ;;  %v7864_v60 = vadd.f32 %v7863_v2, %v16582_v6 }
 0x567   : > { %18876 = vst [vmem:[#allocation36_spill] sm:$0xff] %v16590_v41  ;;  %v8361_v55 = vrot.slane %v8297_v56, 4  ;;  %v8298_v16 = vmul.f32 %v16590_v41, %v16590_v41  ;;  %v16595_v47 = vsub.f32 %v7483_v29, %v8173_v12  ;;  %v8174_v53 = vmul.f32 0.125, %v7820_v4  ;;  %v16603_v21 = vpop.f32.mrf.mxu1  ;;  %v16610_v17 = vpop.f32.mrf.mxu0 }
 0x568   : > { %v7838_v15 = vadd.f32 %v7837_v40, %v7836_v43  ;;  %v7843_v46 = vrot.slane %v7842_v27, 1  ;;  %v7860_v22 = vadd.f32 %v7859_v3, %v7858_v20  ;;  %v7865_v36 = vrot.slane %v7864_v60, 2 }
 0x569   : > { %18877 = vst [vmem:[#allocation54_spill] sm:$0xff] %v16595_v47  ;;  %v8362_v7 = vadd.f32 %v8361_v55, %v8297_v56  ;;  %v8367_v5 = vrot.slane %v8298_v16, 4  ;;  %v8301_v28 = vmul.f32 %v16595_v47, %v16595_v47  ;;  %v16599_v19 = vsub.f32 %v7485_v57, %v8174_v53  ;;  %v7500_v32 = vpop.f32.mrf.mxu1 }
 0x56a   : > { %v8177_v37 = vmul.f32 0.125, %v7838_v15  ;;  %v7844_v24 = vadd.f32 %v7843_v46, %v7842_v27  ;;  %v7861_v29 = vrot.slane %v7860_v22, 1  ;;  %v7866_v39 = vadd.f32 %v7865_v36, %v7864_v60 }
 0x56b   : > { %18878 = vst [vmem:[#allocation18_spill] sm:$0xff] %v16599_v19  ;;  %v8363_v50 = vrot.slane %v8362_v7, 2  ;;  %v8368_v51 = vadd.f32 %v8367_v5, %v8298_v16  ;;  %v8385_v54 = vrot.slane %v8301_v28, 4  ;;  %v8302_v33 = vmul.f32 %v16599_v19, %v16599_v19  ;;  %v7502_v12 = vpop.f32.mrf.mxu1 }
 0x56c   : > { %v16608_v62 = vsub.f32 %v16571_v23, %v8177_v37  ;;  %v8178_v14 = vmul.f32 0.125, %v7844_v24  ;;  %v7862_v57 = vadd.f32 %v7861_v29, %v7860_v22  ;;  %v7867_v13 = vrot.slane %v7866_v39, 1 }
 0x56d   : > { %v8364_v63 = vadd.f32 %v8363_v50, %v8362_v7  ;;  %v8369_v44 = vrot.slane %v8368_v51, 2  ;;  %v8386_v59 = vadd.f32 %v8385_v54, %v8301_v28  ;;  %v8391_v8 = vrot.slane %v8302_v33, 4  ;;  %v7504_v24 = vpop.f32.mrf.mxu1 }
 0x56e   : > { %18879 = vst [vmem:[#allocation29_spill] sm:$0xff] %v16608_v62  ;;  %v8305_v38 = vmul.f32 %v16608_v62, %v16608_v62  ;;  %v16615_v42 = vsub.f32 %v16574_v52, %v8178_v14  ;;  %v8181_v45 = vmul.f32 0.125, %v7862_v57  ;;  %v7868_v49 = vadd.f32 %v7867_v13, %v7866_v39  ;;  %v7389_v52 = vpop.f32.mrf.mxu0 }
 0x56f   : > { %v8365_v23 = vrot.slane %v8364_v63, 1  ;;  %v8370_v0 = vadd.f32 %v8369_v44, %v8368_v51  ;;  %v8387_v30 = vrot.slane %v8386_v59, 2  ;;  %v8392_v61 = vadd.f32 %v8391_v8, %v8302_v33 }
 0x570   : > { %18880 = vst [vmem:[#allocation42_spill] sm:$0xff] %v16615_v42  ;;  %v8409_v1 = vrot.slane %v8305_v38, 4  ;;  %v8306_v10 = vmul.f32 %v16615_v42, %v16615_v42  ;;  %v16620_v48 = vsub.f32 %v16578_v34, %v8181_v45  ;;  %v8182_v43 = vmul.f32 0.125, %v7868_v49  ;;  %v7391_v37 = vpop.f32.mrf.mxu0 }
 0x571   : > { %v8366_v31 = vadd.f32 %v8365_v23, %v8364_v63  ;;  %v8371_v20 = vrot.slane %v8370_v0, 1  ;;  %v8388_v2 = vadd.f32 %v8387_v30, %v8386_v59  ;;  %v8393_v56 = vrot.slane %v8392_v61, 2  ;;  %v7508_v45 = vpop.f32.mrf.mxu1 }
 0x572   : > { %18881 = vst [vmem:[#allocation45_spill] sm:$0xff] %v16620_v48  ;;  %v8410_v4 = vadd.f32 %v8409_v1, %v8305_v38  ;;  %v8415_v40 = vrot.slane %v8306_v10, 4  ;;  %v8309_v27 = vmul.f32 %v16620_v48, %v16620_v48  ;;  %v16625_v3 = vsub.f32 %v16582_v6, %v8182_v43  ;;  %v7395_v38 = vpop.f32.mrf.mxu0 }
 0x573   : > { %v8745_v60 = vmul.f32 0.125, %v8366_v31  ;;  %v8372_v55 = vadd.f32 %v8371_v20, %v8370_v0  ;;  %v8389_v16 = vrot.slane %v8388_v2, 1  ;;  %v8394_v34 = vadd.f32 %v8393_v56, %v8392_v61 }
 0x574   : > { %18882 = vst [vmem:[#allocation25_spill] sm:$0xff] %v16625_v3  ;;  %v8411_v53 = vrot.slane %v8410_v4, 2  ;;  %v8416_v15 = vadd.f32 %v8415_v40, %v8306_v10  ;;  %v8433_v46 = vrot.slane %v8309_v27, 4  ;;  %v8310_v22 = vmul.f32 %v16625_v3, %v16625_v3  ;;  %v7510_v40 = vpop.f32.mrf.mxu1 }
 0x575   : > { %v8809_v36 = vadd.f32 1e-05, %v8745_v60  ;;  %v8746_v7 = vmul.f32 0.125, %v8372_v55  ;;  %v8390_v5 = vadd.f32 %v8389_v16, %v8388_v2  ;;  %v8395_v28 = vrot.slane %v8394_v34, 1 }
 0x576   : > { %v8412_v29 = vadd.f32 %v8411_v53, %v8410_v4  ;;  %v8417_v39 = vrot.slane %v8416_v15, 2  ;;  %v8434_v6 = vadd.f32 %v8433_v46, %v8309_v27  ;;  %v8439_v50 = vrot.slane %v8310_v22, 4  ;;  %v7397_v4 = vpop.f32.mrf.mxu0 }
 0x577   : > { %13466 = vrsqrt.f32 %v8809_v36  ;;  %v8810_v51 = vadd.f32 1e-05, %v8746_v7  ;;  %v8749_v54 = vmul.f32 0.125, %v8390_v5  ;;  %v8396_v33 = vadd.f32 %v8395_v28, %v8394_v34  ;;  %v7512_v28 = vpop.f32.mrf.mxu1 }
 0x578   : > { %v8413_v14 = vrot.slane %v8412_v29, 1  ;;  %v8418_v57 = vadd.f32 %v8417_v39, %v8416_v15  ;;  %v8435_v13 = vrot.slane %v8434_v6, 2  ;;  %v8440_v63 = vadd.f32 %v8439_v50, %v8310_v22  ;;  %v7399_v5 = vpop.f32.mrf.mxu0 }
 0x579   : > { %13468 = vrsqrt.f32 %v8810_v51  ;;  %v8813_v44 = vadd.f32 1e-05, %v8749_v54  ;;  %v8750_v59 = vmul.f32 0.125, %v8396_v33  ;;  %v16631_v8 = vadd.f32 %v16603_v21, %v16601_v58 }
 0x57a   : > { %v8414_v49 = vadd.f32 %v8413_v14, %v8412_v29  ;;  %v8419_v23 = vrot.slane %v8418_v57, 1  ;;  %v8436_v0 = vadd.f32 %v8435_v13, %v8434_v6  ;;  %v8441_v30 = vrot.slane %v8440_v63, 2 }
 0x57b   : > { %13470 = vrsqrt.f32 %v8813_v44  ;;  %v8814_v61 = vadd.f32 1e-05, %v8750_v59  ;;  %v7881_v1 = vrot.slane %v16631_v8, 4  ;;  %v16635_v10 = vadd.f32 %v7500_v32, %v16610_v17 }
 0x57c   : > { %v8753_v43 = vmul.f32 0.125, %v8414_v49  ;;  %v8420_v31 = vadd.f32 %v8419_v23, %v8418_v57  ;;  %v8437_v20 = vrot.slane %v8436_v0, 1  ;;  %v8442_v2 = vadd.f32 %v8441_v30, %v8440_v63  ;;  %v7401_v49 = vpop.f32.mrf.mxu0 }
 0x57d   : > { %13472 = vrsqrt.f32 %v8814_v61  ;;  %v7882_v58 = vadd.f32 %v7881_v1, %v16631_v8  ;;  %v7887_v21 = vrot.slane %v16635_v10, 4  ;;  %v16639_v56 = vadd.f32 %v7502_v12, %v7389_v52 }
 0x57e   : > { %v8817_v27 = vadd.f32 1e-05, %v8753_v43  ;;  %v8754_v60 = vmul.f32 0.125, %v8420_v31  ;;  %v8438_v55 = vadd.f32 %v8437_v20, %v8436_v0  ;;  %v8443_v16 = vrot.slane %v8442_v2, 1  ;;  %v13100_v20 = vld [vmem:[#allocation7 + $0x74] ss:$8 sps:$4 sm:$0xff]  }
 0x57f   : > { %v7883_v34 = vrot.slane %v7882_v58, 2  ;;  %v7888_v17 = vadd.f32 %v7887_v21, %v16635_v10  ;;  %v7905_v32 = vrot.slane %v16639_v56, 4  ;;  %v16643_v53 = vadd.f32 %v7504_v24, %v7391_v37  ;;  %10382 = vmatprep.subr.bf16.mxu0 %v13100_v20 }
 0x580   : > { %13474 = vrsqrt.f32 %v8817_v27  ;;  %v8818_v15 = vadd.f32 1e-05, %v8754_v60  ;;  %v8757_v46 = vmul.f32 0.125, %v8438_v55  ;;  %v8444_v22 = vadd.f32 %v8443_v16, %v8442_v2  ;;  %v13103_v2 = vld [vmem:[#allocation7 + $0x174] ss:$8 sps:$4 sm:$0xff]  }
 0x581   : > { %v7884_v36 = vadd.f32 %v7883_v34, %v7882_v58  ;;  %v7889_v52 = vrot.slane %v7888_v17, 2  ;;  %v7906_v12 = vadd.f32 %v7905_v32, %v16639_v56  ;;  %v7911_v7 = vrot.slane %v16643_v53, 4  ;;  %v13098_v60 = vld [vmem:[#allocation7 + $0x70] ss:$8 sps:$4 sm:$0xff]   ;;  %10495 = vmatprep.subr.bf16.mxu1 %v13103_v2 }
 0x582   : > { %13476 = vrsqrt.f32 %v8818_v15  ;;  %v8821_v29 = vadd.f32 1e-05, %v8757_v46  ;;  %v8758_v39 = vmul.f32 0.125, %v8444_v22  ;;  %v16647_v6 = vadd.f32 %v7508_v45, %v7395_v38  ;;  %v7514_v38 = vpop.f32.mrf.mxu1  ;;  %v13101_v55 = vld [vmem:[#allocation7 + $0x170] ss:$8 sps:$4 sm:$0xff]   ;;  %10383 = vmatpush1.bf16.msra.mxu0 %v13098_v60 }
 0x583   : > { %v7885_v50 = vrot.slane %v7884_v36, 1  ;;  %v7890_v37 = vadd.f32 %v7889_v52, %v7888_v17  ;;  %v7907_v24 = vrot.slane %v7906_v12, 2  ;;  %v7912_v51 = vadd.f32 %v7911_v7, %v16643_v53  ;;  %10496 = vmatpush1.bf16.msra.mxu1 %v13101_v55 }
 0x584   : > { %v16650_v54 = vpop.eup %13466  ;;  %13478 = vrsqrt.f32 %v8821_v29  ;;  %v8822_v33 = vadd.f32 1e-05, %v8758_v39  ;;  %v7929_v14 = vrot.slane %v16647_v6, 4  ;;  %v16653_v57 = vadd.f32 %v7510_v40, %v7397_v4 }
 0x585   : > { %v7886_v13 = vadd.f32 %v7885_v50, %v7884_v36  ;;  %v7891_v63 = vrot.slane %v7890_v37, 1  ;;  %v7908_v44 = vadd.f32 %v7907_v24, %v7906_v12  ;;  %v7913_v59 = vrot.slane %v7912_v51, 2 }
 0x586   : > { %v16655_v45 = vpop.eup %13468  ;;  %13480 = vrsqrt.f32 %v8822_v33  ;;  %v7930_v23 = vadd.f32 %v7929_v14, %v16647_v6  ;;  %v7935_v0 = vrot.slane %v16653_v57, 4  ;;  %v16659_v30 = vadd.f32 %v7512_v28, %v7399_v5 }
 0x587   : > { %v8185_v61 = vmul.f32 0.125, %v7886_v13  ;;  %v7892_v1 = vadd.f32 %v7891_v63, %v7890_v37  ;;  %v7909_v43 = vrot.slane %v7908_v44, 1  ;;  %v7914_v31 = vadd.f32 %v7913_v59, %v7912_v51 }
 0x588   : > { %v16661_v58 = vpop.eup %13470  ;;  %v7931_v21 = vrot.slane %v7930_v23, 2  ;;  %v7936_v4 = vadd.f32 %v7935_v0, %v16653_v57  ;;  %v7953_v40 = vrot.slane %v16659_v30, 4  ;;  %v16665_v27 = vadd.f32 %v7514_v38, %v7401_v49 }
 0x589   : > { %v16668_v16 = vsub.f32 %v16631_v8, %v8185_v61  ;;  %v8186_v34 = vmul.f32 0.125, %v7892_v1  ;;  %v7910_v17 = vadd.f32 %v7909_v43, %v7908_v44  ;;  %v7915_v32 = vrot.slane %v7914_v31, 1  ;;  %v16694_v61 = vpop.f32.mrf.mxu0  ;;  %v16696_v1 = vpop.f32.mrf.mxu1 }
 0x58a   : > { %v16670_v15 = vpop.eup %13472  ;;  %v7932_v46 = vadd.f32 %v7931_v21, %v7930_v23  ;;  %v7937_v22 = vrot.slane %v7936_v4, 2  ;;  %v7954_v36 = vadd.f32 %v7953_v40, %v16659_v30  ;;  %v7959_v52 = vrot.slane %v16665_v27, 4 }
 0x58b   : > { %18883 = vst [vmem:[#allocation37_spill] sm:$0xff] %v16668_v16  ;;  %v8313_v12 = vmul.f32 %v16668_v16, %v16668_v16  ;;  %v16677_v8 = vsub.f32 %v16635_v10, %v8186_v34  ;;  %v8189_v7 = vmul.f32 0.125, %v7910_v17  ;;  %v7916_v5 = vadd.f32 %v7915_v32, %v7914_v31 }
 0x58c   : > { %v7933_v28 = vrot.slane %v7932_v46, 1  ;;  %v7938_v29 = vadd.f32 %v7937_v22, %v7936_v4  ;;  %v7955_v39 = vrot.slane %v7954_v36, 2  ;;  %v7960_v50 = vadd.f32 %v7959_v52, %v16665_v27 }
 0x58d   : > { %18884 = vst [vmem:[#allocation22_spill] sm:$0xff] %v16677_v8  ;;  %v16680_v37 = vpop.eup %13474  ;;  %v8457_v24 = vrot.slane %v8313_v12, 4  ;;  %v8314_v51 = vmul.f32 %v16677_v8, %v16677_v8  ;;  %v16685_v33 = vsub.f32 %v16639_v56, %v8189_v7  ;;  %v8190_v14 = vmul.f32 0.125, %v7916_v5  ;;  %v16709_v7 = vpop.f32.mrf.mxu1 }
 0x58e   : > { %v7934_v13 = vadd.f32 %v7933_v28, %v7932_v46  ;;  %v7939_v10 = vrot.slane %v7938_v29, 1  ;;  %v7956_v63 = vadd.f32 %v7955_v39, %v7954_v36  ;;  %v7961_v44 = vrot.slane %v7960_v50, 2 }
 0x58f   : > { %18885 = vst [vmem:[#allocation35_spill] sm:$0xff] %v16685_v33  ;;  %v16687_v59 = vpop.eup %13476  ;;  %v8458_v49 = vadd.f32 %v8457_v24, %v8313_v12  ;;  %v8463_v38 = vrot.slane %v8314_v51, 4  ;;  %v8317_v23 = vmul.f32 %v16685_v33, %v16685_v33  ;;  %v16692_v0 = vsub.f32 %v16643_v53, %v8190_v14  ;;  %v16707_v12 = vpop.f32.mrf.mxu0 }
 0x590   : > { %v8193_v56 = vmul.f32 0.125, %v7934_v13  ;;  %v7940_v43 = vadd.f32 %v7939_v10, %v7938_v29  ;;  %v7957_v31 = vrot.slane %v7956_v63, 1  ;;  %v7962_v20 = vadd.f32 %v7961_v44, %v7960_v50 }
 0x591   : > { %18886 = vst [vmem:[#allocation63_spill] sm:$0xff] %v16692_v0  ;;  %v16698_v2 = vpop.eup %13478  ;;  %v8459_v21 = vrot.slane %v8458_v49, 2  ;;  %v8464_v4 = vadd.f32 %v8463_v38, %v8314_v51  ;;  %v8481_v40 = vrot.slane %v8317_v23, 4  ;;  %v8318_v60 = vmul.f32 %v16692_v0, %v16692_v0 }
 0x592   : > { %v16703_v55 = vsub.f32 %v16647_v6, %v8193_v56  ;;  %v8194_v53 = vmul.f32 0.125, %v7940_v43  ;;  %v7958_v34 = vadd.f32 %v7957_v31, %v7956_v63  ;;  %v7963_v17 = vrot.slane %v7962_v20, 1  ;;  %v7522_v56 = vpop.f32.mrf.mxu1 }
 0x593   : > { %v16705_v32 = vpop.eup %13480  ;;  %v8460_v46 = vadd.f32 %v8459_v21, %v8458_v49  ;;  %v8465_v22 = vrot.slane %v8464_v4, 2  ;;  %v8482_v36 = vadd.f32 %v8481_v40, %v8317_v23  ;;  %v8487_v52 = vrot.slane %v8318_v60, 4 }
 0x594   : > { %18887 = vst [vmem:[#allocation46_spill] sm:$0xff] %v16703_v55  ;;  %v8321_v5 = vmul.f32 %v16703_v55, %v16703_v55  ;;  %v16714_v28 = vsub.f32 %v16653_v57, %v8194_v53  ;;  %v8197_v6 = vmul.f32 0.125, %v7958_v34  ;;  %v7964_v29 = vadd.f32 %v7963_v17, %v7962_v20  ;;  %v7409_v57 = vpop.f32.mrf.mxu0 }
 0x595   : > { %v8461_v39 = vrot.slane %v8460_v46, 1  ;;  %v8466_v50 = vadd.f32 %v8465_v22, %v8464_v4  ;;  %v8483_v24 = vrot.slane %v8482_v36, 2  ;;  %v8488_v51 = vadd.f32 %v8487_v52, %v8318_v60 }
 0x596   : > { %18888 = vst [vmem:[#allocation23_spill] sm:$0xff] %v16714_v28  ;;  %v8505_v14 = vrot.slane %v8321_v5, 4  ;;  %v8322_v13 = vmul.f32 %v16714_v28, %v16714_v28  ;;  %v16719_v10 = vsub.f32 %v16659_v30, %v8197_v6  ;;  %v8198_v63 = vmul.f32 0.125, %v7964_v29  ;;  %v7411_v6 = vpop.f32.mrf.mxu0  ;;  %v7524_v29 = vpop.f32.mrf.mxu1 }
 0x597   : > { %v8462_v44 = vadd.f32 %v8461_v39, %v8460_v46  ;;  %v8467_v49 = vrot.slane %v8466_v50, 1  ;;  %v8484_v38 = vadd.f32 %v8483_v24, %v8482_v36  ;;  %v8489_v23 = vrot.slane %v8488_v51, 2 }
 0x598   : > { %18889 = vst [vmem:[#allocation24_spill] sm:$0xff] %v16719_v10  ;;  %v8506_v43 = vadd.f32 %v8505_v14, %v8321_v5  ;;  %v8511_v31 = vrot.slane %v8322_v13, 4  ;;  %v8325_v20 = vmul.f32 %v16719_v10, %v16719_v10  ;;  %v16724_v21 = vsub.f32 %v16665_v27, %v8198_v63  ;;  %v13127_v10 = vld [vmem:[#allocation7 + $0x134] ss:$8 sps:$4 sm:$0xff]  }
 0x599   : > { %v8761_v4 = vmul.f32 0.125, %v8462_v44  ;;  %v8468_v40 = vadd.f32 %v8467_v49, %v8466_v50  ;;  %v8485_v60 = vrot.slane %v8484_v38, 1  ;;  %v8490_v30 = vadd.f32 %v8489_v23, %v8488_v51 }
 0x59a   : > { %18890 = vst [vmem:[#allocation20_spill] sm:$0xff] %v16724_v21  ;;  %v8507_v53 = vrot.slane %v8506_v43, 2  ;;  %v8512_v34 = vadd.f32 %v8511_v31, %v8322_v13  ;;  %v8529_v17 = vrot.slane %v8325_v20, 4  ;;  %v8326_v46 = vmul.f32 %v16724_v21, %v16724_v21 }
 0x59b   : > { %v8825_v22 = vadd.f32 1e-05, %v8761_v4  ;;  %v8762_v36 = vmul.f32 0.125, %v8468_v40  ;;  %v8486_v52 = vadd.f32 %v8485_v60, %v8484_v38  ;;  %v8491_v5 = vrot.slane %v8490_v30, 1  ;;  %v7415_v40 = vpop.f32.mrf.mxu0 }
 0x59c   : > { %v8508_v39 = vadd.f32 %v8507_v53, %v8506_v43  ;;  %v8513_v24 = vrot.slane %v8512_v34, 2  ;;  %v8530_v27 = vadd.f32 %v8529_v17, %v8325_v20  ;;  %v8535_v14 = vrot.slane %v8326_v46, 4  ;;  %v7528_v43 = vpop.f32.mrf.mxu1 }
 0x59d   : > { %13482 = vrsqrt.f32 %v8825_v22  ;;  %v8826_v50 = vadd.f32 1e-05, %v8762_v36  ;;  %v8765_v63 = vmul.f32 0.125, %v8486_v52  ;;  %v8492_v51 = vadd.f32 %v8491_v5, %v8490_v30  ;;  %v13106_v22 = vld [vmem:[#allocation7 + $0x64] ss:$8 sps:$4 sm:$0xff]  }
 0x59e   : > { %v8509_v44 = vrot.slane %v8508_v39, 1  ;;  %v8514_v13 = vadd.f32 %v8513_v24, %v8512_v34  ;;  %v8531_v49 = vrot.slane %v8530_v27, 2  ;;  %v8536_v23 = vadd.f32 %v8535_v14, %v8326_v46  ;;  %v13109_v36 = vld [vmem:[#allocation7 + $0x164] ss:$8 sps:$4 sm:$0xff]   ;;  %v13104_v52 = vld [vmem:[#allocation7 + $0x60] ss:$8 sps:$4 sm:$0xff]   ;;  %10384 = vmatprep.subr.bf16.mxu0 %v13106_v22 }
 0x59f   : > { %13484 = vrsqrt.f32 %v8826_v50  ;;  %v8829_v31 = vadd.f32 1e-05, %v8765_v63  ;;  %v8766_v4 = vmul.f32 0.125, %v8492_v51  ;;  %v16730_v38 = vadd.f32 %v16696_v1, %v16694_v61  ;;  %10497 = vmatprep.subr.bf16.mxu1 %v13109_v36  ;;  %v7417_v63 = vpop.f32.mrf.mxu0  ;;  %v7530_v51 = vpop.f32.mrf.mxu1  ;;  %10385 = vmatpush1.bf16.msra.mxu0 %v13104_v52  ;;  %v13110_v52 = vld [vmem:[#allocation7 + $0x50] ss:$8 sps:$4 sm:$0xff]  }
 0x5a0   : > { %v8510_v60 = vadd.f32 %v8509_v44, %v8508_v39  ;;  %v8515_v20 = vrot.slane %v8514_v13, 1  ;;  %v8532_v53 = vadd.f32 %v8531_v49, %v8530_v27  ;;  %v8537_v17 = vrot.slane %v8536_v23, 2  ;;  %v13107_v39 = vld [vmem:[#allocation7 + $0x160] ss:$8 sps:$4 sm:$0xff]  }
 0x5a1   : > { %13486 = vrsqrt.f32 %v8829_v31  ;;  %v8830_v30 = vadd.f32 1e-05, %v8766_v4  ;;  %v7977_v34 = vrot.slane %v16730_v38, 4  ;;  %v16735_v46 = vadd.f32 %v16709_v7, %v16707_v12  ;;  %10498 = vmatpush1.bf16.msra.mxu1 %v13107_v39 }
 0x5a2   : > { %v8769_v5 = vmul.f32 0.125, %v8510_v60  ;;  %v8516_v61 = vadd.f32 %v8515_v20, %v8514_v13  ;;  %v8533_v1 = vrot.slane %v8532_v53, 1  ;;  %v8538_v24 = vadd.f32 %v8537_v17, %v8536_v23 }
 0x5a3   : > { %13488 = vrsqrt.f32 %v8830_v30  ;;  %v7978_v27 = vadd.f32 %v7977_v34, %v16730_v38  ;;  %v7983_v14 = vrot.slane %v16735_v46, 4  ;;  %v16739_v50 = vadd.f32 %v7522_v56, %v7409_v57  ;;  %v13112_v56 = vld [vmem:[#allocation7 + $0x54] ss:$8 sps:$4 sm:$0xff]   ;;  %v7419_v30 = vpop.f32.mrf.mxu0  ;;  %v7532_v34 = vpop.f32.mrf.mxu1 }
 0x5a4   : > { %v8833_v12 = vadd.f32 1e-05, %v8769_v5  ;;  %v8770_v7 = vmul.f32 0.125, %v8516_v61  ;;  %v8534_v44 = vadd.f32 %v8533_v1, %v8532_v53  ;;  %v8539_v49 = vrot.slane %v8538_v24, 1  ;;  %v13113_v5 = vld [vmem:[#allocation7 + $0x150] ss:$8 sps:$4 sm:$0xff]   ;;  %10386 = vmatprep.subr.bf16.mxu0 %v13112_v56 }
 0x5a5   : > { %v7979_v13 = vrot.slane %v7978_v27, 2  ;;  %v7984_v23 = vadd.f32 %v7983_v14, %v16735_v46  ;;  %v8001_v31 = vrot.slane %v16739_v50, 4  ;;  %v16743_v4 = vadd.f32 %v7524_v29, %v7411_v6  ;;  %v13115_v29 = vld [vmem:[#allocation7 + $0x154] ss:$8 sps:$4 sm:$0xff]   ;;  %10387 = vmatpush1.bf16.msra.mxu0 %v13110_v52 }
 0x5a6   : > { %13490 = vrsqrt.f32 %v8833_v12  ;;  %v8834_v60 = vadd.f32 1e-05, %v8770_v7  ;;  %v8773_v20 = vmul.f32 0.125, %v8534_v44  ;;  %v8540_v57 = vadd.f32 %v8539_v49, %v8538_v24  ;;  %10499 = vmatprep.subr.bf16.mxu1 %v13115_v29 }
 0x5a7   : > { %v7980_v17 = vadd.f32 %v7979_v13, %v7978_v27  ;;  %v7985_v22 = vrot.slane %v7984_v23, 2  ;;  %v8002_v36 = vadd.f32 %v8001_v31, %v16739_v50  ;;  %v8007_v53 = vrot.slane %v16743_v4, 4  ;;  %10500 = vmatpush1.bf16.msra.mxu1 %v13113_v5 }
 0x5a8   : > { %13492 = vrsqrt.f32 %v8834_v60  ;;  %v8837_v61 = vadd.f32 1e-05, %v8773_v20  ;;  %v8774_v1 = vmul.f32 0.125, %v8540_v57  ;;  %v16747_v6 = vadd.f32 %v7528_v43, %v7415_v40  ;;  %v7421_v60 = vpop.f32.mrf.mxu0  ;;  %v7534_v20 = vpop.f32.mrf.mxu1  ;;  %v13121_v57 = vld [vmem:[#allocation7 + $0x144] ss:$8 sps:$4 sm:$0xff]  }
 0x5a9   : > { %v7981_v39 = vrot.slane %v7980_v17, 1  ;;  %v7986_v24 = vadd.f32 %v7985_v22, %v7984_v23  ;;  %v8003_v14 = vrot.slane %v8002_v36, 2  ;;  %v8008_v27 = vadd.f32 %v8007_v53, %v16743_v4  ;;  %v13118_v23 = vld [vmem:[#allocation7 + $0x44] ss:$8 sps:$4 sm:$0xff]   ;;  %10501 = vmatprep.subr.bf16.mxu1 %v13121_v57 }
 0x5aa   : > { %v16750_v12 = vpop.eup %13482  ;;  %13494 = vrsqrt.f32 %v8837_v61  ;;  %v8838_v7 = vadd.f32 1e-05, %v8774_v1  ;;  %v8025_v44 = vrot.slane %v16747_v6, 4  ;;  %v16753_v49 = vadd.f32 %v7530_v51, %v7417_v63  ;;  %v13116_v63 = vld [vmem:[#allocation7 + $0x40] ss:$8 sps:$4 sm:$0xff]   ;;  %10388 = vmatprep.subr.bf16.mxu0 %v13118_v23 }
 0x5ab   : > { %v7982_v13 = vadd.f32 %v7981_v39, %v7980_v17  ;;  %v7987_v40 = vrot.slane %v7986_v24, 1  ;;  %v8004_v43 = vadd.f32 %v8003_v14, %v8002_v36  ;;  %v8009_v31 = vrot.slane %v8008_v27, 2  ;;  %v13119_v51 = vld [vmem:[#allocation7 + $0x140] ss:$8 sps:$4 sm:$0xff]   ;;  %10389 = vmatpush1.bf16.msra.mxu0 %v13116_v63 }
 0x5ac   : > { %v16755_v56 = vpop.eup %13484  ;;  %13496 = vrsqrt.f32 %v8838_v7  ;;  %v8026_v22 = vadd.f32 %v8025_v44, %v16747_v6  ;;  %v8031_v53 = vrot.slane %v16753_v49, 4  ;;  %v16759_v52 = vadd.f32 %v7532_v34, %v7419_v30  ;;  %10502 = vmatpush1.bf16.msra.mxu1 %v13119_v51 }
 0x5ad   : > { %v8201_v17 = vmul.f32 0.125, %v7982_v13  ;;  %v7988_v61 = vadd.f32 %v7987_v40, %v7986_v24  ;;  %v8005_v36 = vrot.slane %v8004_v43, 1  ;;  %v8010_v1 = vadd.f32 %v8009_v31, %v8008_v27  ;;  %10503 = vmatprep.subr.bf16.mxu1 %v13127_v10 }
 0x5ae   : > { %v16761_v5 = vpop.eup %13486  ;;  %v8027_v29 = vrot.slane %v8026_v22, 2  ;;  %v8032_v39 = vadd.f32 %v8031_v53, %v16753_v49  ;;  %v8049_v14 = vrot.slane %v16759_v52, 4  ;;  %v16765_v7 = vadd.f32 %v7534_v20, %v7421_v60 }
 0x5af   : > { %v16768_v30 = vsub.f32 %v16730_v38, %v8201_v17  ;;  %v8202_v34 = vmul.f32 0.125, %v7988_v61  ;;  %v8006_v44 = vadd.f32 %v8005_v36, %v8004_v43  ;;  %v8011_v24 = vrot.slane %v8010_v1, 1 }
 0x5b0   : > { %v16770_v27 = vpop.eup %13488  ;;  %v8028_v13 = vadd.f32 %v8027_v29, %v8026_v22  ;;  %v8033_v40 = vrot.slane %v8032_v39, 2  ;;  %v8050_v31 = vadd.f32 %v8049_v14, %v16759_v52  ;;  %v8055_v23 = vrot.slane %v16765_v7, 4 }
 0x5b1   : > { %18891 = vst [vmem:[#allocation21_spill] sm:$0xff] %v16768_v30  ;;  %v8329_v60 = vmul.f32 %v16768_v30, %v16768_v30  ;;  %v16777_v20 = vsub.f32 %v16735_v46, %v8202_v34  ;;  %v8205_v38 = vmul.f32 0.125, %v8006_v44  ;;  %v8012_v57 = vadd.f32 %v8011_v24, %v8010_v1  ;;  %v16794_v30 = vpop.f32.mrf.mxu0 }
 0x5b2   : > { %v8029_v53 = vrot.slane %v8028_v13, 1  ;;  %v8034_v43 = vadd.f32 %v8033_v40, %v8032_v39  ;;  %v8051_v63 = vrot.slane %v8050_v31, 2  ;;  %v8056_v51 = vadd.f32 %v8055_v23, %v16765_v7 }
 0x5b3   : > { %18892 = vst [vmem:[#allocation53_spill] sm:$0xff] %v16777_v20  ;;  %v16780_v17 = vpop.eup %13490  ;;  %v8553_v22 = vrot.slane %v8329_v60, 4  ;;  %v8330_v61 = vmul.f32 %v16777_v20, %v16777_v20  ;;  %v16785_v36 = vsub.f32 %v16739_v50, %v8205_v38  ;;  %v8206_v29 = vmul.f32 0.125, %v8012_v57  ;;  %v16796_v20 = vpop.f32.mrf.mxu1 }
 0x5b4   : > { %v8030_v14 = vadd.f32 %v8029_v53, %v8028_v13  ;;  %v8035_v46 = vrot.slane %v8034_v43, 1  ;;  %v8052_v34 = vadd.f32 %v8051_v63, %v8050_v31  ;;  %v8057_v44 = vrot.slane %v8056_v51, 2 }
 0x5b5   : > { %18893 = vst [vmem:[#allocation50_spill] sm:$0xff] %v16785_v36  ;;  %v16787_v1 = vpop.eup %13492  ;;  %v8554_v39 = vadd.f32 %v8553_v22, %v8329_v60  ;;  %v8559_v24 = vrot.slane %v8330_v61, 4  ;;  %v8333_v40 = vmul.f32 %v16785_v36, %v16785_v36  ;;  %v16792_v23 = vsub.f32 %v16743_v4, %v8206_v29  ;;  %v13124_v36 = vld [vmem:[#allocation7 + $0x34] ss:$8 sps:$4 sm:$0xff]   ;;  %v16809_v33 = vpop.f32.mrf.mxu1 }
 0x5b6   : > { %v8209_v50 = vmul.f32 0.125, %v8030_v14  ;;  %v8036_v38 = vadd.f32 %v8035_v46, %v8034_v43  ;;  %v8053_v13 = vrot.slane %v8052_v34, 1  ;;  %v8058_v57 = vadd.f32 %v8057_v44, %v8056_v51  ;;  %v13122_v14 = vld [vmem:[#allocation7 + $0x30] ss:$8 sps:$4 sm:$0xff]   ;;  %10390 = vmatprep.subr.bf16.mxu0 %v13124_v36 }
 0x5b7   : > { %18894 = vst [vmem:[#allocation32_spill] sm:$0xff] %v16792_v23  ;;  %v16798_v31 = vpop.eup %13494  ;;  %v8555_v53 = vrot.slane %v8554_v39, 2  ;;  %v8560_v63 = vadd.f32 %v8559_v24, %v8330_v61  ;;  %v8577_v60 = vrot.slane %v8333_v40, 4  ;;  %v8334_v22 = vmul.f32 %v16792_v23, %v16792_v23  ;;  %v13125_v43 = vld [vmem:[#allocation7 + $0x130] ss:$8 sps:$4 sm:$0xff]   ;;  %v16807_v24 = vpop.f32.mrf.mxu0  ;;  %10391 = vmatpush1.bf16.msra.mxu0 %v13122_v14 }
 0x5b8   : > { %v16803_v4 = vsub.f32 %v16747_v6, %v8209_v50  ;;  %v8210_v29 = vmul.f32 0.125, %v8036_v38  ;;  %v8054_v55 = vadd.f32 %v8053_v13, %v8052_v34  ;;  %v8059_v21 = vrot.slane %v8058_v57, 1  ;;  %10504 = vmatpush1.bf16.msra.mxu1 %v13125_v43 }
 0x5b9   : > { %v16805_v46 = vpop.eup %13496  ;;  %v8556_v51 = vadd.f32 %v8555_v53, %v8554_v39  ;;  %v8561_v44 = vrot.slane %v8560_v63, 2  ;;  %v8578_v28 = vadd.f32 %v8577_v60, %v8333_v40  ;;  %v8583_v61 = vrot.slane %v8334_v22, 4 }
 0x5ba   : > { %18895 = vst [vmem:[#allocation30_spill] sm:$0xff] %v16803_v4  ;;  %v8337_v6 = vmul.f32 %v16803_v4, %v16803_v4  ;;  %v16814_v34 = vsub.f32 %v16753_v49, %v8210_v29  ;;  %v8213_v50 = vmul.f32 0.125, %v8054_v55  ;;  %v8060_v38 = vadd.f32 %v8059_v21, %v8058_v57  ;;  %v7429_v55 = vpop.f32.mrf.mxu0  ;;  %v7542_v21 = vpop.f32.mrf.mxu1 }
 0x5bb   : > { %v8557_v39 = vrot.slane %v8556_v51, 1  ;;  %v8562_v13 = vadd.f32 %v8561_v44, %v8560_v63  ;;  %v8579_v40 = vrot.slane %v8578_v28, 2  ;;  %v8584_v53 = vadd.f32 %v8583_v61, %v8334_v22 }
 0x5bc   : > { %18896 = vst [vmem:[#allocation28_spill] sm:$0xff] %v16814_v34  ;;  %v8601_v60 = vrot.slane %v8337_v6, 4  ;;  %v8338_v23 = vmul.f32 %v16814_v34, %v16814_v34  ;;  %v16819_v10 = vsub.f32 %v16759_v52, %v8213_v50  ;;  %v8214_v36 = vmul.f32 0.125, %v8060_v38  ;;  %v7431_v34 = vpop.f32.mrf.mxu0  ;;  %v7544_v0 = vpop.f32.mrf.mxu1 }
 0x5bd   : > { %v8558_v4 = vadd.f32 %v8557_v39, %v8556_v51  ;;  %v8563_v16 = vrot.slane %v8562_v13, 1  ;;  %v8580_v49 = vadd.f32 %v8579_v40, %v8578_v28  ;;  %v8585_v29 = vrot.slane %v8584_v53, 2 }
 0x5be   : > { %18897 = vst [vmem:[#allocation26_spill] sm:$0xff] %v16819_v10  ;;  %v8602_v57 = vadd.f32 %v8601_v60, %v8337_v6  ;;  %v8607_v14 = vrot.slane %v8338_v23, 4  ;;  %v8341_v63 = vmul.f32 %v16819_v10, %v16819_v10  ;;  %v16824_v22 = vsub.f32 %v16765_v7, %v8214_v36 }
 0x5bf   : > { %v8777_v43 = vmul.f32 0.125, %v8558_v4  ;;  %v8564_v44 = vadd.f32 %v8563_v16, %v8562_v13  ;;  %v8581_v61 = vrot.slane %v8580_v49, 1  ;;  %v8586_v52 = vadd.f32 %v8585_v29, %v8584_v53 }
 0x5c0   : > { %18898 = vst [vmem:[#allocation56_spill] sm:$0xff] %v16824_v22  ;;  %v8603_v50 = vrot.slane %v8602_v57, 2  ;;  %v8608_v38 = vadd.f32 %v8607_v14, %v8338_v23  ;;  %v8625_v51 = vrot.slane %v8341_v63, 4  ;;  %v8342_v28 = vmul.f32 %v16824_v22, %v16824_v22 }
 0x5c1   : > { %v8841_v39 = vadd.f32 1e-05, %v8777_v43  ;;  %v8778_v40 = vmul.f32 0.125, %v8564_v44  ;;  %v8582_v6 = vadd.f32 %v8581_v61, %v8580_v49  ;;  %v8587_v60 = vrot.slane %v8586_v52, 1  ;;  %v7435_v44 = vpop.f32.mrf.mxu0 }
 0x5c2   : > { %v8604_v10 = vadd.f32 %v8603_v50, %v8602_v57  ;;  %v8609_v8 = vrot.slane %v8608_v38, 2  ;;  %v8626_v7 = vadd.f32 %v8625_v51, %v8341_v63  ;;  %v8631_v36 = vrot.slane %v8342_v28, 4  ;;  %v7548_v57 = vpop.f32.mrf.mxu1 }
 0x5c3   : > { %13498 = vrsqrt.f32 %v8841_v39  ;;  %v8842_v16 = vadd.f32 1e-05, %v8778_v40  ;;  %v8781_v4 = vmul.f32 0.125, %v8582_v6  ;;  %v8588_v13 = vadd.f32 %v8587_v60, %v8586_v52  ;;  %v7437_v60 = vpop.f32.mrf.mxu0 }
 0x5c4   : > { %v8605_v53 = vrot.slane %v8604_v10, 1  ;;  %v8610_v23 = vadd.f32 %v8609_v8, %v8608_v38  ;;  %v8627_v29 = vrot.slane %v8626_v7, 2  ;;  %v8632_v14 = vadd.f32 %v8631_v36, %v8342_v28 }
 0x5c5   : > { %13500 = vrsqrt.f32 %v8842_v16  ;;  %v8845_v22 = vadd.f32 1e-05, %v8781_v4  ;;  %v8782_v43 = vmul.f32 0.125, %v8588_v13  ;;  %v16830_v49 = vadd.f32 %v16796_v20, %v16794_v30  ;;  %v13130_v13 = vld [vmem:[#allocation7 + $0x24] ss:$8 sps:$4 sm:$0xff]  }
 0x5c6   : > { %v8606_v61 = vadd.f32 %v8605_v53, %v8604_v10  ;;  %v8611_v63 = vrot.slane %v8610_v23, 1  ;;  %v8628_v50 = vadd.f32 %v8627_v29, %v8626_v7  ;;  %v8633_v51 = vrot.slane %v8632_v14, 2  ;;  %v13128_v29 = vld [vmem:[#allocation7 + $0x20] ss:$8 sps:$4 sm:$0xff]   ;;  %10392 = vmatprep.subr.bf16.mxu0 %v13130_v13 }
 0x5c7   : > { %13502 = vrsqrt.f32 %v8845_v22  ;;  %v8846_v39 = vadd.f32 1e-05, %v8782_v43  ;;  %v8073_v52 = vrot.slane %v16830_v49, 4  ;;  %v16835_v8 = vadd.f32 %v16809_v33, %v16807_v24  ;;  %v7550_v22 = vpop.f32.mrf.mxu1  ;;  %10393 = vmatpush1.bf16.msra.mxu0 %v13128_v29 }
 0x5c8   : > { %v8785_v38 = vmul.f32 0.125, %v8606_v61  ;;  %v8612_v28 = vadd.f32 %v8611_v63, %v8610_v23  ;;  %v8629_v40 = vrot.slane %v8628_v50, 1  ;;  %v8634_v6 = vadd.f32 %v8633_v51, %v8632_v14  ;;  %v13131_v14 = vld [vmem:[#allocation7 + $0x120] ss:$8 sps:$4 sm:$0xff]   ;;  %v13133_v61 = vld [vmem:[#allocation7 + $0x124] ss:$8 sps:$4 sm:$0xff]  }
 0x5c9   : > { %13504 = vrsqrt.f32 %v8846_v39  ;;  %v8074_v30 = vadd.f32 %v8073_v52, %v16830_v49  ;;  %v8079_v20 = vrot.slane %v16835_v8, 4  ;;  %v16839_v10 = vadd.f32 %v7542_v21, %v7429_v55  ;;  %v7439_v52 = vpop.f32.mrf.mxu0  ;;  %10505 = vmatprep.subr.bf16.mxu1 %v13133_v61 }
 0x5ca   : > { %v8849_v7 = vadd.f32 1e-05, %v8785_v38  ;;  %v8786_v36 = vmul.f32 0.125, %v8612_v28  ;;  %v8630_v16 = vadd.f32 %v8629_v40, %v8628_v50  ;;  %v8635_v4 = vrot.slane %v8634_v6, 1  ;;  %v7552_v38 = vpop.f32.mrf.mxu1  ;;  %10506 = vmatpush1.bf16.msra.mxu1 %v13131_v14 }
 0x5cb   : > { %v8075_v33 = vrot.slane %v8074_v30, 2  ;;  %v8080_v24 = vadd.f32 %v8079_v20, %v16835_v8  ;;  %v8097_v53 = vrot.slane %v16839_v10, 4  ;;  %v16843_v23 = vadd.f32 %v7544_v0, %v7431_v34 }
 0x5cc   : > { %13506 = vrsqrt.f32 %v8849_v7  ;;  %v8850_v43 = vadd.f32 1e-05, %v8786_v36  ;;  %v8789_v55 = vmul.f32 0.125, %v8630_v16  ;;  %v8636_v21 = vadd.f32 %v8635_v4, %v8634_v6  ;;  %v13139_v36 = vld [vmem:[#allocation7 + $0x114] ss:$8 sps:$4 sm:$0xff]  }
 0x5cd   : > { %v8076_v63 = vadd.f32 %v8075_v33, %v8074_v30  ;;  %v8081_v51 = vrot.slane %v8080_v24, 2  ;;  %v8098_v50 = vadd.f32 %v8097_v53, %v16839_v10  ;;  %v8103_v39 = vrot.slane %v16843_v23, 4  ;;  %v13136_v30 = vld [vmem:[#allocation7 + $0x14] ss:$8 sps:$4 sm:$0xff]   ;;  %v13134_v53 = vld [vmem:[#allocation7 + $0x10] ss:$8 sps:$4 sm:$0xff]   ;;  %10507 = vmatprep.subr.bf16.mxu1 %v13139_v36 }
 0x5ce   : > { %13508 = vrsqrt.f32 %v8850_v43  ;;  %v8853_v0 = vadd.f32 1e-05, %v8789_v55  ;;  %v8790_v34 = vmul.f32 0.125, %v8636_v21  ;;  %v16847_v28 = vadd.f32 %v7548_v57, %v7435_v44  ;;  %v7554_v55 = vpop.f32.mrf.mxu1  ;;  %10394 = vmatprep.subr.bf16.mxu0 %v13136_v30  ;;  %v13137_v21 = vld [vmem:[#allocation7 + $0x110] ss:$8 sps:$4 sm:$0xff]  }
 0x5cf   : > { %v8077_v40 = vrot.slane %v8076_v63, 1  ;;  %v8082_v20 = vadd.f32 %v8081_v51, %v8080_v24  ;;  %v8099_v6 = vrot.slane %v8098_v50, 2  ;;  %v8104_v7 = vadd.f32 %v8103_v39, %v16843_v23  ;;  %v7441_v24 = vpop.f32.mrf.mxu0  ;;  %10395 = vmatpush1.bf16.msra.mxu0 %v13134_v53  ;;  %10508 = vmatpush1.bf16.msra.mxu1 %v13137_v21 }
 0x5d0   : > { %v16850_v16 = vpop.eup %13498  ;;  %13510 = vrsqrt.f32 %v8853_v0  ;;  %v8854_v4 = vadd.f32 1e-05, %v8790_v34  ;;  %v8121_v13 = vrot.slane %v16847_v28, 4  ;;  %v16853_v33 = vadd.f32 %v7550_v22, %v7437_v60 }
 0x5d1   : > { %v8078_v44 = vadd.f32 %v8077_v40, %v8076_v63  ;;  %v8083_v57 = vrot.slane %v8082_v20, 1  ;;  %v8100_v29 = vadd.f32 %v8099_v6, %v8098_v50  ;;  %v8105_v43 = vrot.slane %v8104_v7, 2 }
 0x5d2   : > { %v16855_v14 = vpop.eup %13500  ;;  %13512 = vrsqrt.f32 %v8854_v4  ;;  %v8122_v61 = vadd.f32 %v8121_v13, %v16847_v28  ;;  %v8127_v51 = vrot.slane %v16853_v33, 4  ;;  %v16859_v39 = vadd.f32 %v7552_v38, %v7439_v52 }
 0x5d3   : > { %v8217_v60 = vmul.f32 0.125, %v8078_v44  ;;  %v8084_v22 = vadd.f32 %v8083_v57, %v8082_v20  ;;  %v8101_v63 = vrot.slane %v8100_v29, 1  ;;  %v8106_v50 = vadd.f32 %v8105_v43, %v8104_v7 }
 0x5d4   : > { %v16861_v0 = vpop.eup %13502  ;;  %v8123_v34 = vrot.slane %v8122_v61, 2  ;;  %v8128_v40 = vadd.f32 %v8127_v51, %v16853_v33  ;;  %v8145_v6 = vrot.slane %v16859_v39, 4  ;;  %v16865_v30 = vadd.f32 %v7554_v55, %v7441_v24 }
 0x5d5   : > { %v16868_v36 = vsub.f32 %v16830_v49, %v8217_v60  ;;  %v8218_v52 = vmul.f32 0.125, %v8084_v22  ;;  %v8102_v38 = vadd.f32 %v8101_v63, %v8100_v29  ;;  %v8107_v4 = vrot.slane %v8106_v50, 1 }
 0x5d6   : > { %v16870_v13 = vpop.eup %13504  ;;  %v8124_v20 = vadd.f32 %v8123_v34, %v8122_v61  ;;  %v8129_v7 = vrot.slane %v8128_v40, 2  ;;  %v8146_v53 = vadd.f32 %v8145_v6, %v16859_v39  ;;  %v8151_v44 = vrot.slane %v16865_v30, 4 }
 0x5d7   : > { %18899 = vst [vmem:[#allocation31_spill] sm:$0xff] %v16868_v36  ;;  %v8345_v57 = vmul.f32 %v16868_v36, %v16868_v36  ;;  %v16877_v43 = vsub.f32 %v16835_v8, %v8218_v52  ;;  %v8221_v24 = vmul.f32 0.125, %v8102_v38  ;;  %v8108_v49 = vadd.f32 %v8107_v4, %v8106_v50  ;;  %v13142_v50 = vld [vmem:[#allocation7 + $0x4] ss:$8 sps:$4 sm:$0xff]  }
 0x5d8   : > { %v8125_v55 = vrot.slane %v8124_v20, 1  ;;  %v8130_v21 = vadd.f32 %v8129_v7, %v8128_v40  ;;  %v8147_v29 = vrot.slane %v8146_v53, 2  ;;  %v8152_v51 = vadd.f32 %v8151_v44, %v16865_v30  ;;  %v13145_v4 = vld [vmem:[#allocation7 + $0x104] ss:$8 sps:$4 sm:$0xff]   ;;  %10396 = vmatprep.subr.bf16.mxu0 %v13142_v50 }
 0x5d9   : > { %18900 = vst [vmem:[#allocation38_spill] sm:$0xff] %v16877_v43  ;;  %v16880_v60 = vpop.eup %13506  ;;  %v8649_v61 = vrot.slane %v8345_v57, 4  ;;  %v8346_v22 = vmul.f32 %v16877_v43, %v16877_v43  ;;  %v16885_v63 = vsub.f32 %v16839_v10, %v8221_v24  ;;  %v8222_v34 = vmul.f32 0.125, %v8108_v49  ;;  %v13140_v43 = vld [vmem:[#allocation7] ss:$8 sps:$4 sm:$0xff]   ;;  %10509 = vmatprep.subr.bf16.mxu1 %v13145_v4 }
 0x5da   : > { %v8126_v6 = vadd.f32 %v8125_v55, %v8124_v20  ;;  %v8131_v8 = vrot.slane %v8130_v21, 1  ;;  %v8148_v52 = vadd.f32 %v8147_v29, %v8146_v53  ;;  %v8153_v38 = vrot.slane %v8152_v51, 2  ;;  %v13143_v10 = vld [vmem:[#allocation7 + $0x100] ss:$8 sps:$4 sm:$0xff]   ;;  %10397 = vmatpush1.bf16.msra.mxu0 %v13140_v43 }
 0x5db   : > { %18901 = vst [vmem:[#allocation69_spill] sm:$0xff] %v16885_v63  ;;  %v16887_v40 = vpop.eup %13508  ;;  %v8650_v7 = vadd.f32 %v8649_v61, %v8345_v57  ;;  %v8655_v44 = vrot.slane %v8346_v22, 4  ;;  %v8349_v36 = vmul.f32 %v16885_v63, %v16885_v63  ;;  %v16892_v48 = vsub.f32 %v16843_v23, %v8222_v34  ;;  %v16898_v63 = vpop.f32.mrf.mxu0  ;;  %10510 = vmatpush1.bf16.msra.mxu1 %v13143_v10 }
 0x5dc   : > { %v8225_v24 = vmul.f32 0.125, %v8126_v6  ;;  %v8132_v49 = vadd.f32 %v8131_v8, %v8130_v21  ;;  %v8149_v20 = vrot.slane %v8148_v52, 1  ;;  %v8154_v55 = vadd.f32 %v8153_v38, %v8152_v51  ;;  %v16900_v23 = vpop.f32.mrf.mxu1 }
 0x5dd   : > { %18902 = vst [vmem:[#allocation27_spill] sm:$0xff] %v16892_v48  ;;  %v16894_v53 = vpop.eup %13510  ;;  %v8651_v29 = vrot.slane %v8650_v7, 2  ;;  %v8656_v62 = vadd.f32 %v8655_v44, %v8346_v22  ;;  %v8673_v57 = vrot.slane %v8349_v36, 4  ;;  %v8350_v61 = vmul.f32 %v16892_v48, %v16892_v48 }
 0x5de   : > { %v16903_v21 = vsub.f32 %v16847_v28, %v8225_v24  ;;  %v8226_v51 = vmul.f32 0.125, %v8132_v49  ;;  %v8150_v34 = vadd.f32 %v8149_v20, %v8148_v52  ;;  %v8155_v6 = vrot.slane %v8154_v55, 1  ;;  %v7593_v52 = vpop.f32.mrf.mxu0  ;;  %v7706_v20 = vpop.f32.mrf.mxu1 }
 0x5df   : > { %v16905_v8 = vpop.eup %13512  ;;  %v8652_v38 = vadd.f32 %v8651_v29, %v8650_v7  ;;  %v8657_v22 = vrot.slane %v8656_v62, 2  ;;  %v8674_v50 = vadd.f32 %v8673_v57, %v8349_v36  ;;  %v8679_v4 = vrot.slane %v8350_v61, 4 }
 0x5e0   : > { %18903 = vst [vmem:[#allocation48_spill] sm:$0xff] %v16903_v21  ;;  %v8353_v44 = vmul.f32 %v16903_v21, %v16903_v21  ;;  %v16910_v48 = vsub.f32 %v16853_v33, %v8226_v51  ;;  %v8229_v43 = vmul.f32 0.125, %v8150_v34  ;;  %v8156_v10 = vadd.f32 %v8155_v6, %v8154_v55  ;;  %v7595_v47 = vpop.f32.mrf.mxu0 }
 0x5e1   : > { %v8653_v3 = vrot.slane %v8652_v38, 1  ;;  %v8658_v28 = vadd.f32 %v8657_v22, %v8656_v62  ;;  %v8675_v24 = vrot.slane %v8674_v50, 2  ;;  %v8680_v49 = vadd.f32 %v8679_v4, %v8350_v61 }
 0x5e2   : > { %18904 = vst [vmem:[#allocation61_spill] sm:$0xff] %v16910_v48  ;;  %v8697_v42 = vrot.slane %v8353_v44, 4  ;;  %v8354_v7 = vmul.f32 %v16910_v48, %v16910_v48  ;;  %v16915_v36 = vsub.f32 %v16859_v39, %v8229_v43  ;;  %v8230_v29 = vmul.f32 0.125, %v8156_v10  ;;  %v7708_v39 = vpop.f32.mrf.mxu1 }
 0x5e3   : > { %v8654_v57 = vadd.f32 %v8653_v3, %v8652_v38  ;;  %v8659_v21 = vrot.slane %v8658_v28, 1  ;;  %v8676_v33 = vadd.f32 %v8675_v24, %v8674_v50  ;;  %v8681_v51 = vrot.slane %v8680_v49, 2 }
 0x5e4   : > { %18905 = vst [vmem:[#allocation59_spill] sm:$0xff] %v16915_v36  ;;  %v8698_v34 = vadd.f32 %v8697_v42, %v8353_v44  ;;  %v8703_v55 = vrot.slane %v8354_v7, 4  ;;  %v8357_v62 = vmul.f32 %v16915_v36, %v16915_v36  ;;  %v16920_v61 = vsub.f32 %v16865_v30, %v8230_v29 }
 0x5e5   : > { %v8793_v6 = vmul.f32 0.125, %v8654_v57  ;;  %v8660_v22 = vadd.f32 %v8659_v21, %v8658_v28  ;;  %v8677_v4 = vrot.slane %v8676_v33, 1  ;;  %v8682_v48 = vadd.f32 %v8681_v51, %v8680_v49  ;;  %v7597_v57 = vpop.f32.mrf.mxu0  ;;  %v7710_v51 = vpop.f32.mrf.mxu1 }
 0x5e6   : > { %18906 = vst [vmem:[#allocation49_spill] sm:$0xff] %v16920_v61  ;;  %v8699_v43 = vrot.slane %v8698_v34, 2  ;;  %v8704_v10 = vadd.f32 %v8703_v55, %v8354_v7  ;;  %v8721_v3 = vrot.slane %v8357_v62, 4  ;;  %v8358_v38 = vmul.f32 %v16920_v61, %v16920_v61 }
 0x5e7   : > { %v8857_v42 = vadd.f32 1e-05, %v8793_v6  ;;  %v8794_v50 = vmul.f32 0.125, %v8660_v22  ;;  %v8678_v44 = vadd.f32 %v8677_v4, %v8676_v33  ;;  %v8683_v24 = vrot.slane %v8682_v48, 1 }
 0x5e8   : > { %v8700_v36 = vadd.f32 %v8699_v43, %v8698_v34  ;;  %v8705_v11 = vrot.slane %v8704_v10, 2  ;;  %v8722_v30 = vadd.f32 %v8721_v3, %v8357_v62  ;;  %v8727_v29 = vrot.slane %v8358_v38, 4 }
 0x5e9   : > { %13514 = vrsqrt.f32 %v8857_v42  ;;  %v8858_v21 = vadd.f32 1e-05, %v8794_v50  ;;  %v8797_v28 = vmul.f32 0.125, %v8678_v44  ;;  %v8684_v49 = vadd.f32 %v8683_v24, %v8682_v48  ;;  %v13148_v24 = vld [vmem:[#allocation7 + $0xf4] ss:$8 sps:$4 sm:$0xff]  }
 0x5ea   : > { %v8701_v25 = vrot.slane %v8700_v36, 1  ;;  %v8706_v7 = vadd.f32 %v8705_v11, %v8704_v10  ;;  %v8723_v55 = vrot.slane %v8722_v30, 2  ;;  %v8728_v35 = vadd.f32 %v8727_v29, %v8358_v38  ;;  %v7601_v11 = vpop.f32.mrf.mxu0  ;;  %v7714_v10 = vpop.f32.mrf.mxu1  ;;  %v13151_v29 = vld [vmem:[#allocation7 + $0x1f4] ss:$8 sps:$4 sm:$0xff]   ;;  %10398 = vmatprep.subr.bf16.mxu0 %v13148_v24 }
 0x5eb   : > { %13516 = vrsqrt.f32 %v8858_v21  ;;  %v8861_v61 = vadd.f32 1e-05, %v8797_v28  ;;  %v8798_v6 = vmul.f32 0.125, %v8684_v49  ;;  %v16926_v33 = vadd.f32 %v16900_v23, %v16898_v63  ;;  %10511 = vmatprep.subr.bf16.mxu1 %v13151_v29 }
 0x5ec   : > { %v8702_v34 = vadd.f32 %v8701_v25, %v8700_v36  ;;  %v8707_v62 = vrot.slane %v8706_v7, 1  ;;  %v8724_v22 = vadd.f32 %v8723_v55, %v8722_v30  ;;  %v8729_v4 = vrot.slane %v8728_v35, 2  ;;  %v13146_v36 = vld [vmem:[#allocation7 + $0xf0] ss:$8 sps:$4 sm:$0xff]   ;;  %v7603_v55 = vpop.f32.mrf.mxu0 }
 0x5ed   : > { %13518 = vrsqrt.f32 %v8861_v61  ;;  %v8862_v43 = vadd.f32 1e-05, %v8798_v6  ;;  %v7797_v48 = vrot.slane %v16926_v33, 4  ;;  %v16929_v3 = vadd.f32 %v7706_v20, %v7593_v52  ;;  %v13149_v61 = vld [vmem:[#allocation7 + $0x1f0] ss:$8 sps:$4 sm:$0xff]   ;;  %v7716_v6 = vpop.f32.mrf.mxu1  ;;  %10399 = vmatpush2.bf16.msra.mxu0 %v13146_v36 }
 0x5ee   : > { %v8801_v38 = vmul.f32 0.125, %v8702_v34  ;;  %v8708_v42 = vadd.f32 %v8707_v62, %v8706_v7  ;;  %v8725_v50 = vrot.slane %v8724_v22, 1  ;;  %v8730_v44 = vadd.f32 %v8729_v4, %v8728_v35  ;;  %10512 = vmatpush2.bf16.msra.mxu1 %v13149_v61 }
 0x5ef   : > { %13520 = vrsqrt.f32 %v8862_v43  ;;  %v7798_v25 = vadd.f32 %v7797_v48, %v16926_v33  ;;  %v7803_v63 = vrot.slane %v16929_v3, 4  ;;  %v9001_v23 = vcombine.low %v16650_v54, %v16655_v45 }
 0x5f0   : > { %v8865_v52 = vadd.f32 1e-05, %v8801_v38  ;;  %v8802_v20 = vmul.f32 0.125, %v8708_v42  ;;  %v8726_v30 = vadd.f32 %v8725_v50, %v8724_v22  ;;  %v8731_v21 = vrot.slane %v8730_v44, 1 }
 0x5f1   : > { %v7799_v28 = vrot.slane %v7798_v25, 2  ;;  %v7804_v35 = vadd.f32 %v7803_v63, %v16929_v3  ;;  %v16937_v49 = vrot.slane %v9001_v23, %v14117_v18  ;;  %v16939_v7 = vadd.f32 %v7708_v39, %v7595_v47  ;;  %v13154_v39 = vld [vmem:[#allocation7 + $0xe4] ss:$8 sps:$4 sm:$0xff]   ;;  %v13152_v63 = vld [vmem:[#allocation7 + $0xe0] ss:$8 sps:$4 sm:$0xff]  }
 0x5f2   : > { %13522 = vrsqrt.f32 %v8865_v52  ;;  %v8866_v54 = vadd.f32 1e-05, %v8802_v20  ;;  %v8805_v45 = vmul.f32 0.125, %v8726_v30  ;;  %v8732_v34 = vadd.f32 %v8731_v21, %v8730_v44  ;;  %v7605_v44 = vpop.f32.mrf.mxu0  ;;  %v13155_v23 = vld [vmem:[#allocation7 + $0x1e0] ss:$8 sps:$4 sm:$0xff]   ;;  %10400 = vmatprep.subr.bf16.mxu0 %v13154_v39 }
 0x5f3   : > { %v7800_v62 = vadd.f32 %v7799_v28, %v7798_v25  ;;  %v7805_v22 = vrot.slane %v7804_v35, 2  ;;  %v7821_v4 = vrot.slane %v16939_v7, 4  ;;  %v16942_v43 = vadd.f32 %v7710_v51, %v7597_v57  ;;  %v7718_v25 = vpop.f32.mrf.mxu1  ;;  %10401 = vmatpush2.bf16.msra.mxu0 %v13152_v63  ;;  %v13161_v39 = vld [vmem:[#allocation7 + $0x1d0] ss:$8 sps:$4 sm:$0xff]  }
 0x5f4   : > { %13524 = vrsqrt.f32 %v8866_v54  ;;  %v8869_v48 = vadd.f32 1e-05, %v8805_v45  ;;  %v8806_v38 = vmul.f32 0.125, %v8732_v34  ;;  %v9025_v47 = vcombine.low %v16661_v58, %v16670_v15  ;;  %v13157_v58 = vld [vmem:[#allocation7 + $0x1e4] ss:$8 sps:$4 sm:$0xff]  }
 0x5f5   : > { %v7801_v42 = vrot.slane %v7800_v62, 1  ;;  %v7806_v50 = vadd.f32 %v7805_v22, %v7804_v35  ;;  %v7822_v24 = vadd.f32 %v7821_v4, %v16939_v7  ;;  %v7827_v29 = vrot.slane %v16942_v43, 4  ;;  %10513 = vmatprep.subr.bf16.mxu1 %v13157_v58  ;;  %v7720_v22 = vpop.f32.mrf.mxu1  ;;  %v13160_v4 = vld [vmem:[#allocation7 + $0xd4] ss:$8 sps:$4 sm:$0xff]  }
 0x5f6   : > { %v16948_v36 = vpop.eup %13514  ;;  %13526 = vrsqrt.f32 %v8869_v48  ;;  %v8870_v57 = vadd.f32 1e-05, %v8806_v38  ;;  %v16951_v51 = vrot.slane %v9025_v47, %v14117_v18  ;;  %v16953_v61 = vadd.f32 %v7714_v10, %v7601_v11  ;;  %10514 = vmatpush2.bf16.msra.mxu1 %v13155_v23  ;;  %v13163_v48 = vld [vmem:[#allocation7 + $0x1d4] ss:$8 sps:$4 sm:$0xff]   ;;  %10402 = vmatprep.subr.bf16.mxu0 %v13160_v4 }
 0x5f7   : > { %v7802_v15 = vadd.f32 %v7801_v42, %v7800_v62  ;;  %v7807_v52 = vrot.slane %v7806_v50, 1  ;;  %v7823_v20 = vrot.slane %v7822_v24, 2  ;;  %v7828_v30 = vadd.f32 %v7827_v29, %v16942_v43  ;;  %v7607_v62 = vpop.f32.mrf.mxu0  ;;  %10515 = vmatprep.subr.bf16.mxu1 %v13163_v48 }
 0x5f8   : > { %v16956_v21 = vpop.eup %13516  ;;  %13528 = vrsqrt.f32 %v8870_v57  ;;  %v7845_v28 = vrot.slane %v16953_v61, 4  ;;  %v16959_v35 = vadd.f32 %v7716_v6, %v7603_v55  ;;  %v9049_v54 = vcombine.low %v16680_v37, %v16687_v59  ;;  %v13158_v59 = vld [vmem:[#allocation7 + $0xd0] ss:$8 sps:$4 sm:$0xff]  }
 0x5f9   : > { %v8171_v11 = vmul.f32 0.125, %v7802_v15  ;;  %v7808_v10 = vadd.f32 %v7807_v52, %v7806_v50  ;;  %v7824_v45 = vadd.f32 %v7823_v20, %v7822_v24  ;;  %v7829_v34 = vrot.slane %v7828_v30, 2  ;;  %10403 = vmatpush2.bf16.msra.mxu0 %v13158_v59 }
 0x5fa   : > { %v16963_v38 = vpop.eup %13518  ;;  %v7846_v47 = vadd.f32 %v7845_v28, %v16953_v61  ;;  %v7851_v55 = vrot.slane %v16959_v35, 4  ;;  %v16968_v6 = vrot.slane %v9049_v54, %v14117_v18  ;;  %v16970_v37 = vadd.f32 %v7718_v25, %v7605_v44  ;;  %10516 = vmatpush2.bf16.msra.mxu1 %v13161_v39 }
 0x5fb   : > { %v16973_v42 = vsub.f32 %v16926_v33, %v8171_v11  ;;  %v8172_v50 = vmul.f32 0.125, %v7808_v10  ;;  %v7825_v24 = vrot.slane %v7824_v45, 1  ;;  %v7830_v29 = vadd.f32 %v7829_v34, %v7828_v30 }
 0x5fc   : > { %v16975_v63 = vpop.eup %13520  ;;  %v7847_v23 = vrot.slane %v7846_v47, 2  ;;  %v7852_v57 = vadd.f32 %v7851_v55, %v16959_v35  ;;  %v7869_v58 = vrot.slane %v16970_v37, 4  ;;  %v16979_v15 = vadd.f32 %v7720_v22, %v7607_v62 }
 0x5fd   : > { %18907 = vst [vmem:[#allocation33_spill] sm:$0xff] %v16973_v42  ;;  %v8299_v44 = vmul.f32 %v16973_v42, %v16973_v42  ;;  %v16984_v33 = vsub.f32 %v16929_v3, %v8172_v50  ;;  %v7826_v25 = vadd.f32 %v7825_v24, %v7824_v45  ;;  %v7831_v52 = vrot.slane %v7830_v29, 1 }
 0x5fe   : > { %v7848_v20 = vadd.f32 %v7847_v23, %v7846_v47  ;;  %v7853_v30 = vrot.slane %v7852_v57, 2  ;;  %v7870_v28 = vadd.f32 %v7869_v58, %v16970_v37  ;;  %v7875_v54 = vrot.slane %v16979_v15, 4 }
 0x5ff   : > { %v16988_v11 = vpop.eup %13522  ;;  %v8373_v10 = vrot.slane %v8299_v44, 4  ;;  %v8300_v34 = vmul.f32 %v16984_v33, %v16984_v33  ;;  %v8175_v62 = vmul.f32 0.125, %v7826_v25  ;;  %v7832_v22 = vadd.f32 %v7831_v52, %v7830_v29 }
 0x600   : > { %v7849_v4 = vrot.slane %v7848_v20, 1  ;;  %v7854_v3 = vadd.f32 %v7853_v30, %v7852_v57  ;;  %v7871_v48 = vrot.slane %v7870_v28, 2  ;;  %v7876_v45 = vadd.f32 %v7875_v54, %v16979_v15 }
 0x601   : > { %v16993_v55 = vpop.eup %13524  ;;  %v8374_v47 = vadd.f32 %v8373_v10, %v8299_v44  ;;  %v8379_v59 = vrot.slane %v8300_v34, 4  ;;  %v16996_v39 = vsub.f32 %v16939_v7, %v8175_v62  ;;  %v8176_v50 = vmul.f32 0.125, %v7832_v22 }
 0x602   : > { %v7850_v24 = vadd.f32 %v7849_v4, %v7848_v20  ;;  %v7855_v23 = vrot.slane %v7854_v3, 1  ;;  %v7872_v58 = vadd.f32 %v7871_v48, %v7870_v28  ;;  %v7877_v42 = vrot.slane %v7876_v45, 2 }
 0x603   : > { %18908 = vst [vmem:[#allocation41_spill] sm:$0xff] %v16996_v39  ;;  %v16998_v19 = vpop.eup %13526  ;;  %v8375_v29 = vrot.slane %v8374_v47, 2  ;;  %v8380_v25 = vadd.f32 %v8379_v59, %v8300_v34  ;;  %v8303_v57 = vmul.f32 %v16996_v39, %v16996_v39  ;;  %v17003_v52 = vsub.f32 %v16942_v43, %v8176_v50 }
 0x604   : > { %18909 = vst [vmem:[#allocation51_spill] sm:$0xff] %v16998_v19  ;;  %v8179_v44 = vmul.f32 0.125, %v7850_v24  ;;  %v7856_v30 = vadd.f32 %v7855_v23, %v7854_v3  ;;  %v7873_v54 = vrot.slane %v7872_v58, 1  ;;  %v7878_v7 = vadd.f32 %v7877_v42, %v7876_v45 }
 0x605   : > { %v17005_v10 = vpop.eup %13528  ;;  %v8376_v20 = vadd.f32 %v8375_v29, %v8374_v47  ;;  %v8381_v62 = vrot.slane %v8380_v25, 2  ;;  %v8397_v28 = vrot.slane %v8303_v57, 4  ;;  %v8304_v22 = vmul.f32 %v17003_v52, %v17003_v52 }
 0x606   : > { %18910 = vst [vmem:[#allocation62_spill] sm:$0xff] %v17005_v10  ;;  %v17010_v34 = vsub.f32 %v16953_v61, %v8179_v44  ;;  %v8180_v4 = vmul.f32 0.125, %v7856_v30  ;;  %v7874_v48 = vadd.f32 %v7873_v54, %v7872_v58  ;;  %v7879_v59 = vrot.slane %v7878_v7, 1  ;;  %v7611_v44 = vpop.f32.mrf.mxu0  ;;  %v7724_v30 = vpop.f32.mrf.mxu1 }
 0x607   : > { %v8377_v43 = vrot.slane %v8376_v20, 1  ;;  %v8382_v50 = vadd.f32 %v8381_v62, %v8380_v25  ;;  %v8398_v24 = vadd.f32 %v8397_v28, %v8303_v57  ;;  %v8403_v3 = vrot.slane %v8304_v22, 4 }
 0x608   : > { %18911 = vst [vmem:[#allocation60_spill] sm:$0xff] %v17010_v34  ;;  %v8307_v42 = vmul.f32 %v17010_v34, %v17010_v34  ;;  %v17015_v45 = vsub.f32 %v16959_v35, %v8180_v4  ;;  %v8183_v47 = vmul.f32 0.125, %v7874_v48  ;;  %v7880_v23 = vadd.f32 %v7879_v59, %v7878_v7  ;;  %v7613_v9 = vpop.f32.mrf.mxu0 }
 0x609   : > { %v8378_v29 = vadd.f32 %v8377_v43, %v8376_v20  ;;  %v8383_v39 = vrot.slane %v8382_v50, 1  ;;  %v8399_v41 = vrot.slane %v8398_v24, 2  ;;  %v8404_v61 = vadd.f32 %v8403_v3, %v8304_v22 }
 0x60a   : > { %v8421_v58 = vrot.slane %v8307_v42, 4  ;;  %v8308_v25 = vmul.f32 %v17015_v45, %v17015_v45  ;;  %v17020_v57 = vsub.f32 %v16970_v37, %v8183_v47  ;;  %v8184_v54 = vmul.f32 0.125, %v7880_v23  ;;  %v7726_v37 = vpop.f32.mrf.mxu1 }
 0x60b   : > { %v8747_v62 = vmul.f32 0.125, %v8378_v29  ;;  %v8384_v28 = vadd.f32 %v8383_v39, %v8382_v50  ;;  %v8400_v35 = vadd.f32 %v8399_v41, %v8398_v24  ;;  %v8405_v4 = vrot.slane %v8404_v61, 2 }
 0x60c   : > { %18912 = vst [vmem:[#allocation34_spill] sm:$0xff] %v17020_v57  ;;  %v8422_v48 = vadd.f32 %v8421_v58, %v8307_v42  ;;  %v8427_v7 = vrot.slane %v8308_v25, 4  ;;  %v8311_v20 = vmul.f32 %v17020_v57, %v17020_v57  ;;  %v17025_v22 = vsub.f32 %v16979_v15, %v8184_v54 }
 0x60d   : > { %v8811_v59 = vadd.f32 1e-05, %v8747_v62  ;;  %v8748_v43 = vmul.f32 0.125, %v8384_v28  ;;  %v8401_v3 = vrot.slane %v8400_v35, 1  ;;  %v8406_v34 = vadd.f32 %v8405_v4, %v8404_v61  ;;  %v7615_v4 = vpop.f32.mrf.mxu0 }
 0x60e   : > { %v8423_v47 = vrot.slane %v8422_v48, 2  ;;  %v8428_v23 = vadd.f32 %v8427_v7, %v8308_v25  ;;  %v8445_v29 = vrot.slane %v8311_v20, 4  ;;  %v8312_v41 = vmul.f32 %v17025_v22, %v17025_v22  ;;  %v7728_v25 = vpop.f32.mrf.mxu1 }
 0x60f   : > { %13530 = vrsqrt.f32 %v8811_v59  ;;  %v8812_v39 = vadd.f32 1e-05, %v8748_v43  ;;  %v8402_v50 = vadd.f32 %v8401_v3, %v8400_v35  ;;  %v8407_v24 = vrot.slane %v8406_v34, 1 }
 0x610   : > { %v8424_v42 = vadd.f32 %v8423_v47, %v8422_v48  ;;  %v8429_v58 = vrot.slane %v8428_v23, 2  ;;  %v8446_v15 = vadd.f32 %v8445_v29, %v8311_v20  ;;  %v8451_v54 = vrot.slane %v8312_v41, 4  ;;  %v13166_v20 = vld [vmem:[#allocation7 + $0xc4] ss:$8 sps:$4 sm:$0xff]  }
 0x611   : > { %13532 = vrsqrt.f32 %v8812_v39  ;;  %v8751_v62 = vmul.f32 0.125, %v8402_v50  ;;  %v8408_v28 = vadd.f32 %v8407_v24, %v8406_v34  ;;  %v9073_v61 = vcombine.low %v16698_v2, %v16705_v32  ;;  %v13164_v39 = vld [vmem:[#allocation7 + $0xc0] ss:$8 sps:$4 sm:$0xff]   ;;  %v7730_v24 = vpop.f32.mrf.mxu1  ;;  %10404 = vmatprep.subr.bf16.mxu0 %v13166_v20 }
 0x612   : > { %v8425_v7 = vrot.slane %v8424_v42, 1  ;;  %v8430_v57 = vadd.f32 %v8429_v58, %v8428_v23  ;;  %v8447_v19 = vrot.slane %v8446_v15, 2  ;;  %v8452_v10 = vadd.f32 %v8451_v54, %v8312_v41  ;;  %v13167_v2 = vld [vmem:[#allocation7 + $0x1c0] ss:$8 sps:$4 sm:$0xff]   ;;  %v7617_v41 = vpop.f32.mrf.mxu0  ;;  %v13169_v58 = vld [vmem:[#allocation7 + $0x1c4] ss:$8 sps:$4 sm:$0xff]   ;;  %10405 = vmatpush2.bf16.msra.mxu0 %v13164_v39 }
 0x613   : > { %v8815_v59 = vadd.f32 1e-05, %v8751_v62  ;;  %v8752_v43 = vmul.f32 0.125, %v8408_v28  ;;  %v17032_v35 = vrot.slane %v9073_v61, %v14117_v18  ;;  %v17034_v48 = vadd.f32 %v7724_v30, %v7611_v44  ;;  %10517 = vmatprep.subr.bf16.mxu1 %v13169_v58 }
 0x614   : > { %v8426_v3 = vadd.f32 %v8425_v7, %v8424_v42  ;;  %v8431_v47 = vrot.slane %v8430_v57, 1  ;;  %v8448_v34 = vadd.f32 %v8447_v19, %v8446_v15  ;;  %v8453_v29 = vrot.slane %v8452_v10, 2  ;;  %10518 = vmatpush2.bf16.msra.mxu1 %v13167_v2 }
 0x615   : > { %13534 = vrsqrt.f32 %v8815_v59  ;;  %v8816_v32 = vadd.f32 1e-05, %v8752_v43  ;;  %v7893_v23 = vrot.slane %v17034_v48, 4  ;;  %v17037_v50 = vadd.f32 %v7726_v37, %v7613_v9  ;;  %v13172_v9 = vld [vmem:[#allocation7 + $0xb4] ss:$8 sps:$4 sm:$0xff]  }
 0x616   : > { %v8755_v54 = vmul.f32 0.125, %v8426_v3  ;;  %v8432_v44 = vadd.f32 %v8431_v47, %v8430_v57  ;;  %v8449_v30 = vrot.slane %v8448_v34, 1  ;;  %v8454_v62 = vadd.f32 %v8453_v29, %v8452_v10  ;;  %v13175_v37 = vld [vmem:[#allocation7 + $0x1b4] ss:$8 sps:$4 sm:$0xff]   ;;  %v13170_v57 = vld [vmem:[#allocation7 + $0xb0] ss:$8 sps:$4 sm:$0xff]   ;;  %v7621_v47 = vpop.f32.mrf.mxu0  ;;  %v7734_v29 = vpop.f32.mrf.mxu1  ;;  %10406 = vmatprep.subr.bf16.mxu0 %v13172_v9 }
 0x617   : > { %13536 = vrsqrt.f32 %v8816_v32  ;;  %v7894_v19 = vadd.f32 %v7893_v23, %v17034_v48  ;;  %v7899_v42 = vrot.slane %v17037_v50, 4  ;;  %v9097_v15 = vcombine.low %v16750_v12, %v16755_v56  ;;  %v13173_v12 = vld [vmem:[#allocation7 + $0x1b0] ss:$8 sps:$4 sm:$0xff]   ;;  %10519 = vmatprep.subr.bf16.mxu1 %v13175_v37  ;;  %10407 = vmatpush2.bf16.msra.mxu0 %v13170_v57 }
 0x618   : > { %v8819_v28 = vadd.f32 1e-05, %v8755_v54  ;;  %v8756_v61 = vmul.f32 0.125, %v8432_v44  ;;  %v8450_v7 = vadd.f32 %v8449_v30, %v8448_v34  ;;  %v8455_v59 = vrot.slane %v8454_v62, 1  ;;  %10520 = vmatpush2.bf16.msra.mxu1 %v13173_v12  ;;  %v7736_v9 = vpop.f32.mrf.mxu1 }
 0x619   : > { %v7895_v43 = vrot.slane %v7894_v19, 2  ;;  %v7900_v10 = vadd.f32 %v7899_v42, %v17037_v50  ;;  %v17045_v20 = vrot.slane %v9097_v15, %v14117_v18  ;;  %v17047_v3 = vadd.f32 %v7728_v25, %v7615_v4 }
 0x61a   : > { %13538 = vrsqrt.f32 %v8819_v28  ;;  %v8820_v56 = vadd.f32 1e-05, %v8756_v61  ;;  %v8759_v39 = vmul.f32 0.125, %v8450_v7  ;;  %v8456_v34 = vadd.f32 %v8455_v59, %v8454_v62  ;;  %v13178_v61 = vld [vmem:[#allocation7 + $0xa4] ss:$8 sps:$4 sm:$0xff]  }
 0x61b   : > { %v7896_v2 = vadd.f32 %v7895_v43, %v7894_v19  ;;  %v7901_v32 = vrot.slane %v7900_v10, 2  ;;  %v7917_v23 = vrot.slane %v17047_v3, 4  ;;  %v17050_v58 = vadd.f32 %v7730_v24, %v7617_v41  ;;  %v7623_v19 = vpop.f32.mrf.mxu0  ;;  %v13181_v7 = vld [vmem:[#allocation7 + $0x1a4] ss:$8 sps:$4 sm:$0xff]   ;;  %v13176_v43 = vld [vmem:[#allocation7 + $0xa0] ss:$8 sps:$4 sm:$0xff]   ;;  %10408 = vmatprep.subr.bf16.mxu0 %v13178_v61 }
 0x61c   : > { %v13531_v54 = vpop.eup %13530  ;;  %13540 = vrsqrt.f32 %v8820_v56  ;;  %v8823_v4 = vadd.f32 1e-05, %v8759_v39  ;;  %v8760_v25 = vmul.f32 0.125, %v8456_v34  ;;  %v9121_v44 = vcombine.low %v16761_v5, %v16770_v27  ;;  %10521 = vmatprep.subr.bf16.mxu1 %v13181_v7  ;;  %10409 = vmatpush2.bf16.msra.mxu0 %v13176_v43  ;;  %v17077_v61 = vld [vmem:[%s18469_s8] sm:$0xf] }
 0x61d   : > { %v7897_v30 = vrot.slane %v7896_v2, 1  ;;  %v7902_v42 = vadd.f32 %v7901_v32, %v7900_v10  ;;  %v7918_v15 = vadd.f32 %v7917_v23, %v17047_v3  ;;  %v7923_v62 = vrot.slane %v17050_v58, 4  ;;  %v13179_v10 = vld [vmem:[#allocation7 + $0x1a0] ss:$8 sps:$4 sm:$0xff]  }
 0x61e   : > { %v13533_v37 = vpop.eup %13532  ;;  %13542 = vrsqrt.f32 %v8823_v4  ;;  %v8824_v41 = vadd.f32 1e-05, %v8760_v25  ;;  %v17057_v24 = vrot.slane %v9121_v44, %v14117_v18  ;;  %v17059_v28 = vadd.f32 %v7734_v29, %v7621_v47  ;;  %10522 = vmatpush2.bf16.msra.mxu1 %v13179_v10  ;;  %v13184_v44 = vld [vmem:[#allocation7 + $0x94] ss:$8 sps:$4 sm:$0xff]  }
 0x61f   : > { %v9002_v5 = vcombine.low %v13531_v54, %v13533_v37  ;;  %v7898_v27 = vadd.f32 %v7897_v30, %v7896_v2  ;;  %v7903_v59 = vrot.slane %v7902_v42, 1  ;;  %v7919_v57 = vrot.slane %v7918_v15, 2  ;;  %v13187_v30 = vld [vmem:[#allocation7 + $0x194] ss:$8 sps:$4 sm:$0xff]   ;;  %v13185_v37 = vld [vmem:[#allocation7 + $0x190] ss:$8 sps:$4 sm:$0xff]   ;;  %10410 = vmatprep.subr.bf16.mxu0 %v13184_v44 }
 0x620   : > { %13544 = vrsqrt.f32 %v8824_v41  ;;  %v7924_v12 = vadd.f32 %v7923_v62, %v17050_v58  ;;  %v7941_v56 = vrot.slane %v17059_v28, 4  ;;  %v17063_v39 = vadd.f32 %v7736_v9, %v7623_v19  ;;  %v13182_v9 = vld [vmem:[#allocation7 + $0x90] ss:$8 sps:$4 sm:$0xff]   ;;  %10523 = vmatprep.subr.bf16.mxu1 %v13187_v30 }
 0x621   : > { %v9016_v47 = vrot.slane %v9002_v5, %v14117_v18  ;;  %v8187_v29 = vmul.f32 0.125, %v7898_v27  ;;  %v7904_v34 = vadd.f32 %v7903_v59, %v7902_v42  ;;  %v7920_v32 = vadd.f32 %v7919_v57, %v7918_v15  ;;  %10411 = vmatpush2.bf16.msra.mxu0 %v13182_v9 }
 0x622   : > { %v13535_v2 = vpop.eup %13534  ;;  %v7925_v23 = vrot.slane %v7924_v12, 2  ;;  %v7942_v54 = vadd.f32 %v7941_v56, %v17059_v28  ;;  %v7947_v4 = vrot.slane %v17063_v39, 4  ;;  %v9145_v25 = vcombine.low %v16780_v17, %v16787_v1  ;;  %10524 = vmatpush2.bf16.msra.mxu1 %v13185_v37  ;;  %v13190_v56 = vld [vmem:[#allocation7 + $0x84] ss:$8 sps:$4 sm:$0xff]  }
 0x623   : > { %v9017_v62 = vcombine.low %v16937_v49, %v9016_v47  ;;  %v17072_v19 = vsub.f32 %v17034_v48, %v8187_v29  ;;  %v8188_v42 = vmul.f32 0.125, %v7904_v34  ;;  %v7921_v15 = vrot.slane %v7920_v32, 1  ;;  %v13193_v47 = vld [vmem:[#allocation7 + $0x184] ss:$8 sps:$4 sm:$0xff]   ;;  %10412 = vmatprep.subr.bf16.mxu0 %v13190_v56 }
 0x624   : > { %v13537_v41 = vpop.eup %13536  ;;  %v7926_v7 = vadd.f32 %v7925_v23, %v7924_v12  ;;  %v7943_v5 = vrot.slane %v7942_v54, 2  ;;  %v7948_v17 = vadd.f32 %v7947_v4, %v17063_v39  ;;  %v17081_v1 = vrot.slane %v9145_v25, %v14117_v18  ;;  %v13191_v25 = vld [vmem:[#allocation7 + $0x180] ss:$8 sps:$4 sm:$0xff]   ;;  %10525 = vmatprep.subr.bf16.mxu1 %v13193_v47 }
 0x625   : > { %18913 = vst [vmem:[#allocation55_spill] sm:$0xff] %v17072_v19  ;;  %v9024_v49 = vrot.slane %v9017_v62, %v14117_v18  ;;  %v9026_v48 = vcombine.low %v13535_v2, %v13537_v41  ;;  %v8315_v27 = vmul.f32 %v17072_v19, %v17072_v19  ;;  %v17087_v59 = vsub.f32 %v17037_v50, %v8188_v42  ;;  %v13188_v50 = vld [vmem:[#allocation7 + $0x80] ss:$8 sps:$4 sm:$0xff]  }
 0x626   : > { %v7922_v57 = vadd.f32 %v7921_v15, %v7920_v32  ;;  %v7927_v43 = vrot.slane %v7926_v7, 1  ;;  %v7944_v10 = vadd.f32 %v7943_v5, %v7942_v54  ;;  %v7949_v12 = vrot.slane %v7948_v17, 2  ;;  %10413 = vmatpush2.bf16.msra.mxu0 %v13188_v50  ;;  %10526 = vmatpush2.bf16.msra.mxu1 %v13191_v25  ;;  %v7738_v50 = vpop.f32.mrf.mxu1 }
 0x627   : > { %v13539_v29 = vpop.eup %13538  ;;  %v17090_v34 = vmul.f32 %v9024_v49, %v17077_v61  ;;  %v9040_v2 = vrot.slane %v9026_v48, %v14117_v18  ;;  %v8469_v23 = vrot.slane %v8315_v27, 4  ;;  %v8316_v4 = vmul.f32 %v17087_v59, %v17087_v59 }
 0x628   : > { %v8191_v44 = vmul.f32 0.125, %v7922_v57  ;;  %v7928_v32 = vadd.f32 %v7927_v43, %v7926_v7  ;;  %v7945_v30 = vrot.slane %v7944_v10, 1  ;;  %v7950_v54 = vadd.f32 %v7949_v12, %v7948_v17 }
 0x629   : > { %v13541_v62 = vpop.eup %13540  ;;  %v9448_v42 = vrot.slane %v17090_v34, %v14201_v26  ;;  %v9041_v15 = vcombine.low %v16951_v51, %v9040_v2  ;;  %v8470_v9 = vadd.f32 %v8469_v23, %v8315_v27  ;;  %v8475_v37 = vrot.slane %v8316_v4, 4  ;;  %v7625_v23 = vpop.f32.mrf.mxu0 }
 0x62a   : > { %v9050_v41 = vcombine.low %v13539_v29, %v13541_v62  ;;  %v17099_v5 = vsub.f32 %v17047_v3, %v8191_v44  ;;  %v8192_v49 = vmul.f32 0.125, %v7928_v32  ;;  %v7946_v48 = vadd.f32 %v7945_v30, %v7944_v10 }
 0x62b   : > { %v13543_v7 = vpop.eup %13542  ;;  %v17102_v17 = vmul.f32 %v9448_v42, %v16984_v33  ;;  %v9048_v57 = vrot.slane %v9041_v15, %v14117_v18  ;;  %v8471_v43 = vrot.slane %v8470_v9, 2  ;;  %v8476_v12 = vadd.f32 %v8475_v37, %v8316_v4 }
 0x62c   : > { %18914 = vst [vmem:[#allocation39_spill] sm:$0xff] %v17099_v5  ;;  %v9064_v51 = vrot.slane %v9050_v41, %v14117_v18  ;;  %v8319_v27 = vmul.f32 %v17099_v5, %v17099_v5  ;;  %v17109_v56 = vsub.f32 %v17050_v58, %v8192_v49  ;;  %v8195_v3 = vmul.f32 0.125, %v7946_v48 }
 0x62d   : > { %v13545_v47 = vpop.eup %13544  ;;  %v17112_v10 = vmul.f32 %v9048_v57, %v17077_v61  ;;  %v8472_v29 = vadd.f32 %v8471_v43, %v8470_v9  ;;  %v8477_v33 = vrot.slane %v8476_v12, 2  ;;  %v7951_v2 = vrot.slane %v7950_v54, 1  ;;  %v7627_v57 = vpop.f32.mrf.mxu0 }
 0x62e   : > { %v9065_v4 = vcombine.low %v16968_v6, %v9064_v51  ;;  %v9074_v25 = vcombine.low %v13543_v7, %v13545_v47  ;;  %v8493_v44 = vrot.slane %v8319_v27, 4  ;;  %v8320_v32 = vmul.f32 %v17109_v56, %v17109_v56  ;;  %v7740_v43 = vpop.f32.mrf.mxu1 }
 0x62f   : > { %v9464_v58 = vrot.slane %v17112_v10, %v14201_v26  ;;  %v8473_v30 = vrot.slane %v8472_v29, 1  ;;  %v8478_v62 = vadd.f32 %v8477_v33, %v8476_v12  ;;  %v17120_v42 = vsub.f32 %v17059_v28, %v8195_v3  ;;  %v7631_v5 = vpop.f32.mrf.mxu0 }
 0x630   : > { %v9072_v15 = vrot.slane %v9065_v4, %v14117_v18  ;;  %v9088_v9 = vrot.slane %v9074_v25, %v14117_v18  ;;  %v8494_v37 = vadd.f32 %v8493_v44, %v8319_v27  ;;  %v8499_v41 = vrot.slane %v8320_v32, 4  ;;  %v7744_v19 = vpop.f32.mrf.mxu1 }
 0x631   : > { %18915 = vst [vmem:[#allocation40_spill] sm:$0xff] %v17120_v42  ;;  %v17125_v6 = vmul.f32 %v9464_v58, %v17003_v52  ;;  %v8474_v49 = vadd.f32 %v8473_v30, %v8472_v29  ;;  %v8479_v48 = vrot.slane %v8478_v62, 1  ;;  %v8323_v7 = vmul.f32 %v17120_v42, %v17120_v42 }
 0x632   : > { %v17130_v12 = vmul.f32 %v9072_v15, %v17077_v61  ;;  %v9089_v28 = vcombine.low %v17032_v35, %v9088_v9  ;;  %v8495_v51 = vrot.slane %v8494_v37, 2  ;;  %v8500_v3 = vadd.f32 %v8499_v41, %v8320_v32 }
 0x633   : > { %v8763_v47 = vmul.f32 0.125, %v8474_v49  ;;  %v8480_v27 = vadd.f32 %v8479_v48, %v8478_v62  ;;  %v8517_v33 = vrot.slane %v8323_v7, 4  ;;  %v7952_v4 = vadd.f32 %v7951_v2, %v7950_v54 }
 0x634   : > { %v9480_v52 = vrot.slane %v17130_v12, %v14201_v26  ;;  %v9096_v29 = vrot.slane %v9089_v28, %v14117_v18  ;;  %v8496_v25 = vadd.f32 %v8495_v51, %v8494_v37  ;;  %v8501_v44 = vrot.slane %v8500_v3, 2 }
 0x635   : > { %v8827_v58 = vadd.f32 1e-05, %v8763_v47  ;;  %v8764_v30 = vmul.f32 0.125, %v8480_v27  ;;  %v8518_v42 = vadd.f32 %v8517_v33, %v8323_v7  ;;  %v8196_v15 = vmul.f32 0.125, %v7952_v4  ;;  %v7746_v47 = vpop.f32.mrf.mxu1 }
 0x636   : > { %v17137_v35 = vmul.f32 %v9480_v52, %v17015_v45  ;;  %v17140_v32 = vmul.f32 %v9096_v29, %v17077_v61  ;;  %v8497_v54 = vrot.slane %v8496_v25, 1  ;;  %v8502_v2 = vadd.f32 %v8501_v44, %v8500_v3  ;;  %v7633_v3 = vpop.f32.mrf.mxu0 }
 0x637   : > { %13546 = vrsqrt.f32 %v8827_v58  ;;  %v8828_v62 = vadd.f32 1e-05, %v8764_v30  ;;  %v8519_v9 = vrot.slane %v8518_v42, 2  ;;  %v17143_v37 = vsub.f32 %v17063_v39, %v8196_v15 }
 0x638   : > { %v9496_v41 = vrot.slane %v17140_v32, %v14201_v26  ;;  %v8498_v49 = vadd.f32 %v8497_v54, %v8496_v25  ;;  %v8503_v48 = vrot.slane %v8502_v2, 1  ;;  %v17147_v7 = vadd.f32 %v7738_v50, %v7625_v23  ;;  %v7635_v15 = vpop.f32.mrf.mxu0  ;;  %v7748_v54 = vpop.f32.mrf.mxu1 }
 0x639   : > { %13548 = vrsqrt.f32 %v8828_v62  ;;  %v8520_v45 = vadd.f32 %v8519_v9, %v8518_v42  ;;  %v8324_v28 = vmul.f32 %v17143_v37, %v17143_v37  ;;  %v17151_v51 = vadd.f32 %v7740_v43, %v7627_v57 }
 0x63a   : > { %v17154_v27 = vmul.f32 %v9496_v41, %v17025_v22  ;;  %v8767_v39 = vmul.f32 0.125, %v8498_v49  ;;  %v8504_v33 = vadd.f32 %v8503_v48, %v8502_v2  ;;  %v7965_v4 = vrot.slane %v17147_v7, 4 }
 0x63b   : > { %v8521_v52 = vrot.slane %v8520_v45, 1  ;;  %v8523_v29 = vrot.slane %v8324_v28, 4  ;;  %v7971_v23 = vrot.slane %v17151_v51, 4  ;;  %v9169_v50 = vcombine.low %v16798_v31, %v16805_v46 }
 0x63c   : > { %v8831_v42 = vadd.f32 1e-05, %v8767_v39  ;;  %v8768_v25 = vmul.f32 0.125, %v8504_v33  ;;  %v7966_v57 = vadd.f32 %v7965_v4, %v17147_v7  ;;  %v17161_v43 = vadd.f32 %v7744_v19, %v7631_v5  ;;  %v7637_v4 = vpop.f32.mrf.mxu0 }
 0x63d   : > { %v8522_v44 = vadd.f32 %v8521_v52, %v8520_v45  ;;  %v8524_v22 = vadd.f32 %v8523_v29, %v8324_v28  ;;  %v7972_v58 = vadd.f32 %v7971_v23, %v17151_v51  ;;  %v17165_v30 = vrot.slane %v9169_v50, %v14117_v18  ;;  %v7750_v52 = vpop.f32.mrf.mxu1 }
 0x63e   : > { %13550 = vrsqrt.f32 %v8831_v42  ;;  %v8832_v2 = vadd.f32 1e-05, %v8768_v25  ;;  %v7967_v62 = vrot.slane %v7966_v57, 2  ;;  %v7989_v31 = vrot.slane %v17161_v43, 4 }
 0x63f   : > { %v8771_v46 = vmul.f32 0.125, %v8522_v44  ;;  %v8525_v9 = vrot.slane %v8524_v22, 2  ;;  %v7973_v41 = vrot.slane %v7972_v58, 2  ;;  %v17168_v49 = vadd.f32 %v7746_v47, %v7633_v3 }
 0x640   : > { %13552 = vrsqrt.f32 %v8832_v2  ;;  %v7968_v19 = vadd.f32 %v7967_v62, %v7966_v57  ;;  %v7990_v5 = vadd.f32 %v7989_v31, %v17161_v43  ;;  %v9193_v48 = vcombine.low %v16850_v16, %v16855_v14 }
 0x641   : > { %v8835_v45 = vadd.f32 1e-05, %v8771_v46  ;;  %v8526_v28 = vadd.f32 %v8525_v9, %v8524_v22  ;;  %v7974_v39 = vadd.f32 %v7973_v41, %v7972_v58  ;;  %v7995_v33 = vrot.slane %v17168_v49, 4 }
 0x642   : > { %v7969_v29 = vrot.slane %v7968_v19, 1  ;;  %v7991_v23 = vrot.slane %v7990_v5, 2  ;;  %v17175_v50 = vrot.slane %v9193_v48, %v14117_v18  ;;  %v17177_v3 = vadd.f32 %v7748_v54, %v7635_v15 }
 0x643   : > { %13554 = vrsqrt.f32 %v8835_v45  ;;  %v8527_v47 = vrot.slane %v8526_v28, 1  ;;  %v7975_v42 = vrot.slane %v7974_v39, 1  ;;  %v7996_v25 = vadd.f32 %v7995_v33, %v17168_v49 }
 0x644   : > { %v13547_v16 = vpop.eup %13546  ;;  %v7970_v14 = vadd.f32 %v7969_v29, %v7968_v19  ;;  %v7992_v57 = vadd.f32 %v7991_v23, %v7990_v5  ;;  %v8013_v44 = vrot.slane %v17177_v3, 4  ;;  %v17181_v22 = vadd.f32 %v7750_v52, %v7637_v4 }
 0x645   : > { %v8528_v58 = vadd.f32 %v8527_v47, %v8526_v28  ;;  %v7976_v2 = vadd.f32 %v7975_v42, %v7974_v39  ;;  %v7997_v62 = vrot.slane %v7996_v25, 2  ;;  %v9217_v31 = vcombine.low %v16861_v0, %v16870_v13 }
 0x646   : > { %v13549_v15 = vpop.eup %13548  ;;  %v8199_v54 = vmul.f32 0.125, %v7970_v14  ;;  %v7993_v46 = vrot.slane %v7992_v57, 1  ;;  %v8014_v9 = vadd.f32 %v8013_v44, %v17177_v3  ;;  %v8019_v41 = vrot.slane %v17181_v22, 4 }
 0x647   : > { %v9098_v48 = vcombine.low %v13547_v16, %v13549_v15  ;;  %v8772_v19 = vmul.f32 0.125, %v8528_v58  ;;  %v8200_v5 = vmul.f32 0.125, %v7976_v2  ;;  %v7998_v45 = vadd.f32 %v7997_v62, %v7996_v25 }
 0x648   : > { %v17188_v33 = vsub.f32 %v17147_v7, %v8199_v54  ;;  %v7994_v28 = vadd.f32 %v7993_v46, %v7992_v57  ;;  %v8015_v39 = vrot.slane %v8014_v9, 2  ;;  %v8020_v4 = vadd.f32 %v8019_v41, %v17181_v22 }
 0x649   : > { %v9112_v0 = vrot.slane %v9098_v48, %v14117_v18  ;;  %v8836_v13 = vadd.f32 1e-05, %v8772_v19  ;;  %v17193_v52 = vsub.f32 %v17151_v51, %v8200_v5  ;;  %v7999_v29 = vrot.slane %v7998_v45, 1 }
 0x64a   : > { %18916 = vst [vmem:[#allocation65_spill] sm:$0xff] %v17188_v33  ;;  %v8327_v23 = vmul.f32 %v17188_v33, %v17188_v33  ;;  %v8203_v47 = vmul.f32 0.125, %v7994_v28  ;;  %v8016_v42 = vadd.f32 %v8015_v39, %v8014_v9  ;;  %v8021_v25 = vrot.slane %v8020_v4, 2 }
 0x64b   : > { %v13551_v16 = vpop.eup %13550  ;;  %v9113_v7 = vcombine.low %v17045_v20, %v9112_v0  ;;  %13556 = vrsqrt.f32 %v8836_v13  ;;  %v8328_v14 = vmul.f32 %v17193_v52, %v17193_v52  ;;  %v8000_v57 = vadd.f32 %v7999_v29, %v7998_v45 }
 0x64c   : > { %v8541_v44 = vrot.slane %v8327_v23, 4  ;;  %v17201_v58 = vsub.f32 %v17161_v43, %v8203_v47  ;;  %v8017_v51 = vrot.slane %v8016_v42, 1  ;;  %v8022_v2 = vadd.f32 %v8021_v25, %v8020_v4  ;;  %v7641_v25 = vpop.f32.mrf.mxu0 }
 0x64d   : > { %v13553_v62 = vpop.eup %13552  ;;  %v9120_v15 = vrot.slane %v9113_v7, %v14117_v18  ;;  %v8547_v54 = vrot.slane %v8328_v14, 4  ;;  %v8204_v46 = vmul.f32 0.125, %v8000_v57  ;;  %v17205_v9 = vrot.slane %v9217_v31, %v14117_v18 }
 0x64e   : > { %18917 = vst [vmem:[#allocation70_spill] sm:$0xff] %v17201_v58  ;;  %v9122_v20 = vcombine.low %v13551_v16, %v13553_v62  ;;  %v8542_v41 = vadd.f32 %v8541_v44, %v8327_v23  ;;  %v8331_v48 = vmul.f32 %v17201_v58, %v17201_v58  ;;  %v8018_v19 = vadd.f32 %v8017_v51, %v8016_v42  ;;  %v7754_v16 = vpop.f32.mrf.mxu1 }
 0x64f   : > { %v17210_v5 = vmul.f32 %v9120_v15, %v17077_v61  ;;  %v8548_v43 = vadd.f32 %v8547_v54, %v8328_v14  ;;  %v17213_v45 = vsub.f32 %v17168_v49, %v8204_v46  ;;  %v8023_v28 = vrot.slane %v8022_v2, 1 }
 0x650   : > { %v13555_v39 = vpop.eup %13554  ;;  %v9136_v4 = vrot.slane %v9122_v20, %v14117_v18  ;;  %v8543_v0 = vrot.slane %v8542_v41, 2  ;;  %v8565_v31 = vrot.slane %v8331_v48, 4  ;;  %v8207_v13 = vmul.f32 0.125, %v8018_v19 }
 0x651   : > { %v9512_v29 = vrot.slane %v17210_v5, %v14201_v26  ;;  %v8549_v23 = vrot.slane %v8548_v43, 2  ;;  %v8332_v47 = vmul.f32 %v17213_v45, %v17213_v45  ;;  %v8024_v42 = vadd.f32 %v8023_v28, %v8022_v2 }
 0x652   : > { %v9137_v49 = vcombine.low %v17057_v24, %v9136_v4  ;;  %v8544_v7 = vadd.f32 %v8543_v0, %v8542_v41  ;;  %v8566_v14 = vadd.f32 %v8565_v31, %v8331_v48  ;;  %v17222_v57 = vsub.f32 %v17177_v3, %v8207_v13  ;;  %v7643_v48 = vpop.f32.mrf.mxu0 }
 0x653   : > { %v17225_v44 = vmul.f32 %v9512_v29, %v17087_v59  ;;  %v8550_v51 = vadd.f32 %v8549_v23, %v8548_v43  ;;  %v8571_v62 = vrot.slane %v8332_v47, 4  ;;  %v8208_v15 = vmul.f32 0.125, %v8024_v42  ;;  %v7756_v59 = vpop.f32.mrf.mxu1 }
 0x654   : > { %18918 = vst [vmem:[#allocation44_spill] sm:$0xff] %v17222_v57  ;;  %v9144_v54 = vrot.slane %v9137_v49, %v14117_v18  ;;  %v8545_v46 = vrot.slane %v8544_v7, 1  ;;  %v8567_v20 = vrot.slane %v8566_v14, 2  ;;  %v8335_v2 = vmul.f32 %v17222_v57, %v17222_v57 }
 0x655   : > { %18919 = vst [vmem:[#allocation47_spill] sm:$0xff] %v17225_v44  ;;  %v8551_v19 = vrot.slane %v8550_v51, 1  ;;  %v8572_v24 = vadd.f32 %v8571_v62, %v8332_v47  ;;  %v17231_v41 = vsub.f32 %v17181_v22, %v8208_v15  ;;  %v17233_v3 = vadd.f32 %v7754_v16, %v7641_v25 }
 0x656   : > { %v17236_v43 = vmul.f32 %v9144_v54, %v17077_v61  ;;  %v8546_v28 = vadd.f32 %v8545_v46, %v8544_v7  ;;  %v8568_v4 = vadd.f32 %v8567_v20, %v8566_v14  ;;  %v8589_v0 = vrot.slane %v8335_v2, 4  ;;  %v7645_v14 = vpop.f32.mrf.mxu0  ;;  %v7758_v54 = vpop.f32.mrf.mxu1 }
 0x657   : > { %v8552_v31 = vadd.f32 %v8551_v19, %v8550_v51  ;;  %v8573_v13 = vrot.slane %v8572_v24, 2  ;;  %v8336_v29 = vmul.f32 %v17231_v41, %v17231_v41  ;;  %v8037_v23 = vrot.slane %v17233_v3, 4 }
 0x658   : > { %v13557_v47 = vpop.eup %13556  ;;  %v9528_v22 = vrot.slane %v17236_v43, %v14201_v26  ;;  %v8775_v42 = vmul.f32 0.125, %v8546_v28  ;;  %v8569_v25 = vrot.slane %v8568_v4, 1  ;;  %v8590_v16 = vadd.f32 %v8589_v0, %v8335_v2 }
 0x659   : > { %v9146_v49 = vcombine.low %v13555_v39, %v13557_v47  ;;  %v8776_v62 = vmul.f32 0.125, %v8552_v31  ;;  %v8574_v15 = vadd.f32 %v8573_v13, %v8572_v24  ;;  %v8595_v7 = vrot.slane %v8336_v29, 4  ;;  %v7760_v13 = vpop.f32.mrf.mxu1 }
 0x65a   : > { %v17244_v51 = vmul.f32 %v9528_v22, %v17109_v56  ;;  %v8839_v46 = vadd.f32 1e-05, %v8775_v42  ;;  %v8570_v20 = vadd.f32 %v8569_v25, %v8568_v4  ;;  %v8591_v19 = vrot.slane %v8590_v16, 2  ;;  %v7647_v56 = vpop.f32.mrf.mxu0 }
 0x65b   : > { %v9160_v57 = vrot.slane %v9146_v49, %v14117_v18  ;;  %v8840_v58 = vadd.f32 1e-05, %v8776_v62  ;;  %v8575_v33 = vrot.slane %v8574_v15, 1  ;;  %v8596_v44 = vadd.f32 %v8595_v7, %v8336_v29 }
 0x65c   : > { %13558 = vrsqrt.f32 %v8839_v46  ;;  %v8779_v28 = vmul.f32 0.125, %v8570_v20  ;;  %v8592_v2 = vadd.f32 %v8591_v19, %v8590_v16  ;;  %v8038_v39 = vadd.f32 %v8037_v23, %v17233_v3 }
 0x65d   : > { %v9161_v24 = vcombine.low %v17081_v1, %v9160_v57  ;;  %13560 = vrsqrt.f32 %v8840_v58  ;;  %v8576_v0 = vadd.f32 %v8575_v33, %v8574_v15  ;;  %v8597_v31 = vrot.slane %v8596_v44, 2  ;;  %v7764_v15 = vpop.f32.mrf.mxu1 }
 0x65e   : > { %v8843_v47 = vadd.f32 1e-05, %v8779_v28  ;;  %v8593_v4 = vrot.slane %v8592_v2, 1  ;;  %v8039_v22 = vrot.slane %v8038_v39, 2  ;;  %v17249_v42 = vadd.f32 %v7756_v59, %v7643_v48  ;;  %v7651_v59 = vpop.f32.mrf.mxu0 }
 0x65f   : > { %v9168_v25 = vrot.slane %v9161_v24, %v14117_v18  ;;  %v8780_v29 = vmul.f32 0.125, %v8576_v0  ;;  %v8598_v49 = vadd.f32 %v8597_v31, %v8596_v44  ;;  %v9241_v16 = vcombine.low %v16880_v60, %v16887_v40 }
 0x660   : > { %13562 = vrsqrt.f32 %v8843_v47  ;;  %v8594_v23 = vadd.f32 %v8593_v4, %v8592_v2  ;;  %v8040_v1 = vadd.f32 %v8039_v22, %v8038_v39  ;;  %v8043_v33 = vrot.slane %v17249_v42, 4  ;;  %v7766_v4 = vpop.f32.mrf.mxu1 }
 0x661   : > { %v17256_v58 = vmul.f32 %v9168_v25, %v17077_v61  ;;  %v8844_v57 = vadd.f32 1e-05, %v8780_v29  ;;  %v8599_v62 = vrot.slane %v8598_v49, 1  ;;  %v17259_v48 = vrot.slane %v9241_v16, %v14117_v18 }
 0x662   : > { %v8783_v7 = vmul.f32 0.125, %v8594_v23  ;;  %v8041_v44 = vrot.slane %v8040_v1, 1  ;;  %v8044_v46 = vadd.f32 %v8043_v33, %v17249_v42  ;;  %v17262_v60 = vadd.f32 %v7758_v54, %v7645_v14  ;;  %v7653_v54 = vpop.f32.mrf.mxu0 }
 0x663   : > { %v9544_v40 = vrot.slane %v17256_v58, %v14201_v26  ;;  %13564 = vrsqrt.f32 %v8844_v57  ;;  %v8600_v20 = vadd.f32 %v8599_v62, %v8598_v49  ;;  %v17266_v19 = vadd.f32 %v7760_v13, %v7647_v56 }
 0x664   : > { %v8847_v28 = vadd.f32 1e-05, %v8783_v7  ;;  %v8042_v2 = vadd.f32 %v8041_v44, %v8040_v1  ;;  %v8045_v39 = vrot.slane %v8044_v46, 2  ;;  %v8061_v24 = vrot.slane %v17262_v60, 4 }
 0x665   : > { %v17270_v0 = vmul.f32 %v9544_v40, %v17143_v37  ;;  %v8784_v31 = vmul.f32 0.125, %v8600_v20  ;;  %v8067_v47 = vrot.slane %v17266_v19, 4  ;;  %v9265_v14 = vcombine.low %v16894_v53, %v16905_v8  ;;  %v7768_v40 = vpop.f32.mrf.mxu1 }
 0x666   : > { %13566 = vrsqrt.f32 %v8847_v28  ;;  %v8211_v22 = vmul.f32 0.125, %v8042_v2  ;;  %v8046_v56 = vadd.f32 %v8045_v39, %v8044_v46  ;;  %v8062_v13 = vadd.f32 %v8061_v24, %v17262_v60  ;;  %v7655_v46 = vpop.f32.mrf.mxu0 }
 0x667   : > { %v8848_v25 = vadd.f32 1e-05, %v8784_v31  ;;  %v8068_v29 = vadd.f32 %v8067_v47, %v17266_v19  ;;  %v17278_v49 = vrot.slane %v9265_v14, %v14117_v18  ;;  %v17280_v37 = vadd.f32 %v7764_v15, %v7651_v59 }
 0x668   : > { %v17283_v16 = vsub.f32 %v17233_v3, %v8211_v22  ;;  %v8047_v23 = vrot.slane %v8046_v56, 1  ;;  %v8063_v53 = vrot.slane %v8062_v13, 2  ;;  %v17285_v8 = vadd.f32 %v7766_v4, %v7653_v54 }
 0x669   : > { %v13559_v1 = vpop.eup %13558  ;;  %13568 = vrsqrt.f32 %v8848_v25  ;;  %v8069_v33 = vrot.slane %v8068_v29, 2  ;;  %v8085_v57 = vrot.slane %v17280_v37, 4  ;;  %v9289_v62 = vcombine.low %v16948_v36, %v16956_v21 }
 0x66a   : > { %18920 = vst [vmem:[#allocation58_spill] sm:$0xff] %v17283_v16  ;;  %v13561_v7 = vpop.eup %13560  ;;  %v8339_v59 = vmul.f32 %v17283_v16, %v17283_v16  ;;  %v8048_v15 = vadd.f32 %v8047_v23, %v8046_v56  ;;  %v8064_v44 = vadd.f32 %v8063_v53, %v8062_v13  ;;  %v8091_v3 = vrot.slane %v17285_v8, 4 }
 0x66b   : > { %v9170_v20 = vcombine.low %v13559_v1, %v13561_v7  ;;  %v8070_v28 = vadd.f32 %v8069_v33, %v8068_v29  ;;  %v8086_v2 = vadd.f32 %v8085_v57, %v17280_v37  ;;  %v17295_v39 = vrot.slane %v9289_v62, %v14117_v18 }
 0x66c   : > { %v8613_v24 = vrot.slane %v8339_v59, 4  ;;  %v8212_v31 = vmul.f32 0.125, %v8048_v15  ;;  %v8065_v36 = vrot.slane %v8064_v44, 1  ;;  %v8092_v21 = vadd.f32 %v8091_v3, %v17285_v8 }
 0x66d   : > { %v13563_v47 = vpop.eup %13562  ;;  %v9184_v14 = vrot.slane %v9170_v20, %v14117_v18  ;;  %v8071_v54 = vrot.slane %v8070_v28, 1  ;;  %v8087_v4 = vrot.slane %v8086_v2, 2  ;;  %v17299_v22 = vadd.f32 %v7768_v40, %v7655_v46 }
 0x66e   : > { %v8614_v56 = vadd.f32 %v8613_v24, %v8339_v59  ;;  %v17302_v13 = vsub.f32 %v17249_v42, %v8212_v31  ;;  %v8066_v25 = vadd.f32 %v8065_v36, %v8064_v44  ;;  %v8093_v29 = vrot.slane %v8092_v21, 2 }
 0x66f   : > { %v9185_v23 = vcombine.low %v17165_v30, %v9184_v14  ;;  %v8072_v53 = vadd.f32 %v8071_v54, %v8070_v28  ;;  %v8088_v1 = vadd.f32 %v8087_v4, %v8086_v2  ;;  %v8109_v33 = vrot.slane %v17299_v22, 4 }
 0x670   : > { %v13565_v57 = vpop.eup %13564  ;;  %v8615_v62 = vrot.slane %v8614_v56, 2  ;;  %v8340_v7 = vmul.f32 %v17302_v13, %v17302_v13  ;;  %v8215_v15 = vmul.f32 0.125, %v8066_v25  ;;  %v8094_v3 = vadd.f32 %v8093_v29, %v8092_v21 }
 0x671   : > { %v9192_v59 = vrot.slane %v9185_v23, %v14117_v18  ;;  %v9194_v46 = vcombine.low %v13563_v47, %v13565_v57  ;;  %v8216_v42 = vmul.f32 0.125, %v8072_v53  ;;  %v8089_v40 = vrot.slane %v8088_v1, 1 }
 0x672   : > { %v8616_v44 = vadd.f32 %v8615_v62, %v8614_v56  ;;  %v8619_v20 = vrot.slane %v8340_v7, 4  ;;  %v17310_v30 = vsub.f32 %v17262_v60, %v8215_v15  ;;  %v8095_v28 = vrot.slane %v8094_v3, 1 }
 0x673   : > { %v13567_v2 = vpop.eup %13566  ;;  %v17313_v24 = vmul.f32 %v9192_v59, %v17077_v61  ;;  %v9208_v31 = vrot.slane %v9194_v46, %v14117_v18  ;;  %v17317_v36 = vsub.f32 %v17266_v19, %v8216_v42  ;;  %v8090_v21 = vadd.f32 %v8089_v40, %v8088_v1 }
 0x674   : > { %18921 = vst [vmem:[#allocation64_spill] sm:$0xff] %v17310_v30  ;;  %v8617_v14 = vrot.slane %v8616_v44, 1  ;;  %v8620_v47 = vadd.f32 %v8619_v20, %v8340_v7  ;;  %v8343_v54 = vmul.f32 %v17310_v30, %v17310_v30  ;;  %v8096_v4 = vadd.f32 %v8095_v28, %v8094_v3 }
 0x675   : > { %v9560_v60 = vrot.slane %v17313_v24, %v14201_v26  ;;  %v9209_v56 = vcombine.low %v17175_v50, %v9208_v31  ;;  %v8344_v25 = vmul.f32 %v17317_v36, %v17317_v36  ;;  %v8219_v29 = vmul.f32 0.125, %v8090_v21  ;;  %v7770_v31 = vpop.f32.mrf.mxu1 }
 0x676   : > { %v13569_v23 = vpop.eup %13568  ;;  %v8618_v53 = vadd.f32 %v8617_v14, %v8616_v44  ;;  %v8621_v19 = vrot.slane %v8620_v47, 2  ;;  %v8637_v57 = vrot.slane %v8343_v54, 4  ;;  %v8220_v1 = vmul.f32 0.125, %v8096_v4 }
 0x677   : > { %v17327_v62 = vmul.f32 %v9560_v60, %v17193_v52  ;;  %v9216_v7 = vrot.slane %v9209_v56, %v14117_v18  ;;  %v9218_v15 = vcombine.low %v13567_v2, %v13569_v23  ;;  %v8643_v3 = vrot.slane %v8344_v25, 4  ;;  %v7657_v52 = vpop.f32.mrf.mxu0 }
 0x678   : > { %v8787_v59 = vmul.f32 0.125, %v8618_v53  ;;  %v8622_v46 = vadd.f32 %v8621_v19, %v8620_v47  ;;  %v8638_v42 = vadd.f32 %v8637_v57, %v8343_v54  ;;  %v17331_v50 = vsub.f32 %v17280_v37, %v8219_v29 }
 0x679   : > { %v17334_v40 = vmul.f32 %v9216_v7, %v17077_v61  ;;  %v9232_v44 = vrot.slane %v9218_v15, %v14117_v18  ;;  %v8644_v20 = vadd.f32 %v8643_v3, %v8344_v25  ;;  %v17338_v28 = vsub.f32 %v17285_v8, %v8220_v1  ;;  %v7661_v57 = vpop.f32.mrf.mxu0  ;;  %v7774_v1 = vpop.f32.mrf.mxu1 }
 0x67a   : > { %18922 = vst [vmem:[#allocation43_spill] sm:$0xff] %v17331_v50  ;;  %v8851_v21 = vadd.f32 1e-05, %v8787_v59  ;;  %v8623_v2 = vrot.slane %v8622_v46, 1  ;;  %v8639_v14 = vrot.slane %v8638_v42, 2  ;;  %v8347_v47 = vmul.f32 %v17331_v50, %v17331_v50 }
 0x67b   : > { %v9576_v37 = vrot.slane %v17334_v40, %v14201_v26  ;;  %v9233_v54 = vcombine.low %v17205_v9, %v9232_v44  ;;  %v8645_v4 = vrot.slane %v8644_v20, 2  ;;  %v8348_v60 = vmul.f32 %v17338_v28, %v17338_v28 }
 0x67c   : > { %13570 = vrsqrt.f32 %v8851_v21  ;;  %v8624_v8 = vadd.f32 %v8623_v2, %v8622_v46  ;;  %v8640_v56 = vadd.f32 %v8639_v14, %v8638_v42  ;;  %v8661_v25 = vrot.slane %v8347_v47, 4 }
 0x67d   : > { %v17348_v29 = vmul.f32 %v9576_v37, %v17213_v45  ;;  %v9240_v23 = vrot.slane %v9233_v54, %v14117_v18  ;;  %v8646_v53 = vadd.f32 %v8645_v4, %v8644_v20  ;;  %v8667_v19 = vrot.slane %v8348_v60, 4  ;;  %v7663_v4 = vpop.f32.mrf.mxu0 }
 0x67e   : > { %v8788_v7 = vmul.f32 0.125, %v8624_v8  ;;  %v8641_v15 = vrot.slane %v8640_v56, 1  ;;  %v8662_v9 = vadd.f32 %v8661_v25, %v8347_v47  ;;  %v8110_v3 = vadd.f32 %v8109_v33, %v17299_v22  ;;  %v7776_v33 = vpop.f32.mrf.mxu1 }
 0x67f   : > { %v17355_v59 = vmul.f32 %v9240_v23, %v17077_v61  ;;  %v8647_v46 = vrot.slane %v8646_v53, 1  ;;  %v8668_v42 = vadd.f32 %v8667_v19, %v8348_v60  ;;  %v17357_v45 = vadd.f32 %v7770_v31, %v7657_v52 }
 0x680   : > { %v8852_v44 = vadd.f32 1e-05, %v8788_v7  ;;  %v8642_v21 = vadd.f32 %v8641_v15, %v8640_v56  ;;  %v8663_v20 = vrot.slane %v8662_v9, 2  ;;  %v8111_v2 = vrot.slane %v8110_v3, 2 }
 0x681   : > { %v9592_v14 = vrot.slane %v17355_v59, %v14201_v26  ;;  %v8648_v37 = vadd.f32 %v8647_v46, %v8646_v53  ;;  %v8669_v47 = vrot.slane %v8668_v42, 2  ;;  %v8115_v54 = vrot.slane %v17357_v45, 4 }
 0x682   : > { %13572 = vrsqrt.f32 %v8852_v44  ;;  %v8791_v61 = vmul.f32 0.125, %v8642_v21  ;;  %v8664_v8 = vadd.f32 %v8663_v20, %v8662_v9  ;;  %v8112_v25 = vadd.f32 %v8111_v2, %v8110_v3  ;;  %v7665_v9 = vpop.f32.mrf.mxu0  ;;  %v7778_v3 = vpop.f32.mrf.mxu1 }
 0x683   : > { %v17363_v52 = vmul.f32 %v9592_v14, %v17231_v41  ;;  %v8792_v31 = vmul.f32 0.125, %v8648_v37  ;;  %v8670_v60 = vadd.f32 %v8669_v47, %v8668_v42  ;;  %v8116_v56 = vadd.f32 %v8115_v54, %v17357_v45 }
 0x684   : > { %v8855_v23 = vadd.f32 1e-05, %v8791_v61  ;;  %v8665_v19 = vrot.slane %v8664_v8, 1  ;;  %v8113_v7 = vrot.slane %v8112_v25, 1  ;;  %v9313_v53 = vcombine.low %v16963_v38, %v16975_v63 }
 0x685   : > { %v8856_v15 = vadd.f32 1e-05, %v8792_v31  ;;  %v8671_v46 = vrot.slane %v8670_v60, 1  ;;  %v8117_v50 = vrot.slane %v8116_v56, 2  ;;  %v17368_v44 = vadd.f32 %v7774_v1, %v7661_v57  ;;  %v7780_v31 = vpop.f32.mrf.mxu1 }
 0x686   : > { %13574 = vrsqrt.f32 %v8855_v23  ;;  %v8666_v41 = vadd.f32 %v8665_v19, %v8664_v8  ;;  %v8114_v21 = vadd.f32 %v8113_v7, %v8112_v25  ;;  %v17371_v42 = vrot.slane %v9313_v53, %v14117_v18  ;;  %v7667_v25 = vpop.f32.mrf.mxu0 }
 0x687   : > { %13576 = vrsqrt.f32 %v8856_v15  ;;  %v8672_v20 = vadd.f32 %v8671_v46, %v8670_v60  ;;  %v8118_v2 = vadd.f32 %v8117_v50, %v8116_v56  ;;  %v8133_v14 = vrot.slane %v17368_v44, 4 }
 0x688   : > { %v8795_v37 = vmul.f32 0.125, %v8666_v41  ;;  %v8223_v38 = vmul.f32 0.125, %v8114_v21  ;;  %v17374_v63 = vadd.f32 %v7776_v33, %v7663_v4  ;;  %v9337_v57 = vcombine.low %v16988_v11, %v16993_v55  ;;  %v18924_v21 = vld [vmem:[#allocation62_spill] sm:$0xff] }
 0x689   : > { %v13571_v1 = vpop.eup %13570  ;;  %v8796_v47 = vmul.f32 0.125, %v8672_v20  ;;  %v8119_v54 = vrot.slane %v8118_v2, 1  ;;  %v8134_v61 = vadd.f32 %v8133_v14, %v17368_v44  ;;  %v17379_v8 = vadd.f32 %v7778_v3, %v7665_v9  ;;  %v18925_v20 = vld [vmem:[#allocation51_spill] sm:$0xff] }
 0x68a   : > { %v8859_v60 = vadd.f32 1e-05, %v8795_v37  ;;  %v17382_v50 = vsub.f32 %v17299_v22, %v8223_v38  ;;  %v8139_v56 = vrot.slane %v17374_v63, 4  ;;  %v17386_v4 = vrot.slane %v9337_v57, %v14117_v18 }
 0x68b   : > { %v8860_v33 = vadd.f32 1e-05, %v8796_v47  ;;  %v8120_v11 = vadd.f32 %v8119_v54, %v8118_v2  ;;  %v8135_v55 = vrot.slane %v8134_v61, 2  ;;  %v8157_v23 = vrot.slane %v17379_v8, 4  ;;  %v18926_v47 = vld [vmem:[#allocation66_spill] sm:$0xff] }
 0x68c   : > { %18923 = vst [vmem:[#allocation57_spill] sm:$0xff] %v17382_v50  ;;  %13578 = vrsqrt.f32 %v8859_v60  ;;  %v8351_v19 = vmul.f32 %v17382_v50, %v17382_v50  ;;  %v8140_v7 = vadd.f32 %v8139_v56, %v17374_v63  ;;  %v17392_v53 = vadd.f32 %v7780_v31, %v7667_v25 }
 0x68d   : > { %13580 = vrsqrt.f32 %v8860_v33  ;;  %v8224_v22 = vmul.f32 0.125, %v8120_v11  ;;  %v8136_v15 = vadd.f32 %v8135_v55, %v8134_v61  ;;  %v8158_v46 = vadd.f32 %v8157_v23, %v17379_v8 }
 0x68e   : > { %v8685_v9 = vrot.slane %v8351_v19, 4  ;;  %v8141_v3 = vrot.slane %v8140_v7, 2  ;;  %v8163_v41 = vrot.slane %v17392_v53, 4  ;;  %v9361_v2 = vcombine.low %v18925_v20, %v18924_v21 }
 0x68f   : > { %v13573_v14 = vpop.eup %13572  ;;  %v17399_v37 = vsub.f32 %v17357_v45, %v8224_v22  ;;  %v8137_v38 = vrot.slane %v8136_v15, 1  ;;  %v8159_v57 = vrot.slane %v8158_v46, 2 }
 0x690   : > { %v9242_v25 = vcombine.low %v13571_v1, %v13573_v14  ;;  %v8686_v61 = vadd.f32 %v8685_v9, %v8351_v19  ;;  %v8142_v31 = vadd.f32 %v8141_v3, %v8140_v7  ;;  %v8164_v60 = vadd.f32 %v8163_v41, %v17392_v53 }
 0x691   : > { %v8352_v56 = vmul.f32 %v17399_v37, %v17399_v37  ;;  %v8138_v33 = vadd.f32 %v8137_v38, %v8136_v15  ;;  %v8160_v11 = vadd.f32 %v8159_v57, %v8158_v46  ;;  %v17407_v55 = vrot.slane %v9361_v2, %v14117_v18 }
 0x692   : > { %v9256_v45 = vrot.slane %v9242_v25, %v14117_v18  ;;  %v8687_v23 = vrot.slane %v8686_v61, 2  ;;  %v8143_v22 = vrot.slane %v8142_v31, 1  ;;  %v8165_v21 = vrot.slane %v8164_v60, 2 }
 0x693   : > { %v13575_v20 = vpop.eup %13574  ;;  %v8691_v54 = vrot.slane %v8352_v56, 4  ;;  %v8227_v1 = vmul.f32 0.125, %v8138_v33  ;;  %v8161_v19 = vrot.slane %v8160_v11, 1 }
 0x694   : > { %v13577_v9 = vpop.eup %13576  ;;  %v9257_v3 = vcombine.low %v17259_v48, %v9256_v45  ;;  %v8688_v15 = vadd.f32 %v8687_v23, %v8686_v61  ;;  %v8144_v46 = vadd.f32 %v8143_v22, %v8142_v31  ;;  %v8166_v41 = vadd.f32 %v8165_v21, %v8164_v60 }
 0x695   : > { %v9266_v2 = vcombine.low %v13575_v20, %v13577_v9  ;;  %v8692_v14 = vadd.f32 %v8691_v54, %v8352_v56  ;;  %v17414_v38 = vsub.f32 %v17368_v44, %v8227_v1  ;;  %v8162_v57 = vadd.f32 %v8161_v19, %v8160_v11  ;;  %v17423_v54 = vld [vmem:[%s18469_s8] sm:$0xf] }
 0x696   : > { %v9264_v25 = vrot.slane %v9257_v3, %v14117_v18  ;;  %v8689_v50 = vrot.slane %v8688_v15, 1  ;;  %v8228_v33 = vmul.f32 0.125, %v8144_v46  ;;  %v8167_v30 = vrot.slane %v8166_v41, 1 }
 0x697   : > { %18927 = vst [vmem:[#allocation52_spill] sm:$0xff] %v17414_v38  ;;  %v9280_v16 = vrot.slane %v9266_v2, %v14117_v18  ;;  %v8693_v7 = vrot.slane %v8692_v14, 2  ;;  %v8355_v48 = vmul.f32 %v17414_v38, %v17414_v38  ;;  %v8231_v61 = vmul.f32 0.125, %v8162_v57 }
 0x698   : > { %v17426_v44 = vmul.f32 %v17423_v54, %v9264_v25  ;;  %v8690_v31 = vadd.f32 %v8689_v50, %v8688_v15  ;;  %v17429_v60 = vsub.f32 %v17374_v63, %v8228_v33  ;;  %v8168_v56 = vadd.f32 %v8167_v30, %v8166_v41 }
 0x699   : > { %v13579_v11 = vpop.eup %13578  ;;  %v9281_v45 = vcombine.low %v17278_v49, %v9280_v16  ;;  %v8694_v23 = vadd.f32 %v8693_v7, %v8692_v14  ;;  %v8709_v22 = vrot.slane %v8355_v48, 4  ;;  %v17433_v21 = vsub.f32 %v17379_v8, %v8231_v61 }
 0x69a   : > { %v13581_v20 = vpop.eup %13580  ;;  %v9608_v1 = vrot.slane %v17426_v44, %v14201_v26  ;;  %v8799_v19 = vmul.f32 0.125, %v8690_v31  ;;  %v8356_v50 = vmul.f32 %v17429_v60, %v17429_v60  ;;  %v8232_v9 = vmul.f32 0.125, %v8168_v56 }
 0x69b   : > { %18928 = vst [vmem:[#allocation62_spill] sm:$0xff] %v17433_v21  ;;  %v9288_v63 = vrot.slane %v9281_v45, %v14117_v18  ;;  %v9290_v30 = vcombine.low %v13579_v11, %v13581_v20  ;;  %v8695_v3 = vrot.slane %v8694_v23, 1  ;;  %v8710_v15 = vadd.f32 %v8709_v22, %v8355_v48  ;;  %v18929_v22 = vld [vmem:[#allocation36_spill] sm:$0xff] }
 0x69c   : > { %v17441_v49 = vmul.f32 %v9608_v1, %v17302_v13  ;;  %v8863_v16 = vadd.f32 1e-05, %v8799_v19  ;;  %v8715_v8 = vrot.slane %v8356_v50, 4  ;;  %v8359_v7 = vmul.f32 %v17433_v21, %v17433_v21 }
 0x69d   : > { %v17446_v46 = vmul.f32 %v17423_v54, %v9288_v63  ;;  %v9304_v41 = vrot.slane %v9290_v30, %v14117_v18  ;;  %v8696_v2 = vadd.f32 %v8695_v3, %v8694_v23  ;;  %v8711_v14 = vrot.slane %v8710_v15, 2  ;;  %v7784_v23 = vld [vmem:[%s18470_s9] sm:$0xf] }
 0x69e   : > { %13582 = vrsqrt.f32 %v8863_v16  ;;  %v8716_v57 = vadd.f32 %v8715_v8, %v8356_v50  ;;  %v8733_v25 = vrot.slane %v8359_v7, 4  ;;  %v17450_v33 = vsub.f32 %v17392_v53, %v8232_v9  ;;  %v18931_v3 = vld [vmem:[#allocation18_spill] sm:$0xff] }
 0x69f   : > { %v9624_v13 = vrot.slane %v17446_v46, %v14201_v26  ;;  %v9305_v48 = vcombine.low %v17295_v39, %v9304_v41  ;;  %v8800_v61 = vmul.f32 0.125, %v8696_v2  ;;  %v8712_v31 = vadd.f32 %v8711_v14, %v8710_v15  ;;  %v18933_v41 = vld [vmem:[#allocation67_spill] sm:$0xff] }
 0x6a0   : > { %v8717_v56 = vrot.slane %v8716_v57, 2  ;;  %v8734_v11 = vadd.f32 %v8733_v25, %v8359_v7  ;;  %v8360_v45 = vmul.f32 %v17450_v33, %v17450_v33  ;;  %v18930_v53 = vrot.slane %v17090_v34, %v18926_v47 }
 0x6a1   : > { %v17465_v1 = vmul.f32 %v9624_v13, %v17317_v36  ;;  %v9312_v39 = vrot.slane %v9305_v48, %v14117_v18  ;;  %v8864_v19 = vadd.f32 1e-05, %v8800_v61  ;;  %v8713_v50 = vrot.slane %v8712_v31, 1  ;;  %v18934_v61 = vld [vmem:[#allocation68_spill] sm:$0xff] }
 0x6a2   : > { %v9754_v20 = vmul.f32 %v18930_v53, %v18929_v22  ;;  %v8718_v9 = vadd.f32 %v8717_v56, %v8716_v57  ;;  %v8735_v63 = vrot.slane %v8734_v11, 2  ;;  %v8739_v30 = vrot.slane %v8360_v45, 4 }
 0x6a3   : > { %v18932_v15 = vrot.slane %v17112_v10, %v18926_v47  ;;  %v17473_v8 = vmul.f32 %v17423_v54, %v9312_v39  ;;  %13584 = vrsqrt.f32 %v8864_v19  ;;  %v8714_v7 = vadd.f32 %v8713_v50, %v8712_v31 }
 0x6a4   : > { %v17476_v36 = vrot.slane %v7784_v23, %v18933_v41  ;;  %v8719_v2 = vrot.slane %v8718_v9, 1  ;;  %v8736_v14 = vadd.f32 %v8735_v63, %v8734_v11  ;;  %v8740_v25 = vadd.f32 %v8739_v30, %v8360_v45 }
 0x6a5   : > { %v9758_v16 = vmul.f32 %v18932_v15, %v18931_v3  ;;  %v17479_v57 = vrot.slane %v7784_v23, %v18926_v47  ;;  %v9640_v13 = vrot.slane %v17473_v8, %v14201_v26  ;;  %v8803_v48 = vmul.f32 0.125, %v8714_v7 }
 0x6a6   : > { %v17484_v56 = vrot.slane %v7784_v23, %v18934_v61  ;;  %v17487_v22 = vrot.slane %v7784_v23, %v14201_v26  ;;  %v8720_v31 = vadd.f32 %v8719_v2, %v8718_v9  ;;  %v8737_v53 = vrot.slane %v8736_v14, 1 }
 0x6a7   : > { %v8741_v39 = vrot.slane %v8740_v25, 2  ;;  %v9839_v19 = vadd.f32 %v17479_v57, %v9754_v20  ;;  %v17491_v11 = vmul.f32 %v9640_v13, %v17338_v28  ;;  %v8867_v45 = vadd.f32 1e-05, %v8803_v48 }
 0x6a8   : > { %v9843_v50 = vadd.f32 %v17479_v57, %v9758_v16  ;;  %v9841_v63 = vadd.f32 %v17487_v22, %v17102_v17  ;;  %v8804_v30 = vmul.f32 0.125, %v8720_v31  ;;  %v8738_v3 = vadd.f32 %v8737_v53, %v8736_v14 }
 0x6a9   : > { %v8742_v15 = vadd.f32 %v8741_v39, %v8740_v25  ;;  %v9903_v7 = vmax.f32 %v9839_v19, 0.0  ;;  %13586 = vrsqrt.f32 %v8867_v45  ;;  %v9845_v9 = vadd.f32 %v17487_v22, %v17125_v6  ;;  %v18935_v6 = vld [vmem:[#allocation19_spill] sm:$0xff]  ;;  %v18936_v19 = vld [vmem:[#allocation54_spill] sm:$0xff] }
 0x6aa   : > { %v9907_v23 = vmax.f32 %v9843_v50, 0.0  ;;  %v9905_v2 = vmax.f32 %v9841_v63, 0.0  ;;  %v8868_v20 = vadd.f32 1e-05, %v8804_v30  ;;  %v8807_v21 = vmul.f32 0.125, %v8738_v3  ;;  %v18937_v63 = vld [vmem:[#allocation33_spill] sm:$0xff] }
 0x6ab   : > { %v8743_v28 = vrot.slane %v8742_v15, 1  ;;  %v9436_v13 = vrot.slane %v17090_v34, %v18933_v41  ;;  %v13583_v16 = vpop.eup %13582  ;;  %v9909_v38 = vmax.f32 %v9845_v9, 0.0  ;;  %v9452_v17 = vrot.slane %v17112_v10, %v18933_v41 }
 0x6ac   : > { %v9967_v48 = vpack.c.bf16 %v9907_v23, %v9903_v7  ;;  %v9444_v14 = vrot.slane %v17090_v34, %v18934_v61  ;;  %13588 = vrsqrt.f32 %v8868_v20  ;;  %v8871_v25 = vadd.f32 1e-05, %v8807_v21 }
 0x6ad   : > { %v8744_v31 = vadd.f32 %v8743_v28, %v8742_v15  ;;  %v9753_v53 = vmul.f32 %v9436_v13, %v18935_v6  ;;  %v9969_v39 = vpack.c.bf16 %v9909_v38, %v9905_v2  ;;  %v9757_v45 = vmul.f32 %v9452_v17, %v18936_v19  ;;  %v18938_v15 = vld [vmem:[#allocation41_spill] sm:$0xff]  ;;  %v18939_v28 = vld [vmem:[#allocation42_spill] sm:$0xff] }
 0x6ae   : > { %10414 = vmatprep.mubr.bf16.mxu0 %v9967_v48  ;;  %v9460_v50 = vrot.slane %v17112_v10, %v18934_v61  ;;  %v9755_v30 = vmul.f32 %v9444_v14, %v18937_v63  ;;  %13590 = vrsqrt.f32 %v8871_v25  ;;  %v9472_v34 = vrot.slane %v17130_v12, %v18926_v47  ;;  %v18940_v6 = vld [vmem:[#allocation25_spill] sm:$0xff] }
 0x6af   : > { %v8808_v3 = vmul.f32 0.125, %v8744_v31  ;;  %v9838_v7 = vadd.f32 %v17476_v36, %v9753_v53  ;;  %10527 = vmatprep.mubr.bf16.mxu1 %v9969_v39  ;;  %v9842_v21 = vadd.f32 %v17476_v36, %v9757_v45  ;;  %v9488_v9 = vrot.slane %v17140_v32, %v18926_v47 }
 0x6b0   : > { %v9759_v23 = vmul.f32 %v9460_v50, %v18938_v15  ;;  %v9840_v38 = vadd.f32 %v17484_v56, %v9755_v30  ;;  %v13585_v10 = vpop.eup %13584  ;;  %v9762_v13 = vmul.f32 %v9472_v34, %v18939_v28  ;;  %v9849_v48 = vadd.f32 %v17487_v22, %v17137_v35 }
 0x6b1   : > { %v8872_v2 = vadd.f32 1e-05, %v8808_v3  ;;  %v9902_v20 = vmax.f32 %v9838_v7, 0.0  ;;  %v9314_v17 = vcombine.low %v13583_v16, %v13585_v10  ;;  %v9906_v14 = vmax.f32 %v9842_v21, 0.0  ;;  %v18941_v10 = vld [vmem:[#allocation29_spill] sm:$0xff] }
 0x6b2   : > { %v9844_v25 = vadd.f32 %v17484_v56, %v9759_v23  ;;  %v9904_v31 = vmax.f32 %v9840_v38, 0.0  ;;  %v9766_v53 = vmul.f32 %v9488_v9, %v18940_v6  ;;  %v9847_v39 = vadd.f32 %v17479_v57, %v9762_v13 }
 0x6b3   : > { %13592 = vrsqrt.f32 %v8872_v2  ;;  %v9853_v19 = vadd.f32 %v17487_v22, %v17154_v27  ;;  %v9328_v45 = vrot.slane %v9314_v17, %v14117_v18  ;;  %v9966_v50 = vpack.c.bf16 %v9906_v14, %v9902_v20 }
 0x6b4   : > { %v9908_v63 = vmax.f32 %v9844_v25, 0.0  ;;  %v9913_v30 = vmax.f32 %v9849_v48, 0.0  ;;  %v9851_v35 = vadd.f32 %v17479_v57, %v9766_v53  ;;  %v9911_v16 = vmax.f32 %v9847_v39, 0.0  ;;  %v18943_v48 = vld [vmem:[#allocation60_spill] sm:$0xff] }
 0x6b5   : > { %v9917_v3 = vmax.f32 %v9853_v19, 0.0  ;;  %v9468_v7 = vrot.slane %v17130_v12, %v18933_v41  ;;  %v9329_v34 = vcombine.low %v17371_v42, %v9328_v45  ;;  %10415 = vmatmul.mubr.bf16.vlgmr.msra.gmra.mxu0 %v9966_v50  ;;  %v9484_v15 = vrot.slane %v17140_v32, %v18933_v41  ;;  %v18942_v42 = vld [vmem:[#allocation45_spill] sm:$0xff]  ;;  %v18945_v50 = vld [vmem:[#allocation22_spill] sm:$0xff] }
 0x6b6   : > { %v9968_v21 = vpack.c.bf16 %v9908_v63, %v9904_v31  ;;  %v9476_v27 = vrot.slane %v17130_v12, %v18934_v61  ;;  %v13587_v23 = vpop.eup %13586  ;;  %v9915_v38 = vmax.f32 %v9851_v35, 0.0  ;;  %v9492_v20 = vrot.slane %v17140_v32, %v18934_v61  ;;  %v18944_v31 = vld [vmem:[#allocation34_spill] sm:$0xff] }
 0x6b7   : > { %v9973_v9 = vpack.c.bf16 %v9917_v3, %v9913_v30  ;;  %v9761_v2 = vmul.f32 %v9468_v7, %v18941_v10  ;;  %v9336_v28 = vrot.slane %v9329_v34, %v14117_v18  ;;  %v9765_v13 = vmul.f32 %v9484_v15, %v18942_v42  ;;  %v18946_v3 = vld [vmem:[#allocation63_spill] sm:$0xff] }
 0x6b8   : > { %10528 = vmatmul.mubr.bf16.vlgmr.msra.gmra.mxu1 %v9968_v21  ;;  %v9763_v17 = vmul.f32 %v9476_v27, %v18943_v48  ;;  %v9504_v14 = vrot.slane %v17210_v5, %v18926_v47  ;;  %v9971_v25 = vpack.c.bf16 %v9915_v38, %v9911_v16  ;;  %v9767_v6 = vmul.f32 %v9492_v20, %v18944_v31 }
 0x6b9   : > { %10537 = vmatprep.mubr.bf16.mxu1 %v9973_v9  ;;  %v9846_v12 = vadd.f32 %v17476_v36, %v9761_v2  ;;  %v9520_v53 = vrot.slane %v17236_v43, %v18926_v47  ;;  %v13589_v32 = vpop.eup %13588  ;;  %v17547_v39 = vmul.f32 %v17423_v54, %v9336_v28  ;;  %v9850_v19 = vadd.f32 %v17476_v36, %v9765_v13 }
 0x6ba   : > { %v9848_v45 = vadd.f32 %v17484_v56, %v9763_v17  ;;  %v9770_v63 = vmul.f32 %v9504_v14, %v18945_v50  ;;  %v9338_v30 = vcombine.low %v13587_v23, %v13589_v32  ;;  %10424 = vmatprep.mubr.bf16.mxu0 %v9971_v25  ;;  %v9852_v16 = vadd.f32 %v17484_v56, %v9767_v6  ;;  %v18947_v23 = vld [vmem:[#allocation47_spill] sm:$0xff] }
 0x6bb   : > { %v9910_v35 = vmax.f32 %v9846_v12, 0.0  ;;  %v9774_v7 = vmul.f32 %v9520_v53, %v18946_v3  ;;  %v13591_v34 = vpop.eup %13590  ;;  %v9656_v21 = vrot.slane %v17547_v39, %v14201_v26  ;;  %v9914_v15 = vmax.f32 %v9850_v19, 0.0  ;;  %v18950_v3 = vld [vmem:[#allocation55_spill] sm:$0xff] }
 0x6bc   : > { %v9912_v27 = vmax.f32 %v9848_v45, 0.0  ;;  %v9855_v38 = vadd.f32 %v17479_v57, %v9770_v63  ;;  %v9352_v9 = vrot.slane %v9338_v30, %v14117_v18  ;;  %v9916_v10 = vmax.f32 %v9852_v16, 0.0  ;;  %v18948_v63 = vld [vmem:[#allocation37_spill] sm:$0xff] }
 0x6bd   : > { %v9859_v2 = vadd.f32 %v17479_v57, %v9774_v7  ;;  %v9857_v20 = vadd.f32 %v17487_v22, %v18947_v23  ;;  %v17562_v28 = vmul.f32 %v9656_v21, %v17399_v37  ;;  %v9970_v42 = vpack.c.bf16 %v9914_v15, %v9910_v35  ;;  %v18949_v35 = vld [vmem:[#allocation35_spill] sm:$0xff] }
 0x6be   : > { %v9919_v13 = vmax.f32 %v9855_v38, 0.0  ;;  %v9861_v48 = vadd.f32 %v17487_v22, %v17244_v51  ;;  %v9353_v17 = vcombine.low %v17386_v4, %v9352_v9  ;;  %v9972_v14 = vpack.c.bf16 %v9916_v10, %v9912_v27  ;;  %v18951_v15 = vld [vmem:[#allocation39_spill] sm:$0xff] }
 0x6bf   : > { %v9923_v25 = vmax.f32 %v9859_v2, 0.0  ;;  %v9921_v12 = vmax.f32 %v9857_v20, 0.0  ;;  %10425 = vmatmul.mubr.bf16.gmra.mxu0 %v9970_v42  ;;  %v9500_v53 = vrot.slane %v17210_v5, %v18933_v41  ;;  %v9516_v37 = vrot.slane %v17236_v43, %v18933_v41  ;;  %v18952_v42 = vld [vmem:[#allocation23_spill] sm:$0xff] }
 0x6c0   : > { %v13593_v31 = vpop.eup %13592  ;;  %v9925_v6 = vmax.f32 %v9861_v48, 0.0  ;;  %v9508_v32 = vrot.slane %v17210_v5, %v18934_v61  ;;  %v9360_v19 = vrot.slane %v9353_v17, %v14117_v18  ;;  %10538 = vmatmul.mubr.bf16.gmra.mxu1 %v9972_v14  ;;  %v9524_v45 = vrot.slane %v17236_v43, %v18934_v61 }
 0x6c1   : > { %v9362_v51 = vcombine.low %v13591_v34, %v13593_v31  ;;  %v9975_v4 = vpack.c.bf16 %v9923_v25, %v9919_v13  ;;  %v9769_v30 = vmul.f32 %v9500_v53, %v18948_v63  ;;  %v9773_v16 = vmul.f32 %v9516_v37, %v18949_v35  ;;  %v18953_v25 = vld [vmem:[#allocation20_spill] sm:$0xff] }
 0x6c2   : > { %v9977_v50 = vpack.c.bf16 %v9925_v6, %v9921_v12  ;;  %v9771_v7 = vmul.f32 %v9508_v32, %v18950_v3  ;;  %v17580_v21 = vmul.f32 %v17423_v54, %v9360_v19  ;;  %v9775_v34 = vmul.f32 %v9524_v45, %v18951_v15 }
 0x6c3   : > { %v9376_v5 = vrot.slane %v9362_v51, %v14117_v18  ;;  %10434 = vmatprep.mubr.bf16.mxu0 %v9975_v4  ;;  %v9536_v27 = vrot.slane %v17256_v58, %v18926_v47  ;;  %v9854_v43 = vadd.f32 %v17476_v36, %v9769_v30  ;;  %v9858_v38 = vadd.f32 %v17476_v36, %v9773_v16 }
 0x6c4   : > { %10547 = vmatprep.mubr.bf16.mxu1 %v9977_v50  ;;  %v9856_v9 = vadd.f32 %v17484_v56, %v9771_v7  ;;  %v9552_v10 = vrot.slane %v17313_v24, %v18926_v47  ;;  %v9672_v2 = vrot.slane %v17580_v21, %v14201_v26  ;;  %v9860_v20 = vadd.f32 %v17484_v56, %v9775_v34  ;;  %v18955_v34 = vld [vmem:[#allocation24_spill] sm:$0xff] }
 0x6c5   : > { %v9377_v23 = vcombine.low %v17407_v55, %v9376_v5  ;;  %v9778_v13 = vmul.f32 %v9536_v27, %v18952_v42  ;;  %v9918_v48 = vmax.f32 %v9854_v43, 0.0  ;;  %v9922_v17 = vmax.f32 %v9858_v38, 0.0 }
 0x6c6   : > { %v9920_v14 = vmax.f32 %v9856_v9, 0.0  ;;  %v9782_v12 = vmul.f32 %v9552_v10, %v18953_v25  ;;  %v17598_v31 = vmul.f32 %v9672_v2, %v17429_v60  ;;  %v9924_v53 = vmax.f32 %v9860_v20, 0.0  ;;  %v18956_v9 = vld [vmem:[#allocation40_spill] sm:$0xff]  ;;  %v18957_v2 = vld [vmem:[#allocation65_spill] sm:$0xff] }
 0x6c7   : > { %v9384_v6 = vrot.slane %v9377_v23, %v14117_v18  ;;  %v9863_v37 = vadd.f32 %v17479_v57, %v9778_v13  ;;  %v9974_v32 = vpack.c.bf16 %v9922_v17, %v9918_v48  ;;  %v9865_v19 = vadd.f32 %v17487_v22, %v17270_v0  ;;  %v18958_v20 = vld [vmem:[#allocation53_spill] sm:$0xff]  ;;  %v18959_v25 = vld [vmem:[#allocation32_spill] sm:$0xff] }
 0x6c8   : > { %v9867_v55 = vadd.f32 %v17479_v57, %v9782_v12  ;;  %v9869_v51 = vadd.f32 %v17487_v22, %v17327_v62  ;;  %v9976_v45 = vpack.c.bf16 %v9924_v53, %v9920_v14  ;;  %v9532_v50 = vrot.slane %v17256_v58, %v18933_v41  ;;  %v18954_v62 = vld [vmem:[#allocation46_spill] sm:$0xff] }
 0x6c9   : > { %v17608_v4 = vmul.f32 %v17423_v54, %v9384_v6  ;;  %v9927_v60 = vmax.f32 %v9863_v37, 0.0  ;;  %10435 = vmatmul.mubr.bf16.gmra.mxu0 %v9974_v32  ;;  %v9929_v30 = vmax.f32 %v9865_v19, 0.0  ;;  %v9548_v16 = vrot.slane %v17313_v24, %v18933_v41 }
 0x6ca   : > { %v9931_v63 = vmax.f32 %v9867_v55, 0.0  ;;  %v9933_v35 = vmax.f32 %v9869_v51, 0.0  ;;  %10548 = vmatmul.mubr.bf16.gmra.mxu1 %v9976_v45  ;;  %v9777_v3 = vmul.f32 %v9532_v50, %v18954_v62  ;;  %v9540_v54 = vrot.slane %v17256_v58, %v18934_v61 }
 0x6cb   : > { %v9688_v0 = vrot.slane %v17608_v4, %v14201_v26  ;;  %v9556_v7 = vrot.slane %v17313_v24, %v18934_v61  ;;  %v9781_v27 = vmul.f32 %v9548_v16, %v18955_v34  ;;  %v9568_v43 = vrot.slane %v17334_v40, %v18926_v47 }
 0x6cc   : > { %v9979_v5 = vpack.c.bf16 %v9931_v63, %v9927_v60  ;;  %v9981_v15 = vpack.c.bf16 %v9933_v35, %v9929_v30  ;;  %v9862_v26 = vadd.f32 %v17476_v36, %v9777_v3  ;;  %v9779_v10 = vmul.f32 %v9540_v54, %v18956_v9  ;;  %v18960_v30 = vld [vmem:[#allocation21_spill] sm:$0xff]  ;;  %v18961_v54 = vld [vmem:[#allocation50_spill] sm:$0xff]  ;;  %v18964_v9 = vld [vmem:[#allocation28_spill] sm:$0xff] }
 0x6cd   : > { %v17625_v38 = vmul.f32 %v9688_v0, %v17450_v33  ;;  %v9783_v23 = vmul.f32 %v9556_v7, %v18957_v2  ;;  %v9866_v58 = vadd.f32 %v17476_v36, %v9781_v27  ;;  %v9584_v24 = vrot.slane %v17355_v59, %v18926_v47 }
 0x6ce   : > { %10444 = vmatprep.mubr.bf16.mxu0 %v9979_v5  ;;  %10557 = vmatprep.mubr.bf16.mxu1 %v9981_v15  ;;  %v9786_v42 = vmul.f32 %v9568_v43, %v18958_v20  ;;  %v9926_v13 = vmax.f32 %v9862_v26, 0.0  ;;  %v9864_v48 = vadd.f32 %v17484_v56, %v9779_v10  ;;  %v9873_v17 = vadd.f32 %v17487_v22, %v17348_v29  ;;  %v18962_v15 = vld [vmem:[#allocation70_spill] sm:$0xff]  ;;  %v18963_v43 = vld [vmem:[#allocation44_spill] sm:$0xff] }
 0x6cf   : > { %v9868_v33 = vadd.f32 %v17484_v56, %v9783_v23  ;;  %v9930_v14 = vmax.f32 %v9866_v58, 0.0  ;;  %v9790_v12 = vmul.f32 %v9584_v24, %v18959_v25  ;;  %v9877_v53 = vadd.f32 %v17487_v22, %v17363_v52  ;;  %v18965_v24 = vld [vmem:[#allocation56_spill] sm:$0xff] }
 0x6d0   : > { %v9871_v6 = vadd.f32 %v17479_v57, %v9786_v42  ;;  %v9928_v37 = vmax.f32 %v9864_v48, 0.0  ;;  %v9937_v55 = vmax.f32 %v9873_v17, 0.0  ;;  %v9564_v19 = vrot.slane %v17334_v40, %v18933_v41 }
 0x6d1   : > { %v9932_v32 = vmax.f32 %v9868_v33, 0.0  ;;  %v9978_v51 = vpack.c.bf16 %v9930_v14, %v9926_v13  ;;  %v9875_v45 = vadd.f32 %v17479_v57, %v9790_v12  ;;  %v9941_v50 = vmax.f32 %v9877_v53, 0.0 }
 0x6d2   : > { %v9935_v60 = vmax.f32 %v9871_v6, 0.0  ;;  %v9580_v63 = vrot.slane %v17355_v59, %v18933_v41  ;;  %v9785_v35 = vmul.f32 %v9564_v19, %v18960_v30  ;;  %v9572_v52 = vrot.slane %v17334_v40, %v18934_v61  ;;  %v18966_v19 = vld [vmem:[#allocation30_spill] sm:$0xff] }
 0x6d3   : > { %v9980_v29 = vpack.c.bf16 %v9932_v32, %v9928_v37  ;;  %10445 = vmatmul.mubr.bf16.gmra.mxu0 %v9978_v51  ;;  %v9939_v16 = vmax.f32 %v9875_v45, 0.0  ;;  %v9985_v0 = vpack.c.bf16 %v9941_v50, %v9937_v55  ;;  %v9588_v62 = vrot.slane %v17355_v59, %v18934_v61  ;;  %v18967_v50 = vld [vmem:[#allocation26_spill] sm:$0xff] }
 0x6d4   : > { %v9600_v3 = vrot.slane %v17426_v44, %v18926_v47  ;;  %v9789_v7 = vmul.f32 %v9580_v63, %v18961_v54  ;;  %v9870_v5 = vadd.f32 %v17476_v36, %v9785_v35  ;;  %v9787_v34 = vmul.f32 %v9572_v52, %v18962_v15  ;;  %v18968_v52 = vld [vmem:[#allocation58_spill] sm:$0xff] }
 0x6d5   : > { %10558 = vmatmul.mubr.bf16.gmra.mxu1 %v9980_v29  ;;  %v9616_v27 = vrot.slane %v17446_v46, %v18926_v47  ;;  %v9983_v40 = vpack.c.bf16 %v9939_v16, %v9935_v60  ;;  %v9791_v26 = vmul.f32 %v9588_v62, %v18963_v43  ;;  %v9881_v59 = vadd.f32 %v17487_v22, %v17441_v49  ;;  %v18970_v15 = vld [vmem:[#allocation38_spill] sm:$0xff] }
 0x6d6   : > { %10567 = vmatprep.mubr.bf16.mxu1 %v9985_v0  ;;  %v9794_v10 = vmul.f32 %v9600_v3, %v18964_v9  ;;  %v9874_v2 = vadd.f32 %v17476_v36, %v9789_v7  ;;  %v9934_v23 = vmax.f32 %v9870_v5, 0.0  ;;  %v9872_v58 = vadd.f32 %v17484_v56, %v9787_v34 }
 0x6d7   : > { %v9798_v20 = vmul.f32 %v9616_v27, %v18965_v24  ;;  %10454 = vmatprep.mubr.bf16.mxu0 %v9983_v40  ;;  %v9876_v42 = vadd.f32 %v17484_v56, %v9791_v26  ;;  %v9885_v48 = vadd.f32 %v17487_v22, %v17465_v1  ;;  %v9945_v33 = vmax.f32 %v9881_v59, 0.0  ;;  %v18971_v26 = vld [vmem:[#allocation27_spill] sm:$0xff] }
 0x6d8   : > { %v9879_v13 = vadd.f32 %v17479_v57, %v9794_v10  ;;  %v9938_v17 = vmax.f32 %v9874_v2, 0.0  ;;  %v9936_v14 = vmax.f32 %v9872_v58, 0.0  ;;  %v9596_v25 = vrot.slane %v17426_v44, %v18933_v41 }
 0x6d9   : > { %v9883_v49 = vadd.f32 %v17479_v57, %v9798_v20  ;;  %v9940_v12 = vmax.f32 %v9876_v42, 0.0  ;;  %v9949_v53 = vmax.f32 %v9885_v48, 0.0  ;;  %v9612_v37 = vrot.slane %v17446_v46, %v18933_v41  ;;  %v18972_v48 = vld [vmem:[#allocation31_spill] sm:$0xff] }
 0x6da   : > { %v9943_v6 = vmax.f32 %v9879_v13, 0.0  ;;  %v9982_v32 = vpack.c.bf16 %v9938_v17, %v9934_v23  ;;  %v9793_v51 = vmul.f32 %v9596_v25, %v18966_v19  ;;  %v9604_v1 = vrot.slane %v17426_v44, %v18934_v61  ;;  %v18969_v44 = vld [vmem:[#allocation64_spill] sm:$0xff]  ;;  %v18973_v25 = vld [vmem:[#allocation69_spill] sm:$0xff] }
 0x6db   : > { %v9947_v55 = vmax.f32 %v9883_v49, 0.0  ;;  %v9984_v45 = vpack.c.bf16 %v9940_v12, %v9936_v14  ;;  %v9989_v60 = vpack.c.bf16 %v9949_v53, %v9945_v33  ;;  %v9797_v29 = vmul.f32 %v9612_v37, %v18967_v50  ;;  %v18974_v37 = vld [vmem:[#allocation43_spill] sm:$0xff] }
 0x6dc   : > { %v9620_v63 = vrot.slane %v17446_v46, %v18934_v61  ;;  %10455 = vmatmul.mubr.bf16.gmra.mxu0 %v9982_v32  ;;  %v9878_v35 = vadd.f32 %v17476_v36, %v9793_v51  ;;  %v9795_v16 = vmul.f32 %v9604_v1, %v18968_v52  ;;  %v9632_v0 = vrot.slane %v17473_v8, %v18926_v47  ;;  %v18975_v1 = vld [vmem:[#allocation57_spill] sm:$0xff] }
 0x6dd   : > { %v9987_v30 = vpack.c.bf16 %v9947_v55, %v9943_v6  ;;  %10568 = vmatmul.mubr.bf16.gmra.mxu1 %v9984_v45  ;;  %v9882_v62 = vadd.f32 %v17476_v36, %v9797_v29  ;;  %v9648_v54 = vrot.slane %v17547_v39, %v18926_v47  ;;  %v9889_v46 = vadd.f32 %v17487_v22, %v17491_v11  ;;  %v18976_v29 = vld [vmem:[#allocation61_spill] sm:$0xff] }
 0x6de   : > { %v9799_v3 = vmul.f32 %v9620_v63, %v18969_v44  ;;  %10577 = vmatprep.mubr.bf16.mxu1 %v9989_v60  ;;  %v9942_v7 = vmax.f32 %v9878_v35, 0.0  ;;  %v9880_v5 = vadd.f32 %v17484_v56, %v9795_v16  ;;  %v9802_v34 = vmul.f32 %v9632_v0, %v18970_v15 }
 0x6df   : > { %10464 = vmatprep.mubr.bf16.mxu0 %v9987_v30  ;;  %v9893_v27 = vadd.f32 %v17487_v22, %v17562_v28  ;;  %v9946_v40 = vmax.f32 %v9882_v62, 0.0  ;;  %v9806_v9 = vmul.f32 %v9648_v54, %v18971_v26  ;;  %v9953_v10 = vmax.f32 %v9889_v46, 0.0  ;;  %v18977_v30 = vld [vmem:[#allocation49_spill] sm:$0xff] }
 0x6e0   : > { %v9884_v43 = vadd.f32 %v17484_v56, %v9799_v3  ;;  %v9944_v59 = vmax.f32 %v9880_v5, 0.0  ;;  %v9887_v2 = vadd.f32 %v17479_v57, %v9802_v34  ;;  %v9628_v23 = vrot.slane %v17473_v8, %v18933_v41 }
 0x6e1   : > { %v9957_v11 = vmax.f32 %v9893_v27, 0.0  ;;  %v9986_v58 = vpack.c.bf16 %v9946_v40, %v9942_v7  ;;  %v9891_v20 = vadd.f32 %v17479_v57, %v9806_v9  ;;  %v9644_v28 = vrot.slane %v17547_v39, %v18933_v41  ;;  %v18978_v40 = vld [vmem:[#allocation48_spill] sm:$0xff]  ;;  %v18979_v9 = vld [vmem:[#allocation59_spill] sm:$0xff] }
 0x6e2   : > { %v9948_v24 = vmax.f32 %v9884_v43, 0.0  ;;  %v9951_v42 = vmax.f32 %v9887_v2, 0.0  ;;  %v9801_v33 = vmul.f32 %v9628_v23, %v18972_v48  ;;  %v9636_v17 = vrot.slane %v17473_v8, %v18934_v61 }
 0x6e3   : > { %v9993_v13 = vpack.c.bf16 %v9957_v11, %v9953_v10  ;;  %v9955_v49 = vmax.f32 %v9891_v20, 0.0  ;;  %v9805_v12 = vmul.f32 %v9644_v28, %v18973_v25  ;;  %v9652_v6 = vrot.slane %v17547_v39, %v18934_v61  ;;  %v18980_v11 = vld [vmem:[#allocation52_spill] sm:$0xff] }
 0x6e4   : > { %v9988_v14 = vpack.c.bf16 %v9948_v24, %v9944_v59  ;;  %10465 = vmatmul.mubr.bf16.gmra.mxu0 %v9986_v58  ;;  %v9886_v53 = vadd.f32 %v17476_v36, %v9801_v33  ;;  %v9803_v32 = vmul.f32 %v9636_v17, %v18974_v37  ;;  %v9664_v55 = vrot.slane %v17580_v21, %v18926_v47  ;;  %v18981_v24 = vld [vmem:[#allocation62_spill] sm:$0xff]  ;;  %v13195_v17 = vld [vmem:[%s18474_s13 + $0x38] sm:$0xff]  }
 0x6e5   : > { %v9680_v19 = vrot.slane %v17608_v4, %v18926_v47  ;;  %v9991_v8 = vpack.c.bf16 %v9955_v49, %v9951_v42  ;;  %v9890_v51 = vadd.f32 %v17476_v36, %v9805_v12  ;;  %v9807_v45 = vmul.f32 %v9652_v6, %v18975_v1 }
 0x6e6   : > { %10578 = vmatmul.mubr.bf16.gmra.mxu1 %v9988_v14  ;;  %v9897_v39 = vadd.f32 %v17487_v22, %v17598_v31  ;;  %v9950_v60 = vmax.f32 %v9886_v53, 0.0  ;;  %v9888_v50 = vadd.f32 %v17484_v56, %v9803_v32  ;;  %v9810_v63 = vmul.f32 %v9664_v55, %v18976_v29  ;;  %v13197_v14 = vld [vmem:[%s18474_s13 + $0x30] sm:$0xff]  }
 0x6e7   : > { %10587 = vmatprep.mubr.bf16.mxu1 %v9993_v13  ;;  %v9814_v35 = vmul.f32 %v9680_v19, %v18977_v30  ;;  %10474 = vmatprep.mubr.bf16.mxu0 %v9991_v8  ;;  %v9954_v52 = vmax.f32 %v9890_v51, 0.0  ;;  %v9892_v16 = vadd.f32 %v17484_v56, %v9807_v45  ;;  %v9901_v0 = vadd.f32 %v17487_v22, %v17625_v38  ;;  %v13198_v51 = vld [vmem:[%s18474_s13 + $0x68] sm:$0xff]  }
 0x6e8   : > { %v9961_v62 = vmax.f32 %v9897_v39, 0.0  ;;  %v9952_v44 = vmax.f32 %v9888_v50, 0.0  ;;  %v9895_v3 = vadd.f32 %v17479_v57, %v9810_v63  ;;  %v9660_v54 = vrot.slane %v17580_v21, %v18933_v41 }
 0x6e9   : > { %v9899_v31 = vadd.f32 %v17479_v57, %v9814_v35  ;;  %v9990_v46 = vpack.c.bf16 %v9954_v52, %v9950_v60  ;;  %v9956_v7 = vmax.f32 %v9892_v16, 0.0  ;;  %v9965_v5 = vmax.f32 %v9901_v0, 0.0  ;;  %v13199_v60 = vld [vmem:[%s18474_s13 + $0x28] sm:$0xff]  }
 0x6ea   : > { %v9676_v15 = vrot.slane %v17608_v4, %v18933_v41  ;;  %v9959_v34 = vmax.f32 %v9895_v3, 0.0  ;;  %v9809_v43 = vmul.f32 %v9660_v54, %v18978_v40  ;;  %v9668_v22 = vrot.slane %v17580_v21, %v18934_v61 }
 0x6eb   : > { %v9963_v27 = vmax.f32 %v9899_v31, 0.0  ;;  %v9992_v38 = vpack.c.bf16 %v9956_v7, %v9952_v44  ;;  %v9997_v26 = vpack.c.bf16 %v9965_v5, %v9961_v62  ;;  %v9684_v10 = vrot.slane %v17608_v4, %v18934_v61 }
 0x6ec   : > { %v9813_v57 = vmul.f32 %v9676_v15, %v18979_v9  ;;  %10475 = vmatmul.mubr.bf16.gmra.mxu0 %v9990_v46  ;;  %v9894_v2 = vadd.f32 %v17476_v36, %v9809_v43  ;;  %v9811_v23 = vmul.f32 %v9668_v22, %v18980_v11 }
 0x6ed   : > { %v9995_v59 = vpack.c.bf16 %v9963_v27, %v9959_v34  ;;  %v9815_v20 = vmul.f32 %v9684_v10, %v18981_v24 }
 0x6ee   : > { %10588 = vmatmul.mubr.bf16.gmra.mxu1 %v9992_v38  ;;  %v9898_v58 = vadd.f32 %v17476_v36, %v9813_v57  ;;  %v9896_v21 = vadd.f32 %v17484_v56, %v9811_v23  ;;  %v9958_v28 = vmax.f32 %v9894_v2, 0.0  ;;  %v13194_v36 = vld [vmem:[%s18474_s13 + $0x78] sm:$0xff]  }
 0x6ef   : > { %10484 = vmatprep.mubr.bf16.mxu0 %v9995_v59  ;;  %10597 = vmatprep.mubr.bf16.mxu1 %v9997_v26  ;;  %v9900_v13 = vadd.f32 %v17484_v56, %v9815_v20  ;;  %v13196_v56 = vld [vmem:[%s18474_s13 + $0x70] sm:$0xff]  }
 0x6f0   : > { %v9962_v42 = vmax.f32 %v9898_v58, 0.0  ;;  %v9960_v4 = vmax.f32 %v9896_v21, 0.0  ;;  %12532 = vmatprep.subr.bf16.mxu0 %v13194_v36  ;;  %12596 = vmatprep.subr.bf16.mxu1 %v13194_v36 }
 0x6f1   : > { %v9964_v48 = vmax.f32 %v9900_v13, 0.0  ;;  %12533 = vmatpush3.bf16.msra.mxu0 %v13195_v17  ;;  %12604 = vmatpush3.bf16.msra.mxu1 %v13195_v17 }
 0x6f2   : > { %v9994_v61 = vpack.c.bf16 %v9962_v42, %v9958_v28  ;;  %12534 = vmatprep.subr.bf16.mxu0 %v13196_v56  ;;  %12597 = vmatprep.subr.bf16.mxu1 %v13196_v56 }
 0x6f3   : > { %v9996_v33 = vpack.c.bf16 %v9964_v48, %v9960_v4 }
 0x6f4   : > { %10485 = vmatmul.mubr.bf16.gmra.mxu0 %v9994_v61 }
 0x6f5   : > { %12535 = vmatpush3.bf16.msra.mxu0 %v13197_v14  ;;  %12605 = vmatpush3.bf16.msra.mxu1 %v13197_v14 }
 0x6f6   : > { %10598 = vmatmul.mubr.bf16.gmra.mxu1 %v9996_v33  ;;  %12536 = vmatprep.subr.bf16.mxu0 %v13198_v51 }
 0x6f7   : > { %12598 = vmatprep.subr.bf16.mxu1 %v13198_v51 }
 0x6f9   : > { %12537 = vmatpush3.bf16.msra.mxu0 %v13199_v60  ;;  %12606 = vmatpush3.bf16.msra.mxu1 %v13199_v60 }
 0x775   : > { %v10416_v49 = vpop.f32.mrf.mxu0 }
 0x777   : > { %v10418_v12 = vpop.f32.mrf.mxu0 }
 0x778   : > { %v10529_v25 = vpop.f32.mrf.mxu1 }
 0x779   : > { %v10530_v6 = vadd.f32 %v10529_v25, %v10416_v49  ;;  %v10420_v37 = vpop.f32.mrf.mxu0 }
 0x77a   : > { %v10531_v53 = vpop.f32.mrf.mxu1 }
 0x77b   : > { %v10610_v32 = vrot.slane %v10530_v6, 4  ;;  %v10532_v55 = vadd.f32 %v10531_v53, %v10418_v12  ;;  %v10422_v8 = vpop.f32.mrf.mxu0 }
 0x77c   : > { %v10533_v19 = vpop.f32.mrf.mxu1 }
 0x77d   : > { %v10611_v1 = vadd.f32 %v10610_v32, %v10530_v6  ;;  %v10616_v45 = vrot.slane %v10532_v55, 4  ;;  %v17758_v39 = vadd.f32 %v10533_v19, %v10420_v37 }
 0x77e   : > { %v10535_v50 = vpop.f32.mrf.mxu1 }
 0x77f   : > { %v10612_v29 = vrot.slane %v10611_v1, 2  ;;  %v10617_v63 = vadd.f32 %v10616_v45, %v10532_v55  ;;  %v10622_v30 = vrot.slane %v17758_v39, 4  ;;  %v17764_v35 = vadd.f32 %v10535_v50, %v10422_v8  ;;  %v10426_v52 = vpop.f32.mrf.mxu0 }
 0x780   : > { %v10539_v3 = vpop.f32.mrf.mxu1 }
 0x781   : > { %v10613_v16 = vadd.f32 %v10612_v29, %v10611_v1  ;;  %v10618_v0 = vrot.slane %v10617_v63, 2  ;;  %v10623_v62 = vadd.f32 %v10622_v30, %v17758_v39  ;;  %v10628_v44 = vrot.slane %v17764_v35, 4  ;;  %v10428_v54 = vpop.f32.mrf.mxu0  ;;  %v13201_v1 = vld [vmem:[%s18474_s13 + $0x20] sm:$0xff]  }
 0x782   : > { %v17768_v31 = vadd.f32 %v10539_v3, %v10426_v52  ;;  %v10541_v34 = vpop.f32.mrf.mxu1 }
 0x783   : > { %v10614_v46 = vrot.slane %v10613_v16, 1  ;;  %v10619_v7 = vadd.f32 %v10618_v0, %v10617_v63  ;;  %v10624_v5 = vrot.slane %v10623_v62, 2  ;;  %v10629_v15 = vadd.f32 %v10628_v44, %v17764_v35  ;;  %v10430_v43 = vpop.f32.mrf.mxu0 }
 0x784   : > { %v10634_v27 = vrot.slane %v17768_v31, 4  ;;  %v17772_v40 = vadd.f32 %v10541_v34, %v10428_v54  ;;  %v10543_v57 = vpop.f32.mrf.mxu1 }
 0x785   : > { %v10615_v22 = vadd.f32 %v10614_v46, %v10613_v16  ;;  %v10620_v38 = vrot.slane %v10619_v7, 1  ;;  %v10625_v26 = vadd.f32 %v10624_v5, %v10623_v62  ;;  %v10630_v9 = vrot.slane %v10629_v15, 2  ;;  %v10432_v11 = vpop.f32.mrf.mxu0 }
 0x786   : > { %v10635_v10 = vadd.f32 %v10634_v27, %v17768_v31  ;;  %v10640_v59 = vrot.slane %v17772_v40, 4  ;;  %v17776_v2 = vadd.f32 %v10543_v57, %v10430_v43  ;;  %v10545_v21 = vpop.f32.mrf.mxu1  ;;  %v13202_v27 = vld [vmem:[%s18474_s13 + $0x58] sm:$0xff]  }
 0x787   : > { %v10802_v23 = vmul.f32 0.125, %v10615_v22  ;;  %v10621_v58 = vadd.f32 %v10620_v38, %v10619_v7  ;;  %v10626_v24 = vrot.slane %v10625_v26, 1  ;;  %v10631_v20 = vadd.f32 %v10630_v9, %v10629_v15 }
 0x788   : > { %v10636_v28 = vrot.slane %v10635_v10, 2  ;;  %v10641_v42 = vadd.f32 %v10640_v59, %v17772_v40  ;;  %v10646_v13 = vrot.slane %v17776_v2, 4  ;;  %v17780_v61 = vadd.f32 %v10545_v21, %v10432_v11 }
 0x789   : > { %v17782_v4 = vsub.f32 %v10530_v6, %v10802_v23  ;;  %v10803_v48 = vmul.f32 0.125, %v10621_v58  ;;  %v10627_v33 = vadd.f32 %v10626_v24, %v10625_v26  ;;  %v10632_v36 = vrot.slane %v10631_v20, 1  ;;  %v13200_v6 = vld [vmem:[%s18474_s13 + $0x60] sm:$0xff]   ;;  %v13203_v26 = vld [vmem:[%s18474_s13 + $0x18] sm:$0xff]   ;;  %v17818_v11 = vpop.f32.mrf.mxu0 }
 0x78a   : > { %v10637_v17 = vadd.f32 %v10636_v28, %v10635_v10  ;;  %v10642_v56 = vrot.slane %v10641_v42, 2  ;;  %v10647_v14 = vadd.f32 %v10646_v13, %v17776_v2  ;;  %v10652_v49 = vrot.slane %v17780_v61, 4  ;;  %12538 = vmatprep.subr.bf16.mxu0 %v13200_v6  ;;  %12599 = vmatprep.subr.bf16.mxu1 %v13200_v6  ;;  %v17820_v23 = vpop.f32.mrf.mxu1  ;;  %v13205_v6 = vld [vmem:[%s18474_s13 + $0x10] sm:$0xff]  }
 0x78b   : > { %v10866_v25 = vmul.f32 %v17782_v4, %v17782_v4  ;;  %v17788_v12 = vsub.f32 %v10532_v55, %v10803_v48  ;;  %v10804_v53 = vmul.f32 0.125, %v10627_v33  ;;  %v10633_v37 = vadd.f32 %v10632_v36, %v10631_v20  ;;  %12539 = vmatpush3.bf16.msra.mxu0 %v13201_v1  ;;  %12607 = vmatpush3.bf16.msra.mxu1 %v13201_v1 }
 0x78c   : > { %v10638_v32 = vrot.slane %v10637_v17, 1  ;;  %v10643_v19 = vadd.f32 %v10642_v56, %v10641_v42  ;;  %v10648_v8 = vrot.slane %v10647_v14, 2  ;;  %v10653_v51 = vadd.f32 %v10652_v49, %v17780_v61  ;;  %12540 = vmatprep.subr.bf16.mxu0 %v13202_v27  ;;  %12600 = vmatprep.subr.bf16.mxu1 %v13202_v27 }
 0x78d   : > { %v10898_v45 = vrot.slane %v10866_v25, 4  ;;  %v10867_v55 = vmul.f32 %v17788_v12, %v17788_v12  ;;  %v17800_v60 = vsub.f32 %v17758_v39, %v10804_v53  ;;  %v10805_v50 = vmul.f32 0.125, %v10633_v37  ;;  %v10438_v53 = vpop.f32.mrf.mxu0  ;;  %v10551_v37 = vpop.f32.mrf.mxu1 }
 0x78e   : > { %v10639_v29 = vadd.f32 %v10638_v32, %v10637_v17  ;;  %v10644_v63 = vrot.slane %v10643_v19, 1  ;;  %v10649_v30 = vadd.f32 %v10648_v8, %v10647_v14  ;;  %v10654_v52 = vrot.slane %v10653_v51, 2 }
 0x78f   : > { %v10899_v16 = vadd.f32 %v10898_v45, %v10866_v25  ;;  %v10904_v0 = vrot.slane %v10867_v55, 4  ;;  %v10868_v62 = vmul.f32 %v17800_v60, %v17800_v60  ;;  %v17805_v44 = vsub.f32 %v17764_v35, %v10805_v50  ;;  %12541 = vmatpush3.bf16.msra.mxu0 %v13203_v26  ;;  %12608 = vmatpush3.bf16.msra.mxu1 %v13203_v26 }
 0x790   : > { %v10806_v3 = vmul.f32 0.125, %v10639_v29  ;;  %v10645_v39 = vadd.f32 %v10644_v63, %v10643_v19  ;;  %v10650_v54 = vrot.slane %v10649_v30, 1  ;;  %v10655_v46 = vadd.f32 %v10654_v52, %v10653_v51  ;;  %v13206_v52 = vld [vmem:[%s18474_s13 + $0x48] sm:$0xff]  }
 0x791   : > { %v10900_v7 = vrot.slane %v10899_v16, 2  ;;  %v10905_v5 = vadd.f32 %v10904_v0, %v10867_v55  ;;  %v10910_v15 = vrot.slane %v10868_v62, 4  ;;  %v10869_v34 = vmul.f32 %v17805_v44, %v17805_v44 }
 0x792   : > { %v17813_v43 = vsub.f32 %v17768_v31, %v10806_v3  ;;  %v10807_v22 = vmul.f32 0.125, %v10645_v39  ;;  %v10651_v35 = vadd.f32 %v10650_v54, %v10649_v30  ;;  %v10656_v38 = vrot.slane %v10655_v46, 1  ;;  %v10440_v3 = vpop.f32.mrf.mxu0  ;;  %v10553_v39 = vpop.f32.mrf.mxu1  ;;  %v13207_v54 = vld [vmem:[%s18474_s13 + $0x8] sm:$0xff]  }
 0x793   : > { %v10901_v9 = vadd.f32 %v10900_v7, %v10899_v16  ;;  %v10906_v57 = vrot.slane %v10905_v5, 2  ;;  %v10911_v10 = vadd.f32 %v10910_v15, %v10868_v62  ;;  %v10916_v59 = vrot.slane %v10869_v34, 4 }
 0x794   : > { %v10870_v31 = vmul.f32 %v17813_v43, %v17813_v43  ;;  %v17825_v58 = vsub.f32 %v17772_v40, %v10807_v22  ;;  %v10808_v24 = vmul.f32 0.125, %v10651_v35  ;;  %v10657_v20 = vadd.f32 %v10656_v38, %v10655_v46  ;;  %v13204_v40 = vld [vmem:[%s18474_s13 + $0x50] sm:$0xff]  }
 0x795   : > { %v10902_v21 = vrot.slane %v10901_v9, 1  ;;  %v10907_v28 = vadd.f32 %v10906_v57, %v10905_v5  ;;  %v10912_v42 = vrot.slane %v10911_v10, 2  ;;  %v10917_v13 = vadd.f32 %v10916_v59, %v10869_v34  ;;  %12542 = vmatprep.subr.bf16.mxu0 %v13204_v40  ;;  %12601 = vmatprep.subr.bf16.mxu1 %v13204_v40  ;;  %v13208_v57 = vld [vmem:[%s18474_s13 + $0x40] sm:$0xff]  }
 0x796   : > { %v10922_v48 = vrot.slane %v10870_v31, 4  ;;  %v10871_v33 = vmul.f32 %v17825_v58, %v17825_v58  ;;  %v17830_v36 = vsub.f32 %v17776_v2, %v10808_v24  ;;  %v10809_v17 = vmul.f32 0.125, %v10657_v20  ;;  %12543 = vmatpush3.bf16.msra.mxu0 %v13205_v6  ;;  %12609 = vmatpush3.bf16.msra.mxu1 %v13205_v6  ;;  %v10442_v24 = vpop.f32.mrf.mxu0  ;;  %v10555_v20 = vpop.f32.mrf.mxu1 }
 0x797   : > { %v10903_v56 = vadd.f32 %v10902_v21, %v10901_v9  ;;  %v10908_v14 = vrot.slane %v10907_v28, 1  ;;  %v10913_v49 = vadd.f32 %v10912_v42, %v10911_v10  ;;  %v10918_v25 = vrot.slane %v10917_v13, 2  ;;  %12544 = vmatprep.subr.bf16.mxu0 %v13206_v52  ;;  %12602 = vmatprep.subr.bf16.mxu1 %v13206_v52  ;;  %v13209_v21 = vld [vmem:[%s18474_s13] sm:$0xff]  }
 0x798   : > { %v10923_v32 = vadd.f32 %v10922_v48, %v10870_v31  ;;  %v10928_v19 = vrot.slane %v10871_v33, 4  ;;  %v10872_v2 = vmul.f32 %v17830_v36, %v17830_v36  ;;  %v17841_v8 = vsub.f32 %v17780_v61, %v10809_v17 }
 0x799   : > { %v11090_v51 = vmul.f32 0.125, %v10903_v56  ;;  %v10909_v1 = vadd.f32 %v10908_v14, %v10907_v28  ;;  %v10914_v45 = vrot.slane %v10913_v49, 1  ;;  %v10919_v55 = vadd.f32 %v10918_v25, %v10917_v13 }
 0x79a   : > { %v10924_v50 = vrot.slane %v10923_v32, 2  ;;  %v10929_v29 = vadd.f32 %v10928_v19, %v10871_v33  ;;  %v10934_v63 = vrot.slane %v10872_v2, 4  ;;  %v10873_v30 = vmul.f32 %v17841_v8, %v17841_v8  ;;  %12545 = vmatpush3.bf16.msra.mxu0 %v13207_v54  ;;  %12610 = vmatpush3.bf16.msra.mxu1 %v13207_v54  ;;  %v10559_v19 = vpop.f32.mrf.mxu1 }
 0x79b   : > { %v11122_v61 = vadd.f32 1e-05, %v11090_v51  ;;  %v11091_v16 = vmul.f32 0.125, %v10909_v1  ;;  %v10915_v0 = vadd.f32 %v10914_v45, %v10913_v49  ;;  %v10920_v62 = vrot.slane %v10919_v55, 1  ;;  %12546 = vmatprep.subr.bf16.mxu0 %v13208_v57  ;;  %12603 = vmatprep.subr.bf16.mxu1 %v13208_v57 }
 0x79c   : > { %v10925_v46 = vadd.f32 %v10924_v50, %v10923_v32  ;;  %v10930_v7 = vrot.slane %v10929_v29, 2  ;;  %v10935_v5 = vadd.f32 %v10934_v63, %v10872_v2  ;;  %v10940_v15 = vrot.slane %v10873_v30, 4  ;;  %v10446_v32 = vpop.f32.mrf.mxu0 }
 0x79d   : > { %13594 = vrsqrt.f32 %v11122_v61  ;;  %v11123_v34 = vadd.f32 1e-05, %v11091_v16  ;;  %v11092_v27 = vmul.f32 0.125, %v10915_v0  ;;  %v10921_v22 = vadd.f32 %v10920_v62, %v10919_v55 }
 0x79e   : > { %v10926_v35 = vrot.slane %v10925_v46, 1  ;;  %v10931_v38 = vadd.f32 %v10930_v7, %v10929_v29  ;;  %v10936_v26 = vrot.slane %v10935_v5, 2  ;;  %v10941_v9 = vadd.f32 %v10940_v15, %v10873_v30  ;;  %12547 = vmatpush3.bf16.msra.mxu0 %v13209_v21  ;;  %12611 = vmatpush3.bf16.msra.mxu1 %v13209_v21  ;;  %v10448_v62 = vpop.f32.mrf.mxu0 }
 0x79f   : > { %13596 = vrsqrt.f32 %v11123_v34  ;;  %v11124_v10 = vadd.f32 1e-05, %v11092_v27  ;;  %v11093_v59 = vmul.f32 0.125, %v10921_v22  ;;  %v17856_v31 = vadd.f32 %v17820_v23, %v17818_v11 }
 0x7a0   : > { %v10927_v28 = vadd.f32 %v10926_v35, %v10925_v46  ;;  %v10932_v42 = vrot.slane %v10931_v38, 1  ;;  %v10937_v13 = vadd.f32 %v10936_v26, %v10935_v5  ;;  %v10942_v48 = vrot.slane %v10941_v9, 2 }
 0x7a1   : > { %13598 = vrsqrt.f32 %v11124_v10  ;;  %v11125_v33 = vadd.f32 1e-05, %v11093_v59  ;;  %v10658_v17 = vrot.slane %v17856_v31, 4  ;;  %v17862_v40 = vadd.f32 %v10551_v37, %v10438_v53 }
 0x7a2   : > { %v11094_v11 = vmul.f32 0.125, %v10927_v28  ;;  %v10933_v23 = vadd.f32 %v10932_v42, %v10931_v38  ;;  %v10938_v56 = vrot.slane %v10937_v13, 1  ;;  %v10943_v14 = vadd.f32 %v10942_v48, %v10941_v9  ;;  %v10450_v48 = vpop.f32.mrf.mxu0 }
 0x7a3   : > { %13600 = vrsqrt.f32 %v11125_v33  ;;  %v10659_v49 = vadd.f32 %v10658_v17, %v17856_v31  ;;  %v10664_v25 = vrot.slane %v17862_v40, 4  ;;  %v17866_v6 = vadd.f32 %v10553_v39, %v10440_v3  ;;  %v10561_v3 = vpop.f32.mrf.mxu1 }
 0x7a4   : > { %v11126_v2 = vadd.f32 1e-05, %v11094_v11  ;;  %v11095_v51 = vmul.f32 0.125, %v10933_v23  ;;  %v10939_v1 = vadd.f32 %v10938_v56, %v10937_v13  ;;  %v10944_v53 = vrot.slane %v10943_v14, 1 }
 0x7a5   : > { %v10660_v37 = vrot.slane %v10659_v49, 2  ;;  %v10665_v45 = vadd.f32 %v10664_v25, %v17862_v40  ;;  %v10670_v55 = vrot.slane %v17866_v6, 4  ;;  %v17870_v50 = vadd.f32 %v10555_v20, %v10442_v24  ;;  %v10563_v33 = vpop.f32.mrf.mxu1 }
 0x7a6   : > { %13602 = vrsqrt.f32 %v11126_v2  ;;  %v11127_v29 = vadd.f32 1e-05, %v11095_v51  ;;  %v11096_v63 = vmul.f32 0.125, %v10939_v1  ;;  %v10945_v30 = vadd.f32 %v10944_v53, %v10943_v14  ;;  %v17890_v2 = vld [vmem:[%s18472_s11] sm:$0x3] }
 0x7a7   : > { %v10661_v52 = vadd.f32 %v10660_v37, %v10659_v49  ;;  %v10666_v61 = vrot.slane %v10665_v45, 2  ;;  %v10671_v16 = vadd.f32 %v10670_v55, %v17866_v6  ;;  %v10676_v0 = vrot.slane %v17870_v50, 4  ;;  %v17897_v37 = vld [vmem:[%s18473_s12] sm:$0x3] }
 0x7a8   : > { %13604 = vrsqrt.f32 %v11127_v29  ;;  %v11128_v39 = vadd.f32 1e-05, %v11096_v63  ;;  %v11097_v54 = vmul.f32 0.125, %v10945_v30  ;;  %v17874_v46 = vadd.f32 %v10559_v19, %v10446_v32 }
 0x7a9   : > { %v10662_v7 = vrot.slane %v10661_v52, 1  ;;  %v10667_v5 = vadd.f32 %v10666_v61, %v10665_v45  ;;  %v10672_v15 = vrot.slane %v10671_v16, 2  ;;  %v10677_v34 = vadd.f32 %v10676_v0, %v17870_v50 }
 0x7aa   : > { %v13595_v27 = vpop.eup %13594  ;;  %13606 = vrsqrt.f32 %v11128_v39  ;;  %v11129_v22 = vadd.f32 1e-05, %v11097_v54  ;;  %v10682_v35 = vrot.slane %v17874_v46, 4  ;;  %v17878_v38 = vadd.f32 %v10561_v3, %v10448_v62 }
 0x7ab   : > { %v10663_v26 = vadd.f32 %v10662_v7, %v10661_v52  ;;  %v10668_v9 = vrot.slane %v10667_v5, 1  ;;  %v10673_v57 = vadd.f32 %v10672_v15, %v10671_v16  ;;  %v10678_v10 = vrot.slane %v10677_v34, 2 }
 0x7ac   : > { %v13597_v59 = vpop.eup %13596  ;;  %13608 = vrsqrt.f32 %v11129_v22  ;;  %v10683_v24 = vadd.f32 %v10682_v35, %v17874_v46  ;;  %v10688_v20 = vrot.slane %v17878_v38, 4  ;;  %v17892_v53 = vadd.f32 %v10563_v33, %v10450_v48 }
 0x7ad   : > { %v11218_v21 = vcombine.low %v13595_v27, %v13597_v59  ;;  %v10810_v28 = vmul.f32 0.125, %v10663_v26  ;;  %v10669_v42 = vadd.f32 %v10668_v9, %v10667_v5  ;;  %v10674_v13 = vrot.slane %v10673_v57, 1 }
 0x7ae   : > { %v13599_v17 = vpop.eup %13598  ;;  %v10679_v11 = vadd.f32 %v10678_v10, %v10677_v34  ;;  %v10684_v23 = vrot.slane %v10683_v24, 2  ;;  %v10689_v56 = vadd.f32 %v10688_v20, %v17878_v38  ;;  %v17911_v39 = vrot.slane %v17897_v37, %v18933_v41 }
 0x7af   : > { %v11225_v14 = vrot.slane %v11218_v21, %v14117_v18  ;;  %v17885_v49 = vsub.f32 %v17856_v31, %v10810_v28  ;;  %v10811_v25 = vmul.f32 0.125, %v10669_v42  ;;  %v10675_v32 = vadd.f32 %v10674_v13, %v10673_v57 }
 0x7b0   : > { %v13601_v19 = vpop.eup %13600  ;;  %v10680_v51 = vrot.slane %v10679_v11, 1  ;;  %v10685_v1 = vadd.f32 %v10684_v23, %v10683_v24  ;;  %v10690_v52 = vrot.slane %v10689_v56, 2  ;;  %v10694_v22 = vrot.slane %v17892_v53, 4 }
 0x7b1   : > { %v11232_v31 = vrot.slane %v11225_v14, %v14117_v18  ;;  %v11233_v45 = vcombine.low %v13599_v17, %v13601_v19  ;;  %v10874_v55 = vmul.f32 %v17885_v49, %v17885_v49  ;;  %v17903_v29 = vsub.f32 %v17862_v40, %v10811_v25 }
 0x7b2   : > { %v10812_v63 = vmul.f32 0.125, %v10675_v32  ;;  %v10681_v30 = vadd.f32 %v10680_v51, %v10679_v11  ;;  %v10686_v7 = vrot.slane %v10685_v1, 1  ;;  %v10691_v20 = vadd.f32 %v10690_v52, %v10689_v56 }
 0x7b3   : > { %v13603_v61 = vpop.eup %13602  ;;  %v11474_v16 = vmul.f32 %v11232_v31, %v17890_v2  ;;  %v11240_v0 = vrot.slane %v11233_v45, %v14117_v18  ;;  %v10946_v62 = vrot.slane %v10874_v55, 4  ;;  %v10875_v3 = vmul.f32 %v17903_v29, %v17903_v29 }
 0x7b4   : > { %v17914_v54 = vsub.f32 %v17866_v6, %v10812_v63  ;;  %v10813_v40 = vmul.f32 0.125, %v10681_v30  ;;  %v10687_v13 = vadd.f32 %v10686_v7, %v10685_v1  ;;  %v10695_v19 = vadd.f32 %v10694_v22, %v17892_v53  ;;  %v10565_v63 = vpop.f32.mrf.mxu1 }
 0x7b5   : > { %v13605_v5 = vpop.eup %13604  ;;  %v11509_v15 = vrot.slane %v11474_v16, %v18933_v41  ;;  %v11247_v34 = vrot.slane %v11240_v0, %v14117_v18  ;;  %v10947_v27 = vadd.f32 %v10946_v62, %v10874_v55  ;;  %v10952_v26 = vrot.slane %v10875_v3, 4  ;;  %v10452_v55 = vpop.f32.mrf.mxu0 }
 0x7b6   : > { %v11248_v35 = vcombine.low %v13603_v61, %v13605_v5  ;;  %v10876_v9 = vmul.f32 %v17914_v54, %v17914_v54  ;;  %v17922_v57 = vsub.f32 %v17870_v50, %v10813_v40  ;;  %v11513_v33 = vrot.slane %v11474_v16, %v18926_v47 }
 0x7b7   : > { %v13607_v6 = vpop.eup %13606  ;;  %v11666_v10 = vmul.f32 %v11509_v15, %v17782_v4  ;;  %v11475_v59 = vmul.f32 %v11247_v34, %v17890_v2  ;;  %v10948_v24 = vrot.slane %v10947_v27, 2  ;;  %v10953_v28 = vadd.f32 %v10952_v26, %v10875_v3  ;;  %v10569_v26 = vpop.f32.mrf.mxu1 }
 0x7b8   : > { %v11255_v21 = vrot.slane %v11248_v35, %v14117_v18  ;;  %v10958_v42 = vrot.slane %v10876_v9, 4  ;;  %v10877_v50 = vmul.f32 %v17922_v57, %v17922_v57  ;;  %v10814_v61 = vmul.f32 0.125, %v10687_v13  ;;  %v10456_v35 = vpop.f32.mrf.mxu0 }
 0x7b9   : > { %v13609_v48 = vpop.eup %13608  ;;  %v11517_v17 = vrot.slane %v11475_v59, %v18933_v41  ;;  %v10949_v11 = vadd.f32 %v10948_v24, %v10947_v27  ;;  %v17932_v4 = vadd.f32 %v17911_v39, %v11666_v10  ;;  %v10954_v56 = vrot.slane %v10953_v28, 2 }
 0x7ba   : > { %v11262_v23 = vrot.slane %v11255_v21, %v14117_v18  ;;  %v10959_v14 = vadd.f32 %v10958_v42, %v10876_v9  ;;  %v11263_v25 = vcombine.low %v13607_v6, %v13609_v48  ;;  %v11521_v51 = vrot.slane %v11475_v59, %v18926_v47 }
 0x7bb   : > { %v10950_v32 = vrot.slane %v10949_v11, 1  ;;  %v11668_v1 = vmul.f32 %v11517_v17, %v17800_v60  ;;  %v10955_v31 = vadd.f32 %v10954_v56, %v10953_v28  ;;  %v10964_v52 = vrot.slane %v10877_v50, 4 }
 0x7bc   : > { %v10960_v45 = vrot.slane %v10959_v14, 2  ;;  %v10692_v16 = vrot.slane %v10691_v20, 1  ;;  %v17939_v0 = vmul.f32 %v11513_v33, %v17788_v12  ;;  %v17943_v3 = vmul.f32 %v11262_v23, %v17890_v2 }
 0x7bd   : > { %v10951_v30 = vadd.f32 %v10950_v32, %v10949_v11  ;;  %v10956_v40 = vrot.slane %v10955_v31, 1  ;;  %v17946_v7 = vrot.slane %v11263_v25, %v14117_v18  ;;  %v10965_v15 = vadd.f32 %v10964_v52, %v10877_v50  ;;  %v10458_v11 = vpop.f32.mrf.mxu0  ;;  %v10571_v50 = vpop.f32.mrf.mxu1 }
 0x7be   : > { %v10961_v5 = vadd.f32 %v10960_v45, %v10959_v14  ;;  %v17949_v34 = vmul.f32 %v11521_v51, %v17805_v44  ;;  %v17952_v27 = vadd.f32 %v17911_v39, %v11668_v1  ;;  %v17955_v22 = vsub.f32 %v17874_v46, %v10814_v61 }
 0x7bf   : > { %v11098_v60 = vmul.f32 0.125, %v10951_v30  ;;  %v10957_v12 = vadd.f32 %v10956_v40, %v10955_v31  ;;  %v10966_v10 = vrot.slane %v10965_v15, 2  ;;  %v10693_v59 = vadd.f32 %v10692_v16, %v10691_v20 }
 0x7c0   : > { %18982 = vst [vmem:[#allocation51_spill] sm:$0xff] %v17955_v22  ;;  %v10962_v6 = vrot.slane %v10961_v5, 1  ;;  %v11529_v44 = vrot.slane %v17943_v3, %v18926_v47  ;;  %v10878_v28 = vmul.f32 %v17955_v22, %v17955_v22  ;;  %v11277_v46 = vrot.slane %v17946_v7, %v14117_v18 }
 0x7c1   : > { %v11130_v9 = vadd.f32 1e-05, %v11098_v60  ;;  %v11099_v21 = vmul.f32 0.125, %v10957_v12  ;;  %v10967_v13 = vadd.f32 %v10966_v10, %v10965_v15  ;;  %v10815_v48 = vmul.f32 0.125, %v10693_v59 }
 0x7c2   : > { %v10963_v42 = vadd.f32 %v10962_v6, %v10961_v5  ;;  %v10970_v17 = vrot.slane %v10878_v28, 4  ;;  %v10696_v20 = vrot.slane %v10695_v19, 2  ;;  %v17968_v25 = vadd.f32 %v10565_v63, %v10452_v55  ;;  %v10460_v55 = vpop.f32.mrf.mxu0  ;;  %v10573_v63 = vpop.f32.mrf.mxu1 }
 0x7c3   : > { %13610 = vrsqrt.f32 %v11130_v9  ;;  %v11131_v33 = vadd.f32 1e-05, %v11099_v21  ;;  %v10968_v56 = vrot.slane %v10967_v13, 1  ;;  %v17966_v14 = vsub.f32 %v17878_v38, %v10815_v48 }
 0x7c4   : > { %v11100_v23 = vmul.f32 0.125, %v10963_v42  ;;  %v10971_v32 = vadd.f32 %v10970_v17, %v10878_v28  ;;  %v10697_v51 = vadd.f32 %v10696_v20, %v10695_v19  ;;  %v17970_v1 = vadd.f32 %v10569_v26, %v10456_v35  ;;  %v10462_v48 = vpop.f32.mrf.mxu0 }
 0x7c5   : > { %13612 = vrsqrt.f32 %v11131_v33  ;;  %v10969_v45 = vadd.f32 %v10968_v56, %v10967_v13  ;;  %v10879_v30 = vmul.f32 %v17966_v14, %v17966_v14  ;;  %v10700_v52 = vrot.slane %v17968_v25, 4  ;;  %v10575_v33 = vpop.f32.mrf.mxu1 }
 0x7c6   : > { %v11132_v31 = vadd.f32 1e-05, %v11100_v23  ;;  %v10972_v61 = vrot.slane %v10971_v32, 2  ;;  %v10698_v16 = vrot.slane %v10697_v51, 1  ;;  %v10706_v40 = vrot.slane %v17970_v1, 4  ;;  %v10466_v7 = vpop.f32.mrf.mxu0 }
 0x7c7   : > { %v17976_v38 = vadd.f32 %v10571_v50, %v10458_v11  ;;  %v11101_v60 = vmul.f32 0.125, %v10969_v45  ;;  %v10976_v19 = vrot.slane %v10879_v30, 4  ;;  %v10701_v5 = vadd.f32 %v10700_v52, %v17968_v25 }
 0x7c8   : > { %13614 = vrsqrt.f32 %v11132_v31  ;;  %v10973_v15 = vadd.f32 %v10972_v61, %v10971_v32  ;;  %v10699_v12 = vadd.f32 %v10698_v16, %v10697_v51  ;;  %v10707_v35 = vadd.f32 %v10706_v40, %v17970_v1 }
 0x7c9   : > { %v10712_v26 = vrot.slane %v17976_v38, 4  ;;  %v11133_v9 = vadd.f32 1e-05, %v11101_v60  ;;  %v10977_v6 = vadd.f32 %v10976_v19, %v10879_v30  ;;  %v10702_v10 = vrot.slane %v10701_v5, 2 }
 0x7ca   : > { %v17981_v59 = vadd.f32 %v10573_v63, %v10460_v55  ;;  %v10974_v21 = vrot.slane %v10973_v15, 1  ;;  %v10816_v28 = vmul.f32 0.125, %v10699_v12  ;;  %v10708_v42 = vrot.slane %v10707_v35, 2 }
 0x7cb   : > { %v10713_v13 = vadd.f32 %v10712_v26, %v17976_v38  ;;  %13616 = vrsqrt.f32 %v11133_v9  ;;  %v10978_v17 = vrot.slane %v10977_v6, 2  ;;  %v10703_v20 = vadd.f32 %v10702_v10, %v10701_v5 }
 0x7cc   : > { %v10718_v11 = vrot.slane %v17981_v59, 4  ;;  %v10975_v50 = vadd.f32 %v10974_v21, %v10973_v15  ;;  %v17986_v23 = vsub.f32 %v17892_v53, %v10816_v28  ;;  %v10709_v56 = vadd.f32 %v10708_v42, %v10707_v35 }
 0x7cd   : > { %v10714_v32 = vrot.slane %v10713_v13, 2  ;;  %v10979_v51 = vadd.f32 %v10978_v17, %v10977_v6  ;;  %v10704_v31 = vrot.slane %v10703_v20, 1  ;;  %v17989_v30 = vadd.f32 %v10575_v33, %v10462_v48 }
 0x7ce   : > { %18983 = vst [vmem:[#allocation66_spill] sm:$0xff] %v17986_v23  ;;  %v10719_v45 = vadd.f32 %v10718_v11, %v17981_v59  ;;  %v11102_v52 = vmul.f32 0.125, %v10975_v50  ;;  %v10880_v61 = vmul.f32 %v17986_v23, %v17986_v23  ;;  %v10710_v16 = vrot.slane %v10709_v56, 1 }
 0x7cf   : > { %v10715_v40 = vadd.f32 %v10714_v32, %v10713_v13  ;;  %v10980_v63 = vrot.slane %v10979_v51, 1  ;;  %v10705_v60 = vadd.f32 %v10704_v31, %v10703_v20  ;;  %v10724_v53 = vrot.slane %v17989_v30, 4 }
 0x7d0   : > { %v13611_v55 = vpop.eup %13610  ;;  %v10720_v19 = vrot.slane %v10719_v45, 2  ;;  %v10982_v15 = vrot.slane %v10880_v61, 4  ;;  %v10711_v12 = vadd.f32 %v10710_v16, %v10709_v56  ;;  %v11134_v42 = vadd.f32 1e-05, %v11102_v52 }
 0x7d1   : > { %v10716_v35 = vrot.slane %v10715_v40, 1  ;;  %v10981_v9 = vadd.f32 %v10980_v63, %v10979_v51  ;;  %v10817_v6 = vmul.f32 0.125, %v10705_v60  ;;  %v10725_v21 = vadd.f32 %v10724_v53, %v17989_v30 }
 0x7d2   : > { %v13613_v26 = vpop.eup %13612  ;;  %v10721_v10 = vadd.f32 %v10720_v19, %v10719_v45  ;;  %v10983_v13 = vadd.f32 %v10982_v15, %v10880_v61  ;;  %v10818_v48 = vmul.f32 0.125, %v10711_v12 }
 0x7d3   : > { %v11278_v28 = vcombine.low %v13611_v55, %v13613_v26  ;;  %v11103_v33 = vmul.f32 0.125, %v10981_v9  ;;  %v17997_v17 = vsub.f32 %v17968_v25, %v10817_v6  ;;  %v10717_v20 = vadd.f32 %v10716_v35, %v10715_v40 }
 0x7d4   : > { %v10722_v11 = vrot.slane %v10721_v10, 1  ;;  %v10984_v32 = vrot.slane %v10983_v13, 2  ;;  %v18001_v51 = vsub.f32 %v17970_v1, %v10818_v48  ;;  %v10726_v31 = vrot.slane %v10725_v21, 2 }
 0x7d5   : > { %v13615_v50 = vpop.eup %13614  ;;  %v11285_v56 = vrot.slane %v11278_v28, %v14117_v18  ;;  %v11135_v45 = vadd.f32 1e-05, %v11103_v33  ;;  %v10881_v52 = vmul.f32 %v17997_v17, %v17997_v17  ;;  %v10819_v61 = vmul.f32 0.125, %v10717_v20 }
 0x7d6   : > { %v10723_v16 = vadd.f32 %v10722_v11, %v10721_v10  ;;  %v18009_v25 = vmul.f32 %v11277_v46, %v17890_v2  ;;  %v10985_v40 = vadd.f32 %v10984_v32, %v10983_v13  ;;  %v10882_v55 = vmul.f32 %v18001_v51, %v18001_v51  ;;  %v10579_v46 = vpop.f32.mrf.mxu1 }
 0x7d7   : > { %v10727_v63 = vadd.f32 %v10726_v31, %v10725_v21  ;;  %13618 = vrsqrt.f32 %v11135_v45  ;;  %v10988_v1 = vrot.slane %v10881_v52, 4  ;;  %v18014_v60 = vsub.f32 %v17976_v38, %v10819_v61 }
 0x7d8   : > { %v10820_v19 = vmul.f32 0.125, %v10723_v16  ;;  %v13617_v53 = vpop.eup %13616  ;;  %v11292_v15 = vrot.slane %v11285_v56, %v14117_v18  ;;  %v10986_v12 = vrot.slane %v10985_v40, 1  ;;  %v10994_v35 = vrot.slane %v10882_v55, 4  ;;  %v10581_v32 = vpop.f32.mrf.mxu1 }
 0x7d9   : > { %v10728_v26 = vrot.slane %v10727_v63, 1  ;;  %13620 = vrsqrt.f32 %v11134_v42  ;;  %v10989_v9 = vadd.f32 %v10988_v1, %v10881_v52  ;;  %v10883_v6 = vmul.f32 %v18014_v60, %v18014_v60 }
 0x7da   : > { %v18020_v10 = vsub.f32 %v17981_v59, %v10820_v19  ;;  %v18026_v38 = vmul.f32 %v11529_v44, %v17825_v58  ;;  %v11537_v21 = vrot.slane %v18009_v25, %v18926_v47  ;;  %v10987_v28 = vadd.f32 %v10986_v12, %v10985_v40  ;;  %v10468_v44 = vpop.f32.mrf.mxu0 }
 0x7db   : > { %v10995_v13 = vadd.f32 %v10994_v35, %v10882_v55  ;;  %v11293_v48 = vcombine.low %v13615_v50, %v13617_v53  ;;  %v10990_v42 = vrot.slane %v10989_v9, 2  ;;  %v11000_v33 = vrot.slane %v10883_v6, 4 }
 0x7dc   : > { %v10884_v20 = vmul.f32 %v18020_v10, %v18020_v10  ;;  %v18035_v11 = vmul.f32 %v11292_v15, %v17890_v2  ;;  %v10729_v58 = vadd.f32 %v10728_v26, %v10727_v63  ;;  %v11104_v31 = vmul.f32 0.125, %v10987_v28 }
 0x7dd   : > { %v10996_v56 = vrot.slane %v10995_v13, 2  ;;  %v10991_v45 = vadd.f32 %v10990_v42, %v10989_v9  ;;  %v11001_v52 = vadd.f32 %v11000_v33, %v10883_v6  ;;  %v18038_v50 = vmul.f32 %v11537_v21, %v17841_v8  ;;  %v10470_v8 = vpop.f32.mrf.mxu0  ;;  %v10583_v9 = vpop.f32.mrf.mxu1 }
 0x7de   : > { %v11006_v61 = vrot.slane %v10884_v20, 4  ;;  %v10821_v40 = vmul.f32 0.125, %v10729_v58  ;;  %v18040_v55 = vadd.f32 %v10579_v46, %v10466_v7  ;;  %v11300_v1 = vrot.slane %v11293_v48, %v14117_v18 }
 0x7df   : > { %v10997_v16 = vadd.f32 %v10996_v56, %v10995_v13  ;;  %v10992_v19 = vrot.slane %v10991_v45, 1  ;;  %v11002_v53 = vrot.slane %v11001_v52, 2  ;;  %v11545_v7 = vrot.slane %v18035_v11, %v18926_v47 }
 0x7e0   : > { %v11007_v15 = vadd.f32 %v11006_v61, %v10884_v20  ;;  %v18046_v35 = vsub.f32 %v17989_v30, %v10821_v40  ;;  %v10730_v26 = vrot.slane %v18040_v55, 4  ;;  %v11136_v46 = vadd.f32 1e-05, %v11104_v31 }
 0x7e1   : > { %v10998_v12 = vrot.slane %v10997_v16, 1  ;;  %v10993_v6 = vadd.f32 %v10992_v19, %v10991_v45  ;;  %v11003_v21 = vadd.f32 %v11002_v53, %v11001_v52  ;;  %v11307_v30 = vrot.slane %v11300_v1, %v14117_v18  ;;  %v10472_v45 = vpop.f32.mrf.mxu0  ;;  %v10585_v52 = vpop.f32.mrf.mxu1 }
 0x7e2   : > { %v11008_v13 = vrot.slane %v11007_v15, 2  ;;  %v10885_v48 = vmul.f32 %v18046_v35, %v18046_v35  ;;  %v10731_v42 = vadd.f32 %v10730_v26, %v18040_v55  ;;  %v18055_v56 = vadd.f32 %v10581_v32, %v10468_v44 }
 0x7e3   : > { %v10999_v28 = vadd.f32 %v10998_v12, %v10997_v16  ;;  %v11105_v33 = vmul.f32 0.125, %v10993_v6  ;;  %v11004_v20 = vrot.slane %v11003_v21, 1  ;;  %13622 = vrsqrt.f32 %v11136_v46 }
 0x7e4   : > { %v13619_v58 = vpop.eup %13618  ;;  %v11009_v40 = vadd.f32 %v11008_v13, %v11007_v15  ;;  %v11012_v63 = vrot.slane %v10885_v48, 4  ;;  %v10732_v31 = vrot.slane %v10731_v42, 2  ;;  %v10736_v53 = vrot.slane %v18055_v56, 4 }
 0x7e5   : > { %v11106_v61 = vmul.f32 0.125, %v10999_v28  ;;  %v11137_v16 = vadd.f32 1e-05, %v11105_v33  ;;  %v11005_v19 = vadd.f32 %v11004_v20, %v11003_v21  ;;  %v18060_v15 = vmul.f32 %v11307_v30, %v17890_v2  ;;  %v10476_v33 = vpop.f32.mrf.mxu0  ;;  %v10589_v21 = vpop.f32.mrf.mxu1 }
 0x7e6   : > { %v13621_v12 = vpop.eup %13620  ;;  %v11010_v59 = vrot.slane %v11009_v40, 1  ;;  %v11013_v1 = vadd.f32 %v11012_v63, %v10885_v48  ;;  %v10733_v6 = vadd.f32 %v10732_v31, %v10731_v42  ;;  %v10737_v32 = vadd.f32 %v10736_v53, %v18055_v56 }
 0x7e7   : > { %v11138_v26 = vadd.f32 1e-05, %v11106_v61  ;;  %v11308_v24 = vcombine.low %v13621_v12, %v13619_v58  ;;  %13624 = vrsqrt.f32 %v11137_v16  ;;  %v11107_v44 = vmul.f32 0.125, %v11005_v19 }
 0x7e8   : > { %v11011_v28 = vadd.f32 %v11010_v59, %v11009_v40  ;;  %v11014_v13 = vrot.slane %v11013_v1, 2  ;;  %v10734_v46 = vrot.slane %v10733_v6, 1  ;;  %v10738_v5 = vrot.slane %v10737_v32, 2 }
 0x7e9   : > { %13626 = vrsqrt.f32 %v11138_v26  ;;  %v11139_v20 = vadd.f32 1e-05, %v11107_v44  ;;  %v18062_v61 = vadd.f32 %v10583_v9, %v10470_v8  ;;  %v18064_v58 = vadd.f32 %v10585_v52, %v10472_v45  ;;  %v10478_v8 = vpop.f32.mrf.mxu0  ;;  %v10591_v9 = vpop.f32.mrf.mxu1 }
 0x7ea   : > { %v11108_v63 = vmul.f32 0.125, %v11011_v28  ;;  %v11015_v48 = vadd.f32 %v11014_v13, %v11013_v1  ;;  %v10735_v42 = vadd.f32 %v10734_v46, %v10733_v6  ;;  %v11315_v31 = vrot.slane %v11308_v24, %v14117_v18 }
 0x7eb   : > { %13628 = vrsqrt.f32 %v11139_v20  ;;  %v10739_v30 = vadd.f32 %v10738_v5, %v10737_v32  ;;  %v10742_v59 = vrot.slane %v18062_v61, 4  ;;  %v18069_v40 = vmul.f32 %v11545_v7, %v17903_v29 }
 0x7ec   : > { %v11016_v16 = vrot.slane %v11015_v48, 1  ;;  %v10822_v19 = vmul.f32 0.125, %v10735_v42  ;;  %v10748_v53 = vrot.slane %v18064_v58, 4  ;;  %v11140_v45 = vadd.f32 1e-05, %v11108_v63  ;;  %v10480_v63 = vpop.f32.mrf.mxu0 }
 0x7ed   : > { %v10740_v52 = vrot.slane %v10739_v30, 1  ;;  %v10743_v24 = vadd.f32 %v10742_v59, %v18062_v61  ;;  %v11322_v1 = vrot.slane %v11315_v31, %v14117_v18  ;;  %v18082_v32 = vadd.f32 %v10589_v21, %v10476_v33 }
 0x7ee   : > { %v11017_v26 = vadd.f32 %v11016_v16, %v11015_v48  ;;  %v18078_v29 = vsub.f32 %v18040_v55, %v10822_v19  ;;  %v10749_v7 = vadd.f32 %v10748_v53, %v18064_v58  ;;  %v18086_v20 = vadd.f32 %v10591_v9, %v10478_v8  ;;  %v10593_v48 = vpop.f32.mrf.mxu1 }
 0x7ef   : > { %v10741_v6 = vadd.f32 %v10740_v52, %v10739_v30  ;;  %v10744_v44 = vrot.slane %v10743_v24, 2  ;;  %13630 = vrsqrt.f32 %v11140_v45  ;;  %v10754_v59 = vrot.slane %v18082_v32, 4 }
 0x7f0   : > { %18984 = vst [vmem:[#allocation36_spill] sm:$0xff] %v18078_v29  ;;  %v11109_v28 = vmul.f32 0.125, %v11017_v26  ;;  %v10886_v13 = vmul.f32 %v18078_v29, %v18078_v29  ;;  %v10750_v46 = vrot.slane %v10749_v7, 2  ;;  %v13623_v16 = vpop.eup %13622  ;;  %v10760_v33 = vrot.slane %v18086_v20, 4 }
 0x7f1   : > { %v10823_v55 = vmul.f32 0.125, %v10741_v6  ;;  %v10745_v42 = vadd.f32 %v10744_v44, %v10743_v24  ;;  %v10755_v8 = vadd.f32 %v10754_v59, %v18082_v32  ;;  %v18094_v9 = vadd.f32 %v10593_v48, %v10480_v63 }
 0x7f2   : > { %v11141_v31 = vadd.f32 1e-05, %v11109_v28  ;;  %v11018_v30 = vrot.slane %v10886_v13, 4  ;;  %v10751_v19 = vadd.f32 %v10750_v46, %v10749_v7  ;;  %v10761_v26 = vadd.f32 %v10760_v33, %v18086_v20 }
 0x7f3   : > { %v18091_v21 = vsub.f32 %v18055_v56, %v10823_v55  ;;  %v10746_v53 = vrot.slane %v10745_v42, 1  ;;  %v10756_v28 = vrot.slane %v10755_v8, 2  ;;  %v18100_v56 = vmul.f32 %v11322_v1, %v17890_v2 }
 0x7f4   : > { %v13625_v52 = vpop.eup %13624  ;;  %13632 = vrsqrt.f32 %v11141_v31  ;;  %v11019_v45 = vadd.f32 %v11018_v30, %v10886_v13  ;;  %v10752_v24 = vrot.slane %v10751_v19, 1  ;;  %v10762_v63 = vrot.slane %v10761_v26, 2 }
 0x7f5   : > { %v11323_v6 = vcombine.low %v13623_v16, %v13625_v52  ;;  %v10887_v7 = vmul.f32 %v18091_v21, %v18091_v21  ;;  %v10747_v44 = vadd.f32 %v10746_v53, %v10745_v42  ;;  %18985 = vst [vmem:[#allocation18_spill] sm:$0xff] %v18100_v56  ;;  %v10757_v30 = vadd.f32 %v10756_v28, %v10755_v8 }
 0x7f6   : > { %v13627_v46 = vpop.eup %13626  ;;  %v11020_v55 = vrot.slane %v11019_v45, 2  ;;  %v10753_v59 = vadd.f32 %v10752_v24, %v10751_v19  ;;  %v10763_v52 = vadd.f32 %v10762_v63, %v10761_v26  ;;  %v10766_v62 = vrot.slane %v18094_v9, 4 }
 0x7f7   : > { %v11330_v48 = vrot.slane %v11323_v6, %v14117_v18  ;;  %v11024_v31 = vrot.slane %v10887_v7, 4  ;;  %v10824_v13 = vmul.f32 0.125, %v10747_v44  ;;  %v10758_v6 = vrot.slane %v10757_v30, 1 }
 0x7f8   : > { %v13629_v12 = vpop.eup %13628  ;;  %v11021_v33 = vadd.f32 %v11020_v55, %v11019_v45  ;;  %v10825_v16 = vmul.f32 0.125, %v10753_v59  ;;  %v10764_v44 = vrot.slane %v10763_v52, 1  ;;  %v11561_v8 = vrot.slane %v18100_v56, %v18926_v47 }
 0x7f9   : > { %v11337_v42 = vrot.slane %v11330_v48, %v14117_v18  ;;  %v11338_v53 = vcombine.low %v13627_v46, %v13629_v12  ;;  %v11025_v5 = vadd.f32 %v11024_v31, %v10887_v7  ;;  %v18106_v1 = vsub.f32 %v18062_v61, %v10824_v13 }
 0x7fa   : > { %v11022_v19 = vrot.slane %v11021_v33, 1  ;;  %v18109_v24 = vsub.f32 %v18064_v58, %v10825_v16  ;;  %v10759_v7 = vadd.f32 %v10758_v6, %v10757_v30  ;;  %v10765_v46 = vadd.f32 %v10764_v44, %v10763_v52  ;;  %v10595_v44 = vpop.f32.mrf.mxu1 }
 0x7fb   : > { %18986 = vst [vmem:[#allocation67_spill] sm:$0xff] %v18106_v1  ;;  %v11345_v45 = vrot.slane %v11338_v53, %v14117_v18  ;;  %v11026_v26 = vrot.slane %v11025_v5, 2  ;;  %v10888_v28 = vmul.f32 %v18106_v1, %v18106_v1  ;;  %v18987_v58 = vrot.slane %v18060_v15, %v18926_v47 }
 0x7fc   : > { %v11023_v12 = vadd.f32 %v11022_v19, %v11021_v33  ;;  %v10889_v61 = vmul.f32 %v18109_v24, %v18109_v24  ;;  %v18125_v59 = vmul.f32 %v11337_v42, %v17890_v2  ;;  %v10767_v48 = vadd.f32 %v10766_v62, %v18094_v9  ;;  %v13631_v31 = vpop.eup %13630 }
 0x7fd   : > { %v18122_v55 = vmul.f32 %v18987_v58, %v17922_v57  ;;  %v11027_v63 = vadd.f32 %v11026_v26, %v11025_v5  ;;  %v11030_v33 = vrot.slane %v10888_v28, 4  ;;  %v10826_v53 = vmul.f32 0.125, %v10759_v7  ;;  %v10482_v57 = vpop.f32.mrf.mxu0 }
 0x7fe   : > { %18988 = vst [vmem:[#allocation68_spill] sm:$0xff] %v18125_v59  ;;  %v11110_v13 = vmul.f32 0.125, %v11023_v12  ;;  %v11036_v16 = vrot.slane %v10889_v61, 4  ;;  %v11352_v52 = vrot.slane %v11345_v45, %v14117_v18  ;;  %v10827_v6 = vmul.f32 0.125, %v10765_v46 }
 0x7ff   : > { %v11028_v19 = vrot.slane %v11027_v63, 1  ;;  %v18132_v42 = vmul.f32 %v11561_v8, %v17966_v14  ;;  %v11031_v5 = vadd.f32 %v11030_v33, %v10888_v28  ;;  %v18135_v62 = vsub.f32 %v18082_v32, %v10826_v53 }
 0x800   : > { %v11037_v26 = vadd.f32 %v11036_v16, %v10889_v61  ;;  %v11142_v58 = vadd.f32 1e-05, %v11110_v13  ;;  %v18138_v1 = vsub.f32 %v18086_v20, %v10827_v6  ;;  %v10768_v30 = vrot.slane %v10767_v48, 2  ;;  %v10486_v61 = vpop.f32.mrf.mxu0 }
 0x801   : > { %18989 = vst [vmem:[#allocation19_spill] sm:$0xff] %v18135_v62  ;;  %v13633_v12 = vpop.eup %13632  ;;  %v11029_v7 = vadd.f32 %v11028_v19, %v11027_v63  ;;  %v11032_v29 = vrot.slane %v11031_v5, 2  ;;  %v11569_v14 = vrot.slane %v18125_v59, %v18926_v47  ;;  %v11482_v8 = vmul.f32 %v11352_v52, %v17890_v2  ;;  %v10599_v63 = vpop.f32.mrf.mxu1 }
 0x802   : > { %18990 = vst [vmem:[#allocation54_spill] sm:$0xff] %v18138_v1  ;;  %v11353_v46 = vcombine.low %v13631_v31, %v13633_v12  ;;  %v11038_v56 = vrot.slane %v11037_v26, 2  ;;  %v10890_v28 = vmul.f32 %v18135_v62, %v18135_v62  ;;  %v10891_v31 = vmul.f32 %v18138_v1, %v18138_v1 }
 0x803   : > { %v11111_v32 = vmul.f32 0.125, %v11029_v7  ;;  %v11033_v13 = vadd.f32 %v11032_v29, %v11031_v5  ;;  %13634 = vrsqrt.f32 %v11142_v58  ;;  %v10769_v19 = vadd.f32 %v10768_v30, %v10767_v48  ;;  %v10601_v29 = vpop.f32.mrf.mxu1 }
 0x804   : > { %v11360_v20 = vrot.slane %v11353_v46, %v14117_v18  ;;  %v11039_v33 = vadd.f32 %v11038_v56, %v11037_v26  ;;  %v11042_v53 = vrot.slane %v10890_v28, 4  ;;  %v11048_v7 = vrot.slane %v10891_v31, 4  ;;  %v10488_v46 = vpop.f32.mrf.mxu0 }
 0x805   : > { %v11143_v16 = vadd.f32 1e-05, %v11111_v32  ;;  %v11034_v52 = vrot.slane %v11033_v13, 1  ;;  %v11573_v45 = vrot.slane %v11482_v8, %v18933_v41  ;;  %v10770_v22 = vrot.slane %v10769_v19, 1 }
 0x806   : > { %v11367_v6 = vrot.slane %v11360_v20, %v14117_v18  ;;  %v11040_v12 = vrot.slane %v11039_v33, 1  ;;  %v11043_v62 = vadd.f32 %v11042_v53, %v10890_v28  ;;  %v11049_v58 = vadd.f32 %v11048_v7, %v10891_v31  ;;  %v10603_v31 = vpop.f32.mrf.mxu1 }
 0x807   : > { %13636 = vrsqrt.f32 %v11143_v16  ;;  %v11035_v5 = vadd.f32 %v11034_v52, %v11033_v13  ;;  %v18156_v48 = vmul.f32 %v11569_v14, %v17997_v17  ;;  %v10771_v32 = vadd.f32 %v10770_v22, %v10769_v19 }
 0x808   : > { %v18153_v56 = vmul.f32 %v11367_v6, %v17890_v2  ;;  %v11041_v26 = vadd.f32 %v11040_v12, %v11039_v33  ;;  %v11044_v30 = vrot.slane %v11043_v62, 2  ;;  %v18158_v20 = vadd.f32 %v10595_v44, %v10482_v57  ;;  %v10490_v33 = vpop.f32.mrf.mxu0  ;;  %v10605_v7 = vpop.f32.mrf.mxu1 }
 0x809   : > { %v11577_v1 = vrot.slane %v11482_v8, %v18926_v47  ;;  %v11112_v16 = vmul.f32 0.125, %v11035_v5  ;;  %v18161_v53 = vadd.f32 %v10599_v63, %v10486_v61  ;;  %v11050_v23 = vrot.slane %v11049_v58, 2 }
 0x80a   : > { %v11113_v28 = vmul.f32 0.125, %v11041_v26  ;;  %v11045_v59 = vadd.f32 %v11044_v30, %v11043_v62  ;;  %v10828_v6 = vmul.f32 0.125, %v10771_v32  ;;  %v10772_v13 = vrot.slane %v18158_v20, 4 }
 0x80b   : > { %v11682_v17 = vmul.f32 %v11573_v45, %v18001_v51  ;;  %v11581_v22 = vrot.slane %v18153_v56, %v18933_v41  ;;  %v11144_v57 = vadd.f32 1e-05, %v11112_v16  ;;  %v11051_v8 = vadd.f32 %v11050_v23, %v11049_v58  ;;  %v10492_v23 = vpop.f32.mrf.mxu0 }
 0x80c   : > { %v11145_v44 = vadd.f32 1e-05, %v11113_v28  ;;  %v11046_v14 = vrot.slane %v11045_v59, 1  ;;  %v18168_v19 = vsub.f32 %v18094_v9, %v10828_v6  ;;  %v10773_v62 = vadd.f32 %v10772_v13, %v18158_v20 }
 0x80d   : > { %v18172_v61 = vmul.f32 %v11577_v1, %v18014_v60  ;;  %13638 = vrsqrt.f32 %v11144_v57  ;;  %v10778_v63 = vrot.slane %v18161_v53, 4  ;;  %v18175_v52 = vadd.f32 %v10601_v29, %v10488_v46 }
 0x80e   : > { %13640 = vrsqrt.f32 %v11145_v44  ;;  %v11047_v51 = vadd.f32 %v11046_v14, %v11045_v59  ;;  %v11052_v45 = vrot.slane %v11051_v8, 1  ;;  %v10892_v12 = vmul.f32 %v18168_v19, %v18168_v19 }
 0x80f   : > { %v11684_v9 = vmul.f32 %v11581_v22, %v18020_v10  ;;  %v10774_v5 = vrot.slane %v10773_v62, 2  ;;  %v10779_v26 = vadd.f32 %v10778_v63, %v18161_v53  ;;  %v10784_v60 = vrot.slane %v18175_v52, 4 }
 0x810   : > { %v11114_v1 = vmul.f32 0.125, %v11047_v51  ;;  %v11053_v58 = vadd.f32 %v11052_v45, %v11051_v8  ;;  %v11054_v30 = vrot.slane %v10892_v12, 4  ;;  %v18182_v46 = vadd.f32 %v10603_v31, %v10490_v33  ;;  %v13635_v29 = vpop.eup %13634 }
 0x811   : > { %v10775_v59 = vadd.f32 %v10774_v5, %v10773_v62  ;;  %v10780_v32 = vrot.slane %v10779_v26, 2  ;;  %v10785_v16 = vadd.f32 %v10784_v60, %v18175_v52  ;;  %v18185_v28 = vadd.f32 %v10605_v7, %v10492_v23 }
 0x812   : > { %v11146_v6 = vadd.f32 1e-05, %v11114_v1  ;;  %v11115_v13 = vmul.f32 0.125, %v11053_v58  ;;  %v11055_v10 = vadd.f32 %v11054_v30, %v10892_v12  ;;  %v10790_v22 = vrot.slane %v18182_v46, 4 }
 0x813   : > { %v10776_v44 = vrot.slane %v10775_v59, 1  ;;  %v10781_v14 = vadd.f32 %v10780_v32, %v10779_v26  ;;  %v10786_v63 = vrot.slane %v10785_v16, 2  ;;  %v10796_v8 = vrot.slane %v18185_v28, 4 }
 0x814   : > { %v13637_v57 = vpop.eup %13636  ;;  %13642 = vrsqrt.f32 %v11146_v6  ;;  %v11147_v31 = vadd.f32 1e-05, %v11115_v13  ;;  %v11056_v62 = vrot.slane %v11055_v10, 2  ;;  %v10791_v23 = vadd.f32 %v10790_v22, %v18182_v46 }
 0x815   : > { %v11368_v33 = vcombine.low %v13635_v29, %v13637_v57  ;;  %v10777_v51 = vadd.f32 %v10776_v44, %v10775_v59  ;;  %v10782_v45 = vrot.slane %v10781_v14, 1  ;;  %v10787_v5 = vadd.f32 %v10786_v63, %v10785_v16 }
 0x816   : > { %13644 = vrsqrt.f32 %v11147_v31  ;;  %v11057_v12 = vadd.f32 %v11056_v62, %v11055_v10  ;;  %v10797_v60 = vadd.f32 %v10796_v8, %v18185_v28  ;;  %v10792_v30 = vrot.slane %v10791_v23, 2 }
 0x817   : > { %v11375_v7 = vrot.slane %v11368_v33, %v14117_v18  ;;  %v10829_v1 = vmul.f32 0.125, %v10777_v51  ;;  %v10783_v26 = vadd.f32 %v10782_v45, %v10781_v14  ;;  %v10788_v58 = vrot.slane %v10787_v5, 1 }
 0x818   : > { %v18193_v29 = vadd.f32 %v17911_v39, %v11682_v17  ;;  %v11585_v59 = vrot.slane %v18153_v56, %v18926_v47  ;;  %v10798_v16 = vrot.slane %v10797_v60, 2  ;;  %v10793_v22 = vadd.f32 %v10792_v30, %v10791_v23 }
 0x819   : > { %v11382_v32 = vrot.slane %v11375_v7, %v14117_v18  ;;  %v18199_v6 = vsub.f32 %v18158_v20, %v10829_v1  ;;  %v10830_v13 = vmul.f32 0.125, %v10783_v26  ;;  %v10789_v10 = vadd.f32 %v10788_v58, %v10787_v5 }
 0x81a   : > { %v13639_v57 = vpop.eup %13638  ;;  %v18202_v44 = vadd.f32 %v17911_v39, %v11684_v9  ;;  %v11058_v14 = vrot.slane %v11057_v12, 1  ;;  %v10799_v63 = vadd.f32 %v10798_v16, %v10797_v60  ;;  %v18206_v17 = vrot.slane %v17897_v37, %v18926_v47 }
 0x81b   : > { %v13641_v56 = vpop.eup %13640  ;;  %v10893_v8 = vmul.f32 %v18199_v6, %v18199_v6  ;;  %v18211_v20 = vsub.f32 %v18161_v53, %v10830_v13  ;;  %v10831_v33 = vmul.f32 0.125, %v10789_v10  ;;  %v10794_v31 = vrot.slane %v10793_v22, 1 }
 0x81c   : > { %v11757_v62 = vmax.f32 %v18193_v29, 0.0  ;;  %v18215_v9 = vmul.f32 %v11585_v59, %v18046_v35  ;;  %v18218_v51 = vmul.f32 %v11382_v32, %v17890_v2  ;;  %v11383_v45 = vcombine.low %v13639_v57, %v13641_v56 }
 0x81d   : > { %v11060_v37 = vrot.slane %v10893_v8, 4  ;;  %v10894_v5 = vmul.f32 %v18211_v20, %v18211_v20  ;;  %v18223_v23 = vsub.f32 %v18175_v52, %v10831_v33  ;;  %v10795_v53 = vadd.f32 %v10794_v31, %v10793_v22 }
 0x81e   : > { %v11759_v7 = vmax.f32 %v18202_v44, 0.0  ;;  %v11059_v60 = vadd.f32 %v11058_v14, %v11057_v12  ;;  %v10800_v1 = vrot.slane %v10799_v63, 1  ;;  %v11710_v35 = vadd.f32 %v18206_v17, %v17939_v0 }
 0x81f   : > { %v11061_v26 = vadd.f32 %v11060_v37, %v10893_v8  ;;  %v11066_v58 = vrot.slane %v10894_v5, 4  ;;  %v10895_v2 = vmul.f32 %v18223_v23, %v18223_v23  ;;  %v10832_v30 = vmul.f32 0.125, %v10795_v53 }
 0x820   : > { %v11390_v52 = vrot.slane %v11383_v45, %v14117_v18  ;;  %v10801_v32 = vadd.f32 %v10800_v1, %v10799_v63  ;;  %v11712_v16 = vadd.f32 %v18206_v17, %v17949_v34  ;;  %v11593_v57 = vrot.slane %v18218_v51, %v18926_v47 }
 0x821   : > { %v13643_v12 = vpop.eup %13642  ;;  %v11062_v13 = vrot.slane %v11061_v26, 2  ;;  %v11067_v10 = vadd.f32 %v11066_v58, %v10894_v5  ;;  %v11072_v22 = vrot.slane %v10895_v2, 4  ;;  %v18236_v0 = vsub.f32 %v18182_v46, %v10832_v30 }
 0x822   : > { %v11116_v14 = vmul.f32 0.125, %v11059_v60  ;;  %v10833_v56 = vmul.f32 0.125, %v10801_v32  ;;  %v11744_v8 = vmax.f32 %v11712_v16, 0.0  ;;  %v11397_v37 = vrot.slane %v11390_v52, %v14117_v18 }
 0x823   : > { %v13645_v33 = vpop.eup %13644  ;;  %v11063_v31 = vadd.f32 %v11062_v13, %v11061_v26  ;;  %v11068_v45 = vrot.slane %v11067_v10, 2  ;;  %v11073_v63 = vadd.f32 %v11072_v22, %v10895_v2  ;;  %v10896_v34 = vmul.f32 %v18236_v0, %v18236_v0 }
 0x824   : > { %v11398_v5 = vcombine.low %v13643_v12, %v13645_v33  ;;  %v18244_v53 = vsub.f32 %v18185_v28, %v10833_v56  ;;  %v11742_v46 = vmax.f32 %v11710_v35, 0.0  ;;  %v11148_v16 = vadd.f32 1e-05, %v11116_v14  ;;  %v18252_v28 = vld [vmem:[%s18472_s11] sm:$0x3] }
 0x825   : > { %v11064_v1 = vrot.slane %v11063_v31, 1  ;;  %v11069_v58 = vadd.f32 %v11068_v45, %v11067_v10  ;;  %v11074_v30 = vrot.slane %v11073_v63, 2  ;;  %v11078_v60 = vrot.slane %v10896_v34, 4 }
 0x826   : > { %v11405_v32 = vrot.slane %v11398_v5, %v14117_v18  ;;  %v10897_v26 = vmul.f32 %v18244_v53, %v18244_v53  ;;  %v11774_v2 = vpack.c.bf16 %v11744_v8, %v11742_v46  ;;  %v18255_v35 = vmul.f32 %v18252_v28, %v11397_v37 }
 0x827   : > { %v11065_v13 = vadd.f32 %v11064_v1, %v11063_v31  ;;  %v11070_v22 = vrot.slane %v11069_v58, 1  ;;  %v11075_v59 = vadd.f32 %v11074_v30, %v11073_v63  ;;  %v11079_v52 = vadd.f32 %v11078_v60, %v10896_v34 }
 0x828   : > { %v11084_v12 = vrot.slane %v10897_v26, 4  ;;  %11956 = vmatprep.mubr.bf16.mxu0 %v11774_v2  ;;  %v18991_v10 = vmax.f32 %v17932_v4, 0.0  ;;  %v18992_v14 = vmax.f32 %v17952_v27, 0.0  ;;  %v11714_v8 = vadd.f32 %v18206_v17, %v18026_v38 }
 0x829   : > { %v11117_v33 = vmul.f32 0.125, %v11065_v13  ;;  %v11071_v31 = vadd.f32 %v11070_v22, %v11069_v58  ;;  %v11076_v45 = vrot.slane %v11075_v59, 1  ;;  %v11080_v63 = vrot.slane %v11079_v52, 2 }
 0x82a   : > { %v11773_v56 = vpack.c.bf16 %v18992_v14, %v18991_v10  ;;  %v11412_v34 = vrot.slane %v11405_v32, %v14117_v18  ;;  %13646 = vrsqrt.f32 %v11148_v16  ;;  %v11085_v5 = vadd.f32 %v11084_v12, %v10897_v26 }
 0x82b   : > { %v11716_v37 = vadd.f32 %v18206_v17, %v18038_v50  ;;  %v11149_v46 = vadd.f32 1e-05, %v11117_v33  ;;  %v11118_v4 = vmul.f32 0.125, %v11071_v31  ;;  %v11077_v1 = vadd.f32 %v11076_v45, %v11075_v59 }
 0x82c   : > { %11957 = vmatmul.mubr.bf16.vlgmr.msra.gmra.mxu0 %v11773_v56  ;;  %v11081_v27 = vadd.f32 %v11080_v63, %v11079_v52  ;;  %v11601_v30 = vrot.slane %v18255_v35, %v18926_v47  ;;  %v11086_v38 = vrot.slane %v11085_v5, 2  ;;  %v11746_v60 = vmax.f32 %v11714_v8, 0.0 }
 0x82d   : > { %v11748_v58 = vmax.f32 %v11716_v37, 0.0  ;;  %13648 = vrsqrt.f32 %v11149_v46  ;;  %v11150_v2 = vadd.f32 1e-05, %v11118_v4  ;;  %v11119_v13 = vmul.f32 0.125, %v11077_v1 }
 0x82e   : > { %v11082_v32 = vrot.slane %v11081_v27, 1  ;;  %v18269_v16 = vmul.f32 %v18252_v28, %v11412_v34  ;;  %v11087_v26 = vadd.f32 %v11086_v38, %v11085_v5  ;;  %v18993_v50 = vrot.slane %v17943_v3, %v18933_v41 }
 0x82f   : > { %v11776_v22 = vpack.c.bf16 %v11748_v58, %v11746_v60  ;;  %13650 = vrsqrt.f32 %v11150_v2  ;;  %v11151_v52 = vadd.f32 1e-05, %v11119_v13  ;;  %v18994_v10 = vrot.slane %v18009_v25, %v18933_v41 }
 0x830   : > { %v11670_v59 = vmul.f32 %v18993_v50, %v17813_v43  ;;  %v11083_v12 = vadd.f32 %v11082_v32, %v11081_v27  ;;  %v11088_v56 = vrot.slane %v11087_v26, 1  ;;  %v11718_v33 = vadd.f32 %v18206_v17, %v18069_v40  ;;  %v18997_v32 = vld [vmem:[#allocation66_spill] sm:$0xff] }
 0x831   : > { %v11672_v14 = vmul.f32 %v18994_v10, %v17830_v36  ;;  %11964 = vmatprep.mubr.bf16.mxu0 %v11776_v22  ;;  %v11720_v31 = vadd.f32 %v18206_v17, %v18122_v55  ;;  %13652 = vrsqrt.f32 %v11151_v52  ;;  %v18995_v45 = vrot.slane %v18035_v11, %v18933_v41  ;;  %v19001_v52 = vld [vmem:[#allocation18_spill] sm:$0xff] }
 0x832   : > { %v11713_v8 = vadd.f32 %v17911_v39, %v11670_v59  ;;  %v11120_v43 = vmul.f32 0.125, %v11083_v12  ;;  %v11089_v36 = vadd.f32 %v11088_v56, %v11087_v26  ;;  %v11750_v34 = vmax.f32 %v11718_v33, 0.0  ;;  %v18998_v26 = vld [vmem:[#allocation68_spill] sm:$0xff]  ;;  %v19000_v59 = vld [vmem:[#allocation51_spill] sm:$0xff] }
 0x833   : > { %v11715_v3 = vadd.f32 %v17911_v39, %v11672_v14  ;;  %v11674_v25 = vmul.f32 %v18995_v45, %v17885_v49  ;;  %v11752_v5 = vmax.f32 %v11720_v31, 0.0  ;;  %v18996_v40 = vrot.slane %v18060_v15, %v18933_v41 }
 0x834   : > { %v11745_v63 = vmax.f32 %v11713_v8, 0.0  ;;  %v11152_v37 = vadd.f32 1e-05, %v11120_v43  ;;  %v11121_v1 = vmul.f32 0.125, %v11089_v36  ;;  %v11722_v38 = vadd.f32 %v18206_v17, %v18132_v42  ;;  %v19003_v43 = vld [vmem:[#allocation36_spill] sm:$0xff] }
 0x835   : > { %v11747_v46 = vmax.f32 %v11715_v3, 0.0  ;;  %v11676_v55 = vmul.f32 %v18996_v40, %v17914_v54  ;;  %v11717_v4 = vadd.f32 %v17911_v39, %v11674_v25  ;;  %v11778_v27 = vpack.c.bf16 %v11752_v5, %v11750_v34  ;;  %v19005_v34 = vld [vmem:[#allocation67_spill] sm:$0xff] }
 0x836   : > { %v11724_v49 = vadd.f32 %v18206_v17, %v18156_v48  ;;  %v11687_v11 = vmul.f32 %v11593_v57, %v18091_v21  ;;  %v11597_v60 = vrot.slane %v18255_v35, %v18933_v41  ;;  %v11689_v58 = vmul.f32 %v11601_v30, %v18109_v24 }
 0x837   : > { %v11775_v15 = vpack.c.bf16 %v11747_v46, %v11745_v63  ;;  %v11719_v54 = vadd.f32 %v17911_v39, %v11676_v55  ;;  %v11609_v2 = vrot.slane %v18269_v16, %v18926_v47  ;;  %13654 = vrsqrt.f32 %v11152_v37  ;;  %v13647_v13 = vpop.eup %13646 }
 0x838   : > { %v11153_v42 = vadd.f32 1e-05, %v11121_v1  ;;  %v18999_v21 = vrot.slane %v18998_v26, %v18933_v41  ;;  %v11726_v35 = vadd.f32 %v18206_v17, %v18172_v61  ;;  %v11728_v22 = vadd.f32 %v18206_v17, %v18215_v9 }
 0x839   : > { %11965 = vmatmul.mubr.bf16.gmra.mxu0 %v11775_v15  ;;  %v11751_v48 = vmax.f32 %v11719_v54, 0.0  ;;  %v11749_v24 = vmax.f32 %v11717_v4, 0.0  ;;  %v11754_v30 = vmax.f32 %v11722_v38, 0.0  ;;  %v11756_v50 = vmax.f32 %v11724_v49, 0.0 }
 0x83a   : > { %v11680_v57 = vmul.f32 %v18999_v21, %v18997_v32  ;;  %13656 = vrsqrt.f32 %v11153_v42  ;;  %11972 = vmatprep.mubr.bf16.mxu0 %v11778_v27  ;;  %v19002_v12 = vrot.slane %v19001_v52, %v18933_v41  ;;  %v11758_v14 = vmax.f32 %v11726_v35, 0.0  ;;  %v13649_v8 = vpop.eup %13648 }
 0x83b   : > { %v11760_v56 = vmax.f32 %v11728_v22, 0.0  ;;  %v11781_v61 = vpack.c.bf16 %v11759_v7, %v11757_v62  ;;  %v11777_v33 = vpack.c.bf16 %v11751_v48, %v11749_v24  ;;  %v11730_v9 = vadd.f32 %v18206_v17, %v11687_v11 }
 0x83c   : > { %v11678_v10 = vmul.f32 %v19002_v12, %v19000_v59  ;;  %v11732_v31 = vadd.f32 %v18206_v17, %v11689_v58  ;;  %v19004_v3 = vrot.slane %v18218_v51, %v18933_v41  ;;  %v11413_v25 = vcombine.low %v13647_v13, %v13649_v8  ;;  %v13651_v5 = vpop.eup %13650  ;;  %v19007_v13 = vld [vmem:[#allocation19_spill] sm:$0xff] }
 0x83d   : > { %v11723_v36 = vadd.f32 %v17911_v39, %v11680_v57  ;;  %v11782_v63 = vpack.c.bf16 %v11760_v56, %v11758_v14  ;;  %v11688_v29 = vmul.f32 %v11597_v60, %v19005_v34  ;;  %v11780_v44 = vpack.c.bf16 %v11756_v50, %v11754_v30  ;;  %v19006_v60 = vld [vmem:[#allocation54_spill] sm:$0xff] }
 0x83e   : > { %v11686_v45 = vmul.f32 %v19004_v3, %v19003_v43  ;;  %v11762_v62 = vmax.f32 %v11730_v9, 0.0  ;;  %v11764_v7 = vmax.f32 %v11732_v31, 0.0  ;;  %v11605_v46 = vrot.slane %v18269_v16, %v18933_v41  ;;  %v13653_v4 = vpop.eup %13652 }
 0x83f   : > { %v11420_v40 = vrot.slane %v11413_v25, %v14117_v18  ;;  %v11721_v51 = vadd.f32 %v17911_v39, %v11678_v10  ;;  %11988 = vmatprep.mubr.bf16.mxu1 %v11782_v63  ;;  %v11731_v55 = vadd.f32 %v17911_v39, %v11688_v29  ;;  %v11428_v38 = vcombine.low %v13651_v5, %v13653_v4 }
 0x840   : > { %v11729_v37 = vadd.f32 %v17911_v39, %v11686_v45  ;;  %11989 = vmatmul.mubr.bf16.vlgmr.msra.gmra.mxu1 %v11781_v61  ;;  %v11784_v1 = vpack.c.bf16 %v11764_v7, %v11762_v62  ;;  %v11755_v49 = vmax.f32 %v11723_v36, 0.0  ;;  %v11691_v15 = vmul.f32 %v11609_v2, %v19006_v60 }
 0x841   : > { %v11427_v27 = vrot.slane %v11420_v40, %v14117_v18  ;;  %11973 = vmatmul.mubr.bf16.gmra.mxu0 %v11777_v33  ;;  %v11763_v11 = vmax.f32 %v11731_v55, 0.0  ;;  %v11435_v58 = vrot.slane %v11428_v38, %v14117_v18  ;;  %v11753_v42 = vmax.f32 %v11721_v51, 0.0 }
 0x842   : > { %11980 = vmatprep.mubr.bf16.mxu0 %v11780_v44  ;;  %11996 = vmatprep.mubr.bf16.mxu1 %v11784_v1  ;;  %v11761_v16 = vmax.f32 %v11729_v37, 0.0  ;;  %v11690_v48 = vmul.f32 %v11605_v46, %v19007_v13  ;;  %v11734_v2 = vadd.f32 %v18206_v17, %v11691_v15 }
 0x843   : > { %v11487_v54 = vmul.f32 %v18252_v28, %v11427_v27  ;;  %v11442_v35 = vrot.slane %v11435_v58, %v14117_v18  ;;  %v11779_v22 = vpack.c.bf16 %v11755_v49, %v11753_v42 }
 0x844   : > { %v11783_v32 = vpack.c.bf16 %v11763_v11, %v11761_v16  ;;  %v13655_v26 = vpop.eup %13654  ;;  %v11733_v52 = vadd.f32 %v17911_v39, %v11690_v48 }
 0x845   : > { %v11613_v21 = vrot.slane %v11487_v54, %v18933_v41  ;;  %v11617_v57 = vrot.slane %v11487_v54, %v18926_v47  ;;  %v11488_v50 = vmul.f32 %v18252_v28, %v11442_v35 }
 0x846   : > { %v11765_v9 = vmax.f32 %v11733_v52, 0.0 }
 0x847   : > { %v13657_v24 = vpop.eup %13656  ;;  %v11693_v30 = vmul.f32 %v11617_v57, %v18199_v6  ;;  %v11692_v59 = vmul.f32 %v11613_v21, %v18168_v19  ;;  %v11621_v56 = vrot.slane %v11488_v50, %v18933_v41  ;;  %v11625_v61 = vrot.slane %v11488_v50, %v18926_v47 }
 0x848   : > { %v11443_v12 = vcombine.low %v13655_v26, %v13657_v24  ;;  %11997 = vmatmul.mubr.bf16.gmra.mxu1 %v11783_v32  ;;  %v11766_v6 = vmax.f32 %v11734_v2, 0.0 }
 0x849   : > { %11981 = vmatmul.mubr.bf16.gmra.mxu0 %v11779_v22  ;;  %v11736_v10 = vadd.f32 %v18206_v17, %v11693_v30  ;;  %v11735_v14 = vadd.f32 %v17911_v39, %v11692_v59  ;;  %v11695_v45 = vmul.f32 %v11625_v61, %v18223_v23  ;;  %v11694_v36 = vmul.f32 %v11621_v56, %v18211_v20 }
 0x84a   : > { %v11450_v8 = vrot.slane %v11443_v12, %v14117_v18 }
 0x84b   : > { %v11768_v33 = vmax.f32 %v11736_v10, 0.0  ;;  %v11767_v31 = vmax.f32 %v11735_v14, 0.0  ;;  %v11737_v23 = vadd.f32 %v17911_v39, %v11694_v36 }
 0x84c   : > { %v11457_v19 = vrot.slane %v11450_v8, %v14117_v18  ;;  %v11738_v18 = vadd.f32 %v18206_v17, %v11695_v45 }
 0x84d   : > { %v11786_v43 = vpack.c.bf16 %v11768_v33, %v11766_v6  ;;  %v11785_v3 = vpack.c.bf16 %v11767_v31, %v11765_v9 }
 0x84e   : > { %v11489_v25 = vmul.f32 %v18252_v28, %v11457_v19  ;;  %v11770_v44 = vmax.f32 %v11738_v18, 0.0 }
 0x84f   : > { %12004 = vmatprep.mubr.bf16.mxu1 %v11786_v43 }
 0x850   : > { %v11629_v63 = vrot.slane %v11489_v25, %v18933_v41  ;;  %v11633_v34 = vrot.slane %v11489_v25, %v18926_v47  ;;  %12005 = vmatmul.mubr.bf16.gmra.mxu1 %v11785_v3  ;;  %v11769_v41 = vmax.f32 %v11737_v23, 0.0 }
 0x852   : > { %v11697_v29 = vmul.f32 %v11633_v34, %v18244_v53  ;;  %v11696_v5 = vmul.f32 %v11629_v63, %v18236_v0  ;;  %v18374_v0 = vld [vmem:[%s18475_s14] ss:$0 sm:$0xff] }
 0x854   : > { %v11740_v28 = vadd.f32 %v18206_v17, %v11697_v29  ;;  %v11739_v20 = vadd.f32 %v17911_v39, %v11696_v5 }
 0x856   : > { %v11772_v62 = vmax.f32 %v11740_v28, 0.0  ;;  %v11771_v7 = vmax.f32 %v11739_v20, 0.0 }
 0x858   : > { %v11788_v47 = vpack.c.bf16 %v11772_v62, %v11770_v44  ;;  %v11787_v37 = vpack.c.bf16 %v11771_v7, %v11769_v41 }
 0x85a   : > { %12012 = vmatprep.mubr.bf16.mxu1 %v11788_v47 }
 0x85b   : > { %12013 = vmatmul.mubr.bf16.gmra.mxu1 %v11787_v37 }
 0x8ec   : > { %v12548_v53 = vpop.f32.mrf.mxu0 }
 0x8ee   : > { %v12549_v17 = vpop.f32.mrf.mxu0 }
 0x8ef   : > { %v12550_v46 = vadd.f32 %v12549_v17, %v12548_v53 }
 0x8f0   : > { %v12551_v39 = vpop.f32.mrf.mxu0 }
 0x8f1   : > { %v11959_v40 = vadd.f32 %v12550_v46, %v18374_v0 }
 0x8f2   : > { %v12552_v51 = vpop.f32.mrf.mxu0 }
 0x8f3   : > { %12021 = vst [vmem:[%s18377_s25] sm:$0xff] %v11959_v40  ;;  %v12553_v55 = vadd.f32 %v12552_v51, %v12551_v39 }
 0x8f5   : > { %v11962_v4 = vadd.f32 %v12553_v55, %v18374_v0 }
 0x8f7   : > { %12022 = vst [vmem:[%s18377_s25 + $0x8] sm:$0xff] %v11962_v4 }
 0x8f9   : > { %v12554_v1 = vpop.f32.mrf.mxu0 }
 0x8fb   : > { %v12555_v27 = vpop.f32.mrf.mxu0 }
 0x8fc   : > { %v12556_v38 = vadd.f32 %v12555_v27, %v12554_v1 }
 0x8fd   : > { %v12557_v49 = vpop.f32.mrf.mxu0 }
 0x8fe   : > { %v11967_v11 = vadd.f32 %v12556_v38, %v18374_v0 }
 0x8ff   : > { %v12558_v60 = vpop.f32.mrf.mxu0 }
 0x900   : > { %12023 = vst [vmem:[%s18377_s25 + $0x10] sm:$0xff] %v11967_v11  ;;  %v12559_v15 = vadd.f32 %v12558_v60, %v12557_v49  ;;  %v12572_v16 = vpop.f32.mrf.mxu1 }
 0x901   : > { %v12560_v54 = vpop.f32.mrf.mxu0 }
 0x902   : > { %v11970_v58 = vadd.f32 %v12559_v15, %v18374_v0  ;;  %v12573_v42 = vpop.f32.mrf.mxu1 }
 0x903   : > { %v12561_v13 = vpop.f32.mrf.mxu0  ;;  %v12574_v48 = vadd.f32 %v12573_v42, %v12572_v16 }
 0x904   : > { %12024 = vst [vmem:[%s18377_s25 + $0x18] sm:$0xff] %v11970_v58  ;;  %v12562_v32 = vadd.f32 %v12561_v13, %v12560_v54  ;;  %v12575_v26 = vpop.f32.mrf.mxu1 }
 0x905   : > { %v12563_v21 = vpop.f32.mrf.mxu0  ;;  %v11991_v57 = vadd.f32 %v12574_v48, %v18374_v0 }
 0x906   : > { %v11975_v35 = vadd.f32 %v12562_v32, %v18374_v0  ;;  %v12576_v22 = vpop.f32.mrf.mxu1 }
 0x907   : > { %v12564_v2 = vpop.f32.mrf.mxu0  ;;  %12029 = vst [vmem:[%s18377_s25 + $0x40] sm:$0xff] %v11991_v57  ;;  %v12577_v24 = vadd.f32 %v12576_v22, %v12575_v26 }
 0x908   : > { %12025 = vst [vmem:[%s18377_s25 + $0x20] sm:$0xff] %v11975_v35  ;;  %v12565_v30 = vadd.f32 %v12564_v2, %v12563_v21  ;;  %v12578_v50 = vpop.f32.mrf.mxu1 }
 0x909   : > { %v12566_v59 = vpop.f32.mrf.mxu0  ;;  %v11994_v52 = vadd.f32 %v12577_v24, %v18374_v0 }
 0x90a   : > { %v11978_v12 = vadd.f32 %v12565_v30, %v18374_v0  ;;  %v12579_v10 = vpop.f32.mrf.mxu1 }
 0x90b   : > { %v12567_v14 = vpop.f32.mrf.mxu0  ;;  %12030 = vst [vmem:[%s18377_s25 + $0x48] sm:$0xff] %v11994_v52  ;;  %v12580_v56 = vadd.f32 %v12579_v10, %v12578_v50 }
 0x90c   : > { %12026 = vst [vmem:[%s18377_s25 + $0x28] sm:$0xff] %v11978_v12  ;;  %v12568_v61 = vadd.f32 %v12567_v14, %v12566_v59  ;;  %v12581_v8 = vpop.f32.mrf.mxu1 }
 0x90d   : > { %v12569_v6 = vpop.f32.mrf.mxu0  ;;  %v11999_v33 = vadd.f32 %v12580_v56, %v18374_v0 }
 0x90e   : > { %v11983_v9 = vadd.f32 %v12568_v61, %v18374_v0  ;;  %v12582_v31 = vpop.f32.mrf.mxu1 }
 0x90f   : > { %v12570_v19 = vpop.f32.mrf.mxu0  ;;  %12031 = vst [vmem:[%s18377_s25 + $0x50] sm:$0xff] %v11999_v33  ;;  %v12583_v43 = vadd.f32 %v12582_v31, %v12581_v8 }
 0x910   : > { %12027 = vst [vmem:[%s18377_s25 + $0x30] sm:$0xff] %v11983_v9  ;;  %v12571_v3 = vadd.f32 %v12570_v19, %v12569_v6  ;;  %v12584_v45 = vpop.f32.mrf.mxu1 }
 0x911   : > { %v12002_v25 = vadd.f32 %v12583_v43, %v18374_v0 }
 0x912   : > { %v11986_v36 = vadd.f32 %v12571_v3, %v18374_v0  ;;  %v12585_v63 = vpop.f32.mrf.mxu1 }
 0x913   : > { %12032 = vst [vmem:[%s18377_s25 + $0x58] sm:$0xff] %v12002_v25  ;;  %v12586_v34 = vadd.f32 %v12585_v63, %v12584_v45 }
 0x914   : > { %12028 = vst [vmem:[%s18377_s25 + $0x38] sm:$0xff] %v11986_v36  ;;  %v12587_v29 = vpop.f32.mrf.mxu1 }
 0x915   : > { %v12007_v18 = vadd.f32 %v12586_v34, %v18374_v0 }
 0x916   : > { %v12588_v5 = vpop.f32.mrf.mxu1 }
 0x917   : > { %12033 = vst [vmem:[%s18377_s25 + $0x60] sm:$0xff] %v12007_v18  ;;  %v12589_v23 = vadd.f32 %v12588_v5, %v12587_v29 }
 0x919   : > { %v12010_v28 = vadd.f32 %v12589_v23, %v18374_v0 }
 0x91b   : > { %12034 = vst [vmem:[%s18377_s25 + $0x68] sm:$0xff] %v12010_v28  ;;  %v12590_v20 = vpop.f32.mrf.mxu1 }
 0x91d   : > { %v12591_v44 = vpop.f32.mrf.mxu1 }
 0x91e   : > { %v12592_v62 = vadd.f32 %v12591_v44, %v12590_v20 }
 0x91f   : > { %v12593_v41 = vpop.f32.mrf.mxu1 }
 0x920   : > { %v12015_v7 = vadd.f32 %v12592_v62, %v18374_v0 }
 0x921   : > { %v12594_v47 = vpop.f32.mrf.mxu1 }
 0x922   : > { %12035 = vst [vmem:[%s18377_s25 + $0x70] sm:$0xff] %v12015_v7  ;;  %v12595_v37 = vadd.f32 %v12594_v47, %v12593_v41 }
 0x924   : > { %v12018_v53 = vadd.f32 %v12595_v37, %v18374_v0 }
 0x926   : > { %12036 = vst [vmem:[%s18377_s25 + $0x78] sm:$0xff] %v12018_v53 }
 0x927   : > { %13754 = shalt.err (!%p13751_p0)
}
 0x928   : > { %s13755_s23 = scalar_lea.hbm %s18413_s27, 2048  ;;  %s13759_s20 = scalar_lea.hbm %s18476_s15, 4096 }
 0x929   : > { %p13756_p6 = scmp.ne.s32.totalorder %s18413_s27, %s13755_s23  ;;  %p13760_p5 = scmp.lt.s32.totalorder %s18413_s27, %s18476_s15 }
 0x92a   : > { %p13761_p1 = scmp.lt.s32.totalorder %s13759_s20, %s13755_s23 }
 0x92b   : > { %p13757_p9 = pnand %p13756_p6, %p19008_p3 }
 0x92c   : > { %p13762_p10 = por %p13761_p1, %p13760_p5 }
 0x92d   : > { %p13758_p13 = pneg %p13757_p9 }
 0x92f   : > { %p13763_p12 = pnand %p13762_p10, %p13758_p13 }
 0x931   : > { %13766 = shalt.err (!%p13763_p12)
}
 0x932   : > { %s13821_s22 = smov 128   ;;  %s13822_s30 = smov 8  }
 0x933   : > { %12624 = dma.vmem_to_hbm [thread:$0]  (%p19008_p3), %s18415_s24, 2048, %s18413_s27, %s18421_s21, %s13821_s22, %s13821_s22, %s13822_s30  }
 0x934 PF: > { %s19009_s26 = sld [smem:[#allocation14_spill]] }
 0x935   : > { %s19010_s18 = sld [smem:[#allocation12_spill]] }
 0x936   : > { %s19011_s16 = sld [smem:[#allocation17_spill]] }
 0x93a   : > { %p12646_p2 = scmp.ge.s32.totalorder %s19009_s26, 2 }
 0x93b   : > { %s12066_s25 = sand.u32 1, %s19010_s18  }
 0x93c   : > { %p19012_p4 = scmp.ne.s32.totalorder %s19011_s16, 0  ;;  %s12067_s23 = scalar_lea.sflag [#allocation4], %s12066_s25 }
 0x93e   : > { %p12637_p7 = pnand %p12646_p2, %p19012_p4 }
 0x940   : > { %p12638_p8 = pneg %p12637_p7 }
 0x942   : > { %13792 = dma.done.wait (%p12638_p8), %s12067_s23, 2048  }
 0x943   : > { %13794 = vsyncadd (%p12638_p8), %s12067_s23, 4294965248  ;;  %s19013_s21 = sld [smem:[#allocation15_spill]]  ;;  %s19016_s18 = smov %s13801_s19 }
 0x944   : > { %s19014_s20 = sld [smem:[#allocation13_spill]] }
 0x945   : > { %s19015_s29 = sld [smem:[#allocation16_spill]] }
 0x949   : > { %p27_p11 = scmp.ge.s32.totalorder %s19013_s21, 4  }
 0x94a   : > { %s19017_s19 = smov %s19014_s20 }
 0x94b   : > { %s19018_s20 = smov %s19015_s29  ;;  %29 = sbr.rel (!%p27_p11) target bundleno = 5 (0x5), region = 128 }
 0x950   :  { %12072 = vsyncpa [#allocation3], 1 }
 0x951   :  { %12074 = vsyncpa [#allocation3 + $0x1], 1 }
 0x952   :  { %12075 = vsyncpa [#allocation6], 1 }
 0x953   :  { %12076 = vsyncpa [#allocation4], 1 }
 0x954   :  { %12078 = vsyncpa [#allocation4 + $0x1], 1 }

</bundles_post_ra>
